<compile_context>
chip_gen: v7x
topology: tpu7x:2x2x1
jax: 0.10.0
libtpu: 0.0.40
codegen_flags: <defaults>
</compile_context>

<pallas_src>
import jax
import jax.numpy as jnp
from jax.experimental import pallas as pl
from jax.experimental.pallas import tpu as pltpu

# Static shapes implied by the module (28x28 input so the flatten is 32*5*5).
H0 = W0 = 28
K1, C1 = 4, 64
H1 = W1 = H0 - K1 + 1           # 25
P1 = (H1 - 3) // 2 + 1          # 12
K2, C2 = 2, 32
H2 = W2 = P1 - K2 + 1           # 11
P2 = (H2 - 3) // 2 + 1          # 5
NOUT = 10
NPAD = 128                      # lane-dense padded output width
NEG = -1e30
_ROWB = 125                     # conv1 matmul row block (5 * 125 = 625)


# ----------------------------------------------------------------------------
# Fused Pallas kernel: whole Net forward for one image per grid step
# ----------------------------------------------------------------------------
def _net_kernel(p1_ref, w1_ref, b1_ref, w2_ref, b2_ref, wl_ref, bl_ref,
                s1_ref, s2_ref, o_ref, c1_scr, m1_scr):
    f32 = jnp.float32

    # ---- conv1: im2col patches @ weight, bias + ReLU, into VMEM scratch -----
    w1 = w1_ref[...]                                    # (16, 64)
    b1 = b1_ref[...]                                    # (1, 64)
    for blk in range(H1 * W1 // _ROWB):                 # 5 blocks of 125 rows
        r0 = blk * _ROWB
        p1_blk = p1_ref[0, r0:r0 + _ROWB, :]            # (125, 16)
        acc = jnp.dot(p1_blk, w1, preferred_element_type=f32)
        c1_scr[r0:r0 + _ROWB, :] = jnp.maximum(acc + b1, 0.0)

    # ---- pool1: 3x3 / stride 2, (25,25,64) -> (12,12,64) --------------------
    # H direction: elementwise max of three 25-row (W,C) slabs.
    # W direction: exact 0/1 selection matmuls (rows 2j+d) + elementwise max.
    s1a = s1_ref[0, :, :]
    s1b = s1_ref[1, :, :]
    s1c = s1_ref[2, :, :]                               # (12, 25) each
    for i in range(P1):
        r = 2 * i * W1
        hp = jnp.maximum(
            c1_scr[r:r + W1, :],
            jnp.maximum(c1_scr[r + W1:r + 2 * W1, :],
                        c1_scr[r + 2 * W1:r + 3 * W1, :]))          # (25, 64)
        row = jnp.maximum(
            jnp.dot(s1a, hp, preferred_element_type=f32),
            jnp.maximum(jnp.dot(s1b, hp, preferred_element_type=f32),
                        jnp.dot(s1c, hp, preferred_element_type=f32)))
        m1_scr[i, :, :] = row                           # (12, 64)

    # ---- conv2 (NHWC, k=2) + ReLU, one output row at a time -----------------
    b2 = b2_ref[...]                                    # (1, 32)

    def conv2_row(h):
        acc = jnp.zeros((H2, C2), f32)
        for ki in range(K2):
            for kj in range(K2):
                lhs = m1_scr[h + ki, kj:kj + H2, :]     # (11, 64)
                acc = acc + jnp.dot(lhs, w2_ref[ki * K2 + kj, :, :],
                                    preferred_element_type=f32)
        return jnp.maximum(acc + b2, 0.0)               # (11, 32)

    # ---- pool2 fused with conv2: -> 5 rows of (5, 32) -----------------------
    s2a = s2_ref[0, :, :]
    s2b = s2_ref[1, :, :]
    s2c = s2_ref[2, :, :]                               # (5, 11) each
    m2_rows = []
    for i in range(P2):
        hp = jnp.maximum(conv2_row(2 * i),
                         jnp.maximum(conv2_row(2 * i + 1),
                                     conv2_row(2 * i + 2)))          # (11, 32)
        row = jnp.maximum(
            jnp.dot(s2a, hp, preferred_element_type=f32),
            jnp.maximum(jnp.dot(s2b, hp, preferred_element_type=f32),
                        jnp.dot(s2c, hp, preferred_element_type=f32)))
        m2_rows.append(row)                             # (5, 32)

    # ---- linear (weights pre-permuted to NHWC order, padded to 128 lanes) ---
    logits = bl_ref[...]                                # (1, 128), pads = -1e30
    for h in range(P2):
        for w in range(P2):
            logits = logits + jnp.dot(m2_rows[h][w:w + 1, :],
                                      wl_ref[h * P2 + w, :, :],
                                      preferred_element_type=f32)

    # ---- softmax over the padded lane group (pad lanes -> exp == 0) ---------
    m = jnp.max(logits, axis=-1, keepdims=True)
    e = jnp.exp(logits - m)
    o_ref[0, :, :] = e * pl.reciprocal(jnp.sum(e, axis=-1, keepdims=True))


# ----------------------------------------------------------------------------
# Host-side glue: weight pre-permutation, conv1 im2col, pool selection masks
# ----------------------------------------------------------------------------
def _prep_params(params):
    w1, b1 = params["w1"], params["b1"]
    w2, b2 = params["w2"], params["b2"]
    wl, bl = params["wl"], params["bl"]

    w1m = w1.reshape(C1, K1 * K1).T                               # (16, 64)
    b1m = b1.reshape(1, C1)
    # conv2 weights: (co, ci, ki, kj) -> blocks (ki*2+kj, ci, co)
    w2m = jnp.transpose(w2, (2, 3, 1, 0)).reshape(K2 * K2, C1, C2)  # (4, 64, 32)
    b2m = b2.reshape(1, C2)
    # linear weights: accept NHWC-flatten (h, w, c) feature order, pad to 128.
    wlp = wl.T.reshape(C2, P2, P2, NOUT).transpose(1, 2, 0, 3)
    wlp = wlp.reshape(P2 * P2, C2, NOUT)                          # (25, 32, 10)
    wlp = jnp.pad(wlp, ((0, 0), (0, 0), (0, NPAD - NOUT)))        # (25, 32, 128)
    blp = jnp.concatenate(
        [bl, jnp.full((NPAD - NOUT,), NEG, jnp.float32)]).reshape(1, NPAD)
    return w1m, b1m, w2m, b2m, wlp, blp


def _im2col_conv1(x):
    # x: (N, 1, 28, 28) -> (N, 625, 16), feature order (ki, kj)
    n = x.shape[0]
    cols = [x[:, 0, ki:ki + H1, kj:kj + W1]
            for ki in range(K1) for kj in range(K1)]
    return jnp.stack(cols, axis=-1).reshape(n, H1 * W1, K1 * K1)


def _pool_select(p, l):
    # (3, p, l) with S[d, j, k] = 1.0 iff k == 2*j + d  (exact 0/1 matrices)
    j = jnp.arange(p)[None, :, None]
    k = jnp.arange(l)[None, None, :]
    d = jnp.arange(3)[:, None, None]
    return (k == 2 * j + d).astype(jnp.float32)


# ----------------------------------------------------------------------------
# Net forward (matches the PyTorch module)
# ----------------------------------------------------------------------------
@jax.jit
def net_forward(x, params):
    n = x.shape[0]
    w1m, b1m, w2m, b2m, wlp, blp = _prep_params(params)
    p1 = _im2col_conv1(x)                    # (N, 625, 16)
    s1 = _pool_select(P1, W1)                # (3, 12, 25)
    s2 = _pool_select(P2, H2)                # (3, 5, 11)

    out = pl.pallas_call(
        _net_kernel,
        out_shape=jax.ShapeDtypeStruct((n, 1, NPAD), jnp.float32),
        grid=(n,),
        in_specs=[
            pl.BlockSpec((1, H1 * W1, K1 * K1), lambda i: (i, 0, 0)),
            pl.BlockSpec((K1 * K1, C1), lambda i: (0, 0)),
            pl.BlockSpec((1, C1), lambda i: (0, 0)),
            pl.BlockSpec((K2 * K2, C1, C2), lambda i: (0, 0, 0)),
            pl.BlockSpec((1, C2), lambda i: (0, 0)),
            pl.BlockSpec((P2 * P2, C2, NPAD), lambda i: (0, 0, 0)),
            pl.BlockSpec((1, NPAD), lambda i: (0, 0)),
            pl.BlockSpec((3, P1, W1), lambda i: (0, 0, 0)),
            pl.BlockSpec((3, P2, H2), lambda i: (0, 0, 0)),
        ],
        out_specs=pl.BlockSpec((1, 1, NPAD), lambda i: (i, 0, 0)),
        scratch_shapes=[
            pltpu.VMEM((H1 * W1, C1), jnp.float32),   # conv1 output (625, 64)
            pltpu.VMEM((P1, P1, C1), jnp.float32),    # pool1 output (12, 12, 64)
        ],
        compiler_params=pltpu.CompilerParams(
            dimension_semantics=("parallel",)),
    )(p1, w1m, b1m, w2m, b2m, wlp, blp, s1, s2)

    return out[:, 0, :NOUT]


# Pure-JAX reference (for correctness check only)
def net_forward_ref(x, params):
    w1, b1, w2, b2, wl, bl = (params["w1"], params["b1"], params["w2"],
                              params["b2"], params["wl"], params["bl"])
    dn = ("NCHW", "OIHW", "NCHW")
    c1 = jax.lax.conv_general_dilated(x, w1, (1, 1), "VALID", dimension_numbers=dn)
    c1 = jnp.maximum(c1 + b1[None, :, None, None], 0.0)
    m1 = jax.lax.reduce_window(c1, -jnp.inf, jax.lax.max,
                               (1, 1, 3, 3), (1, 1, 2, 2), "VALID")
    c2 = jax.lax.conv_general_dilated(m1, w2, (1, 1), "VALID", dimension_numbers=dn)
    c2 = jnp.maximum(c2 + b2[None, :, None, None], 0.0)
    m2 = jax.lax.reduce_window(c2, -jnp.inf, jax.lax.max,
                               (1, 1, 3, 3), (1, 1, 2, 2), "VALID")
    feat = m2.reshape(m2.shape[0], -1)
    logits = feat @ wl.T + bl
    return jax.nn.softmax(logits, axis=1)


def init_params(key):
    ks = jax.random.split(key, 6)

    def uni(k, shape, fan_in):
        bound = 1.0 / jnp.sqrt(fan_in)
        return jax.random.uniform(k, shape, jnp.float32, -bound, bound)

    return {
        "w1": uni(ks[0], (64, 1, 4, 4), 1 * 4 * 4),
        "b1": uni(ks[1], (64,), 1 * 4 * 4),
        "w2": uni(ks[2], (32, 64, 2, 2), 64 * 2 * 2),
        "b2": uni(ks[3], (32,), 64 * 2 * 2),
        "wl": uni(ks[4], (10, 32 * 5 * 5), 32 * 5 * 5),
        "bl": uni(ks[5], (10,), 32 * 5 * 5),
    }


if __name__ == "__main__":
    key = jax.random.PRNGKey(0)
    kx, kp = jax.random.split(key)
    # The forward pass requires 28x28 spatial input (so the flatten is 32*5*5).
    x = jax.random.normal(kx, (2, 1, 28, 28), jnp.float32)
    params = init_params(kp)

    out = jax.block_until_ready(net_forward(x, params))
    ref = net_forward_ref(x, params)

    assert out.shape == (2, 10)
    assert jnp.allclose(jnp.sum(out, axis=1), 1.0, atol=1e-5)
    assert jnp.allclose(out, ref, atol=1e-4, rtol=1e-4)

    print("KERNEL_OK")
</pallas_src>

<mosaic_0001>
module attributes {stable_mosaic.version = 11 : i64} {
  func.func @_net_kernel(%arg0: i32, %arg1: memref<1x625x16xf32, #tpu.memory_space<vmem>>, %arg2: memref<16x64xf32, #tpu.memory_space<vmem>>, %arg3: memref<1x64xf32, #tpu.memory_space<vmem>>, %arg4: memref<4x64x32xf32, #tpu.memory_space<vmem>>, %arg5: memref<1x32xf32, #tpu.memory_space<vmem>>, %arg6: memref<25x32x128xf32, #tpu.memory_space<vmem>>, %arg7: memref<1x128xf32, #tpu.memory_space<vmem>>, %arg8: memref<3x12x25xf32, #tpu.memory_space<vmem>>, %arg9: memref<3x5x11xf32, #tpu.memory_space<vmem>>, %arg10: memref<1x1x128xf32, #tpu.memory_space<vmem>>, %arg11: memref<625x64xf32, #tpu.memory_space<vmem>>, %arg12: memref<12x12x64xf32, #tpu.memory_space<vmem>>) attributes {dimension_semantics = [#tpu.dimension_semantics<parallel>], iteration_bounds = array<i64: 2>, scalar_prefetch = 0 : i64, scratch_operands = 2 : i64, tpu.core_type = #tpu.core_type<tc>, window_params = [{transform_indices = @transform_0, window_bounds = array<i64: 1, 625, 16>}, {pipeline_mode = #tpu.pipeline_mode<synchronous>, transform_indices = @transform_1, window_bounds = array<i64: 16, 64>}, {pipeline_mode = #tpu.pipeline_mode<synchronous>, transform_indices = @transform_2, window_bounds = array<i64: 1, 64>}, {pipeline_mode = #tpu.pipeline_mode<synchronous>, transform_indices = @transform_3, window_bounds = array<i64: 4, 64, 32>}, {pipeline_mode = #tpu.pipeline_mode<synchronous>, transform_indices = @transform_4, window_bounds = array<i64: 1, 32>}, {pipeline_mode = #tpu.pipeline_mode<synchronous>, transform_indices = @transform_5, window_bounds = array<i64: 25, 32, 128>}, {pipeline_mode = #tpu.pipeline_mode<synchronous>, transform_indices = @transform_6, window_bounds = array<i64: 1, 128>}, {pipeline_mode = #tpu.pipeline_mode<synchronous>, transform_indices = @transform_7, window_bounds = array<i64: 3, 12, 25>}, {pipeline_mode = #tpu.pipeline_mode<synchronous>, transform_indices = @transform_8, window_bounds = array<i64: 3, 5, 11>}, {transform_indices = @transform_9, window_bounds = array<i64: 1, 1, 128>}]} {
    %c0 = arith.constant 0 : index
    %c0_0 = arith.constant 0 : index
    %0 = vector.load %arg2[%c0, %c0_0] : memref<16x64xf32, #tpu.memory_space<vmem>>, vector<16x64xf32>
    %c0_1 = arith.constant 0 : index
    %c0_2 = arith.constant 0 : index
    %1 = vector.load %arg3[%c0_1, %c0_2] : memref<1x64xf32, #tpu.memory_space<vmem>>, vector<1x64xf32>
    %c0_3 = arith.constant 0 : index
    %c0_4 = arith.constant 0 : index
    %c0_5 = arith.constant 0 : index
    %2 = vector.load %arg1[%c0_3, %c0_4, %c0_5] : memref<1x625x16xf32, #tpu.memory_space<vmem>>, vector<1x125x16xf32>
    %3 = vector.shape_cast %2 : vector<1x125x16xf32> to vector<125x16xf32>
    %cst = arith.constant dense<0.000000e+00> : vector<125x64xf32>
    %4 = tpu.matmul %3, %0, %cst {dimension_numbers = #tpu.dot_dimension_numbers<[1], [0], [0], [1], [0, 0, 1, 1], [], []>} : vector<125x16xf32>, vector<16x64xf32>, vector<125x64xf32> -> vector<125x64xf32>
    %5 = vector.broadcast %1 : vector<1x64xf32> to vector<125x64xf32>
    %6 = arith.addf %4, %5 : vector<125x64xf32>
    %cst_6 = arith.constant 0.000000e+00 : f32
    %7 = vector.broadcast %cst_6 : f32 to vector<125x64xf32>
    %8 = arith.maximumf %6, %7 : vector<125x64xf32>
    %c0_7 = arith.constant 0 : index
    %c0_8 = arith.constant 0 : index
    %9 = vector.load %arg11[%c0_7, %c0_8] : memref<625x64xf32, #tpu.memory_space<vmem>>, vector<125x64xf32>
    tpu.vector_store %arg11[%c0_7, %c0_8], %8 {strides = array<i32>} : memref<625x64xf32, #tpu.memory_space<vmem>>, vector<125x64xf32>,
    %c0_9 = arith.constant 0 : index
    %c125 = arith.constant 125 : index
    %c0_10 = arith.constant 0 : index
    %10 = vector.load %arg1[%c0_9, %c125, %c0_10] : memref<1x625x16xf32, #tpu.memory_space<vmem>>, vector<1x125x16xf32>
    %11 = vector.shape_cast %10 : vector<1x125x16xf32> to vector<125x16xf32>
    %cst_11 = arith.constant dense<0.000000e+00> : vector<125x64xf32>
    %12 = tpu.matmul %11, %0, %cst_11 {dimension_numbers = #tpu.dot_dimension_numbers<[1], [0], [0], [1], [0, 0, 1, 1], [], []>} : vector<125x16xf32>, vector<16x64xf32>, vector<125x64xf32> -> vector<125x64xf32>
    %13 = vector.broadcast %1 : vector<1x64xf32> to vector<125x64xf32>
    %14 = arith.addf %12, %13 : vector<125x64xf32>
    %cst_12 = arith.constant 0.000000e+00 : f32
    %15 = vector.broadcast %cst_12 : f32 to vector<125x64xf32>
    %16 = arith.maximumf %14, %15 : vector<125x64xf32>
    %c125_13 = arith.constant 125 : index
    %c0_14 = arith.constant 0 : index
    %17 = vector.load %arg11[%c125_13, %c0_14] : memref<625x64xf32, #tpu.memory_space<vmem>>, vector<125x64xf32>
    tpu.vector_store %arg11[%c125_13, %c0_14], %16 {strides = array<i32>} : memref<625x64xf32, #tpu.memory_space<vmem>>, vector<125x64xf32>,
    %c0_15 = arith.constant 0 : index
    %c250 = arith.constant 250 : index
    %c0_16 = arith.constant 0 : index
    %18 = vector.load %arg1[%c0_15, %c250, %c0_16] : memref<1x625x16xf32, #tpu.memory_space<vmem>>, vector<1x125x16xf32>
    %19 = vector.shape_cast %18 : vector<1x125x16xf32> to vector<125x16xf32>
    %cst_17 = arith.constant dense<0.000000e+00> : vector<125x64xf32>
    %20 = tpu.matmul %19, %0, %cst_17 {dimension_numbers = #tpu.dot_dimension_numbers<[1], [0], [0], [1], [0, 0, 1, 1], [], []>} : vector<125x16xf32>, vector<16x64xf32>, vector<125x64xf32> -> vector<125x64xf32>
    %21 = vector.broadcast %1 : vector<1x64xf32> to vector<125x64xf32>
    %22 = arith.addf %20, %21 : vector<125x64xf32>
    %cst_18 = arith.constant 0.000000e+00 : f32
    %23 = vector.broadcast %cst_18 : f32 to vector<125x64xf32>
    %24 = arith.maximumf %22, %23 : vector<125x64xf32>
    %c250_19 = arith.constant 250 : index
    %c0_20 = arith.constant 0 : index
    %25 = vector.load %arg11[%c250_19, %c0_20] : memref<625x64xf32, #tpu.memory_space<vmem>>, vector<125x64xf32>
    tpu.vector_store %arg11[%c250_19, %c0_20], %24 {strides = array<i32>} : memref<625x64xf32, #tpu.memory_space<vmem>>, vector<125x64xf32>,
    %c0_21 = arith.constant 0 : index
    %c375 = arith.constant 375 : index
    %c0_22 = arith.constant 0 : index
    %26 = vector.load %arg1[%c0_21, %c375, %c0_22] : memref<1x625x16xf32, #tpu.memory_space<vmem>>, vector<1x125x16xf32>
    %27 = vector.shape_cast %26 : vector<1x125x16xf32> to vector<125x16xf32>
    %cst_23 = arith.constant dense<0.000000e+00> : vector<125x64xf32>
    %28 = tpu.matmul %27, %0, %cst_23 {dimension_numbers = #tpu.dot_dimension_numbers<[1], [0], [0], [1], [0, 0, 1, 1], [], []>} : vector<125x16xf32>, vector<16x64xf32>, vector<125x64xf32> -> vector<125x64xf32>
    %29 = vector.broadcast %1 : vector<1x64xf32> to vector<125x64xf32>
    %30 = arith.addf %28, %29 : vector<125x64xf32>
    %cst_24 = arith.constant 0.000000e+00 : f32
    %31 = vector.broadcast %cst_24 : f32 to vector<125x64xf32>
    %32 = arith.maximumf %30, %31 : vector<125x64xf32>
    %c375_25 = arith.constant 375 : index
    %c0_26 = arith.constant 0 : index
    %33 = vector.load %arg11[%c375_25, %c0_26] : memref<625x64xf32, #tpu.memory_space<vmem>>, vector<125x64xf32>
    tpu.vector_store %arg11[%c375_25, %c0_26], %32 {strides = array<i32>} : memref<625x64xf32, #tpu.memory_space<vmem>>, vector<125x64xf32>,
    %c0_27 = arith.constant 0 : index
    %c500 = arith.constant 500 : index
    %c0_28 = arith.constant 0 : index
    %34 = vector.load %arg1[%c0_27, %c500, %c0_28] : memref<1x625x16xf32, #tpu.memory_space<vmem>>, vector<1x125x16xf32>
    %35 = vector.shape_cast %34 : vector<1x125x16xf32> to vector<125x16xf32>
    %cst_29 = arith.constant dense<0.000000e+00> : vector<125x64xf32>
    %36 = tpu.matmul %35, %0, %cst_29 {dimension_numbers = #tpu.dot_dimension_numbers<[1], [0], [0], [1], [0, 0, 1, 1], [], []>} : vector<125x16xf32>, vector<16x64xf32>, vector<125x64xf32> -> vector<125x64xf32>
    %37 = vector.broadcast %1 : vector<1x64xf32> to vector<125x64xf32>
    %38 = arith.addf %36, %37 : vector<125x64xf32>
    %cst_30 = arith.constant 0.000000e+00 : f32
    %39 = vector.broadcast %cst_30 : f32 to vector<125x64xf32>
    %40 = arith.maximumf %38, %39 : vector<125x64xf32>
    %c500_31 = arith.constant 500 : index
    %c0_32 = arith.constant 0 : index
    %41 = vector.load %arg11[%c500_31, %c0_32] : memref<625x64xf32, #tpu.memory_space<vmem>>, vector<125x64xf32>
    tpu.vector_store %arg11[%c500_31, %c0_32], %40 {strides = array<i32>} : memref<625x64xf32, #tpu.memory_space<vmem>>, vector<125x64xf32>,
    %c0_33 = arith.constant 0 : index
    %c0_34 = arith.constant 0 : index
    %c0_35 = arith.constant 0 : index
    %42 = vector.load %arg8[%c0_33, %c0_34, %c0_35] : memref<3x12x25xf32, #tpu.memory_space<vmem>>, vector<1x12x25xf32>
    %43 = vector.shape_cast %42 : vector<1x12x25xf32> to vector<12x25xf32>
    %c1 = arith.constant 1 : index
    %c0_36 = arith.constant 0 : index
    %c0_37 = arith.constant 0 : index
    %44 = vector.load %arg8[%c1, %c0_36, %c0_37] : memref<3x12x25xf32, #tpu.memory_space<vmem>>, vector<1x12x25xf32>
    %45 = vector.shape_cast %44 : vector<1x12x25xf32> to vector<12x25xf32>
    %c2 = arith.constant 2 : index
    %c0_38 = arith.constant 0 : index
    %c0_39 = arith.constant 0 : index
    %46 = vector.load %arg8[%c2, %c0_38, %c0_39] : memref<3x12x25xf32, #tpu.memory_space<vmem>>, vector<1x12x25xf32>
    %47 = vector.shape_cast %46 : vector<1x12x25xf32> to vector<12x25xf32>
    %c0_40 = arith.constant 0 : index
    %c0_41 = arith.constant 0 : index
    %48 = vector.load %arg11[%c0_40, %c0_41] : memref<625x64xf32, #tpu.memory_space<vmem>>, vector<25x64xf32>
    %c25 = arith.constant 25 : index
    %c0_42 = arith.constant 0 : index
    %49 = vector.load %arg11[%c25, %c0_42] : memref<625x64xf32, #tpu.memory_space<vmem>>, vector<25x64xf32>
    %c50 = arith.constant 50 : index
    %c0_43 = arith.constant 0 : index
    %50 = vector.load %arg11[%c50, %c0_43] : memref<625x64xf32, #tpu.memory_space<vmem>>, vector<25x64xf32>
    %51 = arith.maximumf %49, %50 : vector<25x64xf32>
    %52 = arith.maximumf %48, %51 : vector<25x64xf32>
    %cst_44 = arith.constant dense<0.000000e+00> : vector<12x64xf32>
    %53 = tpu.matmul %43, %52, %cst_44 {dimension_numbers = #tpu.dot_dimension_numbers<[1], [0], [0], [1], [0, 0, 1, 1], [], []>} : vector<12x25xf32>, vector<25x64xf32>, vector<12x64xf32> -> vector<12x64xf32>
    %cst_45 = arith.constant dense<0.000000e+00> : vector<12x64xf32>
    %54 = tpu.matmul %45, %52, %cst_45 {dimension_numbers = #tpu.dot_dimension_numbers<[1], [0], [0], [1], [0, 0, 1, 1], [], []>} : vector<12x25xf32>, vector<25x64xf32>, vector<12x64xf32> -> vector<12x64xf32>
    %cst_46 = arith.constant dense<0.000000e+00> : vector<12x64xf32>
    %55 = tpu.matmul %47, %52, %cst_46 {dimension_numbers = #tpu.dot_dimension_numbers<[1], [0], [0], [1], [0, 0, 1, 1], [], []>} : vector<12x25xf32>, vector<25x64xf32>, vector<12x64xf32> -> vector<12x64xf32>
    %56 = arith.maximumf %54, %55 : vector<12x64xf32>
    %57 = arith.maximumf %53, %56 : vector<12x64xf32>
    %c0_47 = arith.constant 0 : index
    %c0_48 = arith.constant 0 : index
    %c0_49 = arith.constant 0 : index
    %58 = vector.load %arg12[%c0_47, %c0_48, %c0_49] : memref<12x12x64xf32, #tpu.memory_space<vmem>>, vector<1x12x64xf32>
    %59 = vector.shape_cast %58 : vector<1x12x64xf32> to vector<12x64xf32>
    %60 = vector.shape_cast %57 : vector<12x64xf32> to vector<1x12x64xf32>
    tpu.vector_store %arg12[%c0_47, %c0_48, %c0_49], %60 {strides = array<i32>} : memref<12x12x64xf32, #tpu.memory_space<vmem>>, vector<1x12x64xf32>,
    %c50_50 = arith.constant 50 : index
    %c0_51 = arith.constant 0 : index
    %61 = vector.load %arg11[%c50_50, %c0_51] : memref<625x64xf32, #tpu.memory_space<vmem>>, vector<25x64xf32>
    %c75 = arith.constant 75 : index
    %c0_52 = arith.constant 0 : index
    %62 = vector.load %arg11[%c75, %c0_52] : memref<625x64xf32, #tpu.memory_space<vmem>>, vector<25x64xf32>
    %c100 = arith.constant 100 : index
    %c0_53 = arith.constant 0 : index
    %63 = vector.load %arg11[%c100, %c0_53] : memref<625x64xf32, #tpu.memory_space<vmem>>, vector<25x64xf32>
    %64 = arith.maximumf %62, %63 : vector<25x64xf32>
    %65 = arith.maximumf %61, %64 : vector<25x64xf32>
    %cst_54 = arith.constant dense<0.000000e+00> : vector<12x64xf32>
    %66 = tpu.matmul %43, %65, %cst_54 {dimension_numbers = #tpu.dot_dimension_numbers<[1], [0], [0], [1], [0, 0, 1, 1], [], []>} : vector<12x25xf32>, vector<25x64xf32>, vector<12x64xf32> -> vector<12x64xf32>
    %cst_55 = arith.constant dense<0.000000e+00> : vector<12x64xf32>
    %67 = tpu.matmul %45, %65, %cst_55 {dimension_numbers = #tpu.dot_dimension_numbers<[1], [0], [0], [1], [0, 0, 1, 1], [], []>} : vector<12x25xf32>, vector<25x64xf32>, vector<12x64xf32> -> vector<12x64xf32>
    %cst_56 = arith.constant dense<0.000000e+00> : vector<12x64xf32>
    %68 = tpu.matmul %47, %65, %cst_56 {dimension_numbers = #tpu.dot_dimension_numbers<[1], [0], [0], [1], [0, 0, 1, 1], [], []>} : vector<12x25xf32>, vector<25x64xf32>, vector<12x64xf32> -> vector<12x64xf32>
    %69 = arith.maximumf %67, %68 : vector<12x64xf32>
    %70 = arith.maximumf %66, %69 : vector<12x64xf32>
    %c1_57 = arith.constant 1 : index
    %c0_58 = arith.constant 0 : index
    %c0_59 = arith.constant 0 : index
    %71 = vector.load %arg12[%c1_57, %c0_58, %c0_59] : memref<12x12x64xf32, #tpu.memory_space<vmem>>, vector<1x12x64xf32>
    %72 = vector.shape_cast %71 : vector<1x12x64xf32> to vector<12x64xf32>
    %73 = vector.shape_cast %70 : vector<12x64xf32> to vector<1x12x64xf32>
    tpu.vector_store %arg12[%c1_57, %c0_58, %c0_59], %73 {strides = array<i32>} : memref<12x12x64xf32, #tpu.memory_space<vmem>>, vector<1x12x64xf32>,
    %c100_60 = arith.constant 100 : index
    %c0_61 = arith.constant 0 : index
    %74 = vector.load %arg11[%c100_60, %c0_61] : memref<625x64xf32, #tpu.memory_space<vmem>>, vector<25x64xf32>
    %c125_62 = arith.constant 125 : index
    %c0_63 = arith.constant 0 : index
    %75 = vector.load %arg11[%c125_62, %c0_63] : memref<625x64xf32, #tpu.memory_space<vmem>>, vector<25x64xf32>
    %c150 = arith.constant 150 : index
    %c0_64 = arith.constant 0 : index
    %76 = vector.load %arg11[%c150, %c0_64] : memref<625x64xf32, #tpu.memory_space<vmem>>, vector<25x64xf32>
    %77 = arith.maximumf %75, %76 : vector<25x64xf32>
    %78 = arith.maximumf %74, %77 : vector<25x64xf32>
    %cst_65 = arith.constant dense<0.000000e+00> : vector<12x64xf32>
    %79 = tpu.matmul %43, %78, %cst_65 {dimension_numbers = #tpu.dot_dimension_numbers<[1], [0], [0], [1], [0, 0, 1, 1], [], []>} : vector<12x25xf32>, vector<25x64xf32>, vector<12x64xf32> -> vector<12x64xf32>
    %cst_66 = arith.constant dense<0.000000e+00> : vector<12x64xf32>
    %80 = tpu.matmul %45, %78, %cst_66 {dimension_numbers = #tpu.dot_dimension_numbers<[1], [0], [0], [1], [0, 0, 1, 1], [], []>} : vector<12x25xf32>, vector<25x64xf32>, vector<12x64xf32> -> vector<12x64xf32>
    %cst_67 = arith.constant dense<0.000000e+00> : vector<12x64xf32>
    %81 = tpu.matmul %47, %78, %cst_67 {dimension_numbers = #tpu.dot_dimension_numbers<[1], [0], [0], [1], [0, 0, 1, 1], [], []>} : vector<12x25xf32>, vector<25x64xf32>, vector<12x64xf32> -> vector<12x64xf32>
    %82 = arith.maximumf %80, %81 : vector<12x64xf32>
    %83 = arith.maximumf %79, %82 : vector<12x64xf32>
    %c2_68 = arith.constant 2 : index
    %c0_69 = arith.constant 0 : index
    %c0_70 = arith.constant 0 : index
    %84 = vector.load %arg12[%c2_68, %c0_69, %c0_70] : memref<12x12x64xf32, #tpu.memory_space<vmem>>, vector<1x12x64xf32>
    %85 = vector.shape_cast %84 : vector<1x12x64xf32> to vector<12x64xf32>
    %86 = vector.shape_cast %83 : vector<12x64xf32> to vector<1x12x64xf32>
    tpu.vector_store %arg12[%c2_68, %c0_69, %c0_70], %86 {strides = array<i32>} : memref<12x12x64xf32, #tpu.memory_space<vmem>>, vector<1x12x64xf32>,
    %c150_71 = arith.constant 150 : index
    %c0_72 = arith.constant 0 : index
    %87 = vector.load %arg11[%c150_71, %c0_72] : memref<625x64xf32, #tpu.memory_space<vmem>>, vector<25x64xf32>
    %c175 = arith.constant 175 : index
    %c0_73 = arith.constant 0 : index
    %88 = vector.load %arg11[%c175, %c0_73] : memref<625x64xf32, #tpu.memory_space<vmem>>, vector<25x64xf32>
    %c200 = arith.constant 200 : index
    %c0_74 = arith.constant 0 : index
    %89 = vector.load %arg11[%c200, %c0_74] : memref<625x64xf32, #tpu.memory_space<vmem>>, vector<25x64xf32>
    %90 = arith.maximumf %88, %89 : vector<25x64xf32>
    %91 = arith.maximumf %87, %90 : vector<25x64xf32>
    %cst_75 = arith.constant dense<0.000000e+00> : vector<12x64xf32>
    %92 = tpu.matmul %43, %91, %cst_75 {dimension_numbers = #tpu.dot_dimension_numbers<[1], [0], [0], [1], [0, 0, 1, 1], [], []>} : vector<12x25xf32>, vector<25x64xf32>, vector<12x64xf32> -> vector<12x64xf32>
    %cst_76 = arith.constant dense<0.000000e+00> : vector<12x64xf32>
    %93 = tpu.matmul %45, %91, %cst_76 {dimension_numbers = #tpu.dot_dimension_numbers<[1], [0], [0], [1], [0, 0, 1, 1], [], []>} : vector<12x25xf32>, vector<25x64xf32>, vector<12x64xf32> -> vector<12x64xf32>
    %cst_77 = arith.constant dense<0.000000e+00> : vector<12x64xf32>
    %94 = tpu.matmul %47, %91, %cst_77 {dimension_numbers = #tpu.dot_dimension_numbers<[1], [0], [0], [1], [0, 0, 1, 1], [], []>} : vector<12x25xf32>, vector<25x64xf32>, vector<12x64xf32> -> vector<12x64xf32>
    %95 = arith.maximumf %93, %94 : vector<12x64xf32>
    %96 = arith.maximumf %92, %95 : vector<12x64xf32>
    %c3 = arith.constant 3 : index
    %c0_78 = arith.constant 0 : index
    %c0_79 = arith.constant 0 : index
    %97 = vector.load %arg12[%c3, %c0_78, %c0_79] : memref<12x12x64xf32, #tpu.memory_space<vmem>>, vector<1x12x64xf32>
    %98 = vector.shape_cast %97 : vector<1x12x64xf32> to vector<12x64xf32>
    %99 = vector.shape_cast %96 : vector<12x64xf32> to vector<1x12x64xf32>
    tpu.vector_store %arg12[%c3, %c0_78, %c0_79], %99 {strides = array<i32>} : memref<12x12x64xf32, #tpu.memory_space<vmem>>, vector<1x12x64xf32>,
    %c200_80 = arith.constant 200 : index
    %c0_81 = arith.constant 0 : index
    %100 = vector.load %arg11[%c200_80, %c0_81] : memref<625x64xf32, #tpu.memory_space<vmem>>, vector<25x64xf32>
    %c225 = arith.constant 225 : index
    %c0_82 = arith.constant 0 : index
    %101 = vector.load %arg11[%c225, %c0_82] : memref<625x64xf32, #tpu.memory_space<vmem>>, vector<25x64xf32>
    %c250_83 = arith.constant 250 : index
    %c0_84 = arith.constant 0 : index
    %102 = vector.load %arg11[%c250_83, %c0_84] : memref<625x64xf32, #tpu.memory_space<vmem>>, vector<25x64xf32>
    %103 = arith.maximumf %101, %102 : vector<25x64xf32>
    %104 = arith.maximumf %100, %103 : vector<25x64xf32>
    %cst_85 = arith.constant dense<0.000000e+00> : vector<12x64xf32>
    %105 = tpu.matmul %43, %104, %cst_85 {dimension_numbers = #tpu.dot_dimension_numbers<[1], [0], [0], [1], [0, 0, 1, 1], [], []>} : vector<12x25xf32>, vector<25x64xf32>, vector<12x64xf32> -> vector<12x64xf32>
    %cst_86 = arith.constant dense<0.000000e+00> : vector<12x64xf32>
    %106 = tpu.matmul %45, %104, %cst_86 {dimension_numbers = #tpu.dot_dimension_numbers<[1], [0], [0], [1], [0, 0, 1, 1], [], []>} : vector<12x25xf32>, vector<25x64xf32>, vector<12x64xf32> -> vector<12x64xf32>
    %cst_87 = arith.constant dense<0.000000e+00> : vector<12x64xf32>
    %107 = tpu.matmul %47, %104, %cst_87 {dimension_numbers = #tpu.dot_dimension_numbers<[1], [0], [0], [1], [0, 0, 1, 1], [], []>} : vector<12x25xf32>, vector<25x64xf32>, vector<12x64xf32> -> vector<12x64xf32>
    %108 = arith.maximumf %106, %107 : vector<12x64xf32>
    %109 = arith.maximumf %105, %108 : vector<12x64xf32>
    %c4 = arith.constant 4 : index
    %c0_88 = arith.constant 0 : index
    %c0_89 = arith.constant 0 : index
    %110 = vector.load %arg12[%c4, %c0_88, %c0_89] : memref<12x12x64xf32, #tpu.memory_space<vmem>>, vector<1x12x64xf32>
    %111 = vector.shape_cast %110 : vector<1x12x64xf32> to vector<12x64xf32>
    %112 = vector.shape_cast %109 : vector<12x64xf32> to vector<1x12x64xf32>
    tpu.vector_store %arg12[%c4, %c0_88, %c0_89], %112 {strides = array<i32>} : memref<12x12x64xf32, #tpu.memory_space<vmem>>, vector<1x12x64xf32>,
    %c250_90 = arith.constant 250 : index
    %c0_91 = arith.constant 0 : index
    %113 = vector.load %arg11[%c250_90, %c0_91] : memref<625x64xf32, #tpu.memory_space<vmem>>, vector<25x64xf32>
    %c275 = arith.constant 275 : index
    %c0_92 = arith.constant 0 : index
    %114 = vector.load %arg11[%c275, %c0_92] : memref<625x64xf32, #tpu.memory_space<vmem>>, vector<25x64xf32>
    %c300 = arith.constant 300 : index
    %c0_93 = arith.constant 0 : index
    %115 = vector.load %arg11[%c300, %c0_93] : memref<625x64xf32, #tpu.memory_space<vmem>>, vector<25x64xf32>
    %116 = arith.maximumf %114, %115 : vector<25x64xf32>
    %117 = arith.maximumf %113, %116 : vector<25x64xf32>
    %cst_94 = arith.constant dense<0.000000e+00> : vector<12x64xf32>
    %118 = tpu.matmul %43, %117, %cst_94 {dimension_numbers = #tpu.dot_dimension_numbers<[1], [0], [0], [1], [0, 0, 1, 1], [], []>} : vector<12x25xf32>, vector<25x64xf32>, vector<12x64xf32> -> vector<12x64xf32>
    %cst_95 = arith.constant dense<0.000000e+00> : vector<12x64xf32>
    %119 = tpu.matmul %45, %117, %cst_95 {dimension_numbers = #tpu.dot_dimension_numbers<[1], [0], [0], [1], [0, 0, 1, 1], [], []>} : vector<12x25xf32>, vector<25x64xf32>, vector<12x64xf32> -> vector<12x64xf32>
    %cst_96 = arith.constant dense<0.000000e+00> : vector<12x64xf32>
    %120 = tpu.matmul %47, %117, %cst_96 {dimension_numbers = #tpu.dot_dimension_numbers<[1], [0], [0], [1], [0, 0, 1, 1], [], []>} : vector<12x25xf32>, vector<25x64xf32>, vector<12x64xf32> -> vector<12x64xf32>
    %121 = arith.maximumf %119, %120 : vector<12x64xf32>
    %122 = arith.maximumf %118, %121 : vector<12x64xf32>
    %c5 = arith.constant 5 : index
    %c0_97 = arith.constant 0 : index
    %c0_98 = arith.constant 0 : index
    %123 = vector.load %arg12[%c5, %c0_97, %c0_98] : memref<12x12x64xf32, #tpu.memory_space<vmem>>, vector<1x12x64xf32>
    %124 = vector.shape_cast %123 : vector<1x12x64xf32> to vector<12x64xf32>
    %125 = vector.shape_cast %122 : vector<12x64xf32> to vector<1x12x64xf32>
    tpu.vector_store %arg12[%c5, %c0_97, %c0_98], %125 {strides = array<i32>} : memref<12x12x64xf32, #tpu.memory_space<vmem>>, vector<1x12x64xf32>,
    %c300_99 = arith.constant 300 : index
    %c0_100 = arith.constant 0 : index
    %126 = vector.load %arg11[%c300_99, %c0_100] : memref<625x64xf32, #tpu.memory_space<vmem>>, vector<25x64xf32>
    %c325 = arith.constant 325 : index
    %c0_101 = arith.constant 0 : index
    %127 = vector.load %arg11[%c325, %c0_101] : memref<625x64xf32, #tpu.memory_space<vmem>>, vector<25x64xf32>
    %c350 = arith.constant 350 : index
    %c0_102 = arith.constant 0 : index
    %128 = vector.load %arg11[%c350, %c0_102] : memref<625x64xf32, #tpu.memory_space<vmem>>, vector<25x64xf32>
    %129 = arith.maximumf %127, %128 : vector<25x64xf32>
    %130 = arith.maximumf %126, %129 : vector<25x64xf32>
    %cst_103 = arith.constant dense<0.000000e+00> : vector<12x64xf32>
    %131 = tpu.matmul %43, %130, %cst_103 {dimension_numbers = #tpu.dot_dimension_numbers<[1], [0], [0], [1], [0, 0, 1, 1], [], []>} : vector<12x25xf32>, vector<25x64xf32>, vector<12x64xf32> -> vector<12x64xf32>
    %cst_104 = arith.constant dense<0.000000e+00> : vector<12x64xf32>
    %132 = tpu.matmul %45, %130, %cst_104 {dimension_numbers = #tpu.dot_dimension_numbers<[1], [0], [0], [1], [0, 0, 1, 1], [], []>} : vector<12x25xf32>, vector<25x64xf32>, vector<12x64xf32> -> vector<12x64xf32>
    %cst_105 = arith.constant dense<0.000000e+00> : vector<12x64xf32>
    %133 = tpu.matmul %47, %130, %cst_105 {dimension_numbers = #tpu.dot_dimension_numbers<[1], [0], [0], [1], [0, 0, 1, 1], [], []>} : vector<12x25xf32>, vector<25x64xf32>, vector<12x64xf32> -> vector<12x64xf32>
    %134 = arith.maximumf %132, %133 : vector<12x64xf32>
    %135 = arith.maximumf %131, %134 : vector<12x64xf32>
    %c6 = arith.constant 6 : index
    %c0_106 = arith.constant 0 : index
    %c0_107 = arith.constant 0 : index
    %136 = vector.load %arg12[%c6, %c0_106, %c0_107] : memref<12x12x64xf32, #tpu.memory_space<vmem>>, vector<1x12x64xf32>
    %137 = vector.shape_cast %136 : vector<1x12x64xf32> to vector<12x64xf32>
    %138 = vector.shape_cast %135 : vector<12x64xf32> to vector<1x12x64xf32>
    tpu.vector_store %arg12[%c6, %c0_106, %c0_107], %138 {strides = array<i32>} : memref<12x12x64xf32, #tpu.memory_space<vmem>>, vector<1x12x64xf32>,
    %c350_108 = arith.constant 350 : index
    %c0_109 = arith.constant 0 : index
    %139 = vector.load %arg11[%c350_108, %c0_109] : memref<625x64xf32, #tpu.memory_space<vmem>>, vector<25x64xf32>
    %c375_110 = arith.constant 375 : index
    %c0_111 = arith.constant 0 : index
    %140 = vector.load %arg11[%c375_110, %c0_111] : memref<625x64xf32, #tpu.memory_space<vmem>>, vector<25x64xf32>
    %c400 = arith.constant 400 : index
    %c0_112 = arith.constant 0 : index
    %141 = vector.load %arg11[%c400, %c0_112] : memref<625x64xf32, #tpu.memory_space<vmem>>, vector<25x64xf32>
    %142 = arith.maximumf %140, %141 : vector<25x64xf32>
    %143 = arith.maximumf %139, %142 : vector<25x64xf32>
    %cst_113 = arith.constant dense<0.000000e+00> : vector<12x64xf32>
    %144 = tpu.matmul %43, %143, %cst_113 {dimension_numbers = #tpu.dot_dimension_numbers<[1], [0], [0], [1], [0, 0, 1, 1], [], []>} : vector<12x25xf32>, vector<25x64xf32>, vector<12x64xf32> -> vector<12x64xf32>
    %cst_114 = arith.constant dense<0.000000e+00> : vector<12x64xf32>
    %145 = tpu.matmul %45, %143, %cst_114 {dimension_numbers = #tpu.dot_dimension_numbers<[1], [0], [0], [1], [0, 0, 1, 1], [], []>} : vector<12x25xf32>, vector<25x64xf32>, vector<12x64xf32> -> vector<12x64xf32>
    %cst_115 = arith.constant dense<0.000000e+00> : vector<12x64xf32>
    %146 = tpu.matmul %47, %143, %cst_115 {dimension_numbers = #tpu.dot_dimension_numbers<[1], [0], [0], [1], [0, 0, 1, 1], [], []>} : vector<12x25xf32>, vector<25x64xf32>, vector<12x64xf32> -> vector<12x64xf32>
    %147 = arith.maximumf %145, %146 : vector<12x64xf32>
    %148 = arith.maximumf %144, %147 : vector<12x64xf32>
    %c7 = arith.constant 7 : index
    %c0_116 = arith.constant 0 : index
    %c0_117 = arith.constant 0 : index
    %149 = vector.load %arg12[%c7, %c0_116, %c0_117] : memref<12x12x64xf32, #tpu.memory_space<vmem>>, vector<1x12x64xf32>
    %150 = vector.shape_cast %149 : vector<1x12x64xf32> to vector<12x64xf32>
    %151 = vector.shape_cast %148 : vector<12x64xf32> to vector<1x12x64xf32>
    tpu.vector_store %arg12[%c7, %c0_116, %c0_117], %151 {strides = array<i32>} : memref<12x12x64xf32, #tpu.memory_space<vmem>>, vector<1x12x64xf32>,
    %c400_118 = arith.constant 400 : index
    %c0_119 = arith.constant 0 : index
    %152 = vector.load %arg11[%c400_118, %c0_119] : memref<625x64xf32, #tpu.memory_space<vmem>>, vector<25x64xf32>
    %c425 = arith.constant 425 : index
    %c0_120 = arith.constant 0 : index
    %153 = vector.load %arg11[%c425, %c0_120] : memref<625x64xf32, #tpu.memory_space<vmem>>, vector<25x64xf32>
    %c450 = arith.constant 450 : index
    %c0_121 = arith.constant 0 : index
    %154 = vector.load %arg11[%c450, %c0_121] : memref<625x64xf32, #tpu.memory_space<vmem>>, vector<25x64xf32>
    %155 = arith.maximumf %153, %154 : vector<25x64xf32>
    %156 = arith.maximumf %152, %155 : vector<25x64xf32>
    %cst_122 = arith.constant dense<0.000000e+00> : vector<12x64xf32>
    %157 = tpu.matmul %43, %156, %cst_122 {dimension_numbers = #tpu.dot_dimension_numbers<[1], [0], [0], [1], [0, 0, 1, 1], [], []>} : vector<12x25xf32>, vector<25x64xf32>, vector<12x64xf32> -> vector<12x64xf32>
    %cst_123 = arith.constant dense<0.000000e+00> : vector<12x64xf32>
    %158 = tpu.matmul %45, %156, %cst_123 {dimension_numbers = #tpu.dot_dimension_numbers<[1], [0], [0], [1], [0, 0, 1, 1], [], []>} : vector<12x25xf32>, vector<25x64xf32>, vector<12x64xf32> -> vector<12x64xf32>
    %cst_124 = arith.constant dense<0.000000e+00> : vector<12x64xf32>
    %159 = tpu.matmul %47, %156, %cst_124 {dimension_numbers = #tpu.dot_dimension_numbers<[1], [0], [0], [1], [0, 0, 1, 1], [], []>} : vector<12x25xf32>, vector<25x64xf32>, vector<12x64xf32> -> vector<12x64xf32>
    %160 = arith.maximumf %158, %159 : vector<12x64xf32>
    %161 = arith.maximumf %157, %160 : vector<12x64xf32>
    %c8 = arith.constant 8 : index
    %c0_125 = arith.constant 0 : index
    %c0_126 = arith.constant 0 : index
    %162 = vector.load %arg12[%c8, %c0_125, %c0_126] : memref<12x12x64xf32, #tpu.memory_space<vmem>>, vector<1x12x64xf32>
    %163 = vector.shape_cast %162 : vector<1x12x64xf32> to vector<12x64xf32>
    %164 = vector.shape_cast %161 : vector<12x64xf32> to vector<1x12x64xf32>
    tpu.vector_store %arg12[%c8, %c0_125, %c0_126], %164 {strides = array<i32>} : memref<12x12x64xf32, #tpu.memory_space<vmem>>, vector<1x12x64xf32>,
    %c450_127 = arith.constant 450 : index
    %c0_128 = arith.constant 0 : index
    %165 = vector.load %arg11[%c450_127, %c0_128] : memref<625x64xf32, #tpu.memory_space<vmem>>, vector<25x64xf32>
    %c475 = arith.constant 475 : index
    %c0_129 = arith.constant 0 : index
    %166 = vector.load %arg11[%c475, %c0_129] : memref<625x64xf32, #tpu.memory_space<vmem>>, vector<25x64xf32>
    %c500_130 = arith.constant 500 : index
    %c0_131 = arith.constant 0 : index
    %167 = vector.load %arg11[%c500_130, %c0_131] : memref<625x64xf32, #tpu.memory_space<vmem>>, vector<25x64xf32>
    %168 = arith.maximumf %166, %167 : vector<25x64xf32>
    %169 = arith.maximumf %165, %168 : vector<25x64xf32>
    %cst_132 = arith.constant dense<0.000000e+00> : vector<12x64xf32>
    %170 = tpu.matmul %43, %169, %cst_132 {dimension_numbers = #tpu.dot_dimension_numbers<[1], [0], [0], [1], [0, 0, 1, 1], [], []>} : vector<12x25xf32>, vector<25x64xf32>, vector<12x64xf32> -> vector<12x64xf32>
    %cst_133 = arith.constant dense<0.000000e+00> : vector<12x64xf32>
    %171 = tpu.matmul %45, %169, %cst_133 {dimension_numbers = #tpu.dot_dimension_numbers<[1], [0], [0], [1], [0, 0, 1, 1], [], []>} : vector<12x25xf32>, vector<25x64xf32>, vector<12x64xf32> -> vector<12x64xf32>
    %cst_134 = arith.constant dense<0.000000e+00> : vector<12x64xf32>
    %172 = tpu.matmul %47, %169, %cst_134 {dimension_numbers = #tpu.dot_dimension_numbers<[1], [0], [0], [1], [0, 0, 1, 1], [], []>} : vector<12x25xf32>, vector<25x64xf32>, vector<12x64xf32> -> vector<12x64xf32>
    %173 = arith.maximumf %171, %172 : vector<12x64xf32>
    %174 = arith.maximumf %170, %173 : vector<12x64xf32>
    %c9 = arith.constant 9 : index
    %c0_135 = arith.constant 0 : index
    %c0_136 = arith.constant 0 : index
    %175 = vector.load %arg12[%c9, %c0_135, %c0_136] : memref<12x12x64xf32, #tpu.memory_space<vmem>>, vector<1x12x64xf32>
    %176 = vector.shape_cast %175 : vector<1x12x64xf32> to vector<12x64xf32>
    %177 = vector.shape_cast %174 : vector<12x64xf32> to vector<1x12x64xf32>
    tpu.vector_store %arg12[%c9, %c0_135, %c0_136], %177 {strides = array<i32>} : memref<12x12x64xf32, #tpu.memory_space<vmem>>, vector<1x12x64xf32>,
    %c500_137 = arith.constant 500 : index
    %c0_138 = arith.constant 0 : index
    %178 = vector.load %arg11[%c500_137, %c0_138] : memref<625x64xf32, #tpu.memory_space<vmem>>, vector<25x64xf32>
    %c525 = arith.constant 525 : index
    %c0_139 = arith.constant 0 : index
    %179 = vector.load %arg11[%c525, %c0_139] : memref<625x64xf32, #tpu.memory_space<vmem>>, vector<25x64xf32>
    %c550 = arith.constant 550 : index
    %c0_140 = arith.constant 0 : index
    %180 = vector.load %arg11[%c550, %c0_140] : memref<625x64xf32, #tpu.memory_space<vmem>>, vector<25x64xf32>
    %181 = arith.maximumf %179, %180 : vector<25x64xf32>
    %182 = arith.maximumf %178, %181 : vector<25x64xf32>
    %cst_141 = arith.constant dense<0.000000e+00> : vector<12x64xf32>
    %183 = tpu.matmul %43, %182, %cst_141 {dimension_numbers = #tpu.dot_dimension_numbers<[1], [0], [0], [1], [0, 0, 1, 1], [], []>} : vector<12x25xf32>, vector<25x64xf32>, vector<12x64xf32> -> vector<12x64xf32>
    %cst_142 = arith.constant dense<0.000000e+00> : vector<12x64xf32>
    %184 = tpu.matmul %45, %182, %cst_142 {dimension_numbers = #tpu.dot_dimension_numbers<[1], [0], [0], [1], [0, 0, 1, 1], [], []>} : vector<12x25xf32>, vector<25x64xf32>, vector<12x64xf32> -> vector<12x64xf32>
    %cst_143 = arith.constant dense<0.000000e+00> : vector<12x64xf32>
    %185 = tpu.matmul %47, %182, %cst_143 {dimension_numbers = #tpu.dot_dimension_numbers<[1], [0], [0], [1], [0, 0, 1, 1], [], []>} : vector<12x25xf32>, vector<25x64xf32>, vector<12x64xf32> -> vector<12x64xf32>
    %186 = arith.maximumf %184, %185 : vector<12x64xf32>
    %187 = arith.maximumf %183, %186 : vector<12x64xf32>
    %c10 = arith.constant 10 : index
    %c0_144 = arith.constant 0 : index
    %c0_145 = arith.constant 0 : index
    %188 = vector.load %arg12[%c10, %c0_144, %c0_145] : memref<12x12x64xf32, #tpu.memory_space<vmem>>, vector<1x12x64xf32>
    %189 = vector.shape_cast %188 : vector<1x12x64xf32> to vector<12x64xf32>
    %190 = vector.shape_cast %187 : vector<12x64xf32> to vector<1x12x64xf32>
    tpu.vector_store %arg12[%c10, %c0_144, %c0_145], %190 {strides = array<i32>} : memref<12x12x64xf32, #tpu.memory_space<vmem>>, vector<1x12x64xf32>,
    %c550_146 = arith.constant 550 : index
    %c0_147 = arith.constant 0 : index
    %191 = vector.load %arg11[%c550_146, %c0_147] : memref<625x64xf32, #tpu.memory_space<vmem>>, vector<25x64xf32>
    %c575 = arith.constant 575 : index
    %c0_148 = arith.constant 0 : index
    %192 = vector.load %arg11[%c575, %c0_148] : memref<625x64xf32, #tpu.memory_space<vmem>>, vector<25x64xf32>
    %c600 = arith.constant 600 : index
    %c0_149 = arith.constant 0 : index
    %193 = vector.load %arg11[%c600, %c0_149] : memref<625x64xf32, #tpu.memory_space<vmem>>, vector<25x64xf32>
    %194 = arith.maximumf %192, %193 : vector<25x64xf32>
    %195 = arith.maximumf %191, %194 : vector<25x64xf32>
    %cst_150 = arith.constant dense<0.000000e+00> : vector<12x64xf32>
    %196 = tpu.matmul %43, %195, %cst_150 {dimension_numbers = #tpu.dot_dimension_numbers<[1], [0], [0], [1], [0, 0, 1, 1], [], []>} : vector<12x25xf32>, vector<25x64xf32>, vector<12x64xf32> -> vector<12x64xf32>
    %cst_151 = arith.constant dense<0.000000e+00> : vector<12x64xf32>
    %197 = tpu.matmul %45, %195, %cst_151 {dimension_numbers = #tpu.dot_dimension_numbers<[1], [0], [0], [1], [0, 0, 1, 1], [], []>} : vector<12x25xf32>, vector<25x64xf32>, vector<12x64xf32> -> vector<12x64xf32>
    %cst_152 = arith.constant dense<0.000000e+00> : vector<12x64xf32>
    %198 = tpu.matmul %47, %195, %cst_152 {dimension_numbers = #tpu.dot_dimension_numbers<[1], [0], [0], [1], [0, 0, 1, 1], [], []>} : vector<12x25xf32>, vector<25x64xf32>, vector<12x64xf32> -> vector<12x64xf32>
    %199 = arith.maximumf %197, %198 : vector<12x64xf32>
    %200 = arith.maximumf %196, %199 : vector<12x64xf32>
    %c11 = arith.constant 11 : index
    %c0_153 = arith.constant 0 : index
    %c0_154 = arith.constant 0 : index
    %201 = vector.load %arg12[%c11, %c0_153, %c0_154] : memref<12x12x64xf32, #tpu.memory_space<vmem>>, vector<1x12x64xf32>
    %202 = vector.shape_cast %201 : vector<1x12x64xf32> to vector<12x64xf32>
    %203 = vector.shape_cast %200 : vector<12x64xf32> to vector<1x12x64xf32>
    tpu.vector_store %arg12[%c11, %c0_153, %c0_154], %203 {strides = array<i32>} : memref<12x12x64xf32, #tpu.memory_space<vmem>>, vector<1x12x64xf32>,
    %c0_155 = arith.constant 0 : index
    %c0_156 = arith.constant 0 : index
    %204 = vector.load %arg5[%c0_155, %c0_156] : memref<1x32xf32, #tpu.memory_space<vmem>>, vector<1x32xf32>
    %c0_157 = arith.constant 0 : index
    %c0_158 = arith.constant 0 : index
    %c0_159 = arith.constant 0 : index
    %205 = vector.load %arg9[%c0_157, %c0_158, %c0_159] : memref<3x5x11xf32, #tpu.memory_space<vmem>>, vector<1x5x11xf32>
    %206 = vector.shape_cast %205 : vector<1x5x11xf32> to vector<5x11xf32>
    %c1_160 = arith.constant 1 : index
    %c0_161 = arith.constant 0 : index
    %c0_162 = arith.constant 0 : index
    %207 = vector.load %arg9[%c1_160, %c0_161, %c0_162] : memref<3x5x11xf32, #tpu.memory_space<vmem>>, vector<1x5x11xf32>
    %208 = vector.shape_cast %207 : vector<1x5x11xf32> to vector<5x11xf32>
    %c2_163 = arith.constant 2 : index
    %c0_164 = arith.constant 0 : index
    %c0_165 = arith.constant 0 : index
    %209 = vector.load %arg9[%c2_163, %c0_164, %c0_165] : memref<3x5x11xf32, #tpu.memory_space<vmem>>, vector<1x5x11xf32>
    %210 = vector.shape_cast %209 : vector<1x5x11xf32> to vector<5x11xf32>
    %cst_166 = arith.constant 0.000000e+00 : f32
    %211 = vector.broadcast %cst_166 : f32 to vector<11x32xf32>
    %c0_167 = arith.constant 0 : index
    %c0_168 = arith.constant 0 : index
    %c0_169 = arith.constant 0 : index
    %212 = vector.load %arg12[%c0_167, %c0_168, %c0_169] : memref<12x12x64xf32, #tpu.memory_space<vmem>>, vector<1x11x64xf32>
    %213 = vector.shape_cast %212 : vector<1x11x64xf32> to vector<11x64xf32>
    %c0_170 = arith.constant 0 : index
    %c0_171 = arith.constant 0 : index
    %c0_172 = arith.constant 0 : index
    %214 = vector.load %arg4[%c0_170, %c0_171, %c0_172] : memref<4x64x32xf32, #tpu.memory_space<vmem>>, vector<1x64x32xf32>
    %215 = vector.shape_cast %214 : vector<1x64x32xf32> to vector<64x32xf32>
    %cst_173 = arith.constant dense<0.000000e+00> : vector<11x32xf32>
    %216 = tpu.matmul %213, %215, %cst_173 {dimension_numbers = #tpu.dot_dimension_numbers<[1], [0], [0], [1], [0, 0, 1, 1], [], []>} : vector<11x64xf32>, vector<64x32xf32>, vector<11x32xf32> -> vector<11x32xf32>
    %217 = arith.addf %211, %216 : vector<11x32xf32>
    %c0_174 = arith.constant 0 : index
    %c1_175 = arith.constant 1 : index
    %c0_176 = arith.constant 0 : index
    %218 = vector.load %arg12[%c0_174, %c1_175, %c0_176] : memref<12x12x64xf32, #tpu.memory_space<vmem>>, vector<1x11x64xf32>
    %219 = vector.shape_cast %218 : vector<1x11x64xf32> to vector<11x64xf32>
    %c1_177 = arith.constant 1 : index
    %c0_178 = arith.constant 0 : index
    %c0_179 = arith.constant 0 : index
    %220 = vector.load %arg4[%c1_177, %c0_178, %c0_179] : memref<4x64x32xf32, #tpu.memory_space<vmem>>, vector<1x64x32xf32>
    %221 = vector.shape_cast %220 : vector<1x64x32xf32> to vector<64x32xf32>
    %cst_180 = arith.constant dense<0.000000e+00> : vector<11x32xf32>
    %222 = tpu.matmul %219, %221, %cst_180 {dimension_numbers = #tpu.dot_dimension_numbers<[1], [0], [0], [1], [0, 0, 1, 1], [], []>} : vector<11x64xf32>, vector<64x32xf32>, vector<11x32xf32> -> vector<11x32xf32>
    %223 = arith.addf %217, %222 : vector<11x32xf32>
    %c1_181 = arith.constant 1 : index
    %c0_182 = arith.constant 0 : index
    %c0_183 = arith.constant 0 : index
    %224 = vector.load %arg12[%c1_181, %c0_182, %c0_183] : memref<12x12x64xf32, #tpu.memory_space<vmem>>, vector<1x11x64xf32>
    %225 = vector.shape_cast %224 : vector<1x11x64xf32> to vector<11x64xf32>
    %c2_184 = arith.constant 2 : index
    %c0_185 = arith.constant 0 : index
    %c0_186 = arith.constant 0 : index
    %226 = vector.load %arg4[%c2_184, %c0_185, %c0_186] : memref<4x64x32xf32, #tpu.memory_space<vmem>>, vector<1x64x32xf32>
    %227 = vector.shape_cast %226 : vector<1x64x32xf32> to vector<64x32xf32>
    %cst_187 = arith.constant dense<0.000000e+00> : vector<11x32xf32>
    %228 = tpu.matmul %225, %227, %cst_187 {dimension_numbers = #tpu.dot_dimension_numbers<[1], [0], [0], [1], [0, 0, 1, 1], [], []>} : vector<11x64xf32>, vector<64x32xf32>, vector<11x32xf32> -> vector<11x32xf32>
    %229 = arith.addf %223, %228 : vector<11x32xf32>
    %c1_188 = arith.constant 1 : index
    %c1_189 = arith.constant 1 : index
    %c0_190 = arith.constant 0 : index
    %230 = vector.load %arg12[%c1_188, %c1_189, %c0_190] : memref<12x12x64xf32, #tpu.memory_space<vmem>>, vector<1x11x64xf32>
    %231 = vector.shape_cast %230 : vector<1x11x64xf32> to vector<11x64xf32>
    %c3_191 = arith.constant 3 : index
    %c0_192 = arith.constant 0 : index
    %c0_193 = arith.constant 0 : index
    %232 = vector.load %arg4[%c3_191, %c0_192, %c0_193] : memref<4x64x32xf32, #tpu.memory_space<vmem>>, vector<1x64x32xf32>
    %233 = vector.shape_cast %232 : vector<1x64x32xf32> to vector<64x32xf32>
    %cst_194 = arith.constant dense<0.000000e+00> : vector<11x32xf32>
    %234 = tpu.matmul %231, %233, %cst_194 {dimension_numbers = #tpu.dot_dimension_numbers<[1], [0], [0], [1], [0, 0, 1, 1], [], []>} : vector<11x64xf32>, vector<64x32xf32>, vector<11x32xf32> -> vector<11x32xf32>
    %235 = arith.addf %229, %234 : vector<11x32xf32>
    %236 = vector.broadcast %204 : vector<1x32xf32> to vector<11x32xf32>
    %237 = arith.addf %235, %236 : vector<11x32xf32>
    %cst_195 = arith.constant 0.000000e+00 : f32
    %238 = vector.broadcast %cst_195 : f32 to vector<11x32xf32>
    %239 = arith.maximumf %237, %238 : vector<11x32xf32>
    %cst_196 = arith.constant 0.000000e+00 : f32
    %240 = vector.broadcast %cst_196 : f32 to vector<11x32xf32>
    %c1_197 = arith.constant 1 : index
    %c0_198 = arith.constant 0 : index
    %c0_199 = arith.constant 0 : index
    %241 = vector.load %arg12[%c1_197, %c0_198, %c0_199] : memref<12x12x64xf32, #tpu.memory_space<vmem>>, vector<1x11x64xf32>
    %242 = vector.shape_cast %241 : vector<1x11x64xf32> to vector<11x64xf32>
    %c0_200 = arith.constant 0 : index
    %c0_201 = arith.constant 0 : index
    %c0_202 = arith.constant 0 : index
    %243 = vector.load %arg4[%c0_200, %c0_201, %c0_202] : memref<4x64x32xf32, #tpu.memory_space<vmem>>, vector<1x64x32xf32>
    %244 = vector.shape_cast %243 : vector<1x64x32xf32> to vector<64x32xf32>
    %cst_203 = arith.constant dense<0.000000e+00> : vector<11x32xf32>
    %245 = tpu.matmul %242, %244, %cst_203 {dimension_numbers = #tpu.dot_dimension_numbers<[1], [0], [0], [1], [0, 0, 1, 1], [], []>} : vector<11x64xf32>, vector<64x32xf32>, vector<11x32xf32> -> vector<11x32xf32>
    %246 = arith.addf %240, %245 : vector<11x32xf32>
    %c1_204 = arith.constant 1 : index
    %c1_205 = arith.constant 1 : index
    %c0_206 = arith.constant 0 : index
    %247 = vector.load %arg12[%c1_204, %c1_205, %c0_206] : memref<12x12x64xf32, #tpu.memory_space<vmem>>, vector<1x11x64xf32>
    %248 = vector.shape_cast %247 : vector<1x11x64xf32> to vector<11x64xf32>
    %c1_207 = arith.constant 1 : index
    %c0_208 = arith.constant 0 : index
    %c0_209 = arith.constant 0 : index
    %249 = vector.load %arg4[%c1_207, %c0_208, %c0_209] : memref<4x64x32xf32, #tpu.memory_space<vmem>>, vector<1x64x32xf32>
    %250 = vector.shape_cast %249 : vector<1x64x32xf32> to vector<64x32xf32>
    %cst_210 = arith.constant dense<0.000000e+00> : vector<11x32xf32>
    %251 = tpu.matmul %248, %250, %cst_210 {dimension_numbers = #tpu.dot_dimension_numbers<[1], [0], [0], [1], [0, 0, 1, 1], [], []>} : vector<11x64xf32>, vector<64x32xf32>, vector<11x32xf32> -> vector<11x32xf32>
    %252 = arith.addf %246, %251 : vector<11x32xf32>
    %c2_211 = arith.constant 2 : index
    %c0_212 = arith.constant 0 : index
    %c0_213 = arith.constant 0 : index
    %253 = vector.load %arg12[%c2_211, %c0_212, %c0_213] : memref<12x12x64xf32, #tpu.memory_space<vmem>>, vector<1x11x64xf32>
    %254 = vector.shape_cast %253 : vector<1x11x64xf32> to vector<11x64xf32>
    %c2_214 = arith.constant 2 : index
    %c0_215 = arith.constant 0 : index
    %c0_216 = arith.constant 0 : index
    %255 = vector.load %arg4[%c2_214, %c0_215, %c0_216] : memref<4x64x32xf32, #tpu.memory_space<vmem>>, vector<1x64x32xf32>
    %256 = vector.shape_cast %255 : vector<1x64x32xf32> to vector<64x32xf32>
    %cst_217 = arith.constant dense<0.000000e+00> : vector<11x32xf32>
    %257 = tpu.matmul %254, %256, %cst_217 {dimension_numbers = #tpu.dot_dimension_numbers<[1], [0], [0], [1], [0, 0, 1, 1], [], []>} : vector<11x64xf32>, vector<64x32xf32>, vector<11x32xf32> -> vector<11x32xf32>
    %258 = arith.addf %252, %257 : vector<11x32xf32>
    %c2_218 = arith.constant 2 : index
    %c1_219 = arith.constant 1 : index
    %c0_220 = arith.constant 0 : index
    %259 = vector.load %arg12[%c2_218, %c1_219, %c0_220] : memref<12x12x64xf32, #tpu.memory_space<vmem>>, vector<1x11x64xf32>
    %260 = vector.shape_cast %259 : vector<1x11x64xf32> to vector<11x64xf32>
    %c3_221 = arith.constant 3 : index
    %c0_222 = arith.constant 0 : index
    %c0_223 = arith.constant 0 : index
    %261 = vector.load %arg4[%c3_221, %c0_222, %c0_223] : memref<4x64x32xf32, #tpu.memory_space<vmem>>, vector<1x64x32xf32>
    %262 = vector.shape_cast %261 : vector<1x64x32xf32> to vector<64x32xf32>
    %cst_224 = arith.constant dense<0.000000e+00> : vector<11x32xf32>
    %263 = tpu.matmul %260, %262, %cst_224 {dimension_numbers = #tpu.dot_dimension_numbers<[1], [0], [0], [1], [0, 0, 1, 1], [], []>} : vector<11x64xf32>, vector<64x32xf32>, vector<11x32xf32> -> vector<11x32xf32>
    %264 = arith.addf %258, %263 : vector<11x32xf32>
    %265 = vector.broadcast %204 : vector<1x32xf32> to vector<11x32xf32>
    %266 = arith.addf %264, %265 : vector<11x32xf32>
    %cst_225 = arith.constant 0.000000e+00 : f32
    %267 = vector.broadcast %cst_225 : f32 to vector<11x32xf32>
    %268 = arith.maximumf %266, %267 : vector<11x32xf32>
    %cst_226 = arith.constant 0.000000e+00 : f32
    %269 = vector.broadcast %cst_226 : f32 to vector<11x32xf32>
    %c2_227 = arith.constant 2 : index
    %c0_228 = arith.constant 0 : index
    %c0_229 = arith.constant 0 : index
    %270 = vector.load %arg12[%c2_227, %c0_228, %c0_229] : memref<12x12x64xf32, #tpu.memory_space<vmem>>, vector<1x11x64xf32>
    %271 = vector.shape_cast %270 : vector<1x11x64xf32> to vector<11x64xf32>
    %c0_230 = arith.constant 0 : index
    %c0_231 = arith.constant 0 : index
    %c0_232 = arith.constant 0 : index
    %272 = vector.load %arg4[%c0_230, %c0_231, %c0_232] : memref<4x64x32xf32, #tpu.memory_space<vmem>>, vector<1x64x32xf32>
    %273 = vector.shape_cast %272 : vector<1x64x32xf32> to vector<64x32xf32>
    %cst_233 = arith.constant dense<0.000000e+00> : vector<11x32xf32>
    %274 = tpu.matmul %271, %273, %cst_233 {dimension_numbers = #tpu.dot_dimension_numbers<[1], [0], [0], [1], [0, 0, 1, 1], [], []>} : vector<11x64xf32>, vector<64x32xf32>, vector<11x32xf32> -> vector<11x32xf32>
    %275 = arith.addf %269, %274 : vector<11x32xf32>
    %c2_234 = arith.constant 2 : index
    %c1_235 = arith.constant 1 : index
    %c0_236 = arith.constant 0 : index
    %276 = vector.load %arg12[%c2_234, %c1_235, %c0_236] : memref<12x12x64xf32, #tpu.memory_space<vmem>>, vector<1x11x64xf32>
    %277 = vector.shape_cast %276 : vector<1x11x64xf32> to vector<11x64xf32>
    %c1_237 = arith.constant 1 : index
    %c0_238 = arith.constant 0 : index
    %c0_239 = arith.constant 0 : index
    %278 = vector.load %arg4[%c1_237, %c0_238, %c0_239] : memref<4x64x32xf32, #tpu.memory_space<vmem>>, vector<1x64x32xf32>
    %279 = vector.shape_cast %278 : vector<1x64x32xf32> to vector<64x32xf32>
    %cst_240 = arith.constant dense<0.000000e+00> : vector<11x32xf32>
    %280 = tpu.matmul %277, %279, %cst_240 {dimension_numbers = #tpu.dot_dimension_numbers<[1], [0], [0], [1], [0, 0, 1, 1], [], []>} : vector<11x64xf32>, vector<64x32xf32>, vector<11x32xf32> -> vector<11x32xf32>
    %281 = arith.addf %275, %280 : vector<11x32xf32>
    %c3_241 = arith.constant 3 : index
    %c0_242 = arith.constant 0 : index
    %c0_243 = arith.constant 0 : index
    %282 = vector.load %arg12[%c3_241, %c0_242, %c0_243] : memref<12x12x64xf32, #tpu.memory_space<vmem>>, vector<1x11x64xf32>
    %283 = vector.shape_cast %282 : vector<1x11x64xf32> to vector<11x64xf32>
    %c2_244 = arith.constant 2 : index
    %c0_245 = arith.constant 0 : index
    %c0_246 = arith.constant 0 : index
    %284 = vector.load %arg4[%c2_244, %c0_245, %c0_246] : memref<4x64x32xf32, #tpu.memory_space<vmem>>, vector<1x64x32xf32>
    %285 = vector.shape_cast %284 : vector<1x64x32xf32> to vector<64x32xf32>
    %cst_247 = arith.constant dense<0.000000e+00> : vector<11x32xf32>
    %286 = tpu.matmul %283, %285, %cst_247 {dimension_numbers = #tpu.dot_dimension_numbers<[1], [0], [0], [1], [0, 0, 1, 1], [], []>} : vector<11x64xf32>, vector<64x32xf32>, vector<11x32xf32> -> vector<11x32xf32>
    %287 = arith.addf %281, %286 : vector<11x32xf32>
    %c3_248 = arith.constant 3 : index
    %c1_249 = arith.constant 1 : index
    %c0_250 = arith.constant 0 : index
    %288 = vector.load %arg12[%c3_248, %c1_249, %c0_250] : memref<12x12x64xf32, #tpu.memory_space<vmem>>, vector<1x11x64xf32>
    %289 = vector.shape_cast %288 : vector<1x11x64xf32> to vector<11x64xf32>
    %c3_251 = arith.constant 3 : index
    %c0_252 = arith.constant 0 : index
    %c0_253 = arith.constant 0 : index
    %290 = vector.load %arg4[%c3_251, %c0_252, %c0_253] : memref<4x64x32xf32, #tpu.memory_space<vmem>>, vector<1x64x32xf32>
    %291 = vector.shape_cast %290 : vector<1x64x32xf32> to vector<64x32xf32>
    %cst_254 = arith.constant dense<0.000000e+00> : vector<11x32xf32>
    %292 = tpu.matmul %289, %291, %cst_254 {dimension_numbers = #tpu.dot_dimension_numbers<[1], [0], [0], [1], [0, 0, 1, 1], [], []>} : vector<11x64xf32>, vector<64x32xf32>, vector<11x32xf32> -> vector<11x32xf32>
    %293 = arith.addf %287, %292 : vector<11x32xf32>
    %294 = vector.broadcast %204 : vector<1x32xf32> to vector<11x32xf32>
    %295 = arith.addf %293, %294 : vector<11x32xf32>
    %cst_255 = arith.constant 0.000000e+00 : f32
    %296 = vector.broadcast %cst_255 : f32 to vector<11x32xf32>
    %297 = arith.maximumf %295, %296 : vector<11x32xf32>
    %298 = arith.maximumf %268, %297 : vector<11x32xf32>
    %299 = arith.maximumf %239, %298 : vector<11x32xf32>
    %cst_256 = arith.constant dense<0.000000e+00> : vector<5x32xf32>
    %300 = tpu.matmul %206, %299, %cst_256 {dimension_numbers = #tpu.dot_dimension_numbers<[1], [0], [0], [1], [0, 0, 1, 1], [], []>} : vector<5x11xf32>, vector<11x32xf32>, vector<5x32xf32> -> vector<5x32xf32>
    %cst_257 = arith.constant dense<0.000000e+00> : vector<5x32xf32>
    %301 = tpu.matmul %208, %299, %cst_257 {dimension_numbers = #tpu.dot_dimension_numbers<[1], [0], [0], [1], [0, 0, 1, 1], [], []>} : vector<5x11xf32>, vector<11x32xf32>, vector<5x32xf32> -> vector<5x32xf32>
    %cst_258 = arith.constant dense<0.000000e+00> : vector<5x32xf32>
    %302 = tpu.matmul %210, %299, %cst_258 {dimension_numbers = #tpu.dot_dimension_numbers<[1], [0], [0], [1], [0, 0, 1, 1], [], []>} : vector<5x11xf32>, vector<11x32xf32>, vector<5x32xf32> -> vector<5x32xf32>
    %303 = arith.maximumf %301, %302 : vector<5x32xf32>
    %304 = arith.maximumf %300, %303 : vector<5x32xf32>
    %cst_259 = arith.constant 0.000000e+00 : f32
    %305 = vector.broadcast %cst_259 : f32 to vector<11x32xf32>
    %c2_260 = arith.constant 2 : index
    %c0_261 = arith.constant 0 : index
    %c0_262 = arith.constant 0 : index
    %306 = vector.load %arg12[%c2_260, %c0_261, %c0_262] : memref<12x12x64xf32, #tpu.memory_space<vmem>>, vector<1x11x64xf32>
    %307 = vector.shape_cast %306 : vector<1x11x64xf32> to vector<11x64xf32>
    %c0_263 = arith.constant 0 : index
    %c0_264 = arith.constant 0 : index
    %c0_265 = arith.constant 0 : index
    %308 = vector.load %arg4[%c0_263, %c0_264, %c0_265] : memref<4x64x32xf32, #tpu.memory_space<vmem>>, vector<1x64x32xf32>
    %309 = vector.shape_cast %308 : vector<1x64x32xf32> to vector<64x32xf32>
    %cst_266 = arith.constant dense<0.000000e+00> : vector<11x32xf32>
    %310 = tpu.matmul %307, %309, %cst_266 {dimension_numbers = #tpu.dot_dimension_numbers<[1], [0], [0], [1], [0, 0, 1, 1], [], []>} : vector<11x64xf32>, vector<64x32xf32>, vector<11x32xf32> -> vector<11x32xf32>
    %311 = arith.addf %305, %310 : vector<11x32xf32>
    %c2_267 = arith.constant 2 : index
    %c1_268 = arith.constant 1 : index
    %c0_269 = arith.constant 0 : index
    %312 = vector.load %arg12[%c2_267, %c1_268, %c0_269] : memref<12x12x64xf32, #tpu.memory_space<vmem>>, vector<1x11x64xf32>
    %313 = vector.shape_cast %312 : vector<1x11x64xf32> to vector<11x64xf32>
    %c1_270 = arith.constant 1 : index
    %c0_271 = arith.constant 0 : index
    %c0_272 = arith.constant 0 : index
    %314 = vector.load %arg4[%c1_270, %c0_271, %c0_272] : memref<4x64x32xf32, #tpu.memory_space<vmem>>, vector<1x64x32xf32>
    %315 = vector.shape_cast %314 : vector<1x64x32xf32> to vector<64x32xf32>
    %cst_273 = arith.constant dense<0.000000e+00> : vector<11x32xf32>
    %316 = tpu.matmul %313, %315, %cst_273 {dimension_numbers = #tpu.dot_dimension_numbers<[1], [0], [0], [1], [0, 0, 1, 1], [], []>} : vector<11x64xf32>, vector<64x32xf32>, vector<11x32xf32> -> vector<11x32xf32>
    %317 = arith.addf %311, %316 : vector<11x32xf32>
    %c3_274 = arith.constant 3 : index
    %c0_275 = arith.constant 0 : index
    %c0_276 = arith.constant 0 : index
    %318 = vector.load %arg12[%c3_274, %c0_275, %c0_276] : memref<12x12x64xf32, #tpu.memory_space<vmem>>, vector<1x11x64xf32>
    %319 = vector.shape_cast %318 : vector<1x11x64xf32> to vector<11x64xf32>
    %c2_277 = arith.constant 2 : index
    %c0_278 = arith.constant 0 : index
    %c0_279 = arith.constant 0 : index
    %320 = vector.load %arg4[%c2_277, %c0_278, %c0_279] : memref<4x64x32xf32, #tpu.memory_space<vmem>>, vector<1x64x32xf32>
    %321 = vector.shape_cast %320 : vector<1x64x32xf32> to vector<64x32xf32>
    %cst_280 = arith.constant dense<0.000000e+00> : vector<11x32xf32>
    %322 = tpu.matmul %319, %321, %cst_280 {dimension_numbers = #tpu.dot_dimension_numbers<[1], [0], [0], [1], [0, 0, 1, 1], [], []>} : vector<11x64xf32>, vector<64x32xf32>, vector<11x32xf32> -> vector<11x32xf32>
    %323 = arith.addf %317, %322 : vector<11x32xf32>
    %c3_281 = arith.constant 3 : index
    %c1_282 = arith.constant 1 : index
    %c0_283 = arith.constant 0 : index
    %324 = vector.load %arg12[%c3_281, %c1_282, %c0_283] : memref<12x12x64xf32, #tpu.memory_space<vmem>>, vector<1x11x64xf32>
    %325 = vector.shape_cast %324 : vector<1x11x64xf32> to vector<11x64xf32>
    %c3_284 = arith.constant 3 : index
    %c0_285 = arith.constant 0 : index
    %c0_286 = arith.constant 0 : index
    %326 = vector.load %arg4[%c3_284, %c0_285, %c0_286] : memref<4x64x32xf32, #tpu.memory_space<vmem>>, vector<1x64x32xf32>
    %327 = vector.shape_cast %326 : vector<1x64x32xf32> to vector<64x32xf32>
    %cst_287 = arith.constant dense<0.000000e+00> : vector<11x32xf32>
    %328 = tpu.matmul %325, %327, %cst_287 {dimension_numbers = #tpu.dot_dimension_numbers<[1], [0], [0], [1], [0, 0, 1, 1], [], []>} : vector<11x64xf32>, vector<64x32xf32>, vector<11x32xf32> -> vector<11x32xf32>
    %329 = arith.addf %323, %328 : vector<11x32xf32>
    %330 = vector.broadcast %204 : vector<1x32xf32> to vector<11x32xf32>
    %331 = arith.addf %329, %330 : vector<11x32xf32>
    %cst_288 = arith.constant 0.000000e+00 : f32
    %332 = vector.broadcast %cst_288 : f32 to vector<11x32xf32>
    %333 = arith.maximumf %331, %332 : vector<11x32xf32>
    %cst_289 = arith.constant 0.000000e+00 : f32
    %334 = vector.broadcast %cst_289 : f32 to vector<11x32xf32>
    %c3_290 = arith.constant 3 : index
    %c0_291 = arith.constant 0 : index
    %c0_292 = arith.constant 0 : index
    %335 = vector.load %arg12[%c3_290, %c0_291, %c0_292] : memref<12x12x64xf32, #tpu.memory_space<vmem>>, vector<1x11x64xf32>
    %336 = vector.shape_cast %335 : vector<1x11x64xf32> to vector<11x64xf32>
    %c0_293 = arith.constant 0 : index
    %c0_294 = arith.constant 0 : index
    %c0_295 = arith.constant 0 : index
    %337 = vector.load %arg4[%c0_293, %c0_294, %c0_295] : memref<4x64x32xf32, #tpu.memory_space<vmem>>, vector<1x64x32xf32>
    %338 = vector.shape_cast %337 : vector<1x64x32xf32> to vector<64x32xf32>
    %cst_296 = arith.constant dense<0.000000e+00> : vector<11x32xf32>
    %339 = tpu.matmul %336, %338, %cst_296 {dimension_numbers = #tpu.dot_dimension_numbers<[1], [0], [0], [1], [0, 0, 1, 1], [], []>} : vector<11x64xf32>, vector<64x32xf32>, vector<11x32xf32> -> vector<11x32xf32>
    %340 = arith.addf %334, %339 : vector<11x32xf32>
    %c3_297 = arith.constant 3 : index
    %c1_298 = arith.constant 1 : index
    %c0_299 = arith.constant 0 : index
    %341 = vector.load %arg12[%c3_297, %c1_298, %c0_299] : memref<12x12x64xf32, #tpu.memory_space<vmem>>, vector<1x11x64xf32>
    %342 = vector.shape_cast %341 : vector<1x11x64xf32> to vector<11x64xf32>
    %c1_300 = arith.constant 1 : index
    %c0_301 = arith.constant 0 : index
    %c0_302 = arith.constant 0 : index
    %343 = vector.load %arg4[%c1_300, %c0_301, %c0_302] : memref<4x64x32xf32, #tpu.memory_space<vmem>>, vector<1x64x32xf32>
    %344 = vector.shape_cast %343 : vector<1x64x32xf32> to vector<64x32xf32>
    %cst_303 = arith.constant dense<0.000000e+00> : vector<11x32xf32>
    %345 = tpu.matmul %342, %344, %cst_303 {dimension_numbers = #tpu.dot_dimension_numbers<[1], [0], [0], [1], [0, 0, 1, 1], [], []>} : vector<11x64xf32>, vector<64x32xf32>, vector<11x32xf32> -> vector<11x32xf32>
    %346 = arith.addf %340, %345 : vector<11x32xf32>
    %c4_304 = arith.constant 4 : index
    %c0_305 = arith.constant 0 : index
    %c0_306 = arith.constant 0 : index
    %347 = vector.load %arg12[%c4_304, %c0_305, %c0_306] : memref<12x12x64xf32, #tpu.memory_space<vmem>>, vector<1x11x64xf32>
    %348 = vector.shape_cast %347 : vector<1x11x64xf32> to vector<11x64xf32>
    %c2_307 = arith.constant 2 : index
    %c0_308 = arith.constant 0 : index
    %c0_309 = arith.constant 0 : index
    %349 = vector.load %arg4[%c2_307, %c0_308, %c0_309] : memref<4x64x32xf32, #tpu.memory_space<vmem>>, vector<1x64x32xf32>
    %350 = vector.shape_cast %349 : vector<1x64x32xf32> to vector<64x32xf32>
    %cst_310 = arith.constant dense<0.000000e+00> : vector<11x32xf32>
    %351 = tpu.matmul %348, %350, %cst_310 {dimension_numbers = #tpu.dot_dimension_numbers<[1], [0], [0], [1], [0, 0, 1, 1], [], []>} : vector<11x64xf32>, vector<64x32xf32>, vector<11x32xf32> -> vector<11x32xf32>
    %352 = arith.addf %346, %351 : vector<11x32xf32>
    %c4_311 = arith.constant 4 : index
    %c1_312 = arith.constant 1 : index
    %c0_313 = arith.constant 0 : index
    %353 = vector.load %arg12[%c4_311, %c1_312, %c0_313] : memref<12x12x64xf32, #tpu.memory_space<vmem>>, vector<1x11x64xf32>
    %354 = vector.shape_cast %353 : vector<1x11x64xf32> to vector<11x64xf32>
    %c3_314 = arith.constant 3 : index
    %c0_315 = arith.constant 0 : index
    %c0_316 = arith.constant 0 : index
    %355 = vector.load %arg4[%c3_314, %c0_315, %c0_316] : memref<4x64x32xf32, #tpu.memory_space<vmem>>, vector<1x64x32xf32>
    %356 = vector.shape_cast %355 : vector<1x64x32xf32> to vector<64x32xf32>
    %cst_317 = arith.constant dense<0.000000e+00> : vector<11x32xf32>
    %357 = tpu.matmul %354, %356, %cst_317 {dimension_numbers = #tpu.dot_dimension_numbers<[1], [0], [0], [1], [0, 0, 1, 1], [], []>} : vector<11x64xf32>, vector<64x32xf32>, vector<11x32xf32> -> vector<11x32xf32>
    %358 = arith.addf %352, %357 : vector<11x32xf32>
    %359 = vector.broadcast %204 : vector<1x32xf32> to vector<11x32xf32>
    %360 = arith.addf %358, %359 : vector<11x32xf32>
    %cst_318 = arith.constant 0.000000e+00 : f32
    %361 = vector.broadcast %cst_318 : f32 to vector<11x32xf32>
    %362 = arith.maximumf %360, %361 : vector<11x32xf32>
    %cst_319 = arith.constant 0.000000e+00 : f32
    %363 = vector.broadcast %cst_319 : f32 to vector<11x32xf32>
    %c4_320 = arith.constant 4 : index
    %c0_321 = arith.constant 0 : index
    %c0_322 = arith.constant 0 : index
    %364 = vector.load %arg12[%c4_320, %c0_321, %c0_322] : memref<12x12x64xf32, #tpu.memory_space<vmem>>, vector<1x11x64xf32>
    %365 = vector.shape_cast %364 : vector<1x11x64xf32> to vector<11x64xf32>
    %c0_323 = arith.constant 0 : index
    %c0_324 = arith.constant 0 : index
    %c0_325 = arith.constant 0 : index
    %366 = vector.load %arg4[%c0_323, %c0_324, %c0_325] : memref<4x64x32xf32, #tpu.memory_space<vmem>>, vector<1x64x32xf32>
    %367 = vector.shape_cast %366 : vector<1x64x32xf32> to vector<64x32xf32>
    %cst_326 = arith.constant dense<0.000000e+00> : vector<11x32xf32>
    %368 = tpu.matmul %365, %367, %cst_326 {dimension_numbers = #tpu.dot_dimension_numbers<[1], [0], [0], [1], [0, 0, 1, 1], [], []>} : vector<11x64xf32>, vector<64x32xf32>, vector<11x32xf32> -> vector<11x32xf32>
    %369 = arith.addf %363, %368 : vector<11x32xf32>
    %c4_327 = arith.constant 4 : index
    %c1_328 = arith.constant 1 : index
    %c0_329 = arith.constant 0 : index
    %370 = vector.load %arg12[%c4_327, %c1_328, %c0_329] : memref<12x12x64xf32, #tpu.memory_space<vmem>>, vector<1x11x64xf32>
    %371 = vector.shape_cast %370 : vector<1x11x64xf32> to vector<11x64xf32>
    %c1_330 = arith.constant 1 : index
    %c0_331 = arith.constant 0 : index
    %c0_332 = arith.constant 0 : index
    %372 = vector.load %arg4[%c1_330, %c0_331, %c0_332] : memref<4x64x32xf32, #tpu.memory_space<vmem>>, vector<1x64x32xf32>
    %373 = vector.shape_cast %372 : vector<1x64x32xf32> to vector<64x32xf32>
    %cst_333 = arith.constant dense<0.000000e+00> : vector<11x32xf32>
    %374 = tpu.matmul %371, %373, %cst_333 {dimension_numbers = #tpu.dot_dimension_numbers<[1], [0], [0], [1], [0, 0, 1, 1], [], []>} : vector<11x64xf32>, vector<64x32xf32>, vector<11x32xf32> -> vector<11x32xf32>
    %375 = arith.addf %369, %374 : vector<11x32xf32>
    %c5_334 = arith.constant 5 : index
    %c0_335 = arith.constant 0 : index
    %c0_336 = arith.constant 0 : index
    %376 = vector.load %arg12[%c5_334, %c0_335, %c0_336] : memref<12x12x64xf32, #tpu.memory_space<vmem>>, vector<1x11x64xf32>
    %377 = vector.shape_cast %376 : vector<1x11x64xf32> to vector<11x64xf32>
    %c2_337 = arith.constant 2 : index
    %c0_338 = arith.constant 0 : index
    %c0_339 = arith.constant 0 : index
    %378 = vector.load %arg4[%c2_337, %c0_338, %c0_339] : memref<4x64x32xf32, #tpu.memory_space<vmem>>, vector<1x64x32xf32>
    %379 = vector.shape_cast %378 : vector<1x64x32xf32> to vector<64x32xf32>
    %cst_340 = arith.constant dense<0.000000e+00> : vector<11x32xf32>
    %380 = tpu.matmul %377, %379, %cst_340 {dimension_numbers = #tpu.dot_dimension_numbers<[1], [0], [0], [1], [0, 0, 1, 1], [], []>} : vector<11x64xf32>, vector<64x32xf32>, vector<11x32xf32> -> vector<11x32xf32>
    %381 = arith.addf %375, %380 : vector<11x32xf32>
    %c5_341 = arith.constant 5 : index
    %c1_342 = arith.constant 1 : index
    %c0_343 = arith.constant 0 : index
    %382 = vector.load %arg12[%c5_341, %c1_342, %c0_343] : memref<12x12x64xf32, #tpu.memory_space<vmem>>, vector<1x11x64xf32>
    %383 = vector.shape_cast %382 : vector<1x11x64xf32> to vector<11x64xf32>
    %c3_344 = arith.constant 3 : index
    %c0_345 = arith.constant 0 : index
    %c0_346 = arith.constant 0 : index
    %384 = vector.load %arg4[%c3_344, %c0_345, %c0_346] : memref<4x64x32xf32, #tpu.memory_space<vmem>>, vector<1x64x32xf32>
    %385 = vector.shape_cast %384 : vector<1x64x32xf32> to vector<64x32xf32>
    %cst_347 = arith.constant dense<0.000000e+00> : vector<11x32xf32>
    %386 = tpu.matmul %383, %385, %cst_347 {dimension_numbers = #tpu.dot_dimension_numbers<[1], [0], [0], [1], [0, 0, 1, 1], [], []>} : vector<11x64xf32>, vector<64x32xf32>, vector<11x32xf32> -> vector<11x32xf32>
    %387 = arith.addf %381, %386 : vector<11x32xf32>
    %388 = vector.broadcast %204 : vector<1x32xf32> to vector<11x32xf32>
    %389 = arith.addf %387, %388 : vector<11x32xf32>
    %cst_348 = arith.constant 0.000000e+00 : f32
    %390 = vector.broadcast %cst_348 : f32 to vector<11x32xf32>
    %391 = arith.maximumf %389, %390 : vector<11x32xf32>
    %392 = arith.maximumf %362, %391 : vector<11x32xf32>
    %393 = arith.maximumf %333, %392 : vector<11x32xf32>
    %cst_349 = arith.constant dense<0.000000e+00> : vector<5x32xf32>
    %394 = tpu.matmul %206, %393, %cst_349 {dimension_numbers = #tpu.dot_dimension_numbers<[1], [0], [0], [1], [0, 0, 1, 1], [], []>} : vector<5x11xf32>, vector<11x32xf32>, vector<5x32xf32> -> vector<5x32xf32>
    %cst_350 = arith.constant dense<0.000000e+00> : vector<5x32xf32>
    %395 = tpu.matmul %208, %393, %cst_350 {dimension_numbers = #tpu.dot_dimension_numbers<[1], [0], [0], [1], [0, 0, 1, 1], [], []>} : vector<5x11xf32>, vector<11x32xf32>, vector<5x32xf32> -> vector<5x32xf32>
    %cst_351 = arith.constant dense<0.000000e+00> : vector<5x32xf32>
    %396 = tpu.matmul %210, %393, %cst_351 {dimension_numbers = #tpu.dot_dimension_numbers<[1], [0], [0], [1], [0, 0, 1, 1], [], []>} : vector<5x11xf32>, vector<11x32xf32>, vector<5x32xf32> -> vector<5x32xf32>
    %397 = arith.maximumf %395, %396 : vector<5x32xf32>
    %398 = arith.maximumf %394, %397 : vector<5x32xf32>
    %cst_352 = arith.constant 0.000000e+00 : f32
    %399 = vector.broadcast %cst_352 : f32 to vector<11x32xf32>
    %c4_353 = arith.constant 4 : index
    %c0_354 = arith.constant 0 : index
    %c0_355 = arith.constant 0 : index
    %400 = vector.load %arg12[%c4_353, %c0_354, %c0_355] : memref<12x12x64xf32, #tpu.memory_space<vmem>>, vector<1x11x64xf32>
    %401 = vector.shape_cast %400 : vector<1x11x64xf32> to vector<11x64xf32>
    %c0_356 = arith.constant 0 : index
    %c0_357 = arith.constant 0 : index
    %c0_358 = arith.constant 0 : index
    %402 = vector.load %arg4[%c0_356, %c0_357, %c0_358] : memref<4x64x32xf32, #tpu.memory_space<vmem>>, vector<1x64x32xf32>
    %403 = vector.shape_cast %402 : vector<1x64x32xf32> to vector<64x32xf32>
    %cst_359 = arith.constant dense<0.000000e+00> : vector<11x32xf32>
    %404 = tpu.matmul %401, %403, %cst_359 {dimension_numbers = #tpu.dot_dimension_numbers<[1], [0], [0], [1], [0, 0, 1, 1], [], []>} : vector<11x64xf32>, vector<64x32xf32>, vector<11x32xf32> -> vector<11x32xf32>
    %405 = arith.addf %399, %404 : vector<11x32xf32>
    %c4_360 = arith.constant 4 : index
    %c1_361 = arith.constant 1 : index
    %c0_362 = arith.constant 0 : index
    %406 = vector.load %arg12[%c4_360, %c1_361, %c0_362] : memref<12x12x64xf32, #tpu.memory_space<vmem>>, vector<1x11x64xf32>
    %407 = vector.shape_cast %406 : vector<1x11x64xf32> to vector<11x64xf32>
    %c1_363 = arith.constant 1 : index
    %c0_364 = arith.constant 0 : index
    %c0_365 = arith.constant 0 : index
    %408 = vector.load %arg4[%c1_363, %c0_364, %c0_365] : memref<4x64x32xf32, #tpu.memory_space<vmem>>, vector<1x64x32xf32>
    %409 = vector.shape_cast %408 : vector<1x64x32xf32> to vector<64x32xf32>
    %cst_366 = arith.constant dense<0.000000e+00> : vector<11x32xf32>
    %410 = tpu.matmul %407, %409, %cst_366 {dimension_numbers = #tpu.dot_dimension_numbers<[1], [0], [0], [1], [0, 0, 1, 1], [], []>} : vector<11x64xf32>, vector<64x32xf32>, vector<11x32xf32> -> vector<11x32xf32>
    %411 = arith.addf %405, %410 : vector<11x32xf32>
    %c5_367 = arith.constant 5 : index
    %c0_368 = arith.constant 0 : index
    %c0_369 = arith.constant 0 : index
    %412 = vector.load %arg12[%c5_367, %c0_368, %c0_369] : memref<12x12x64xf32, #tpu.memory_space<vmem>>, vector<1x11x64xf32>
    %413 = vector.shape_cast %412 : vector<1x11x64xf32> to vector<11x64xf32>
    %c2_370 = arith.constant 2 : index
    %c0_371 = arith.constant 0 : index
    %c0_372 = arith.constant 0 : index
    %414 = vector.load %arg4[%c2_370, %c0_371, %c0_372] : memref<4x64x32xf32, #tpu.memory_space<vmem>>, vector<1x64x32xf32>
    %415 = vector.shape_cast %414 : vector<1x64x32xf32> to vector<64x32xf32>
    %cst_373 = arith.constant dense<0.000000e+00> : vector<11x32xf32>
    %416 = tpu.matmul %413, %415, %cst_373 {dimension_numbers = #tpu.dot_dimension_numbers<[1], [0], [0], [1], [0, 0, 1, 1], [], []>} : vector<11x64xf32>, vector<64x32xf32>, vector<11x32xf32> -> vector<11x32xf32>
    %417 = arith.addf %411, %416 : vector<11x32xf32>
    %c5_374 = arith.constant 5 : index
    %c1_375 = arith.constant 1 : index
    %c0_376 = arith.constant 0 : index
    %418 = vector.load %arg12[%c5_374, %c1_375, %c0_376] : memref<12x12x64xf32, #tpu.memory_space<vmem>>, vector<1x11x64xf32>
    %419 = vector.shape_cast %418 : vector<1x11x64xf32> to vector<11x64xf32>
    %c3_377 = arith.constant 3 : index
    %c0_378 = arith.constant 0 : index
    %c0_379 = arith.constant 0 : index
    %420 = vector.load %arg4[%c3_377, %c0_378, %c0_379] : memref<4x64x32xf32, #tpu.memory_space<vmem>>, vector<1x64x32xf32>
    %421 = vector.shape_cast %420 : vector<1x64x32xf32> to vector<64x32xf32>
    %cst_380 = arith.constant dense<0.000000e+00> : vector<11x32xf32>
    %422 = tpu.matmul %419, %421, %cst_380 {dimension_numbers = #tpu.dot_dimension_numbers<[1], [0], [0], [1], [0, 0, 1, 1], [], []>} : vector<11x64xf32>, vector<64x32xf32>, vector<11x32xf32> -> vector<11x32xf32>
    %423 = arith.addf %417, %422 : vector<11x32xf32>
    %424 = vector.broadcast %204 : vector<1x32xf32> to vector<11x32xf32>
    %425 = arith.addf %423, %424 : vector<11x32xf32>
    %cst_381 = arith.constant 0.000000e+00 : f32
    %426 = vector.broadcast %cst_381 : f32 to vector<11x32xf32>
    %427 = arith.maximumf %425, %426 : vector<11x32xf32>
    %cst_382 = arith.constant 0.000000e+00 : f32
    %428 = vector.broadcast %cst_382 : f32 to vector<11x32xf32>
    %c5_383 = arith.constant 5 : index
    %c0_384 = arith.constant 0 : index
    %c0_385 = arith.constant 0 : index
    %429 = vector.load %arg12[%c5_383, %c0_384, %c0_385] : memref<12x12x64xf32, #tpu.memory_space<vmem>>, vector<1x11x64xf32>
    %430 = vector.shape_cast %429 : vector<1x11x64xf32> to vector<11x64xf32>
    %c0_386 = arith.constant 0 : index
    %c0_387 = arith.constant 0 : index
    %c0_388 = arith.constant 0 : index
    %431 = vector.load %arg4[%c0_386, %c0_387, %c0_388] : memref<4x64x32xf32, #tpu.memory_space<vmem>>, vector<1x64x32xf32>
    %432 = vector.shape_cast %431 : vector<1x64x32xf32> to vector<64x32xf32>
    %cst_389 = arith.constant dense<0.000000e+00> : vector<11x32xf32>
    %433 = tpu.matmul %430, %432, %cst_389 {dimension_numbers = #tpu.dot_dimension_numbers<[1], [0], [0], [1], [0, 0, 1, 1], [], []>} : vector<11x64xf32>, vector<64x32xf32>, vector<11x32xf32> -> vector<11x32xf32>
    %434 = arith.addf %428, %433 : vector<11x32xf32>
    %c5_390 = arith.constant 5 : index
    %c1_391 = arith.constant 1 : index
    %c0_392 = arith.constant 0 : index
    %435 = vector.load %arg12[%c5_390, %c1_391, %c0_392] : memref<12x12x64xf32, #tpu.memory_space<vmem>>, vector<1x11x64xf32>
    %436 = vector.shape_cast %435 : vector<1x11x64xf32> to vector<11x64xf32>
    %c1_393 = arith.constant 1 : index
    %c0_394 = arith.constant 0 : index
    %c0_395 = arith.constant 0 : index
    %437 = vector.load %arg4[%c1_393, %c0_394, %c0_395] : memref<4x64x32xf32, #tpu.memory_space<vmem>>, vector<1x64x32xf32>
    %438 = vector.shape_cast %437 : vector<1x64x32xf32> to vector<64x32xf32>
    %cst_396 = arith.constant dense<0.000000e+00> : vector<11x32xf32>
    %439 = tpu.matmul %436, %438, %cst_396 {dimension_numbers = #tpu.dot_dimension_numbers<[1], [0], [0], [1], [0, 0, 1, 1], [], []>} : vector<11x64xf32>, vector<64x32xf32>, vector<11x32xf32> -> vector<11x32xf32>
    %440 = arith.addf %434, %439 : vector<11x32xf32>
    %c6_397 = arith.constant 6 : index
    %c0_398 = arith.constant 0 : index
    %c0_399 = arith.constant 0 : index
    %441 = vector.load %arg12[%c6_397, %c0_398, %c0_399] : memref<12x12x64xf32, #tpu.memory_space<vmem>>, vector<1x11x64xf32>
    %442 = vector.shape_cast %441 : vector<1x11x64xf32> to vector<11x64xf32>
    %c2_400 = arith.constant 2 : index
    %c0_401 = arith.constant 0 : index
    %c0_402 = arith.constant 0 : index
    %443 = vector.load %arg4[%c2_400, %c0_401, %c0_402] : memref<4x64x32xf32, #tpu.memory_space<vmem>>, vector<1x64x32xf32>
    %444 = vector.shape_cast %443 : vector<1x64x32xf32> to vector<64x32xf32>
    %cst_403 = arith.constant dense<0.000000e+00> : vector<11x32xf32>
    %445 = tpu.matmul %442, %444, %cst_403 {dimension_numbers = #tpu.dot_dimension_numbers<[1], [0], [0], [1], [0, 0, 1, 1], [], []>} : vector<11x64xf32>, vector<64x32xf32>, vector<11x32xf32> -> vector<11x32xf32>
    %446 = arith.addf %440, %445 : vector<11x32xf32>
    %c6_404 = arith.constant 6 : index
    %c1_405 = arith.constant 1 : index
    %c0_406 = arith.constant 0 : index
    %447 = vector.load %arg12[%c6_404, %c1_405, %c0_406] : memref<12x12x64xf32, #tpu.memory_space<vmem>>, vector<1x11x64xf32>
    %448 = vector.shape_cast %447 : vector<1x11x64xf32> to vector<11x64xf32>
    %c3_407 = arith.constant 3 : index
    %c0_408 = arith.constant 0 : index
    %c0_409 = arith.constant 0 : index
    %449 = vector.load %arg4[%c3_407, %c0_408, %c0_409] : memref<4x64x32xf32, #tpu.memory_space<vmem>>, vector<1x64x32xf32>
    %450 = vector.shape_cast %449 : vector<1x64x32xf32> to vector<64x32xf32>
    %cst_410 = arith.constant dense<0.000000e+00> : vector<11x32xf32>
    %451 = tpu.matmul %448, %450, %cst_410 {dimension_numbers = #tpu.dot_dimension_numbers<[1], [0], [0], [1], [0, 0, 1, 1], [], []>} : vector<11x64xf32>, vector<64x32xf32>, vector<11x32xf32> -> vector<11x32xf32>
    %452 = arith.addf %446, %451 : vector<11x32xf32>
    %453 = vector.broadcast %204 : vector<1x32xf32> to vector<11x32xf32>
    %454 = arith.addf %452, %453 : vector<11x32xf32>
    %cst_411 = arith.constant 0.000000e+00 : f32
    %455 = vector.broadcast %cst_411 : f32 to vector<11x32xf32>
    %456 = arith.maximumf %454, %455 : vector<11x32xf32>
    %cst_412 = arith.constant 0.000000e+00 : f32
    %457 = vector.broadcast %cst_412 : f32 to vector<11x32xf32>
    %c6_413 = arith.constant 6 : index
    %c0_414 = arith.constant 0 : index
    %c0_415 = arith.constant 0 : index
    %458 = vector.load %arg12[%c6_413, %c0_414, %c0_415] : memref<12x12x64xf32, #tpu.memory_space<vmem>>, vector<1x11x64xf32>
    %459 = vector.shape_cast %458 : vector<1x11x64xf32> to vector<11x64xf32>
    %c0_416 = arith.constant 0 : index
    %c0_417 = arith.constant 0 : index
    %c0_418 = arith.constant 0 : index
    %460 = vector.load %arg4[%c0_416, %c0_417, %c0_418] : memref<4x64x32xf32, #tpu.memory_space<vmem>>, vector<1x64x32xf32>
    %461 = vector.shape_cast %460 : vector<1x64x32xf32> to vector<64x32xf32>
    %cst_419 = arith.constant dense<0.000000e+00> : vector<11x32xf32>
    %462 = tpu.matmul %459, %461, %cst_419 {dimension_numbers = #tpu.dot_dimension_numbers<[1], [0], [0], [1], [0, 0, 1, 1], [], []>} : vector<11x64xf32>, vector<64x32xf32>, vector<11x32xf32> -> vector<11x32xf32>
    %463 = arith.addf %457, %462 : vector<11x32xf32>
    %c6_420 = arith.constant 6 : index
    %c1_421 = arith.constant 1 : index
    %c0_422 = arith.constant 0 : index
    %464 = vector.load %arg12[%c6_420, %c1_421, %c0_422] : memref<12x12x64xf32, #tpu.memory_space<vmem>>, vector<1x11x64xf32>
    %465 = vector.shape_cast %464 : vector<1x11x64xf32> to vector<11x64xf32>
    %c1_423 = arith.constant 1 : index
    %c0_424 = arith.constant 0 : index
    %c0_425 = arith.constant 0 : index
    %466 = vector.load %arg4[%c1_423, %c0_424, %c0_425] : memref<4x64x32xf32, #tpu.memory_space<vmem>>, vector<1x64x32xf32>
    %467 = vector.shape_cast %466 : vector<1x64x32xf32> to vector<64x32xf32>
    %cst_426 = arith.constant dense<0.000000e+00> : vector<11x32xf32>
    %468 = tpu.matmul %465, %467, %cst_426 {dimension_numbers = #tpu.dot_dimension_numbers<[1], [0], [0], [1], [0, 0, 1, 1], [], []>} : vector<11x64xf32>, vector<64x32xf32>, vector<11x32xf32> -> vector<11x32xf32>
    %469 = arith.addf %463, %468 : vector<11x32xf32>
    %c7_427 = arith.constant 7 : index
    %c0_428 = arith.constant 0 : index
    %c0_429 = arith.constant 0 : index
    %470 = vector.load %arg12[%c7_427, %c0_428, %c0_429] : memref<12x12x64xf32, #tpu.memory_space<vmem>>, vector<1x11x64xf32>
    %471 = vector.shape_cast %470 : vector<1x11x64xf32> to vector<11x64xf32>
    %c2_430 = arith.constant 2 : index
    %c0_431 = arith.constant 0 : index
    %c0_432 = arith.constant 0 : index
    %472 = vector.load %arg4[%c2_430, %c0_431, %c0_432] : memref<4x64x32xf32, #tpu.memory_space<vmem>>, vector<1x64x32xf32>
    %473 = vector.shape_cast %472 : vector<1x64x32xf32> to vector<64x32xf32>
    %cst_433 = arith.constant dense<0.000000e+00> : vector<11x32xf32>
    %474 = tpu.matmul %471, %473, %cst_433 {dimension_numbers = #tpu.dot_dimension_numbers<[1], [0], [0], [1], [0, 0, 1, 1], [], []>} : vector<11x64xf32>, vector<64x32xf32>, vector<11x32xf32> -> vector<11x32xf32>
    %475 = arith.addf %469, %474 : vector<11x32xf32>
    %c7_434 = arith.constant 7 : index
    %c1_435 = arith.constant 1 : index
    %c0_436 = arith.constant 0 : index
    %476 = vector.load %arg12[%c7_434, %c1_435, %c0_436] : memref<12x12x64xf32, #tpu.memory_space<vmem>>, vector<1x11x64xf32>
    %477 = vector.shape_cast %476 : vector<1x11x64xf32> to vector<11x64xf32>
    %c3_437 = arith.constant 3 : index
    %c0_438 = arith.constant 0 : index
    %c0_439 = arith.constant 0 : index
    %478 = vector.load %arg4[%c3_437, %c0_438, %c0_439] : memref<4x64x32xf32, #tpu.memory_space<vmem>>, vector<1x64x32xf32>
    %479 = vector.shape_cast %478 : vector<1x64x32xf32> to vector<64x32xf32>
    %cst_440 = arith.constant dense<0.000000e+00> : vector<11x32xf32>
    %480 = tpu.matmul %477, %479, %cst_440 {dimension_numbers = #tpu.dot_dimension_numbers<[1], [0], [0], [1], [0, 0, 1, 1], [], []>} : vector<11x64xf32>, vector<64x32xf32>, vector<11x32xf32> -> vector<11x32xf32>
    %481 = arith.addf %475, %480 : vector<11x32xf32>
    %482 = vector.broadcast %204 : vector<1x32xf32> to vector<11x32xf32>
    %483 = arith.addf %481, %482 : vector<11x32xf32>
    %cst_441 = arith.constant 0.000000e+00 : f32
    %484 = vector.broadcast %cst_441 : f32 to vector<11x32xf32>
    %485 = arith.maximumf %483, %484 : vector<11x32xf32>
    %486 = arith.maximumf %456, %485 : vector<11x32xf32>
    %487 = arith.maximumf %427, %486 : vector<11x32xf32>
    %cst_442 = arith.constant dense<0.000000e+00> : vector<5x32xf32>
    %488 = tpu.matmul %206, %487, %cst_442 {dimension_numbers = #tpu.dot_dimension_numbers<[1], [0], [0], [1], [0, 0, 1, 1], [], []>} : vector<5x11xf32>, vector<11x32xf32>, vector<5x32xf32> -> vector<5x32xf32>
    %cst_443 = arith.constant dense<0.000000e+00> : vector<5x32xf32>
    %489 = tpu.matmul %208, %487, %cst_443 {dimension_numbers = #tpu.dot_dimension_numbers<[1], [0], [0], [1], [0, 0, 1, 1], [], []>} : vector<5x11xf32>, vector<11x32xf32>, vector<5x32xf32> -> vector<5x32xf32>
    %cst_444 = arith.constant dense<0.000000e+00> : vector<5x32xf32>
    %490 = tpu.matmul %210, %487, %cst_444 {dimension_numbers = #tpu.dot_dimension_numbers<[1], [0], [0], [1], [0, 0, 1, 1], [], []>} : vector<5x11xf32>, vector<11x32xf32>, vector<5x32xf32> -> vector<5x32xf32>
    %491 = arith.maximumf %489, %490 : vector<5x32xf32>
    %492 = arith.maximumf %488, %491 : vector<5x32xf32>
    %cst_445 = arith.constant 0.000000e+00 : f32
    %493 = vector.broadcast %cst_445 : f32 to vector<11x32xf32>
    %c6_446 = arith.constant 6 : index
    %c0_447 = arith.constant 0 : index
    %c0_448 = arith.constant 0 : index
    %494 = vector.load %arg12[%c6_446, %c0_447, %c0_448] : memref<12x12x64xf32, #tpu.memory_space<vmem>>, vector<1x11x64xf32>
    %495 = vector.shape_cast %494 : vector<1x11x64xf32> to vector<11x64xf32>
    %c0_449 = arith.constant 0 : index
    %c0_450 = arith.constant 0 : index
    %c0_451 = arith.constant 0 : index
    %496 = vector.load %arg4[%c0_449, %c0_450, %c0_451] : memref<4x64x32xf32, #tpu.memory_space<vmem>>, vector<1x64x32xf32>
    %497 = vector.shape_cast %496 : vector<1x64x32xf32> to vector<64x32xf32>
    %cst_452 = arith.constant dense<0.000000e+00> : vector<11x32xf32>
    %498 = tpu.matmul %495, %497, %cst_452 {dimension_numbers = #tpu.dot_dimension_numbers<[1], [0], [0], [1], [0, 0, 1, 1], [], []>} : vector<11x64xf32>, vector<64x32xf32>, vector<11x32xf32> -> vector<11x32xf32>
    %499 = arith.addf %493, %498 : vector<11x32xf32>
    %c6_453 = arith.constant 6 : index
    %c1_454 = arith.constant 1 : index
    %c0_455 = arith.constant 0 : index
    %500 = vector.load %arg12[%c6_453, %c1_454, %c0_455] : memref<12x12x64xf32, #tpu.memory_space<vmem>>, vector<1x11x64xf32>
    %501 = vector.shape_cast %500 : vector<1x11x64xf32> to vector<11x64xf32>
    %c1_456 = arith.constant 1 : index
    %c0_457 = arith.constant 0 : index
    %c0_458 = arith.constant 0 : index
    %502 = vector.load %arg4[%c1_456, %c0_457, %c0_458] : memref<4x64x32xf32, #tpu.memory_space<vmem>>, vector<1x64x32xf32>
    %503 = vector.shape_cast %502 : vector<1x64x32xf32> to vector<64x32xf32>
    %cst_459 = arith.constant dense<0.000000e+00> : vector<11x32xf32>
    %504 = tpu.matmul %501, %503, %cst_459 {dimension_numbers = #tpu.dot_dimension_numbers<[1], [0], [0], [1], [0, 0, 1, 1], [], []>} : vector<11x64xf32>, vector<64x32xf32>, vector<11x32xf32> -> vector<11x32xf32>
    %505 = arith.addf %499, %504 : vector<11x32xf32>
    %c7_460 = arith.constant 7 : index
    %c0_461 = arith.constant 0 : index
    %c0_462 = arith.constant 0 : index
    %506 = vector.load %arg12[%c7_460, %c0_461, %c0_462] : memref<12x12x64xf32, #tpu.memory_space<vmem>>, vector<1x11x64xf32>
    %507 = vector.shape_cast %506 : vector<1x11x64xf32> to vector<11x64xf32>
    %c2_463 = arith.constant 2 : index
    %c0_464 = arith.constant 0 : index
    %c0_465 = arith.constant 0 : index
    %508 = vector.load %arg4[%c2_463, %c0_464, %c0_465] : memref<4x64x32xf32, #tpu.memory_space<vmem>>, vector<1x64x32xf32>
    %509 = vector.shape_cast %508 : vector<1x64x32xf32> to vector<64x32xf32>
    %cst_466 = arith.constant dense<0.000000e+00> : vector<11x32xf32>
    %510 = tpu.matmul %507, %509, %cst_466 {dimension_numbers = #tpu.dot_dimension_numbers<[1], [0], [0], [1], [0, 0, 1, 1], [], []>} : vector<11x64xf32>, vector<64x32xf32>, vector<11x32xf32> -> vector<11x32xf32>
    %511 = arith.addf %505, %510 : vector<11x32xf32>
    %c7_467 = arith.constant 7 : index
    %c1_468 = arith.constant 1 : index
    %c0_469 = arith.constant 0 : index
    %512 = vector.load %arg12[%c7_467, %c1_468, %c0_469] : memref<12x12x64xf32, #tpu.memory_space<vmem>>, vector<1x11x64xf32>
    %513 = vector.shape_cast %512 : vector<1x11x64xf32> to vector<11x64xf32>
    %c3_470 = arith.constant 3 : index
    %c0_471 = arith.constant 0 : index
    %c0_472 = arith.constant 0 : index
    %514 = vector.load %arg4[%c3_470, %c0_471, %c0_472] : memref<4x64x32xf32, #tpu.memory_space<vmem>>, vector<1x64x32xf32>
    %515 = vector.shape_cast %514 : vector<1x64x32xf32> to vector<64x32xf32>
    %cst_473 = arith.constant dense<0.000000e+00> : vector<11x32xf32>
    %516 = tpu.matmul %513, %515, %cst_473 {dimension_numbers = #tpu.dot_dimension_numbers<[1], [0], [0], [1], [0, 0, 1, 1], [], []>} : vector<11x64xf32>, vector<64x32xf32>, vector<11x32xf32> -> vector<11x32xf32>
    %517 = arith.addf %511, %516 : vector<11x32xf32>
    %518 = vector.broadcast %204 : vector<1x32xf32> to vector<11x32xf32>
    %519 = arith.addf %517, %518 : vector<11x32xf32>
    %cst_474 = arith.constant 0.000000e+00 : f32
    %520 = vector.broadcast %cst_474 : f32 to vector<11x32xf32>
    %521 = arith.maximumf %519, %520 : vector<11x32xf32>
    %cst_475 = arith.constant 0.000000e+00 : f32
    %522 = vector.broadcast %cst_475 : f32 to vector<11x32xf32>
    %c7_476 = arith.constant 7 : index
    %c0_477 = arith.constant 0 : index
    %c0_478 = arith.constant 0 : index
    %523 = vector.load %arg12[%c7_476, %c0_477, %c0_478] : memref<12x12x64xf32, #tpu.memory_space<vmem>>, vector<1x11x64xf32>
    %524 = vector.shape_cast %523 : vector<1x11x64xf32> to vector<11x64xf32>
    %c0_479 = arith.constant 0 : index
    %c0_480 = arith.constant 0 : index
    %c0_481 = arith.constant 0 : index
    %525 = vector.load %arg4[%c0_479, %c0_480, %c0_481] : memref<4x64x32xf32, #tpu.memory_space<vmem>>, vector<1x64x32xf32>
    %526 = vector.shape_cast %525 : vector<1x64x32xf32> to vector<64x32xf32>
    %cst_482 = arith.constant dense<0.000000e+00> : vector<11x32xf32>
    %527 = tpu.matmul %524, %526, %cst_482 {dimension_numbers = #tpu.dot_dimension_numbers<[1], [0], [0], [1], [0, 0, 1, 1], [], []>} : vector<11x64xf32>, vector<64x32xf32>, vector<11x32xf32> -> vector<11x32xf32>
    %528 = arith.addf %522, %527 : vector<11x32xf32>
    %c7_483 = arith.constant 7 : index
    %c1_484 = arith.constant 1 : index
    %c0_485 = arith.constant 0 : index
    %529 = vector.load %arg12[%c7_483, %c1_484, %c0_485] : memref<12x12x64xf32, #tpu.memory_space<vmem>>, vector<1x11x64xf32>
    %530 = vector.shape_cast %529 : vector<1x11x64xf32> to vector<11x64xf32>
    %c1_486 = arith.constant 1 : index
    %c0_487 = arith.constant 0 : index
    %c0_488 = arith.constant 0 : index
    %531 = vector.load %arg4[%c1_486, %c0_487, %c0_488] : memref<4x64x32xf32, #tpu.memory_space<vmem>>, vector<1x64x32xf32>
    %532 = vector.shape_cast %531 : vector<1x64x32xf32> to vector<64x32xf32>
    %cst_489 = arith.constant dense<0.000000e+00> : vector<11x32xf32>
    %533 = tpu.matmul %530, %532, %cst_489 {dimension_numbers = #tpu.dot_dimension_numbers<[1], [0], [0], [1], [0, 0, 1, 1], [], []>} : vector<11x64xf32>, vector<64x32xf32>, vector<11x32xf32> -> vector<11x32xf32>
    %534 = arith.addf %528, %533 : vector<11x32xf32>
    %c8_490 = arith.constant 8 : index
    %c0_491 = arith.constant 0 : index
    %c0_492 = arith.constant 0 : index
    %535 = vector.load %arg12[%c8_490, %c0_491, %c0_492] : memref<12x12x64xf32, #tpu.memory_space<vmem>>, vector<1x11x64xf32>
    %536 = vector.shape_cast %535 : vector<1x11x64xf32> to vector<11x64xf32>
    %c2_493 = arith.constant 2 : index
    %c0_494 = arith.constant 0 : index
    %c0_495 = arith.constant 0 : index
    %537 = vector.load %arg4[%c2_493, %c0_494, %c0_495] : memref<4x64x32xf32, #tpu.memory_space<vmem>>, vector<1x64x32xf32>
    %538 = vector.shape_cast %537 : vector<1x64x32xf32> to vector<64x32xf32>
    %cst_496 = arith.constant dense<0.000000e+00> : vector<11x32xf32>
    %539 = tpu.matmul %536, %538, %cst_496 {dimension_numbers = #tpu.dot_dimension_numbers<[1], [0], [0], [1], [0, 0, 1, 1], [], []>} : vector<11x64xf32>, vector<64x32xf32>, vector<11x32xf32> -> vector<11x32xf32>
    %540 = arith.addf %534, %539 : vector<11x32xf32>
    %c8_497 = arith.constant 8 : index
    %c1_498 = arith.constant 1 : index
    %c0_499 = arith.constant 0 : index
    %541 = vector.load %arg12[%c8_497, %c1_498, %c0_499] : memref<12x12x64xf32, #tpu.memory_space<vmem>>, vector<1x11x64xf32>
    %542 = vector.shape_cast %541 : vector<1x11x64xf32> to vector<11x64xf32>
    %c3_500 = arith.constant 3 : index
    %c0_501 = arith.constant 0 : index
    %c0_502 = arith.constant 0 : index
    %543 = vector.load %arg4[%c3_500, %c0_501, %c0_502] : memref<4x64x32xf32, #tpu.memory_space<vmem>>, vector<1x64x32xf32>
    %544 = vector.shape_cast %543 : vector<1x64x32xf32> to vector<64x32xf32>
    %cst_503 = arith.constant dense<0.000000e+00> : vector<11x32xf32>
    %545 = tpu.matmul %542, %544, %cst_503 {dimension_numbers = #tpu.dot_dimension_numbers<[1], [0], [0], [1], [0, 0, 1, 1], [], []>} : vector<11x64xf32>, vector<64x32xf32>, vector<11x32xf32> -> vector<11x32xf32>
    %546 = arith.addf %540, %545 : vector<11x32xf32>
    %547 = vector.broadcast %204 : vector<1x32xf32> to vector<11x32xf32>
    %548 = arith.addf %546, %547 : vector<11x32xf32>
    %cst_504 = arith.constant 0.000000e+00 : f32
    %549 = vector.broadcast %cst_504 : f32 to vector<11x32xf32>
    %550 = arith.maximumf %548, %549 : vector<11x32xf32>
    %cst_505 = arith.constant 0.000000e+00 : f32
    %551 = vector.broadcast %cst_505 : f32 to vector<11x32xf32>
    %c8_506 = arith.constant 8 : index
    %c0_507 = arith.constant 0 : index
    %c0_508 = arith.constant 0 : index
    %552 = vector.load %arg12[%c8_506, %c0_507, %c0_508] : memref<12x12x64xf32, #tpu.memory_space<vmem>>, vector<1x11x64xf32>
    %553 = vector.shape_cast %552 : vector<1x11x64xf32> to vector<11x64xf32>
    %c0_509 = arith.constant 0 : index
    %c0_510 = arith.constant 0 : index
    %c0_511 = arith.constant 0 : index
    %554 = vector.load %arg4[%c0_509, %c0_510, %c0_511] : memref<4x64x32xf32, #tpu.memory_space<vmem>>, vector<1x64x32xf32>
    %555 = vector.shape_cast %554 : vector<1x64x32xf32> to vector<64x32xf32>
    %cst_512 = arith.constant dense<0.000000e+00> : vector<11x32xf32>
    %556 = tpu.matmul %553, %555, %cst_512 {dimension_numbers = #tpu.dot_dimension_numbers<[1], [0], [0], [1], [0, 0, 1, 1], [], []>} : vector<11x64xf32>, vector<64x32xf32>, vector<11x32xf32> -> vector<11x32xf32>
    %557 = arith.addf %551, %556 : vector<11x32xf32>
    %c8_513 = arith.constant 8 : index
    %c1_514 = arith.constant 1 : index
    %c0_515 = arith.constant 0 : index
    %558 = vector.load %arg12[%c8_513, %c1_514, %c0_515] : memref<12x12x64xf32, #tpu.memory_space<vmem>>, vector<1x11x64xf32>
    %559 = vector.shape_cast %558 : vector<1x11x64xf32> to vector<11x64xf32>
    %c1_516 = arith.constant 1 : index
    %c0_517 = arith.constant 0 : index
    %c0_518 = arith.constant 0 : index
    %560 = vector.load %arg4[%c1_516, %c0_517, %c0_518] : memref<4x64x32xf32, #tpu.memory_space<vmem>>, vector<1x64x32xf32>
    %561 = vector.shape_cast %560 : vector<1x64x32xf32> to vector<64x32xf32>
    %cst_519 = arith.constant dense<0.000000e+00> : vector<11x32xf32>
    %562 = tpu.matmul %559, %561, %cst_519 {dimension_numbers = #tpu.dot_dimension_numbers<[1], [0], [0], [1], [0, 0, 1, 1], [], []>} : vector<11x64xf32>, vector<64x32xf32>, vector<11x32xf32> -> vector<11x32xf32>
    %563 = arith.addf %557, %562 : vector<11x32xf32>
    %c9_520 = arith.constant 9 : index
    %c0_521 = arith.constant 0 : index
    %c0_522 = arith.constant 0 : index
    %564 = vector.load %arg12[%c9_520, %c0_521, %c0_522] : memref<12x12x64xf32, #tpu.memory_space<vmem>>, vector<1x11x64xf32>
    %565 = vector.shape_cast %564 : vector<1x11x64xf32> to vector<11x64xf32>
    %c2_523 = arith.constant 2 : index
    %c0_524 = arith.constant 0 : index
    %c0_525 = arith.constant 0 : index
    %566 = vector.load %arg4[%c2_523, %c0_524, %c0_525] : memref<4x64x32xf32, #tpu.memory_space<vmem>>, vector<1x64x32xf32>
    %567 = vector.shape_cast %566 : vector<1x64x32xf32> to vector<64x32xf32>
    %cst_526 = arith.constant dense<0.000000e+00> : vector<11x32xf32>
    %568 = tpu.matmul %565, %567, %cst_526 {dimension_numbers = #tpu.dot_dimension_numbers<[1], [0], [0], [1], [0, 0, 1, 1], [], []>} : vector<11x64xf32>, vector<64x32xf32>, vector<11x32xf32> -> vector<11x32xf32>
    %569 = arith.addf %563, %568 : vector<11x32xf32>
    %c9_527 = arith.constant 9 : index
    %c1_528 = arith.constant 1 : index
    %c0_529 = arith.constant 0 : index
    %570 = vector.load %arg12[%c9_527, %c1_528, %c0_529] : memref<12x12x64xf32, #tpu.memory_space<vmem>>, vector<1x11x64xf32>
    %571 = vector.shape_cast %570 : vector<1x11x64xf32> to vector<11x64xf32>
    %c3_530 = arith.constant 3 : index
    %c0_531 = arith.constant 0 : index
    %c0_532 = arith.constant 0 : index
    %572 = vector.load %arg4[%c3_530, %c0_531, %c0_532] : memref<4x64x32xf32, #tpu.memory_space<vmem>>, vector<1x64x32xf32>
    %573 = vector.shape_cast %572 : vector<1x64x32xf32> to vector<64x32xf32>
    %cst_533 = arith.constant dense<0.000000e+00> : vector<11x32xf32>
    %574 = tpu.matmul %571, %573, %cst_533 {dimension_numbers = #tpu.dot_dimension_numbers<[1], [0], [0], [1], [0, 0, 1, 1], [], []>} : vector<11x64xf32>, vector<64x32xf32>, vector<11x32xf32> -> vector<11x32xf32>
    %575 = arith.addf %569, %574 : vector<11x32xf32>
    %576 = vector.broadcast %204 : vector<1x32xf32> to vector<11x32xf32>
    %577 = arith.addf %575, %576 : vector<11x32xf32>
    %cst_534 = arith.constant 0.000000e+00 : f32
    %578 = vector.broadcast %cst_534 : f32 to vector<11x32xf32>
    %579 = arith.maximumf %577, %578 : vector<11x32xf32>
    %580 = arith.maximumf %550, %579 : vector<11x32xf32>
    %581 = arith.maximumf %521, %580 : vector<11x32xf32>
    %cst_535 = arith.constant dense<0.000000e+00> : vector<5x32xf32>
    %582 = tpu.matmul %206, %581, %cst_535 {dimension_numbers = #tpu.dot_dimension_numbers<[1], [0], [0], [1], [0, 0, 1, 1], [], []>} : vector<5x11xf32>, vector<11x32xf32>, vector<5x32xf32> -> vector<5x32xf32>
    %cst_536 = arith.constant dense<0.000000e+00> : vector<5x32xf32>
    %583 = tpu.matmul %208, %581, %cst_536 {dimension_numbers = #tpu.dot_dimension_numbers<[1], [0], [0], [1], [0, 0, 1, 1], [], []>} : vector<5x11xf32>, vector<11x32xf32>, vector<5x32xf32> -> vector<5x32xf32>
    %cst_537 = arith.constant dense<0.000000e+00> : vector<5x32xf32>
    %584 = tpu.matmul %210, %581, %cst_537 {dimension_numbers = #tpu.dot_dimension_numbers<[1], [0], [0], [1], [0, 0, 1, 1], [], []>} : vector<5x11xf32>, vector<11x32xf32>, vector<5x32xf32> -> vector<5x32xf32>
    %585 = arith.maximumf %583, %584 : vector<5x32xf32>
    %586 = arith.maximumf %582, %585 : vector<5x32xf32>
    %cst_538 = arith.constant 0.000000e+00 : f32
    %587 = vector.broadcast %cst_538 : f32 to vector<11x32xf32>
    %c8_539 = arith.constant 8 : index
    %c0_540 = arith.constant 0 : index
    %c0_541 = arith.constant 0 : index
    %588 = vector.load %arg12[%c8_539, %c0_540, %c0_541] : memref<12x12x64xf32, #tpu.memory_space<vmem>>, vector<1x11x64xf32>
    %589 = vector.shape_cast %588 : vector<1x11x64xf32> to vector<11x64xf32>
    %c0_542 = arith.constant 0 : index
    %c0_543 = arith.constant 0 : index
    %c0_544 = arith.constant 0 : index
    %590 = vector.load %arg4[%c0_542, %c0_543, %c0_544] : memref<4x64x32xf32, #tpu.memory_space<vmem>>, vector<1x64x32xf32>
    %591 = vector.shape_cast %590 : vector<1x64x32xf32> to vector<64x32xf32>
    %cst_545 = arith.constant dense<0.000000e+00> : vector<11x32xf32>
    %592 = tpu.matmul %589, %591, %cst_545 {dimension_numbers = #tpu.dot_dimension_numbers<[1], [0], [0], [1], [0, 0, 1, 1], [], []>} : vector<11x64xf32>, vector<64x32xf32>, vector<11x32xf32> -> vector<11x32xf32>
    %593 = arith.addf %587, %592 : vector<11x32xf32>
    %c8_546 = arith.constant 8 : index
    %c1_547 = arith.constant 1 : index
    %c0_548 = arith.constant 0 : index
    %594 = vector.load %arg12[%c8_546, %c1_547, %c0_548] : memref<12x12x64xf32, #tpu.memory_space<vmem>>, vector<1x11x64xf32>
    %595 = vector.shape_cast %594 : vector<1x11x64xf32> to vector<11x64xf32>
    %c1_549 = arith.constant 1 : index
    %c0_550 = arith.constant 0 : index
    %c0_551 = arith.constant 0 : index
    %596 = vector.load %arg4[%c1_549, %c0_550, %c0_551] : memref<4x64x32xf32, #tpu.memory_space<vmem>>, vector<1x64x32xf32>
    %597 = vector.shape_cast %596 : vector<1x64x32xf32> to vector<64x32xf32>
    %cst_552 = arith.constant dense<0.000000e+00> : vector<11x32xf32>
    %598 = tpu.matmul %595, %597, %cst_552 {dimension_numbers = #tpu.dot_dimension_numbers<[1], [0], [0], [1], [0, 0, 1, 1], [], []>} : vector<11x64xf32>, vector<64x32xf32>, vector<11x32xf32> -> vector<11x32xf32>
    %599 = arith.addf %593, %598 : vector<11x32xf32>
    %c9_553 = arith.constant 9 : index
    %c0_554 = arith.constant 0 : index
    %c0_555 = arith.constant 0 : index
    %600 = vector.load %arg12[%c9_553, %c0_554, %c0_555] : memref<12x12x64xf32, #tpu.memory_space<vmem>>, vector<1x11x64xf32>
    %601 = vector.shape_cast %600 : vector<1x11x64xf32> to vector<11x64xf32>
    %c2_556 = arith.constant 2 : index
    %c0_557 = arith.constant 0 : index
    %c0_558 = arith.constant 0 : index
    %602 = vector.load %arg4[%c2_556, %c0_557, %c0_558] : memref<4x64x32xf32, #tpu.memory_space<vmem>>, vector<1x64x32xf32>
    %603 = vector.shape_cast %602 : vector<1x64x32xf32> to vector<64x32xf32>
    %cst_559 = arith.constant dense<0.000000e+00> : vector<11x32xf32>
    %604 = tpu.matmul %601, %603, %cst_559 {dimension_numbers = #tpu.dot_dimension_numbers<[1], [0], [0], [1], [0, 0, 1, 1], [], []>} : vector<11x64xf32>, vector<64x32xf32>, vector<11x32xf32> -> vector<11x32xf32>
    %605 = arith.addf %599, %604 : vector<11x32xf32>
    %c9_560 = arith.constant 9 : index
    %c1_561 = arith.constant 1 : index
    %c0_562 = arith.constant 0 : index
    %606 = vector.load %arg12[%c9_560, %c1_561, %c0_562] : memref<12x12x64xf32, #tpu.memory_space<vmem>>, vector<1x11x64xf32>
    %607 = vector.shape_cast %606 : vector<1x11x64xf32> to vector<11x64xf32>
    %c3_563 = arith.constant 3 : index
    %c0_564 = arith.constant 0 : index
    %c0_565 = arith.constant 0 : index
    %608 = vector.load %arg4[%c3_563, %c0_564, %c0_565] : memref<4x64x32xf32, #tpu.memory_space<vmem>>, vector<1x64x32xf32>
    %609 = vector.shape_cast %608 : vector<1x64x32xf32> to vector<64x32xf32>
    %cst_566 = arith.constant dense<0.000000e+00> : vector<11x32xf32>
    %610 = tpu.matmul %607, %609, %cst_566 {dimension_numbers = #tpu.dot_dimension_numbers<[1], [0], [0], [1], [0, 0, 1, 1], [], []>} : vector<11x64xf32>, vector<64x32xf32>, vector<11x32xf32> -> vector<11x32xf32>
    %611 = arith.addf %605, %610 : vector<11x32xf32>
    %612 = vector.broadcast %204 : vector<1x32xf32> to vector<11x32xf32>
    %613 = arith.addf %611, %612 : vector<11x32xf32>
    %cst_567 = arith.constant 0.000000e+00 : f32
    %614 = vector.broadcast %cst_567 : f32 to vector<11x32xf32>
    %615 = arith.maximumf %613, %614 : vector<11x32xf32>
    %cst_568 = arith.constant 0.000000e+00 : f32
    %616 = vector.broadcast %cst_568 : f32 to vector<11x32xf32>
    %c9_569 = arith.constant 9 : index
    %c0_570 = arith.constant 0 : index
    %c0_571 = arith.constant 0 : index
    %617 = vector.load %arg12[%c9_569, %c0_570, %c0_571] : memref<12x12x64xf32, #tpu.memory_space<vmem>>, vector<1x11x64xf32>
    %618 = vector.shape_cast %617 : vector<1x11x64xf32> to vector<11x64xf32>
    %c0_572 = arith.constant 0 : index
    %c0_573 = arith.constant 0 : index
    %c0_574 = arith.constant 0 : index
    %619 = vector.load %arg4[%c0_572, %c0_573, %c0_574] : memref<4x64x32xf32, #tpu.memory_space<vmem>>, vector<1x64x32xf32>
    %620 = vector.shape_cast %619 : vector<1x64x32xf32> to vector<64x32xf32>
    %cst_575 = arith.constant dense<0.000000e+00> : vector<11x32xf32>
    %621 = tpu.matmul %618, %620, %cst_575 {dimension_numbers = #tpu.dot_dimension_numbers<[1], [0], [0], [1], [0, 0, 1, 1], [], []>} : vector<11x64xf32>, vector<64x32xf32>, vector<11x32xf32> -> vector<11x32xf32>
    %622 = arith.addf %616, %621 : vector<11x32xf32>
    %c9_576 = arith.constant 9 : index
    %c1_577 = arith.constant 1 : index
    %c0_578 = arith.constant 0 : index
    %623 = vector.load %arg12[%c9_576, %c1_577, %c0_578] : memref<12x12x64xf32, #tpu.memory_space<vmem>>, vector<1x11x64xf32>
    %624 = vector.shape_cast %623 : vector<1x11x64xf32> to vector<11x64xf32>
    %c1_579 = arith.constant 1 : index
    %c0_580 = arith.constant 0 : index
    %c0_581 = arith.constant 0 : index
    %625 = vector.load %arg4[%c1_579, %c0_580, %c0_581] : memref<4x64x32xf32, #tpu.memory_space<vmem>>, vector<1x64x32xf32>
    %626 = vector.shape_cast %625 : vector<1x64x32xf32> to vector<64x32xf32>
    %cst_582 = arith.constant dense<0.000000e+00> : vector<11x32xf32>
    %627 = tpu.matmul %624, %626, %cst_582 {dimension_numbers = #tpu.dot_dimension_numbers<[1], [0], [0], [1], [0, 0, 1, 1], [], []>} : vector<11x64xf32>, vector<64x32xf32>, vector<11x32xf32> -> vector<11x32xf32>
    %628 = arith.addf %622, %627 : vector<11x32xf32>
    %c10_583 = arith.constant 10 : index
    %c0_584 = arith.constant 0 : index
    %c0_585 = arith.constant 0 : index
    %629 = vector.load %arg12[%c10_583, %c0_584, %c0_585] : memref<12x12x64xf32, #tpu.memory_space<vmem>>, vector<1x11x64xf32>
    %630 = vector.shape_cast %629 : vector<1x11x64xf32> to vector<11x64xf32>
    %c2_586 = arith.constant 2 : index
    %c0_587 = arith.constant 0 : index
    %c0_588 = arith.constant 0 : index
    %631 = vector.load %arg4[%c2_586, %c0_587, %c0_588] : memref<4x64x32xf32, #tpu.memory_space<vmem>>, vector<1x64x32xf32>
    %632 = vector.shape_cast %631 : vector<1x64x32xf32> to vector<64x32xf32>
    %cst_589 = arith.constant dense<0.000000e+00> : vector<11x32xf32>
    %633 = tpu.matmul %630, %632, %cst_589 {dimension_numbers = #tpu.dot_dimension_numbers<[1], [0], [0], [1], [0, 0, 1, 1], [], []>} : vector<11x64xf32>, vector<64x32xf32>, vector<11x32xf32> -> vector<11x32xf32>
    %634 = arith.addf %628, %633 : vector<11x32xf32>
    %c10_590 = arith.constant 10 : index
    %c1_591 = arith.constant 1 : index
    %c0_592 = arith.constant 0 : index
    %635 = vector.load %arg12[%c10_590, %c1_591, %c0_592] : memref<12x12x64xf32, #tpu.memory_space<vmem>>, vector<1x11x64xf32>
    %636 = vector.shape_cast %635 : vector<1x11x64xf32> to vector<11x64xf32>
    %c3_593 = arith.constant 3 : index
    %c0_594 = arith.constant 0 : index
    %c0_595 = arith.constant 0 : index
    %637 = vector.load %arg4[%c3_593, %c0_594, %c0_595] : memref<4x64x32xf32, #tpu.memory_space<vmem>>, vector<1x64x32xf32>
    %638 = vector.shape_cast %637 : vector<1x64x32xf32> to vector<64x32xf32>
    %cst_596 = arith.constant dense<0.000000e+00> : vector<11x32xf32>
    %639 = tpu.matmul %636, %638, %cst_596 {dimension_numbers = #tpu.dot_dimension_numbers<[1], [0], [0], [1], [0, 0, 1, 1], [], []>} : vector<11x64xf32>, vector<64x32xf32>, vector<11x32xf32> -> vector<11x32xf32>
    %640 = arith.addf %634, %639 : vector<11x32xf32>
    %641 = vector.broadcast %204 : vector<1x32xf32> to vector<11x32xf32>
    %642 = arith.addf %640, %641 : vector<11x32xf32>
    %cst_597 = arith.constant 0.000000e+00 : f32
    %643 = vector.broadcast %cst_597 : f32 to vector<11x32xf32>
    %644 = arith.maximumf %642, %643 : vector<11x32xf32>
    %cst_598 = arith.constant 0.000000e+00 : f32
    %645 = vector.broadcast %cst_598 : f32 to vector<11x32xf32>
    %c10_599 = arith.constant 10 : index
    %c0_600 = arith.constant 0 : index
    %c0_601 = arith.constant 0 : index
    %646 = vector.load %arg12[%c10_599, %c0_600, %c0_601] : memref<12x12x64xf32, #tpu.memory_space<vmem>>, vector<1x11x64xf32>
    %647 = vector.shape_cast %646 : vector<1x11x64xf32> to vector<11x64xf32>
    %c0_602 = arith.constant 0 : index
    %c0_603 = arith.constant 0 : index
    %c0_604 = arith.constant 0 : index
    %648 = vector.load %arg4[%c0_602, %c0_603, %c0_604] : memref<4x64x32xf32, #tpu.memory_space<vmem>>, vector<1x64x32xf32>
    %649 = vector.shape_cast %648 : vector<1x64x32xf32> to vector<64x32xf32>
    %cst_605 = arith.constant dense<0.000000e+00> : vector<11x32xf32>
    %650 = tpu.matmul %647, %649, %cst_605 {dimension_numbers = #tpu.dot_dimension_numbers<[1], [0], [0], [1], [0, 0, 1, 1], [], []>} : vector<11x64xf32>, vector<64x32xf32>, vector<11x32xf32> -> vector<11x32xf32>
    %651 = arith.addf %645, %650 : vector<11x32xf32>
    %c10_606 = arith.constant 10 : index
    %c1_607 = arith.constant 1 : index
    %c0_608 = arith.constant 0 : index
    %652 = vector.load %arg12[%c10_606, %c1_607, %c0_608] : memref<12x12x64xf32, #tpu.memory_space<vmem>>, vector<1x11x64xf32>
    %653 = vector.shape_cast %652 : vector<1x11x64xf32> to vector<11x64xf32>
    %c1_609 = arith.constant 1 : index
    %c0_610 = arith.constant 0 : index
    %c0_611 = arith.constant 0 : index
    %654 = vector.load %arg4[%c1_609, %c0_610, %c0_611] : memref<4x64x32xf32, #tpu.memory_space<vmem>>, vector<1x64x32xf32>
    %655 = vector.shape_cast %654 : vector<1x64x32xf32> to vector<64x32xf32>
    %cst_612 = arith.constant dense<0.000000e+00> : vector<11x32xf32>
    %656 = tpu.matmul %653, %655, %cst_612 {dimension_numbers = #tpu.dot_dimension_numbers<[1], [0], [0], [1], [0, 0, 1, 1], [], []>} : vector<11x64xf32>, vector<64x32xf32>, vector<11x32xf32> -> vector<11x32xf32>
    %657 = arith.addf %651, %656 : vector<11x32xf32>
    %c11_613 = arith.constant 11 : index
    %c0_614 = arith.constant 0 : index
    %c0_615 = arith.constant 0 : index
    %658 = vector.load %arg12[%c11_613, %c0_614, %c0_615] : memref<12x12x64xf32, #tpu.memory_space<vmem>>, vector<1x11x64xf32>
    %659 = vector.shape_cast %658 : vector<1x11x64xf32> to vector<11x64xf32>
    %c2_616 = arith.constant 2 : index
    %c0_617 = arith.constant 0 : index
    %c0_618 = arith.constant 0 : index
    %660 = vector.load %arg4[%c2_616, %c0_617, %c0_618] : memref<4x64x32xf32, #tpu.memory_space<vmem>>, vector<1x64x32xf32>
    %661 = vector.shape_cast %660 : vector<1x64x32xf32> to vector<64x32xf32>
    %cst_619 = arith.constant dense<0.000000e+00> : vector<11x32xf32>
    %662 = tpu.matmul %659, %661, %cst_619 {dimension_numbers = #tpu.dot_dimension_numbers<[1], [0], [0], [1], [0, 0, 1, 1], [], []>} : vector<11x64xf32>, vector<64x32xf32>, vector<11x32xf32> -> vector<11x32xf32>
    %663 = arith.addf %657, %662 : vector<11x32xf32>
    %c11_620 = arith.constant 11 : index
    %c1_621 = arith.constant 1 : index
    %c0_622 = arith.constant 0 : index
    %664 = vector.load %arg12[%c11_620, %c1_621, %c0_622] : memref<12x12x64xf32, #tpu.memory_space<vmem>>, vector<1x11x64xf32>
    %665 = vector.shape_cast %664 : vector<1x11x64xf32> to vector<11x64xf32>
    %c3_623 = arith.constant 3 : index
    %c0_624 = arith.constant 0 : index
    %c0_625 = arith.constant 0 : index
    %666 = vector.load %arg4[%c3_623, %c0_624, %c0_625] : memref<4x64x32xf32, #tpu.memory_space<vmem>>, vector<1x64x32xf32>
    %667 = vector.shape_cast %666 : vector<1x64x32xf32> to vector<64x32xf32>
    %cst_626 = arith.constant dense<0.000000e+00> : vector<11x32xf32>
    %668 = tpu.matmul %665, %667, %cst_626 {dimension_numbers = #tpu.dot_dimension_numbers<[1], [0], [0], [1], [0, 0, 1, 1], [], []>} : vector<11x64xf32>, vector<64x32xf32>, vector<11x32xf32> -> vector<11x32xf32>
    %669 = arith.addf %663, %668 : vector<11x32xf32>
    %670 = vector.broadcast %204 : vector<1x32xf32> to vector<11x32xf32>
    %671 = arith.addf %669, %670 : vector<11x32xf32>
    %cst_627 = arith.constant 0.000000e+00 : f32
    %672 = vector.broadcast %cst_627 : f32 to vector<11x32xf32>
    %673 = arith.maximumf %671, %672 : vector<11x32xf32>
    %674 = arith.maximumf %644, %673 : vector<11x32xf32>
    %675 = arith.maximumf %615, %674 : vector<11x32xf32>
    %cst_628 = arith.constant dense<0.000000e+00> : vector<5x32xf32>
    %676 = tpu.matmul %206, %675, %cst_628 {dimension_numbers = #tpu.dot_dimension_numbers<[1], [0], [0], [1], [0, 0, 1, 1], [], []>} : vector<5x11xf32>, vector<11x32xf32>, vector<5x32xf32> -> vector<5x32xf32>
    %cst_629 = arith.constant dense<0.000000e+00> : vector<5x32xf32>
    %677 = tpu.matmul %208, %675, %cst_629 {dimension_numbers = #tpu.dot_dimension_numbers<[1], [0], [0], [1], [0, 0, 1, 1], [], []>} : vector<5x11xf32>, vector<11x32xf32>, vector<5x32xf32> -> vector<5x32xf32>
    %cst_630 = arith.constant dense<0.000000e+00> : vector<5x32xf32>
    %678 = tpu.matmul %210, %675, %cst_630 {dimension_numbers = #tpu.dot_dimension_numbers<[1], [0], [0], [1], [0, 0, 1, 1], [], []>} : vector<5x11xf32>, vector<11x32xf32>, vector<5x32xf32> -> vector<5x32xf32>
    %679 = arith.maximumf %677, %678 : vector<5x32xf32>
    %680 = arith.maximumf %676, %679 : vector<5x32xf32>
    %c0_631 = arith.constant 0 : index
    %c0_632 = arith.constant 0 : index
    %681 = vector.load %arg7[%c0_631, %c0_632] : memref<1x128xf32, #tpu.memory_space<vmem>>, vector<1x128xf32>
    %682 = vector.extract_strided_slice %304 {offsets = [0, 0], sizes = [1, 32], strides = [1, 1]} : vector<5x32xf32> to vector<1x32xf32>
    %c0_633 = arith.constant 0 : index
    %c0_634 = arith.constant 0 : index
    %c0_635 = arith.constant 0 : index
    %683 = vector.load %arg6[%c0_633, %c0_634, %c0_635] : memref<25x32x128xf32, #tpu.memory_space<vmem>>, vector<1x32x128xf32>
    %684 = vector.shape_cast %683 : vector<1x32x128xf32> to vector<32x128xf32>
    %cst_636 = arith.constant dense<0.000000e+00> : vector<1x128xf32>
    %685 = tpu.matmul %682, %684, %cst_636 {dimension_numbers = #tpu.dot_dimension_numbers<[1], [0], [0], [1], [0, 0, 1, 1], [], []>} : vector<1x32xf32>, vector<32x128xf32>, vector<1x128xf32> -> vector<1x128xf32>
    %686 = arith.addf %681, %685 : vector<1x128xf32>
    %687 = vector.extract_strided_slice %304 {offsets = [1, 0], sizes = [1, 32], strides = [1, 1]} : vector<5x32xf32> to vector<1x32xf32>
    %c1_637 = arith.constant 1 : index
    %c0_638 = arith.constant 0 : index
    %c0_639 = arith.constant 0 : index
    %688 = vector.load %arg6[%c1_637, %c0_638, %c0_639] : memref<25x32x128xf32, #tpu.memory_space<vmem>>, vector<1x32x128xf32>
    %689 = vector.shape_cast %688 : vector<1x32x128xf32> to vector<32x128xf32>
    %cst_640 = arith.constant dense<0.000000e+00> : vector<1x128xf32>
    %690 = tpu.matmul %687, %689, %cst_640 {dimension_numbers = #tpu.dot_dimension_numbers<[1], [0], [0], [1], [0, 0, 1, 1], [], []>} : vector<1x32xf32>, vector<32x128xf32>, vector<1x128xf32> -> vector<1x128xf32>
    %691 = arith.addf %686, %690 : vector<1x128xf32>
    %692 = vector.extract_strided_slice %304 {offsets = [2, 0], sizes = [1, 32], strides = [1, 1]} : vector<5x32xf32> to vector<1x32xf32>
    %c2_641 = arith.constant 2 : index
    %c0_642 = arith.constant 0 : index
    %c0_643 = arith.constant 0 : index
    %693 = vector.load %arg6[%c2_641, %c0_642, %c0_643] : memref<25x32x128xf32, #tpu.memory_space<vmem>>, vector<1x32x128xf32>
    %694 = vector.shape_cast %693 : vector<1x32x128xf32> to vector<32x128xf32>
    %cst_644 = arith.constant dense<0.000000e+00> : vector<1x128xf32>
    %695 = tpu.matmul %692, %694, %cst_644 {dimension_numbers = #tpu.dot_dimension_numbers<[1], [0], [0], [1], [0, 0, 1, 1], [], []>} : vector<1x32xf32>, vector<32x128xf32>, vector<1x128xf32> -> vector<1x128xf32>
    %696 = arith.addf %691, %695 : vector<1x128xf32>
    %697 = vector.extract_strided_slice %304 {offsets = [3, 0], sizes = [1, 32], strides = [1, 1]} : vector<5x32xf32> to vector<1x32xf32>
    %c3_645 = arith.constant 3 : index
    %c0_646 = arith.constant 0 : index
    %c0_647 = arith.constant 0 : index
    %698 = vector.load %arg6[%c3_645, %c0_646, %c0_647] : memref<25x32x128xf32, #tpu.memory_space<vmem>>, vector<1x32x128xf32>
    %699 = vector.shape_cast %698 : vector<1x32x128xf32> to vector<32x128xf32>
    %cst_648 = arith.constant dense<0.000000e+00> : vector<1x128xf32>
    %700 = tpu.matmul %697, %699, %cst_648 {dimension_numbers = #tpu.dot_dimension_numbers<[1], [0], [0], [1], [0, 0, 1, 1], [], []>} : vector<1x32xf32>, vector<32x128xf32>, vector<1x128xf32> -> vector<1x128xf32>
    %701 = arith.addf %696, %700 : vector<1x128xf32>
    %702 = vector.extract_strided_slice %304 {offsets = [4, 0], sizes = [1, 32], strides = [1, 1]} : vector<5x32xf32> to vector<1x32xf32>
    %c4_649 = arith.constant 4 : index
    %c0_650 = arith.constant 0 : index
    %c0_651 = arith.constant 0 : index
    %703 = vector.load %arg6[%c4_649, %c0_650, %c0_651] : memref<25x32x128xf32, #tpu.memory_space<vmem>>, vector<1x32x128xf32>
    %704 = vector.shape_cast %703 : vector<1x32x128xf32> to vector<32x128xf32>
    %cst_652 = arith.constant dense<0.000000e+00> : vector<1x128xf32>
    %705 = tpu.matmul %702, %704, %cst_652 {dimension_numbers = #tpu.dot_dimension_numbers<[1], [0], [0], [1], [0, 0, 1, 1], [], []>} : vector<1x32xf32>, vector<32x128xf32>, vector<1x128xf32> -> vector<1x128xf32>
    %706 = arith.addf %701, %705 : vector<1x128xf32>
    %707 = vector.extract_strided_slice %398 {offsets = [0, 0], sizes = [1, 32], strides = [1, 1]} : vector<5x32xf32> to vector<1x32xf32>
    %c5_653 = arith.constant 5 : index
    %c0_654 = arith.constant 0 : index
    %c0_655 = arith.constant 0 : index
    %708 = vector.load %arg6[%c5_653, %c0_654, %c0_655] : memref<25x32x128xf32, #tpu.memory_space<vmem>>, vector<1x32x128xf32>
    %709 = vector.shape_cast %708 : vector<1x32x128xf32> to vector<32x128xf32>
    %cst_656 = arith.constant dense<0.000000e+00> : vector<1x128xf32>
    %710 = tpu.matmul %707, %709, %cst_656 {dimension_numbers = #tpu.dot_dimension_numbers<[1], [0], [0], [1], [0, 0, 1, 1], [], []>} : vector<1x32xf32>, vector<32x128xf32>, vector<1x128xf32> -> vector<1x128xf32>
    %711 = arith.addf %706, %710 : vector<1x128xf32>
    %712 = vector.extract_strided_slice %398 {offsets = [1, 0], sizes = [1, 32], strides = [1, 1]} : vector<5x32xf32> to vector<1x32xf32>
    %c6_657 = arith.constant 6 : index
    %c0_658 = arith.constant 0 : index
    %c0_659 = arith.constant 0 : index
    %713 = vector.load %arg6[%c6_657, %c0_658, %c0_659] : memref<25x32x128xf32, #tpu.memory_space<vmem>>, vector<1x32x128xf32>
    %714 = vector.shape_cast %713 : vector<1x32x128xf32> to vector<32x128xf32>
    %cst_660 = arith.constant dense<0.000000e+00> : vector<1x128xf32>
    %715 = tpu.matmul %712, %714, %cst_660 {dimension_numbers = #tpu.dot_dimension_numbers<[1], [0], [0], [1], [0, 0, 1, 1], [], []>} : vector<1x32xf32>, vector<32x128xf32>, vector<1x128xf32> -> vector<1x128xf32>
    %716 = arith.addf %711, %715 : vector<1x128xf32>
    %717 = vector.extract_strided_slice %398 {offsets = [2, 0], sizes = [1, 32], strides = [1, 1]} : vector<5x32xf32> to vector<1x32xf32>
    %c7_661 = arith.constant 7 : index
    %c0_662 = arith.constant 0 : index
    %c0_663 = arith.constant 0 : index
    %718 = vector.load %arg6[%c7_661, %c0_662, %c0_663] : memref<25x32x128xf32, #tpu.memory_space<vmem>>, vector<1x32x128xf32>
    %719 = vector.shape_cast %718 : vector<1x32x128xf32> to vector<32x128xf32>
    %cst_664 = arith.constant dense<0.000000e+00> : vector<1x128xf32>
    %720 = tpu.matmul %717, %719, %cst_664 {dimension_numbers = #tpu.dot_dimension_numbers<[1], [0], [0], [1], [0, 0, 1, 1], [], []>} : vector<1x32xf32>, vector<32x128xf32>, vector<1x128xf32> -> vector<1x128xf32>
    %721 = arith.addf %716, %720 : vector<1x128xf32>
    %722 = vector.extract_strided_slice %398 {offsets = [3, 0], sizes = [1, 32], strides = [1, 1]} : vector<5x32xf32> to vector<1x32xf32>
    %c8_665 = arith.constant 8 : index
    %c0_666 = arith.constant 0 : index
    %c0_667 = arith.constant 0 : index
    %723 = vector.load %arg6[%c8_665, %c0_666, %c0_667] : memref<25x32x128xf32, #tpu.memory_space<vmem>>, vector<1x32x128xf32>
    %724 = vector.shape_cast %723 : vector<1x32x128xf32> to vector<32x128xf32>
    %cst_668 = arith.constant dense<0.000000e+00> : vector<1x128xf32>
    %725 = tpu.matmul %722, %724, %cst_668 {dimension_numbers = #tpu.dot_dimension_numbers<[1], [0], [0], [1], [0, 0, 1, 1], [], []>} : vector<1x32xf32>, vector<32x128xf32>, vector<1x128xf32> -> vector<1x128xf32>
    %726 = arith.addf %721, %725 : vector<1x128xf32>
    %727 = vector.extract_strided_slice %398 {offsets = [4, 0], sizes = [1, 32], strides = [1, 1]} : vector<5x32xf32> to vector<1x32xf32>
    %c9_669 = arith.constant 9 : index
    %c0_670 = arith.constant 0 : index
    %c0_671 = arith.constant 0 : index
    %728 = vector.load %arg6[%c9_669, %c0_670, %c0_671] : memref<25x32x128xf32, #tpu.memory_space<vmem>>, vector<1x32x128xf32>
    %729 = vector.shape_cast %728 : vector<1x32x128xf32> to vector<32x128xf32>
    %cst_672 = arith.constant dense<0.000000e+00> : vector<1x128xf32>
    %730 = tpu.matmul %727, %729, %cst_672 {dimension_numbers = #tpu.dot_dimension_numbers<[1], [0], [0], [1], [0, 0, 1, 1], [], []>} : vector<1x32xf32>, vector<32x128xf32>, vector<1x128xf32> -> vector<1x128xf32>
    %731 = arith.addf %726, %730 : vector<1x128xf32>
    %732 = vector.extract_strided_slice %492 {offsets = [0, 0], sizes = [1, 32], strides = [1, 1]} : vector<5x32xf32> to vector<1x32xf32>
    %c10_673 = arith.constant 10 : index
    %c0_674 = arith.constant 0 : index
    %c0_675 = arith.constant 0 : index
    %733 = vector.load %arg6[%c10_673, %c0_674, %c0_675] : memref<25x32x128xf32, #tpu.memory_space<vmem>>, vector<1x32x128xf32>
    %734 = vector.shape_cast %733 : vector<1x32x128xf32> to vector<32x128xf32>
    %cst_676 = arith.constant dense<0.000000e+00> : vector<1x128xf32>
    %735 = tpu.matmul %732, %734, %cst_676 {dimension_numbers = #tpu.dot_dimension_numbers<[1], [0], [0], [1], [0, 0, 1, 1], [], []>} : vector<1x32xf32>, vector<32x128xf32>, vector<1x128xf32> -> vector<1x128xf32>
    %736 = arith.addf %731, %735 : vector<1x128xf32>
    %737 = vector.extract_strided_slice %492 {offsets = [1, 0], sizes = [1, 32], strides = [1, 1]} : vector<5x32xf32> to vector<1x32xf32>
    %c11_677 = arith.constant 11 : index
    %c0_678 = arith.constant 0 : index
    %c0_679 = arith.constant 0 : index
    %738 = vector.load %arg6[%c11_677, %c0_678, %c0_679] : memref<25x32x128xf32, #tpu.memory_space<vmem>>, vector<1x32x128xf32>
    %739 = vector.shape_cast %738 : vector<1x32x128xf32> to vector<32x128xf32>
    %cst_680 = arith.constant dense<0.000000e+00> : vector<1x128xf32>
    %740 = tpu.matmul %737, %739, %cst_680 {dimension_numbers = #tpu.dot_dimension_numbers<[1], [0], [0], [1], [0, 0, 1, 1], [], []>} : vector<1x32xf32>, vector<32x128xf32>, vector<1x128xf32> -> vector<1x128xf32>
    %741 = arith.addf %736, %740 : vector<1x128xf32>
    %742 = vector.extract_strided_slice %492 {offsets = [2, 0], sizes = [1, 32], strides = [1, 1]} : vector<5x32xf32> to vector<1x32xf32>
    %c12 = arith.constant 12 : index
    %c0_681 = arith.constant 0 : index
    %c0_682 = arith.constant 0 : index
    %743 = vector.load %arg6[%c12, %c0_681, %c0_682] : memref<25x32x128xf32, #tpu.memory_space<vmem>>, vector<1x32x128xf32>
    %744 = vector.shape_cast %743 : vector<1x32x128xf32> to vector<32x128xf32>
    %cst_683 = arith.constant dense<0.000000e+00> : vector<1x128xf32>
    %745 = tpu.matmul %742, %744, %cst_683 {dimension_numbers = #tpu.dot_dimension_numbers<[1], [0], [0], [1], [0, 0, 1, 1], [], []>} : vector<1x32xf32>, vector<32x128xf32>, vector<1x128xf32> -> vector<1x128xf32>
    %746 = arith.addf %741, %745 : vector<1x128xf32>
    %747 = vector.extract_strided_slice %492 {offsets = [3, 0], sizes = [1, 32], strides = [1, 1]} : vector<5x32xf32> to vector<1x32xf32>
    %c13 = arith.constant 13 : index
    %c0_684 = arith.constant 0 : index
    %c0_685 = arith.constant 0 : index
    %748 = vector.load %arg6[%c13, %c0_684, %c0_685] : memref<25x32x128xf32, #tpu.memory_space<vmem>>, vector<1x32x128xf32>
    %749 = vector.shape_cast %748 : vector<1x32x128xf32> to vector<32x128xf32>
    %cst_686 = arith.constant dense<0.000000e+00> : vector<1x128xf32>
    %750 = tpu.matmul %747, %749, %cst_686 {dimension_numbers = #tpu.dot_dimension_numbers<[1], [0], [0], [1], [0, 0, 1, 1], [], []>} : vector<1x32xf32>, vector<32x128xf32>, vector<1x128xf32> -> vector<1x128xf32>
    %751 = arith.addf %746, %750 : vector<1x128xf32>
    %752 = vector.extract_strided_slice %492 {offsets = [4, 0], sizes = [1, 32], strides = [1, 1]} : vector<5x32xf32> to vector<1x32xf32>
    %c14 = arith.constant 14 : index
    %c0_687 = arith.constant 0 : index
    %c0_688 = arith.constant 0 : index
    %753 = vector.load %arg6[%c14, %c0_687, %c0_688] : memref<25x32x128xf32, #tpu.memory_space<vmem>>, vector<1x32x128xf32>
    %754 = vector.shape_cast %753 : vector<1x32x128xf32> to vector<32x128xf32>
    %cst_689 = arith.constant dense<0.000000e+00> : vector<1x128xf32>
    %755 = tpu.matmul %752, %754, %cst_689 {dimension_numbers = #tpu.dot_dimension_numbers<[1], [0], [0], [1], [0, 0, 1, 1], [], []>} : vector<1x32xf32>, vector<32x128xf32>, vector<1x128xf32> -> vector<1x128xf32>
    %756 = arith.addf %751, %755 : vector<1x128xf32>
    %757 = vector.extract_strided_slice %586 {offsets = [0, 0], sizes = [1, 32], strides = [1, 1]} : vector<5x32xf32> to vector<1x32xf32>
    %c15 = arith.constant 15 : index
    %c0_690 = arith.constant 0 : index
    %c0_691 = arith.constant 0 : index
    %758 = vector.load %arg6[%c15, %c0_690, %c0_691] : memref<25x32x128xf32, #tpu.memory_space<vmem>>, vector<1x32x128xf32>
    %759 = vector.shape_cast %758 : vector<1x32x128xf32> to vector<32x128xf32>
    %cst_692 = arith.constant dense<0.000000e+00> : vector<1x128xf32>
    %760 = tpu.matmul %757, %759, %cst_692 {dimension_numbers = #tpu.dot_dimension_numbers<[1], [0], [0], [1], [0, 0, 1, 1], [], []>} : vector<1x32xf32>, vector<32x128xf32>, vector<1x128xf32> -> vector<1x128xf32>
    %761 = arith.addf %756, %760 : vector<1x128xf32>
    %762 = vector.extract_strided_slice %586 {offsets = [1, 0], sizes = [1, 32], strides = [1, 1]} : vector<5x32xf32> to vector<1x32xf32>
    %c16 = arith.constant 16 : index
    %c0_693 = arith.constant 0 : index
    %c0_694 = arith.constant 0 : index
    %763 = vector.load %arg6[%c16, %c0_693, %c0_694] : memref<25x32x128xf32, #tpu.memory_space<vmem>>, vector<1x32x128xf32>
    %764 = vector.shape_cast %763 : vector<1x32x128xf32> to vector<32x128xf32>
    %cst_695 = arith.constant dense<0.000000e+00> : vector<1x128xf32>
    %765 = tpu.matmul %762, %764, %cst_695 {dimension_numbers = #tpu.dot_dimension_numbers<[1], [0], [0], [1], [0, 0, 1, 1], [], []>} : vector<1x32xf32>, vector<32x128xf32>, vector<1x128xf32> -> vector<1x128xf32>
    %766 = arith.addf %761, %765 : vector<1x128xf32>
    %767 = vector.extract_strided_slice %586 {offsets = [2, 0], sizes = [1, 32], strides = [1, 1]} : vector<5x32xf32> to vector<1x32xf32>
    %c17 = arith.constant 17 : index
    %c0_696 = arith.constant 0 : index
    %c0_697 = arith.constant 0 : index
    %768 = vector.load %arg6[%c17, %c0_696, %c0_697] : memref<25x32x128xf32, #tpu.memory_space<vmem>>, vector<1x32x128xf32>
    %769 = vector.shape_cast %768 : vector<1x32x128xf32> to vector<32x128xf32>
    %cst_698 = arith.constant dense<0.000000e+00> : vector<1x128xf32>
    %770 = tpu.matmul %767, %769, %cst_698 {dimension_numbers = #tpu.dot_dimension_numbers<[1], [0], [0], [1], [0, 0, 1, 1], [], []>} : vector<1x32xf32>, vector<32x128xf32>, vector<1x128xf32> -> vector<1x128xf32>
    %771 = arith.addf %766, %770 : vector<1x128xf32>
    %772 = vector.extract_strided_slice %586 {offsets = [3, 0], sizes = [1, 32], strides = [1, 1]} : vector<5x32xf32> to vector<1x32xf32>
    %c18 = arith.constant 18 : index
    %c0_699 = arith.constant 0 : index
    %c0_700 = arith.constant 0 : index
    %773 = vector.load %arg6[%c18, %c0_699, %c0_700] : memref<25x32x128xf32, #tpu.memory_space<vmem>>, vector<1x32x128xf32>
    %774 = vector.shape_cast %773 : vector<1x32x128xf32> to vector<32x128xf32>
    %cst_701 = arith.constant dense<0.000000e+00> : vector<1x128xf32>
    %775 = tpu.matmul %772, %774, %cst_701 {dimension_numbers = #tpu.dot_dimension_numbers<[1], [0], [0], [1], [0, 0, 1, 1], [], []>} : vector<1x32xf32>, vector<32x128xf32>, vector<1x128xf32> -> vector<1x128xf32>
    %776 = arith.addf %771, %775 : vector<1x128xf32>
    %777 = vector.extract_strided_slice %586 {offsets = [4, 0], sizes = [1, 32], strides = [1, 1]} : vector<5x32xf32> to vector<1x32xf32>
    %c19 = arith.constant 19 : index
    %c0_702 = arith.constant 0 : index
    %c0_703 = arith.constant 0 : index
    %778 = vector.load %arg6[%c19, %c0_702, %c0_703] : memref<25x32x128xf32, #tpu.memory_space<vmem>>, vector<1x32x128xf32>
    %779 = vector.shape_cast %778 : vector<1x32x128xf32> to vector<32x128xf32>
    %cst_704 = arith.constant dense<0.000000e+00> : vector<1x128xf32>
    %780 = tpu.matmul %777, %779, %cst_704 {dimension_numbers = #tpu.dot_dimension_numbers<[1], [0], [0], [1], [0, 0, 1, 1], [], []>} : vector<1x32xf32>, vector<32x128xf32>, vector<1x128xf32> -> vector<1x128xf32>
    %781 = arith.addf %776, %780 : vector<1x128xf32>
    %782 = vector.extract_strided_slice %680 {offsets = [0, 0], sizes = [1, 32], strides = [1, 1]} : vector<5x32xf32> to vector<1x32xf32>
    %c20 = arith.constant 20 : index
    %c0_705 = arith.constant 0 : index
    %c0_706 = arith.constant 0 : index
    %783 = vector.load %arg6[%c20, %c0_705, %c0_706] : memref<25x32x128xf32, #tpu.memory_space<vmem>>, vector<1x32x128xf32>
    %784 = vector.shape_cast %783 : vector<1x32x128xf32> to vector<32x128xf32>
    %cst_707 = arith.constant dense<0.000000e+00> : vector<1x128xf32>
    %785 = tpu.matmul %782, %784, %cst_707 {dimension_numbers = #tpu.dot_dimension_numbers<[1], [0], [0], [1], [0, 0, 1, 1], [], []>} : vector<1x32xf32>, vector<32x128xf32>, vector<1x128xf32> -> vector<1x128xf32>
    %786 = arith.addf %781, %785 : vector<1x128xf32>
    %787 = vector.extract_strided_slice %680 {offsets = [1, 0], sizes = [1, 32], strides = [1, 1]} : vector<5x32xf32> to vector<1x32xf32>
    %c21 = arith.constant 21 : index
    %c0_708 = arith.constant 0 : index
    %c0_709 = arith.constant 0 : index
    %788 = vector.load %arg6[%c21, %c0_708, %c0_709] : memref<25x32x128xf32, #tpu.memory_space<vmem>>, vector<1x32x128xf32>
    %789 = vector.shape_cast %788 : vector<1x32x128xf32> to vector<32x128xf32>
    %cst_710 = arith.constant dense<0.000000e+00> : vector<1x128xf32>
    %790 = tpu.matmul %787, %789, %cst_710 {dimension_numbers = #tpu.dot_dimension_numbers<[1], [0], [0], [1], [0, 0, 1, 1], [], []>} : vector<1x32xf32>, vector<32x128xf32>, vector<1x128xf32> -> vector<1x128xf32>
    %791 = arith.addf %786, %790 : vector<1x128xf32>
    %792 = vector.extract_strided_slice %680 {offsets = [2, 0], sizes = [1, 32], strides = [1, 1]} : vector<5x32xf32> to vector<1x32xf32>
    %c22 = arith.constant 22 : index
    %c0_711 = arith.constant 0 : index
    %c0_712 = arith.constant 0 : index
    %793 = vector.load %arg6[%c22, %c0_711, %c0_712] : memref<25x32x128xf32, #tpu.memory_space<vmem>>, vector<1x32x128xf32>
    %794 = vector.shape_cast %793 : vector<1x32x128xf32> to vector<32x128xf32>
    %cst_713 = arith.constant dense<0.000000e+00> : vector<1x128xf32>
    %795 = tpu.matmul %792, %794, %cst_713 {dimension_numbers = #tpu.dot_dimension_numbers<[1], [0], [0], [1], [0, 0, 1, 1], [], []>} : vector<1x32xf32>, vector<32x128xf32>, vector<1x128xf32> -> vector<1x128xf32>
    %796 = arith.addf %791, %795 : vector<1x128xf32>
    %797 = vector.extract_strided_slice %680 {offsets = [3, 0], sizes = [1, 32], strides = [1, 1]} : vector<5x32xf32> to vector<1x32xf32>
    %c23 = arith.constant 23 : index
    %c0_714 = arith.constant 0 : index
    %c0_715 = arith.constant 0 : index
    %798 = vector.load %arg6[%c23, %c0_714, %c0_715] : memref<25x32x128xf32, #tpu.memory_space<vmem>>, vector<1x32x128xf32>
    %799 = vector.shape_cast %798 : vector<1x32x128xf32> to vector<32x128xf32>
    %cst_716 = arith.constant dense<0.000000e+00> : vector<1x128xf32>
    %800 = tpu.matmul %797, %799, %cst_716 {dimension_numbers = #tpu.dot_dimension_numbers<[1], [0], [0], [1], [0, 0, 1, 1], [], []>} : vector<1x32xf32>, vector<32x128xf32>, vector<1x128xf32> -> vector<1x128xf32>
    %801 = arith.addf %796, %800 : vector<1x128xf32>
    %802 = vector.extract_strided_slice %680 {offsets = [4, 0], sizes = [1, 32], strides = [1, 1]} : vector<5x32xf32> to vector<1x32xf32>
    %c24 = arith.constant 24 : index
    %c0_717 = arith.constant 0 : index
    %c0_718 = arith.constant 0 : index
    %803 = vector.load %arg6[%c24, %c0_717, %c0_718] : memref<25x32x128xf32, #tpu.memory_space<vmem>>, vector<1x32x128xf32>
    %804 = vector.shape_cast %803 : vector<1x32x128xf32> to vector<32x128xf32>
    %cst_719 = arith.constant dense<0.000000e+00> : vector<1x128xf32>
    %805 = tpu.matmul %802, %804, %cst_719 {dimension_numbers = #tpu.dot_dimension_numbers<[1], [0], [0], [1], [0, 0, 1, 1], [], []>} : vector<1x32xf32>, vector<32x128xf32>, vector<1x128xf32> -> vector<1x128xf32>
    %806 = arith.addf %801, %805 : vector<1x128xf32>
    %cst_720 = arith.constant dense<0xFF800000> : vector<1xf32>
    %807 = vector.multi_reduction <maximumf>, %806, %cst_720 [1] : vector<1x128xf32> to vector<1xf32>
    %808 = vector.shape_cast %807 : vector<1xf32> to vector<1x1xf32>
    %809 = vector.broadcast %808 : vector<1x1xf32> to vector<1x128xf32>
    %810 = arith.subf %806, %809 : vector<1x128xf32>
    %811 = math.exp %810 : vector<1x128xf32>
    %cst_721 = arith.constant dense<0.000000e+00> : vector<1xf32>
    %812 = vector.multi_reduction <add>, %811, %cst_721 [1] : vector<1x128xf32> to vector<1xf32>
    %813 = vector.shape_cast %812 : vector<1xf32> to vector<1x1xf32>
    %814 = tpu.reciprocal %813 : vector<1x1xf32> -> vector<1x1xf32>
    %815 = vector.broadcast %814 : vector<1x1xf32> to vector<1x128xf32>
    %816 = arith.mulf %811, %815 : vector<1x128xf32>
    %c0_722 = arith.constant 0 : index
    %c0_723 = arith.constant 0 : index
    %c0_724 = arith.constant 0 : index
    %817 = vector.load %arg10[%c0_722, %c0_723, %c0_724] : memref<1x1x128xf32, #tpu.memory_space<vmem>>, vector<1x1x128xf32>
    %818 = vector.shape_cast %817 : vector<1x1x128xf32> to vector<1x128xf32>
    %819 = vector.shape_cast %816 : vector<1x128xf32> to vector<1x1x128xf32>
    tpu.vector_store %arg10[%c0_722, %c0_723, %c0_724], %819 {strides = array<i32>} : memref<1x1x128xf32, #tpu.memory_space<vmem>>, vector<1x1x128xf32>,
    return
  }
  func.func @transform_0(%arg0: i32) -> (i32, i32, i32) {
    %c0_i32 = arith.constant 0 : i32
    %c0_i32_0 = arith.constant 0 : i32
    %c0_i32_1 = arith.constant 0 : i32
    return %arg0, %c0_i32, %c0_i32_0 : i32, i32, i32
  }
  func.func @transform_1(%arg0: i32) -> (i32, i32) {
    %c0_i32 = arith.constant 0 : i32
    %c0_i32_0 = arith.constant 0 : i32
    %c0_i32_1 = arith.constant 0 : i32
    return %c0_i32, %c0_i32_0 : i32, i32
  }
  func.func @transform_2(%arg0: i32) -> (i32, i32) {
    %c0_i32 = arith.constant 0 : i32
    %c0_i32_0 = arith.constant 0 : i32
    %c0_i32_1 = arith.constant 0 : i32
    return %c0_i32, %c0_i32_0 : i32, i32
  }
  func.func @transform_3(%arg0: i32) -> (i32, i32, i32) {
    %c0_i32 = arith.constant 0 : i32
    %c0_i32_0 = arith.constant 0 : i32
    %c0_i32_1 = arith.constant 0 : i32
    %c0_i32_2 = arith.constant 0 : i32
    return %c0_i32, %c0_i32_0, %c0_i32_1 : i32, i32, i32
  }
  func.func @transform_4(%arg0: i32) -> (i32, i32) {
    %c0_i32 = arith.constant 0 : i32
    %c0_i32_0 = arith.constant 0 : i32
    %c0_i32_1 = arith.constant 0 : i32
    return %c0_i32, %c0_i32_0 : i32, i32
  }
  func.func @transform_5(%arg0: i32) -> (i32, i32, i32) {
    %c0_i32 = arith.constant 0 : i32
    %c0_i32_0 = arith.constant 0 : i32
    %c0_i32_1 = arith.constant 0 : i32
    %c0_i32_2 = arith.constant 0 : i32
    return %c0_i32, %c0_i32_0, %c0_i32_1 : i32, i32, i32
  }
  func.func @transform_6(%arg0: i32) -> (i32, i32) {
    %c0_i32 = arith.constant 0 : i32
    %c0_i32_0 = arith.constant 0 : i32
    %c0_i32_1 = arith.constant 0 : i32
    return %c0_i32, %c0_i32_0 : i32, i32
  }
  func.func @transform_7(%arg0: i32) -> (i32, i32, i32) {
    %c0_i32 = arith.constant 0 : i32
    %c0_i32_0 = arith.constant 0 : i32
    %c0_i32_1 = arith.constant 0 : i32
    %c0_i32_2 = arith.constant 0 : i32
    return %c0_i32, %c0_i32_0, %c0_i32_1 : i32, i32, i32
  }
  func.func @transform_8(%arg0: i32) -> (i32, i32, i32) {
    %c0_i32 = arith.constant 0 : i32
    %c0_i32_0 = arith.constant 0 : i32
    %c0_i32_1 = arith.constant 0 : i32
    %c0_i32_2 = arith.constant 0 : i32
    return %c0_i32, %c0_i32_0, %c0_i32_1 : i32, i32, i32
  }
  func.func @transform_9(%arg0: i32) -> (i32, i32, i32) {
    %c0_i32 = arith.constant 0 : i32
    %c0_i32_0 = arith.constant 0 : i32
    %c0_i32_1 = arith.constant 0 : i32
    return %arg0, %c0_i32, %c0_i32_0 : i32, i32, i32
  }
}

</mosaic_0001>

<bundles_post_ra>
// kernel: net_forward.1
= control target key start
LH: loop header
LB: loop body
LE: loop exit
PB: predicated region body
PF: predicated region fallthrough
CT: control target
= control target key end

     0   :  { %14 = vsyncpa [#allocation5], 0  ;;  %s18628_s0 = inlined_call_operand.vmem [shape: f32[2,625,16], index: 0, kind: input, shape index: {}]   ;;  %s18629_s1 = inlined_call_operand.vmem [shape: f32[16,64], index: 1, kind: input, shape index: {}]   ;;  %s18630_s2 = inlined_call_operand.vmem [shape: f32[1,64], index: 2, kind: input, shape index: {}]   ;;  %s18631_s3 = inlined_call_operand.vmem [shape: f32[4,64,32], index: 3, kind: input, shape index: {}]   ;;  %s18632_s4 = inlined_call_operand.vmem [shape: f32[1,32], index: 4, kind: input, shape index: {}]   ;;  %s18633_s5 = inlined_call_operand.vmem [shape: f32[25,32,128], index: 5, kind: input, shape index: {}]   ;;  %s18634_s6 = inlined_call_operand.vmem [shape: f32[1,128], index: 6, kind: input, shape index: {}]   ;;  %s18635_s7 = inlined_call_operand.vmem [shape: f32[3,12,25], index: 7, kind: input, shape index: {}]   ;;  %s18636_s8 = inlined_call_operand.vmem [shape: f32[3,5,11], index: 8, kind: input, shape index: {}]   ;;  %s18637_s9 = inlined_call_operand.hbm [shape: f32[2,1,128], index: 9, kind: output, shape index: {}]  }
   0x1   :  { %16 = vsyncpa [#allocation5 + $0x1], 0  ;;  %s16143_s30 = smov 0   ;;  %s16145_s10 = smov 0  }
   0x2   :  { %s16147_s11 = smov 0   ;;  %s16149_s12 = smov 0  }
   0x3 LB: > { %s16164_s13 = sadd.s32 4294967295, %s16086_s12   ;;  %s11424_s14 = sadd.s32 4294967294, %s16086_s12   ;;  %s16086_s12 = sphi %s16149_s12, %s18653_s12   ;;  %s16082_s11 = sphi %s16147_s11, %s18652_s11   ;;  %s16078_s10 = sphi %s16145_s10, %s18651_s10   ;;  %s16074_s30 = sphi %s16143_s30, %s18650_s30  }
   0x4   : > { %s16168_s15 = sadd.s32 1, %s16086_s12   ;;  %s223_s16 = sadd.s32 1, %s16082_s11 }
   0x5   : > { %s220_s17 = ssub.s32 %s16086_s12, %s16168_s15  ;;  %p233_p0 = scmp.ne.s32.totalorder %s16082_s11, %s16078_s10 }
   0x6   : > { %p221_p1 = scmp.eq.s32.totalorder %s220_s17, 0  ;;  %p234_p2 = scmp.eq.s32.totalorder %s16164_s13, 1 }
   0x7   : > { %p239_p3 = scmp.ne.s32.totalorder %s16078_s10, %s16074_s30  ;;  %p240_p4 = scmp.eq.s32.totalorder %s11424_s14, 1 }
   0x8   : > { %s16179_s18 = scalar_select %p221_p1, %s16082_s11, %s223_s16  }
   0x9   : > { %p16181_p5 = por %p234_p2, %p233_p0  ;;  %p16185_p6 = por %p240_p4, %p239_p3 }
   0xa   : > { %p11427_p7 = scmp.ge.s32.totalorder %s16086_s12, 1  ;;  %p290_p8 = scmp.lt.s32.totalorder %s16086_s12, 3 }
   0xc   : > { %p291_p9 = pnand %p11427_p7, %p290_p8 }
   0xd   : > { %v330_v0 = vld [vmem:[%s18629_s1] sm:$0xff] (!%p291_p9)  ;;  %v331_v1 = vld [vmem:[%s18629_s1 + $0x8] sm:$0xff] (!%p291_p9)  ;;  %p325_p10 = scmp.lt.s32.totalorder (!%p291_p9), %s16164_s13, 1  ;;  %vm355_vm0 = vcmask (!%p291_p9), 130048   ;;  %vm1575_vm1 = vcmask (!%p291_p9), 203776   ;;  %vm565_vm2 = vcmask (!%p291_p9), 523264  }
   0xe   : > { %294 = sbr.rel (%p291_p9) target bundleno = 2881 (0xb41), region = 56  ;;  %v16198_v2 = vpack.c.bf16 (!%p291_p9), %v331_v1, %v330_v0  ;;  %vm581_vm3 = vcmask (!%p291_p9), 520192   ;;  %vm1582_vm4 = vcmask (!%p291_p9), 1040384   ;;  %vm16088_vm5 = vmmov (!%p291_p9), 1   ;;  %s323_s22 = sand.u32 (!%p291_p9), 1, %s16078_s10  }
   0xf   : > { %vm16442_vm6 = vmpackc.low (!%p291_p9), %vm1582_vm4, %vm16088_vm5  ;;  %vm1828_vm7 = vcmask (!%p291_p9), 519168   ;;  %vm16090_vm8 = vmmov (!%p291_p9), 0   ;;  %vm5678_vm9 = vcmask (!%p291_p9), 1042432   ;;  %vm5674_vm11 = vcmask (!%p291_p9), 89088   ;;  %s11888_s23 = sshll.u32 (!%p291_p9), %s16164_s13, 4  ;;  %s324_s24 = scalar_lea.vmem (!%p291_p9), [#allocation4], %s323_s22 }
  0x10   : > { %14560 = vmatprep.subr.bf16.mxu0 (!%p291_p9), %v16198_v2  ;;  %vm17502_vm10 = vmpackc.low (!%p291_p9), %vm5678_vm9, %vm16088_vm5  ;;  %vm9373_vm12 = vcmask (!%p291_p9), 261120   ;;  %s18586_s28 = scalar_lea.hbm (!%p291_p9), %s18637_s9, %s11888_s23 }
  0x11   : > { %14562 = vmatpush3.bf16.msra.mxu0 (!%p291_p9), %v16198_v2 }
  0x12   : > { %14564 = vmatprep.subr.bf16.mxu0 (!%p291_p9), %v16198_v2 }
  0x15   : > { %s326_s25 = scalar_select %p325_p10, %s16164_s13, 1 }
  0x16   : > { %s16092_s13 = smov [#allocation4]  }
  0x17   : > { %s15968_s26 = smul.u32 632, %s326_s25  ;;  %s11369_s25 = sshll.u32 %s324_s24, 4  ;;  %s18588_s25 = int_to_ptr.vmem [resolvable:$true] %s11369_s25 }
  0x18   : > { %s16024_s14 = scalar_lea.vmem %s18588_s25, 16  ;;  %s16028_s16 = sshll.u32 %s16092_s13, 4  ;;  %s16029_s16 = int_to_ptr.vmem [resolvable:$false] %s16028_s16 }
  0x19   : > { %s16207_s29 = scalar_lea.vmem %s18628_s0, %s15968_s26  ;;  %p16025_p11 = scmp.ne.s32.totalorder %s18588_s25, %s16024_s14 }
  0x1a   : > { %v333_v3 = vld [vmem:[%s16207_s29] sm:$0xff]  ;;  %v334_v4 = vld [vmem:[%s16207_s29 + $0x8] sm:$0xff]  ;;  %v335_v5 = vld [vmem:[%s16207_s29 + $0x10] sm:$0xff]  ;;  %s16030_s17 = scalar_lea.vmem %s16029_s16, 32  ;;  %p16031_p0 = scmp.lt.s32.totalorder %s18588_s25, %s16029_s16 }
  0x1b   : > { %12811 = vmatprep.mubr.msk.f32.mxu0 %vm355_vm0, %v333_v3  ;;  %v336_v6 = vld [vmem:[%s16207_s29 + $0x18] sm:$0xff]  ;;  %v337_v7 = vld [vmem:[%s16207_s29 + $0x20] sm:$0xff]  ;;  %v338_v8 = vld [vmem:[%s16207_s29 + $0x28] sm:$0xff]  ;;  %p16026_p12 = pnand %p16025_p11, %p16181_p5  ;;  %p16032_p1 = scmp.lt.s32.totalorder %s16030_s17, %s16024_s14 }
  0x1c   : > { %12812 = vmatmul.mubr.msk.f32.vlgmr.msra.gmra.mrb[0].mxu0 %vm355_vm0, %v334_v4  ;;  %v339_v9 = vld [vmem:[%s16207_s29 + $0x30] sm:$0xff]  ;;  %v340_v10 = vld [vmem:[%s16207_s29 + $0x38] sm:$0xff]  ;;  %v341_v11 = vld [vmem:[%s16207_s29 + $0x40] sm:$0xff] }
  0x1d   : > { %12814 = vmatprep.mubr.msk.f32.mxu0 %vm355_vm0, %v335_v5  ;;  %14566 = vmatpush3.bf16.msra.mxu0 %v16198_v2  ;;  %v342_v12 = vld [vmem:[%s16207_s29 + $0x48] sm:$0xff]  ;;  %v343_v13 = vld [vmem:[%s16207_s29 + $0x50] sm:$0xff]  ;;  %v344_v14 = vld [vmem:[%s16207_s29 + $0x58] sm:$0xff]  ;;  %p16027_p13 = pneg %p16026_p12  ;;  %p16033_p2 = por %p16032_p1, %p16031_p0 }
  0x1e   : > { %14568 = vmatprep.subr.bf16.mxu0 %v16198_v2  ;;  %v345_v15 = vld [vmem:[%s16207_s29 + $0x60] sm:$0xff]  ;;  %v346_v16 = vld [vmem:[%s16207_s29 + $0x68] sm:$0xff]  ;;  %v347_v17 = vld [vmem:[%s16207_s29 + $0x70] sm:$0xff] }
  0x1f   : > { %v348_v18 = vld [vmem:[%s16207_s29 + $0x78] sm:$0x1f]  ;;  %v583_v19 = vld [vmem:[%s16207_s29 + $0x7d] sm:$0xff]  ;;  %v584_v20 = vld [vmem:[%s16207_s29 + $0x85] sm:$0xff]  ;;  %p16034_p3 = pnand %p16033_p2, %p16027_p13 }
  0x20   : > { %12815 = vmatmul.mubr.msk.f32.gmra.mrb[2].mxu0 %vm355_vm0, %v336_v6  ;;  %v585_v21 = vld [vmem:[%s16207_s29 + $0x8d] sm:$0xff]  ;;  %v586_v22 = vld [vmem:[%s16207_s29 + $0x95] sm:$0xff]  ;;  %v587_v23 = vld [vmem:[%s16207_s29 + $0x9d] sm:$0xff] }
  0x21   : > { %12817 = vmatprep.mubr.msk.f32.mxu0 %vm355_vm0, %v337_v7  ;;  %v588_v24 = vld [vmem:[%s16207_s29 + $0xa5] sm:$0xff]  ;;  %v589_v25 = vld [vmem:[%s16207_s29 + $0xad] sm:$0xff]  ;;  %v590_v26 = vld [vmem:[%s16207_s29 + $0xb5] sm:$0xff] }
  0x22   : > { %v591_v27 = vld [vmem:[%s16207_s29 + $0xbd] sm:$0xff]  ;;  %v592_v28 = vld [vmem:[%s16207_s29 + $0xc5] sm:$0xff]  ;;  %v593_v29 = vld [vmem:[%s16207_s29 + $0xcd] sm:$0xff] }
  0x23   : > { %v594_v30 = vld [vmem:[%s16207_s29 + $0xd5] sm:$0xff]  ;;  %v595_v31 = vld [vmem:[%s16207_s29 + $0xdd] sm:$0xff]  ;;  %v596_v32 = vld [vmem:[%s16207_s29 + $0xe5] sm:$0xff] }
  0x24   : > { %12818 = vmatmul.mubr.msk.f32.gmra.mrb[4].mxu0 %vm355_vm0, %v338_v8  ;;  %v597_v33 = vld [vmem:[%s16207_s29 + $0xed] sm:$0xff]  ;;  %v598_v34 = vld [vmem:[%s16207_s29 + $0xf5] sm:$0x1f]  ;;  %v824_v35 = vld [vmem:[%s16207_s29 + $0xfa] sm:$0xff] }
  0x25   : > { %12820 = vmatprep.mubr.msk.f32.mxu0 %vm355_vm0, %v339_v9  ;;  %v825_v36 = vld [vmem:[%s16207_s29 + $0x102] sm:$0xff]  ;;  %v826_v37 = vld [vmem:[%s16207_s29 + $0x10a] sm:$0xff]  ;;  %v827_v38 = vld [vmem:[%s16207_s29 + $0x112] sm:$0xff] }
  0x26   : > { %v828_v39 = vld [vmem:[%s16207_s29 + $0x11a] sm:$0xff]  ;;  %v829_v40 = vld [vmem:[%s16207_s29 + $0x122] sm:$0xff]  ;;  %v830_v41 = vld [vmem:[%s16207_s29 + $0x12a] sm:$0xff] }
  0x27   : > { %v831_v42 = vld [vmem:[%s16207_s29 + $0x132] sm:$0xff]  ;;  %v832_v43 = vld [vmem:[%s16207_s29 + $0x13a] sm:$0xff]  ;;  %v833_v44 = vld [vmem:[%s16207_s29 + $0x142] sm:$0xff] }
  0x28   : > { %12821 = vmatmul.mubr.msk.f32.gmra.mrb[6].mxu0 %vm355_vm0, %v340_v10  ;;  %v834_v45 = vld [vmem:[%s16207_s29 + $0x14a] sm:$0xff]  ;;  %v835_v46 = vld [vmem:[%s16207_s29 + $0x152] sm:$0xff]  ;;  %v836_v47 = vld [vmem:[%s16207_s29 + $0x15a] sm:$0xff] }
  0x29   : > { %12823 = vmatprep.mubr.msk.f32.mxu0 %vm355_vm0, %v341_v11  ;;  %v837_v48 = vld [vmem:[%s16207_s29 + $0x162] sm:$0xff]  ;;  %v838_v49 = vld [vmem:[%s16207_s29 + $0x16a] sm:$0xff]  ;;  %v839_v50 = vld [vmem:[%s16207_s29 + $0x172] sm:$0x1f] }
  0x2a   : > { %v1065_v51 = vld [vmem:[%s16207_s29 + $0x177] sm:$0xff]  ;;  %v1066_v52 = vld [vmem:[%s16207_s29 + $0x17f] sm:$0xff]  ;;  %v1067_v53 = vld [vmem:[%s16207_s29 + $0x187] sm:$0xff] }
  0x2b   : > { %v1068_v54 = vld [vmem:[%s16207_s29 + $0x18f] sm:$0xff]  ;;  %v1069_v55 = vld [vmem:[%s16207_s29 + $0x197] sm:$0xff]  ;;  %v1070_v56 = vld [vmem:[%s16207_s29 + $0x19f] sm:$0xff] }
  0x2c   : > { %12824 = vmatmul.mubr.msk.f32.gmra.mrb[8].mxu0 %vm355_vm0, %v342_v12  ;;  %v1071_v57 = vld [vmem:[%s16207_s29 + $0x1a7] sm:$0xff]  ;;  %v1072_v58 = vld [vmem:[%s16207_s29 + $0x1af] sm:$0xff]  ;;  %v1073_v59 = vld [vmem:[%s16207_s29 + $0x1b7] sm:$0xff] }
  0x2d   : > { %12826 = vmatprep.mubr.msk.f32.mxu0 %vm355_vm0, %v343_v13  ;;  %v1074_v60 = vld [vmem:[%s16207_s29 + $0x1bf] sm:$0xff]  ;;  %v1075_v61 = vld [vmem:[%s16207_s29 + $0x1c7] sm:$0xff]  ;;  %v1076_v62 = vld [vmem:[%s16207_s29 + $0x1cf] sm:$0xff] }
  0x2e   : > { %v1077_v63 = vld [vmem:[%s16207_s29 + $0x1d7] sm:$0xff]  ;;  %v1078_v0 = vld [vmem:[%s16207_s29 + $0x1df] sm:$0xff]  ;;  %v1079_v1 = vld [vmem:[%s16207_s29 + $0x1e7] sm:$0xff] }
  0x2f   : > { %v1306_v3 = vld [vmem:[%s16207_s29 + $0x1f4] sm:$0xff]  ;;  %v1307_v4 = vld [vmem:[%s16207_s29 + $0x1fc] sm:$0xff]  ;;  %v1308_v6 = vld [vmem:[%s16207_s29 + $0x204] sm:$0xff] }
  0x30   : > { %12827 = vmatmul.mubr.msk.f32.gmra.mrb[10].mxu0 %vm355_vm0, %v344_v14  ;;  %v16350_v5 = vld [vmem:[%s18635_s7] sm:$0xff]  ;;  %v1309_v7 = vld [vmem:[%s16207_s29 + $0x20c] sm:$0xff]  ;;  %v1310_v8 = vld [vmem:[%s16207_s29 + $0x214] sm:$0xff] }
  0x31   : > { %12829 = vmatprep.mubr.msk.f32.mxu0 %vm355_vm0, %v345_v15  ;;  %12955 = vmatprep.mubr.msk.f32.mxu1 %vm1575_vm1, %v16350_v5  ;;  %v1311_v9 = vld [vmem:[%s16207_s29 + $0x21c] sm:$0xff]  ;;  %v1312_v10 = vld [vmem:[%s16207_s29 + $0x224] sm:$0xff]  ;;  %v1313_v11 = vld [vmem:[%s16207_s29 + $0x22c] sm:$0xff] }
  0x32   : > { %v1314_v12 = vld [vmem:[%s16207_s29 + $0x234] sm:$0xff]  ;;  %v1315_v13 = vld [vmem:[%s16207_s29 + $0x23c] sm:$0xff]  ;;  %v1316_v14 = vld [vmem:[%s16207_s29 + $0x244] sm:$0xff] }
  0x33   : > { %v1317_v15 = vld [vmem:[%s16207_s29 + $0x24c] sm:$0xff] }
  0x34   : > { %12830 = vmatmul.mubr.msk.f32.gmra.mrb[12].mxu0 %vm355_vm0, %v346_v16  ;;  %v1318_v16 = vld [vmem:[%s16207_s29 + $0x254] sm:$0xff] }
  0x35   : > { %12832 = vmatprep.mubr.msk.f32.mxu0 %vm355_vm0, %v347_v17  ;;  %v1319_v17 = vld [vmem:[%s16207_s29 + $0x25c] sm:$0xff] }
  0x38   : > { %12833 = vmatmul.mubr.msk.f32.gmra.mrb[14].mxu0 %vm355_vm0, %v348_v18  ;;  %v1320_v18 = vld [vmem:[%s16207_s29 + $0x264] sm:$0xff] }
  0x39   : > { %12839 = vmatprep.mubr.msk.f32.mxu0 %vm355_vm0, %v583_v19  ;;  %v1321_v19 = vld [vmem:[%s16207_s29 + $0x26c] sm:$0x1f] }
  0x3c   : > { %12840 = vmatmul.mubr.msk.f32.vlgmr.msra.gmra.mrb[16].mxu0 %vm355_vm0, %v584_v20  ;;  %v16386_v20 = vld [vmem:[%s18635_s7 + $0x10] sm:$0xff] }
  0x3d   : > { %12842 = vmatprep.mubr.msk.f32.mxu0 %vm355_vm0, %v585_v21  ;;  %14570 = vmatpush3.bf16.msra.mxu0 %v16198_v2  ;;  %v16393_v21 = vld [vmem:[%s18630_s2] ss:$0 sm:$0xff] }
  0x3e   : > { %14572 = vmatprep.subr.bf16.mxu0 %v16198_v2 }
  0x40   : > { %12843 = vmatmul.mubr.msk.f32.gmra.mrb[18].mxu0 %vm355_vm0, %v586_v22 }
  0x41   : > { %12845 = vmatprep.mubr.msk.f32.mxu0 %vm355_vm0, %v587_v23 }
  0x44   : > { %12846 = vmatmul.mubr.msk.f32.gmra.mrb[20].mxu0 %vm355_vm0, %v588_v24 }
  0x45   : > { %12848 = vmatprep.mubr.msk.f32.mxu0 %vm355_vm0, %v589_v25 }
  0x48   : > { %12849 = vmatmul.mubr.msk.f32.gmra.mrb[22].mxu0 %vm355_vm0, %v590_v26 }
  0x49   : > { %12851 = vmatprep.mubr.msk.f32.mxu0 %vm355_vm0, %v591_v27 }
  0x4c   : > { %12852 = vmatmul.mubr.msk.f32.gmra.mrb[24].mxu0 %vm355_vm0, %v592_v28 }
  0x4d   : > { %12854 = vmatprep.mubr.msk.f32.mxu0 %vm355_vm0, %v593_v29 }
  0x50   : > { %12855 = vmatmul.mubr.msk.f32.gmra.mrb[26].mxu0 %vm355_vm0, %v594_v30 }
  0x51   : > { %12857 = vmatprep.mubr.msk.f32.mxu0 %vm355_vm0, %v595_v31 }
  0x54   : > { %12858 = vmatmul.mubr.msk.f32.gmra.mrb[28].mxu0 %vm355_vm0, %v596_v32 }
  0x55   : > { %12860 = vmatprep.mubr.msk.f32.mxu0 %vm355_vm0, %v597_v33 }
  0x58   : > { %12861 = vmatmul.mubr.msk.f32.gmra.mrb[30].mxu0 %vm355_vm0, %v598_v34 }
  0x59   : > { %12867 = vmatprep.mubr.msk.f32.mxu0 %vm355_vm0, %v824_v35 }
  0x5c   : > { %12868 = vmatmul.mubr.msk.f32.vlgmr.msra.gmra.mrb[32].mxu0 %vm355_vm0, %v825_v36 }
  0x5d   : > { %12870 = vmatprep.mubr.msk.f32.mxu0 %vm355_vm0, %v826_v37  ;;  %14574 = vmatpush3.bf16.msra.mxu0 %v16198_v2 }
  0x5e   : > { %14576 = vmatprep.subr.bf16.mxu0 %v16198_v2 }
  0x60   : > { %12871 = vmatmul.mubr.msk.f32.gmra.mrb[34].mxu0 %vm355_vm0, %v827_v38 }
  0x61   : > { %12873 = vmatprep.mubr.msk.f32.mxu0 %vm355_vm0, %v828_v39 }
  0x64   : > { %12874 = vmatmul.mubr.msk.f32.gmra.mrb[36].mxu0 %vm355_vm0, %v829_v40 }
  0x65   : > { %12876 = vmatprep.mubr.msk.f32.mxu0 %vm355_vm0, %v830_v41 }
  0x68   : > { %12877 = vmatmul.mubr.msk.f32.gmra.mrb[38].mxu0 %vm355_vm0, %v831_v42 }
  0x69   : > { %12879 = vmatprep.mubr.msk.f32.mxu0 %vm355_vm0, %v832_v43 }
  0x6c   : > { %12880 = vmatmul.mubr.msk.f32.gmra.mrb[40].mxu0 %vm355_vm0, %v833_v44 }
  0x6d   : > { %12882 = vmatprep.mubr.msk.f32.mxu0 %vm355_vm0, %v834_v45 }
  0x70   : > { %12883 = vmatmul.mubr.msk.f32.gmra.mrb[42].mxu0 %vm355_vm0, %v835_v46 }
  0x71   : > { %12885 = vmatprep.mubr.msk.f32.mxu0 %vm355_vm0, %v836_v47 }
  0x74   : > { %12886 = vmatmul.mubr.msk.f32.gmra.mrb[44].mxu0 %vm355_vm0, %v837_v48 }
  0x75   : > { %12888 = vmatprep.mubr.msk.f32.mxu0 %vm355_vm0, %v838_v49 }
  0x78   : > { %12889 = vmatmul.mubr.msk.f32.gmra.mrb[46].mxu0 %vm355_vm0, %v839_v50 }
  0x79   : > { %12895 = vmatprep.mubr.msk.f32.mxu0 %vm355_vm0, %v1065_v51 }
  0x7c   : > { %12896 = vmatmul.mubr.msk.f32.vlgmr.msra.gmra.mrb[48].mxu0 %vm355_vm0, %v1066_v52 }
  0x7d   : > { %12898 = vmatprep.mubr.msk.f32.mxu0 %vm355_vm0, %v1067_v53  ;;  %14578 = vmatpush3.bf16.msra.mxu0 %v16198_v2  ;;  %v1080_v2 = vld [vmem:[%s16207_s29 + $0x1ef] sm:$0x1f]  ;;  %s11357_s29 = scalar_lea.sflag [#allocation5], %s323_s22 }
  0x80   : > { %12899 = vmatmul.mubr.msk.f32.gmra.mrb[50].mxu0 %vm355_vm0, %v1068_v54 }
  0x81   : > { %12901 = vmatprep.mubr.msk.f32.mxu0 %vm355_vm0, %v1069_v55 }
  0x84   : > { %12902 = vmatmul.mubr.msk.f32.gmra.mrb[52].mxu0 %vm355_vm0, %v1070_v56 }
  0x85   : > { %12904 = vmatprep.mubr.msk.f32.mxu0 %vm355_vm0, %v1071_v57 }
  0x88   : > { %12905 = vmatmul.mubr.msk.f32.gmra.mrb[54].mxu0 %vm355_vm0, %v1072_v58 }
  0x89   : > { %12907 = vmatprep.mubr.msk.f32.mxu0 %vm355_vm0, %v1073_v59 }
  0x8c   : > { %12908 = vmatmul.mubr.msk.f32.gmra.mrb[56].mxu0 %vm355_vm0, %v1074_v60 }
  0x8d   : > { %12910 = vmatprep.mubr.msk.f32.mxu0 %vm355_vm0, %v1075_v61 }
  0x90   : > { %12911 = vmatmul.mubr.msk.f32.gmra.mrb[58].mxu0 %vm355_vm0, %v1076_v62 }
  0x91   : > { %12913 = vmatprep.mubr.msk.f32.mxu0 %vm355_vm0, %v1077_v63 }
  0x94   : > { %12914 = vmatmul.mubr.msk.f32.gmra.mrb[60].mxu0 %vm355_vm0, %v1078_v0 }
  0x95   : > { %12916 = vmatprep.mubr.msk.f32.mxu0 %vm355_vm0, %v1079_v1 }
  0x98   : > { %12917 = vmatmul.mubr.msk.f32.gmra.mrb[62].mxu0 %vm355_vm0, %v1080_v2 }
  0x99   : > { %12923 = vmatprep.mubr.msk.f32.mxu0 %vm355_vm0, %v1306_v3 }
  0x9c   : > { %12924 = vmatmul.mubr.msk.f32.vlgmr.msra.gmra.mrb[64].mxu0 %vm355_vm0, %v1307_v4 }
  0x9d   : > { %12926 = vmatprep.mubr.msk.f32.mxu0 %vm355_vm0, %v1308_v6 }
  0xa0   : > { %12927 = vmatmul.mubr.msk.f32.gmra.mrb[66].mxu0 %vm355_vm0, %v1309_v7 }
  0xa1   : > { %12929 = vmatprep.mubr.msk.f32.mxu0 %vm355_vm0, %v1310_v8 }
  0xa4   : > { %12930 = vmatmul.mubr.msk.f32.gmra.mrb[68].mxu0 %vm355_vm0, %v1311_v9 }
  0xa5   : > { %12932 = vmatprep.mubr.msk.f32.mxu0 %vm355_vm0, %v1312_v10 }
  0xa8   : > { %12933 = vmatmul.mubr.msk.f32.gmra.mrb[70].mxu0 %vm355_vm0, %v1313_v11 }
  0xa9   : > { %12935 = vmatprep.mubr.msk.f32.mxu0 %vm355_vm0, %v1314_v12 }
  0xac   : > { %12936 = vmatmul.mubr.msk.f32.gmra.mrb[72].mxu0 %vm355_vm0, %v1315_v13 }
  0xad   : > { %12938 = vmatprep.mubr.msk.f32.mxu0 %vm355_vm0, %v1316_v14 }
  0xb0   : > { %12939 = vmatmul.mubr.msk.f32.gmra.mrb[74].mxu0 %vm355_vm0, %v1317_v15 }
  0xb1   : > { %12941 = vmatprep.mubr.msk.f32.mxu0 %vm355_vm0, %v1318_v16 }
  0xb4   : > { %12942 = vmatmul.mubr.msk.f32.gmra.mrb[76].mxu0 %vm355_vm0, %v1319_v17 }
  0xb5   : > { %12944 = vmatprep.mubr.msk.f32.mxu0 %vm355_vm0, %v1320_v18 }
  0xb8   : > { %12945 = vmatmul.mubr.msk.f32.gmra.mrb[78].mxu0 %vm355_vm0, %v1321_v19 }
  0xb9   : > { %12999 = vmatprep.mubr.msk.f32.mxu0 %vm1575_vm1, %v16386_v20 }
  0xef   : > { %v12813_v22 = vpop.f32.mrb[0].mxu0 }
  0xf0   : > { %v476_v23 = vadd.f32 %v12813_v22, %v16393_v21  ;;  %v470_v24 = vpop.f32.mrb[1].mxu0 }
  0xf1   : > { %v471_v25 = vadd.f32 %v16393_v21, %v470_v24 }
  0xf2   : > { %v550_v26 = vmax.f32 %v476_v23, 0.0 }
  0xf3   : > { %v549_v27 = vmax.f32 %v471_v25, 0.0  ;;  %v12816_v28 = vpop.f32.mrb[2].mxu0 }
  0xf4   : > { %567 = vst.msk [vmem:[#allocation2 + $0x8] sm:$0xff] %vm565_vm2, %v550_v26  ;;  %v486_v29 = vadd.f32 %v12816_v28, %v16393_v21  ;;  %v480_v30 = vpop.f32.mrb[3].mxu0 }
  0xf5   : > { %566 = vst.msk [vmem:[#allocation2] sm:$0xff] %vm565_vm2, %v549_v27  ;;  %v481_v31 = vadd.f32 %v16393_v21, %v480_v30 }
  0xf6   : > { %v552_v32 = vmax.f32 %v486_v29, 0.0 }
  0xf7   : > { %v551_v33 = vmax.f32 %v481_v31, 0.0  ;;  %v12819_v34 = vpop.f32.mrb[4].mxu0 }
  0xf8   : > { %569 = vst.msk [vmem:[#allocation2 + $0x18] sm:$0xff] %vm565_vm2, %v552_v32  ;;  %v496_v35 = vadd.f32 %v12819_v34, %v16393_v21  ;;  %v490_v36 = vpop.f32.mrb[5].mxu0 }
  0xf9   : > { %568 = vst.msk [vmem:[#allocation2 + $0x10] sm:$0xff] %vm565_vm2, %v551_v33  ;;  %v491_v37 = vadd.f32 %v16393_v21, %v490_v36 }
  0xfa   : > { %v554_v38 = vmax.f32 %v496_v35, 0.0 }
  0xfb   : > { %v553_v39 = vmax.f32 %v491_v37, 0.0  ;;  %v12822_v40 = vpop.f32.mrb[6].mxu0  ;;  %v1556_v19 = vld [vmem:[#allocation2 + $0x8] sm:$0xff] }
  0xfc   : > { %571 = vst.msk [vmem:[#allocation2 + $0x28] sm:$0xff] %vm565_vm2, %v554_v38  ;;  %v506_v41 = vadd.f32 %v12822_v40, %v16393_v21  ;;  %v500_v42 = vpop.f32.mrb[7].mxu0  ;;  %v1555_v15 = vld [vmem:[#allocation2] sm:$0xff] }
  0xfd   : > { %570 = vst.msk [vmem:[#allocation2 + $0x20] sm:$0xff] %vm565_vm2, %v553_v39  ;;  %v501_v43 = vadd.f32 %v16393_v21, %v500_v42 }
  0xfe   : > { %v556_v44 = vmax.f32 %v506_v41, 0.0 }
  0xff   : > { %v555_v45 = vmax.f32 %v501_v43, 0.0  ;;  %v12825_v46 = vpop.f32.mrb[8].mxu0  ;;  %v1558_v24 = vld [vmem:[#allocation2 + $0x18] sm:$0x1] }
 0x100   : > { %573 = vst.msk [vmem:[#allocation2 + $0x38] sm:$0xff] %vm565_vm2, %v556_v44  ;;  %v516_v47 = vadd.f32 %v12825_v46, %v16393_v21  ;;  %v510_v48 = vpop.f32.mrb[9].mxu0  ;;  %v1557_v23 = vld [vmem:[#allocation2 + $0x10] sm:$0xff] }
 0x101   : > { %572 = vst.msk [vmem:[#allocation2 + $0x30] sm:$0xff] %vm565_vm2, %v555_v45  ;;  %v511_v49 = vadd.f32 %v16393_v21, %v510_v48 }
 0x102   : > { %v558_v50 = vmax.f32 %v516_v47, 0.0 }
 0x103   : > { %v557_v51 = vmax.f32 %v511_v49, 0.0  ;;  %v12828_v52 = vpop.f32.mrb[10].mxu0 }
 0x104   : > { %575 = vst.msk [vmem:[#allocation2 + $0x48] sm:$0xff] %vm565_vm2, %v558_v50  ;;  %v526_v53 = vadd.f32 %v12828_v52, %v16393_v21  ;;  %v520_v54 = vpop.f32.mrb[11].mxu0  ;;  %v1559_v63 = vld [vmem:[#allocation2 + $0x19] sm:$0xff]  ;;  %v1560_v1 = vld [vmem:[#allocation2 + $0x21] sm:$0xff] }
 0x105   : > { %574 = vst.msk [vmem:[#allocation2 + $0x40] sm:$0xff] %vm565_vm2, %v557_v51  ;;  %v521_v55 = vadd.f32 %v16393_v21, %v520_v54  ;;  %v16468_v54 = vld [vmem:[%s18635_s7 + $0x8] sm:$0xf] }
 0x106   : > { %v560_v56 = vmax.f32 %v526_v53, 0.0 }
 0x107   : > { %v559_v57 = vmax.f32 %v521_v55, 0.0  ;;  %v12831_v58 = vpop.f32.mrb[12].mxu0 }
 0x108   : > { %577 = vst.msk [vmem:[#allocation2 + $0x58] sm:$0xff] %vm565_vm2, %v560_v56  ;;  %v536_v59 = vadd.f32 %v12831_v58, %v16393_v21  ;;  %v530_v60 = vpop.f32.mrb[13].mxu0  ;;  %v16419_v61 = vld [vmem:[#allocation2 + $0x32] sm:$0xff]  ;;  %v1562_v6 = vld [vmem:[#allocation2 + $0x31] sm:$0x1]  ;;  %v1561_v11 = vld [vmem:[#allocation2 + $0x29] sm:$0xff] }
 0x109   : > { %576 = vst.msk [vmem:[#allocation2 + $0x50] sm:$0xff] %vm565_vm2, %v559_v57  ;;  %v531_v62 = vadd.f32 %v16393_v21, %v530_v60  ;;  %v1567_v2 = vmax.f32 %v1559_v63, %v16419_v61 }
 0x10a   : > { %v562_v0 = vmax.f32 %v536_v59, 0.0 }
 0x10b   : > { %v561_v3 = vmax.f32 %v531_v62, 0.0  ;;  %v12834_v4 = vpop.f32.mrb[14].mxu0  ;;  %v1566_v7 = vld [vmem:[#allocation2 + $0x4a] sm:$0x1]  ;;  %v1571_v22 = vmax.f32 %v1555_v15, %v1567_v2 }
 0x10c   : > { %579 = vst.msk [vmem:[#allocation2 + $0x68] sm:$0xff] %vm565_vm2, %v562_v0  ;;  %v546_v8 = vadd.f32 %v12834_v4, %v16393_v21  ;;  %v540_v9 = vpop.f32.mrb[15].mxu0  ;;  %v16426_v10 = vld [vmem:[#allocation2 + $0x3a] sm:$0xff]  ;;  %v16428_v12 = vld [vmem:[#allocation2 + $0x42] sm:$0xff]  ;;  %v1570_v13 = vmax.f32 %v1562_v6, %v1566_v7  ;;  %v1833_v0 = vld [vmem:[#allocation2 + $0x4a] sm:$0x1] }
 0x10d   : > { %578 = vst.msk [vmem:[#allocation2 + $0x60] sm:$0xff] %vm565_vm2, %v561_v3  ;;  %v541_v14 = vadd.f32 %v16393_v21, %v540_v9  ;;  %v1568_v16 = vmax.f32 %v1560_v1, %v16426_v10  ;;  %v1569_v17 = vmax.f32 %v1561_v11, %v16428_v12 }
 0x10e   : > { %v564_v18 = vmax.f32 %v546_v8, 0.0  ;;  %v1574_v29 = vmax.f32 %v1558_v24, %v1570_v13 }
 0x10f   : > { %v563_v25 = vmax.f32 %v541_v14, 0.0  ;;  %v12841_v26 = vpop.f32.mrb[16].mxu0  ;;  %v1572_v27 = vmax.f32 %v1556_v19, %v1568_v16  ;;  %v1573_v28 = vmax.f32 %v1557_v23, %v1569_v17  ;;  %v16507_v14 = vld [vmem:[%s18635_s7 + $0x18] sm:$0xf] }
 0x110   : > { %582 = vst.msk [vmem:[#allocation2 + $0x78] sm:$0x1f] %vm581_vm3, %v564_v18  ;;  %v719_v30 = vadd.f32 %v12841_v26, %v16393_v21  ;;  %v713_v31 = vpop.f32.mrb[17].mxu0  ;;  %v1834_v43 = vld [vmem:[#allocation2 + $0x4b] sm:$0xff]  ;;  %v1835_v46 = vld [vmem:[#allocation2 + $0x53] sm:$0xff]  ;;  %v16519_v18 = vld [vmem:[%s18635_s7 + $0x20] sm:$0xff] }
 0x111   : > { %580 = vst.msk [vmem:[#allocation2 + $0x70] sm:$0xff] %vm565_vm2, %v563_v25  ;;  %v16437_v32 = vpack.c.bf16 %v1572_v27, %v1571_v22  ;;  %v714_v33 = vadd.f32 %v16393_v21, %v713_v31  ;;  %v16447_v38 = vpack.c.bf16 %v1574_v29, %v1573_v28 }
 0x112   : > { %v793_v34 = vmax.f32 %v719_v30, 0.0 }
 0x113   : > { %14580 = vmatprep.subr.bf16.mxu1 %v16437_v32  ;;  %v792_v36 = vmax.f32 %v714_v33, 0.0  ;;  %v12844_v37 = vpop.f32.mrb[18].mxu0 }
 0x114   : > { %809 = vst.msk [vmem:[#allocation2 + $0x85] sm:$0xff] %vm565_vm2, %v793_v34  ;;  %14582 = vmatpush3.bf16.msra.mxu1 %v16437_v32  ;;  %v729_v39 = vadd.f32 %v12844_v37, %v16393_v21  ;;  %v723_v40 = vpop.f32.mrb[19].mxu0  ;;  %v16452_v41 = vld [vmem:[#allocation2 + $0x64] sm:$0xff]  ;;  %v1837_v44 = vld [vmem:[#allocation2 + $0x63] sm:$0x1]  ;;  %v1836_v48 = vld [vmem:[#allocation2 + $0x5b] sm:$0xff] }
 0x115   : > { %808 = vst.msk [vmem:[#allocation2 + $0x7d] sm:$0xff] %vm565_vm2, %v792_v36  ;;  %14585 = vmatprep.subr.msk.bf16.mxu1 %vm16442_vm6, %v16447_v38  ;;  %v724_v42 = vadd.f32 %v16393_v21, %v723_v40  ;;  %v1842_v47 = vmax.f32 %v1834_v43, %v16452_v41  ;;  %v16545_v37 = vld [vmem:[%s18635_s7 + $0x28] sm:$0xf] }
 0x116   : > { %v795_v45 = vmax.f32 %v729_v39, 0.0 }
 0x117   : > { %v794_v49 = vmax.f32 %v724_v42, 0.0  ;;  %v12847_v50 = vpop.f32.mrb[20].mxu0  ;;  %v1841_v51 = vld [vmem:[#allocation2 + $0x7c] sm:$0x1]  ;;  %v1846_v63 = vmax.f32 %v16419_v61, %v1842_v47 }
 0x118   : > { %811 = vst.msk [vmem:[#allocation2 + $0x95] sm:$0xff] %vm565_vm2, %v795_v45  ;;  %v739_v52 = vadd.f32 %v12847_v50, %v16393_v21  ;;  %v733_v53 = vpop.f32.mrb[21].mxu0  ;;  %14588 = vmatpush3.bf16.msk.msra.mxu1 %vm16442_vm6, %v16447_v38  ;;  %v16470_v55 = vld [vmem:[#allocation2 + $0x6c] sm:$0xff]  ;;  %v16472_v56 = vld [vmem:[#allocation2 + $0x74] sm:$0xff]  ;;  %v1845_v57 = vmax.f32 %v1837_v44, %v1841_v51  ;;  %v2088_v44 = vld [vmem:[#allocation2 + $0x7c] sm:$0x1] }
 0x119   : > { %810 = vst.msk [vmem:[#allocation2 + $0x8d] sm:$0xff] %vm565_vm2, %v794_v49  ;;  %v734_v58 = vadd.f32 %v16393_v21, %v733_v53  ;;  %14590 = vmatprep.subr.bf16.mxu1 %v16437_v32  ;;  %v1843_v59 = vmax.f32 %v1835_v46, %v16470_v55  ;;  %v1844_v60 = vmax.f32 %v1836_v48, %v16472_v56 }
 0x11a   : > { %v797_v62 = vmax.f32 %v739_v52, 0.0  ;;  %v1849_v6 = vmax.f32 %v1833_v0, %v1845_v57 }
 0x11b   : > { %v796_v1 = vmax.f32 %v734_v58, 0.0  ;;  %v12850_v2 = vpop.f32.mrb[22].mxu0  ;;  %12956 = vmatmul.mubr.msk.f32.vlgmr.msra.gmra.mrb[0].mxu1 %vm1575_vm1, %v16468_v54  ;;  %v1847_v3 = vmax.f32 %v16426_v10, %v1843_v59  ;;  %v1848_v4 = vmax.f32 %v16428_v12, %v1844_v60  ;;  %v2090_v22 = vld [vmem:[#allocation2 + $0x85] sm:$0xff] }
 0x11c   : > { %813 = vst.msk [vmem:[#allocation2 + $0xa5] sm:$0xff] %vm565_vm2, %v797_v62  ;;  %v749_v7 = vadd.f32 %v12850_v2, %v16393_v21  ;;  %v743_v8 = vpop.f32.mrb[23].mxu0  ;;  %14592 = vmatpush3.bf16.msra.mxu1 %v16437_v32  ;;  %12966 = vmatprep.mubr.msk.f32.mxu1 %vm1575_vm1, %v16386_v20  ;;  %v2089_v19 = vld [vmem:[#allocation2 + $0x7d] sm:$0xff] }
 0x11d   : > { %812 = vst.msk [vmem:[#allocation2 + $0x9d] sm:$0xff] %vm565_vm2, %v796_v1  ;;  %v744_v61 = vadd.f32 %v16393_v21, %v743_v8  ;;  %14595 = vmatprep.subr.msk.bf16.mxu1 %vm16442_vm6, %v16447_v38  ;;  %v16494_v9 = vpack.c.bf16 %v1847_v3, %v1846_v63  ;;  %v16497_v12 = vpack.c.bf16 %v1849_v6, %v1848_v4 }
 0x11e   : > { %v799_v10 = vmax.f32 %v749_v7, 0.0 }
 0x11f   : > { %v798_v11 = vmax.f32 %v744_v61, 0.0  ;;  %14620 = vmatprep.subr.bf16.mxu0 %v16494_v9  ;;  %v12853_v13 = vpop.f32.mrb[24].mxu0  ;;  %v2092_v34 = vld [vmem:[#allocation2 + $0x95] sm:$0x1] }
 0x120   : > { %815 = vst.msk [vmem:[#allocation2 + $0xb5] sm:$0xff] %vm565_vm2, %v799_v10  ;;  %14598 = vmatpush3.bf16.msk.msra.mxu1 %vm16442_vm6, %v16447_v38  ;;  %14622 = vmatpush3.bf16.msra.mxu0 %v16494_v9  ;;  %v759_v15 = vadd.f32 %v12853_v13, %v16393_v21  ;;  %v753_v16 = vpop.f32.mrb[25].mxu0  ;;  %v2091_v33 = vld [vmem:[#allocation2 + $0x8d] sm:$0xff] }
 0x121   : > { %814 = vst.msk [vmem:[#allocation2 + $0xad] sm:$0xff] %vm565_vm2, %v798_v11  ;;  %14600 = vmatprep.subr.bf16.mxu1 %v16437_v32  ;;  %14625 = vmatprep.subr.msk.bf16.mxu0 %vm16442_vm6, %v16497_v12  ;;  %v754_v17 = vadd.f32 %v16393_v21, %v753_v16 }
 0x122   : > { %v801_v23 = vmax.f32 %v759_v15, 0.0 }
 0x123   : > { %12967 = vmatmul.mubr.msk.f32.vlgmr.msra.gmra.mrb[2].mxu1 %vm1575_vm1, %v16507_v14  ;;  %v800_v24 = vmax.f32 %v754_v17, 0.0  ;;  %v12856_v25 = vpop.f32.mrb[26].mxu0 }
 0x124   : > { %14602 = vmatpush3.bf16.msra.mxu1 %v16437_v32  ;;  %14628 = vmatpush3.bf16.msk.msra.mxu0 %vm16442_vm6, %v16497_v12  ;;  %v16527_v26 = vld [vmem:[#allocation2 + $0x96] sm:$0xff]  ;;  %v16529_v27 = vld [vmem:[#allocation2 + $0x9e] sm:$0xff]  ;;  %817 = vst.msk [vmem:[#allocation2 + $0xc5] sm:$0xff] %vm565_vm2, %v801_v23  ;;  %v769_v28 = vadd.f32 %v12856_v25, %v16393_v21  ;;  %v763_v29 = vpop.f32.mrb[27].mxu0 }
 0x125   : > { %14605 = vmatprep.subr.msk.bf16.mxu1 %vm16442_vm6, %v16447_v38  ;;  %12977 = vmatprep.mubr.msk.f32.mxu1 %vm1575_vm1, %v16519_v18  ;;  %v2097_v30 = vmax.f32 %v2089_v19, %v16527_v26  ;;  %v2098_v31 = vmax.f32 %v2090_v22, %v16529_v27  ;;  %816 = vst.msk [vmem:[#allocation2 + $0xbd] sm:$0xff] %vm565_vm2, %v800_v24 }
 0x126   : > { %v764_v32 = vadd.f32 %v16393_v21, %v763_v29  ;;  %v803_v36 = vmax.f32 %v769_v28, 0.0 }
 0x127   : > { %v2101_v39 = vmax.f32 %v16452_v41, %v2097_v30  ;;  %v2102_v40 = vmax.f32 %v16470_v55, %v2098_v31  ;;  %13000 = vmatmul.mubr.msk.f32.vlgmr.msra.gmra.mrb[80].mxu0 %vm1575_vm1, %v16507_v14  ;;  %v12859_v43 = vpop.f32.mrb[28].mxu0 }
 0x128   : > { %v802_v42 = vmax.f32 %v764_v32, 0.0  ;;  %14608 = vmatpush3.bf16.msk.msra.mxu1 %vm16442_vm6, %v16447_v38  ;;  %v16554_v45 = vld [vmem:[#allocation2 + $0xa6] sm:$0xff]  ;;  %v2096_v46 = vld [vmem:[#allocation2 + $0xae] sm:$0x1]  ;;  %13021 = vmatprep.mubr.msk.f32.mxu0 %vm1575_vm1, %v16350_v5  ;;  %819 = vst.msk [vmem:[#allocation2 + $0xd5] sm:$0xff] %vm565_vm2, %v803_v36  ;;  %v779_v41 = vadd.f32 %v12859_v43, %v16393_v21  ;;  %v773_v47 = vpop.f32.mrb[29].mxu0 }
 0x129   : > { %14610 = vmatprep.subr.bf16.mxu1 %v16494_v9  ;;  %v16561_v48 = vpack.c.bf16 %v2102_v40, %v2101_v39  ;;  %v2099_v49 = vmax.f32 %v2091_v33, %v16554_v45  ;;  %v2100_v50 = vmax.f32 %v2092_v34, %v2096_v46  ;;  %v774_v38 = vadd.f32 %v16393_v21, %v773_v47  ;;  %v2344_v63 = vld [vmem:[#allocation2 + $0xaf] sm:$0xff] }
 0x12a   : > { %818 = vst.msk [vmem:[#allocation2 + $0xcd] sm:$0xff] %vm565_vm2, %v802_v42  ;;  %v805_v51 = vmax.f32 %v779_v41, 0.0 }
 0x12b   : > { %12978 = vmatmul.mubr.msk.f32.vlgmr.msra.gmra.mrb[4].mxu1 %vm1575_vm1, %v16545_v37  ;;  %14640 = vmatprep.subr.bf16.mxu0 %v16561_v48  ;;  %v2103_v52 = vmax.f32 %v16472_v56, %v2099_v49  ;;  %v2104_v53 = vmax.f32 %v2088_v44, %v2100_v50  ;;  %v804_v55 = vmax.f32 %v774_v38, 0.0  ;;  %v12862_v57 = vpop.f32.mrb[30].mxu0  ;;  %v2347_v22 = vld [vmem:[#allocation2 + $0xc7] sm:$0x1] }
 0x12c   : > { %14612 = vmatpush3.bf16.msra.mxu1 %v16494_v9  ;;  %14642 = vmatpush3.bf16.msra.mxu0 %v16561_v48  ;;  %821 = vst.msk [vmem:[#allocation2 + $0xe5] sm:$0xff] %vm565_vm2, %v805_v51  ;;  %v789_v58 = vadd.f32 %v12862_v57, %v16393_v21  ;;  %v783_v59 = vpop.f32.mrb[31].mxu0  ;;  %v2345_v0 = vld [vmem:[#allocation2 + $0xb7] sm:$0xff]  ;;  %v2346_v13 = vld [vmem:[#allocation2 + $0xbf] sm:$0xff] }
 0x12d   : > { %14615 = vmatprep.subr.msk.bf16.mxu1 %vm16442_vm6, %v16497_v12  ;;  %v16577_v60 = vpack.c.bf16 %v2104_v53, %v2103_v52  ;;  %12988 = vmatprep.mubr.msk.f32.mxu1 %vm1575_vm1, %v16350_v5  ;;  %820 = vst.msk [vmem:[#allocation2 + $0xdd] sm:$0xff] %vm565_vm2, %v804_v55  ;;  %v784_v56 = vadd.f32 %v16393_v21, %v783_v59 }
 0x12e   : > { %v807_v62 = vmax.f32 %v789_v58, 0.0 }
 0x12f   : > { %14645 = vmatprep.subr.msk.bf16.mxu0 %vm16442_vm6, %v16577_v60  ;;  %v806_v1 = vmax.f32 %v784_v56, 0.0  ;;  %v12869_v2 = vpop.f32.mrb[32].mxu0 }
 0x130   : > { %14618 = vmatpush3.bf16.msk.msra.mxu1 %vm16442_vm6, %v16497_v12  ;;  %14648 = vmatpush3.bf16.msk.msra.mxu0 %vm16442_vm6, %v16577_v60  ;;  %823 = vst.msk [vmem:[#allocation2 + $0xf5] sm:$0x1f] %vm581_vm3, %v807_v62  ;;  %v960_v3 = vadd.f32 %v12869_v2, %v16393_v21  ;;  %v954_v4 = vpop.f32.mrb[33].mxu0 }
 0x131   : > { %v16594_v6 = vld [vmem:[#allocation2 + $0xc8] sm:$0xff]  ;;  %v16596_v7 = vld [vmem:[#allocation2 + $0xd0] sm:$0xff]  ;;  %14630 = vmatprep.subr.bf16.mxu1 %v16494_v9  ;;  %14660 = vmatprep.subr.bf16.mxu0 %v16561_v48  ;;  %822 = vst.msk [vmem:[#allocation2 + $0xed] sm:$0xff] %vm565_vm2, %v806_v1  ;;  %v955_v8 = vadd.f32 %v16393_v21, %v954_v4 }
 0x132   : > { %v2352_v61 = vmax.f32 %v2344_v63, %v16594_v6  ;;  %v2353_v10 = vmax.f32 %v2345_v0, %v16596_v7  ;;  %v1034_v11 = vmax.f32 %v960_v3, 0.0 }
 0x133   : > { %12989 = vmatmul.mubr.msk.f32.vlgmr.msra.gmra.mrb[6].mxu1 %vm1575_vm1, %v16468_v54  ;;  %13022 = vmatmul.mubr.msk.f32.vlgmr.msra.gmra.mrb[82].mxu0 %vm1575_vm1, %v16468_v54  ;;  %v1033_v15 = vmax.f32 %v955_v8, 0.0  ;;  %v12872_v16 = vpop.f32.mrb[34].mxu0 }
 0x134   : > { %v2356_v17 = vmax.f32 %v16527_v26, %v2352_v61  ;;  %v2357_v19 = vmax.f32 %v16529_v27, %v2353_v10  ;;  %14632 = vmatpush3.bf16.msra.mxu1 %v16494_v9  ;;  %14662 = vmatpush3.bf16.msra.mxu0 %v16561_v48  ;;  %1050 = vst.msk [vmem:[#allocation2 + $0x102] sm:$0xff] %vm565_vm2, %v1034_v11  ;;  %v964_v24 = vpop.f32.mrb[35].mxu0  ;;  %v16614_v25 = vld [vmem:[#allocation2 + $0xd8] sm:$0xff]  ;;  %v2351_v28 = vld [vmem:[#allocation2 + $0xe0] sm:$0x1]  ;;  %v2599_v44 = vld [vmem:[#allocation2 + $0xe1] sm:$0xff] }
 0x135   : > { %v970_v23 = vadd.f32 %v12872_v16, %v16393_v21  ;;  %14635 = vmatprep.subr.msk.bf16.mxu1 %vm16442_vm6, %v16497_v12  ;;  %14665 = vmatprep.subr.msk.bf16.mxu0 %vm16442_vm6, %v16577_v60  ;;  %1049 = vst.msk [vmem:[#allocation2 + $0xfa] sm:$0xff] %vm565_vm2, %v1033_v15  ;;  %v965_v9 = vadd.f32 %v16393_v21, %v964_v24  ;;  %v2343_v26 = vld [vmem:[#allocation2 + $0xae] sm:$0x1]  ;;  %v2598_v63 = vld [vmem:[#allocation2 + $0xe0] sm:$0x1] }
 0x136   : > { %v2354_v27 = vmax.f32 %v2346_v13, %v16614_v25  ;;  %13010 = vmatprep.mubr.msk.f32.mxu1 %vm1575_vm1, %v16519_v18  ;;  %13043 = vmatprep.mubr.msk.f32.mxu0 %vm1575_vm1, %v16519_v18  ;;  %v2355_v30 = vmax.f32 %v2347_v22, %v2351_v28  ;;  %v16629_v32 = vpack.c.bf16 %v2357_v19, %v2356_v17 }
 0x137   : > { %v1036_v29 = vmax.f32 %v970_v23, 0.0  ;;  %v1035_v31 = vmax.f32 %v965_v9, 0.0  ;;  %v12875_v33 = vpop.f32.mrb[36].mxu0  ;;  %v2602_v53 = vld [vmem:[#allocation2 + $0xf9] sm:$0x1] }
 0x138   : > { %14638 = vmatpush3.bf16.msk.msra.mxu1 %vm16442_vm6, %v16497_v12  ;;  %14668 = vmatpush3.bf16.msk.msra.mxu0 %vm16442_vm6, %v16577_v60  ;;  %v2358_v34 = vmax.f32 %v16554_v45, %v2354_v27  ;;  %v2359_v36 = vmax.f32 %v2343_v26, %v2355_v30  ;;  %v980_v39 = vadd.f32 %v12875_v33, %v16393_v21  ;;  %v974_v40 = vpop.f32.mrb[37].mxu0  ;;  %v2600_v42 = vld [vmem:[#allocation2 + $0xe9] sm:$0xff]  ;;  %v2601_v58 = vld [vmem:[#allocation2 + $0xf1] sm:$0xff] }
 0x139   : > { %1052 = vst.msk [vmem:[#allocation2 + $0x112] sm:$0xff] %vm565_vm2, %v1036_v29  ;;  %14650 = vmatprep.subr.bf16.mxu1 %v16561_v48  ;;  %1051 = vst.msk [vmem:[#allocation2 + $0x10a] sm:$0xff] %vm565_vm2, %v1035_v31  ;;  %14680 = vmatprep.subr.bf16.mxu0 %v16629_v32  ;;  %v975_v12 = vadd.f32 %v16393_v21, %v974_v40 }
 0x13a   : > { %v1038_v43 = vmax.f32 %v980_v39, 0.0  ;;  %v16653_v47 = vpack.c.bf16 %v2359_v36, %v2358_v34 }
 0x13b   : > { %13011 = vmatmul.mubr.msk.f32.vlgmr.msra.gmra.mrb[8].mxu1 %vm1575_vm1, %v16545_v37  ;;  %13044 = vmatmul.mubr.msk.f32.vlgmr.msra.gmra.mrb[84].mxu0 %vm1575_vm1, %v16545_v37  ;;  %v1037_v45 = vmax.f32 %v975_v12, 0.0  ;;  %v12878_v46 = vpop.f32.mrb[38].mxu0  ;;  %v16648_v41 = vld [vmem:[#allocation2 + $0x102] sm:$0xff] }
 0x13c   : > { %14652 = vmatpush3.bf16.msra.mxu1 %v16561_v48  ;;  %13032 = vmatprep.mubr.msk.f32.mxu1 %vm1575_vm1, %v16386_v20  ;;  %1054 = vst.msk [vmem:[#allocation2 + $0x122] sm:$0xff] %vm565_vm2, %v1038_v43  ;;  %v990_v49 = vadd.f32 %v12878_v46, %v16393_v21  ;;  %v984_v50 = vpop.f32.mrb[39].mxu0  ;;  %v16657_v38 = vld [vmem:[#allocation2 + $0xfa] sm:$0xff]  ;;  %v2608_v51 = vmax.f32 %v2600_v42, %v16648_v41 }
 0x13d   : > { %14655 = vmatprep.subr.msk.bf16.mxu1 %vm16442_vm6, %v16577_v60  ;;  %1053 = vst.msk [vmem:[#allocation2 + $0x11a] sm:$0xff] %vm565_vm2, %v1037_v45  ;;  %14682 = vmatpush3.bf16.msra.mxu0 %v16629_v32  ;;  %v985_v48 = vadd.f32 %v16393_v21, %v984_v50  ;;  %v2607_v52 = vmax.f32 %v2599_v44, %v16657_v38 }
 0x13e   : > { %v1040_v55 = vmax.f32 %v990_v49, 0.0  ;;  %14685 = vmatprep.subr.msk.bf16.mxu0 %vm16442_vm6, %v16653_v47  ;;  %13065 = vmatprep.mubr.msk.f32.mxu0 %vm1575_vm1, %v16386_v20  ;;  %v2612_v57 = vmax.f32 %v16596_v7, %v2608_v51 }
 0x13f   : > { %v1039_v59 = vmax.f32 %v985_v48, 0.0  ;;  %v12881_v56 = vpop.f32.mrb[40].mxu0  ;;  %v2611_v62 = vmax.f32 %v16594_v6, %v2607_v52 }
 0x140   : > { %v2606_v0 = vld [vmem:[#allocation2 + $0x112] sm:$0x1]  ;;  %14658 = vmatpush3.bf16.msk.msra.mxu1 %vm16442_vm6, %v16577_v60  ;;  %1056 = vst.msk [vmem:[#allocation2 + $0x132] sm:$0xff] %vm565_vm2, %v1040_v55  ;;  %v1000_v1 = vadd.f32 %v12881_v56, %v16393_v21  ;;  %v994_v2 = vpop.f32.mrb[41].mxu0  ;;  %v16679_v3 = vld [vmem:[#allocation2 + $0x10a] sm:$0xff] }
 0x141   : > { %v2610_v4 = vmax.f32 %v2602_v53, %v2606_v0  ;;  %14670 = vmatprep.subr.bf16.mxu1 %v16629_v32  ;;  %1055 = vst.msk [vmem:[#allocation2 + $0x12a] sm:$0xff] %vm565_vm2, %v1039_v59  ;;  %v995_v6 = vadd.f32 %v16393_v21, %v994_v2  ;;  %14688 = vmatpush3.bf16.msk.msra.mxu0 %vm16442_vm6, %v16653_v47 }
 0x142   : > { %v16687_v7 = vpack.c.bf16 %v2612_v57, %v2611_v62  ;;  %v2609_v60 = vmax.f32 %v2601_v58, %v16679_v3  ;;  %v1042_v8 = vmax.f32 %v1000_v1, 0.0 }
 0x143   : > { %v2614_v61 = vmax.f32 %v2598_v63, %v2610_v4  ;;  %13033 = vmatmul.mubr.msk.f32.vlgmr.msra.gmra.mrb[10].mxu1 %vm1575_vm1, %v16507_v14  ;;  %v1041_v10 = vmax.f32 %v995_v6, 0.0  ;;  %v12884_v11 = vpop.f32.mrb[42].mxu0 }
 0x144   : > { %14700 = vmatprep.subr.bf16.mxu0 %v16687_v7  ;;  %v2613_v13 = vmax.f32 %v16614_v25, %v2609_v60  ;;  %14672 = vmatpush3.bf16.msra.mxu1 %v16629_v32  ;;  %1058 = vst.msk [vmem:[#allocation2 + $0x142] sm:$0xff] %vm565_vm2, %v1042_v8  ;;  %v1010_v15 = vadd.f32 %v12884_v11, %v16393_v21  ;;  %v1004_v16 = vpop.f32.mrb[43].mxu0  ;;  %v2854_v23 = vld [vmem:[#allocation2 + $0x113] sm:$0xff]  ;;  %v2855_v33 = vld [vmem:[#allocation2 + $0x11b] sm:$0xff] }
 0x145   : > { %13054 = vmatprep.mubr.msk.f32.mxu1 %vm1575_vm1, %v16350_v5  ;;  %14675 = vmatprep.subr.msk.bf16.mxu1 %vm16442_vm6, %v16653_v47  ;;  %1057 = vst.msk [vmem:[#allocation2 + $0x13a] sm:$0xff] %vm565_vm2, %v1041_v10  ;;  %v1005_v19 = vadd.f32 %v16393_v21, %v1004_v16 }
 0x146   : > { %13066 = vmatmul.mubr.msk.f32.vlgmr.msra.gmra.mrb[86].mxu0 %vm1575_vm1, %v16507_v14  ;;  %v16705_v17 = vpack.c.bf16 %v2614_v61, %v2613_v13  ;;  %v1044_v22 = vmax.f32 %v1010_v15, 0.0 }
 0x147   : > { %14702 = vmatpush3.bf16.msra.mxu0 %v16687_v7  ;;  %13087 = vmatprep.mubr.msk.f32.mxu0 %vm1575_vm1, %v16350_v5  ;;  %v1043_v24 = vmax.f32 %v1005_v19, 0.0  ;;  %v12887_v25 = vpop.f32.mrb[44].mxu0 }
 0x148   : > { %14705 = vmatprep.subr.msk.bf16.mxu0 %vm16442_vm6, %v16705_v17  ;;  %14678 = vmatpush3.bf16.msk.msra.mxu1 %vm16442_vm6, %v16653_v47  ;;  %1060 = vst.msk [vmem:[#allocation2 + $0x152] sm:$0xff] %vm565_vm2, %v1044_v22  ;;  %v1020_v28 = vadd.f32 %v12887_v25, %v16393_v21  ;;  %v1014_v9 = vpop.f32.mrb[45].mxu0  ;;  %v16719_v26 = vld [vmem:[#allocation2 + $0x12c] sm:$0xff]  ;;  %v2857_v30 = vld [vmem:[#allocation2 + $0x12b] sm:$0x1]  ;;  %v2856_v34 = vld [vmem:[#allocation2 + $0x123] sm:$0xff] }
 0x149   : > { %14690 = vmatprep.subr.bf16.mxu1 %v16629_v32  ;;  %1059 = vst.msk [vmem:[#allocation2 + $0x14a] sm:$0xff] %vm565_vm2, %v1043_v24  ;;  %v1015_v27 = vadd.f32 %v16393_v21, %v1014_v9  ;;  %v2862_v29 = vmax.f32 %v2854_v23, %v16719_v26 }
 0x14a   : > { %v1046_v31 = vmax.f32 %v1020_v28, 0.0 }
 0x14b   : > { %14708 = vmatpush3.bf16.msk.msra.mxu0 %vm16442_vm6, %v16705_v17  ;;  %13055 = vmatmul.mubr.msk.f32.vlgmr.msra.gmra.mrb[12].mxu1 %vm1575_vm1, %v16468_v54  ;;  %v1045_v36 = vmax.f32 %v1015_v27, 0.0  ;;  %v12890_v39 = vpop.f32.mrb[46].mxu0  ;;  %v2861_v40 = vld [vmem:[#allocation2 + $0x144] sm:$0x1]  ;;  %v2866_v44 = vmax.f32 %v16657_v38, %v2862_v29  ;;  %v2853_v38 = vld [vmem:[#allocation2 + $0x112] sm:$0x1] }
 0x14c   : > { %14720 = vmatprep.subr.bf16.mxu0 %v16687_v7  ;;  %14692 = vmatpush3.bf16.msra.mxu1 %v16629_v32  ;;  %1062 = vst.msk [vmem:[#allocation2 + $0x162] sm:$0xff] %vm565_vm2, %v1046_v31  ;;  %v1030_v12 = vadd.f32 %v12890_v39, %v16393_v21  ;;  %v1024_v42 = vpop.f32.mrb[47].mxu0  ;;  %v16736_v43 = vld [vmem:[#allocation2 + $0x134] sm:$0xff]  ;;  %v16739_v45 = vld [vmem:[#allocation2 + $0x13c] sm:$0xff]  ;;  %v2865_v46 = vmax.f32 %v2857_v30, %v2861_v40  ;;  %v3108_v15 = vld [vmem:[#allocation2 + $0x144] sm:$0x1] }
 0x14d   : > { %13076 = vmatprep.mubr.msk.f32.mxu1 %vm1575_vm1, %v16519_v18  ;;  %14695 = vmatprep.subr.msk.bf16.mxu1 %vm16442_vm6, %v16653_v47  ;;  %1061 = vst.msk [vmem:[#allocation2 + $0x15a] sm:$0xff] %vm565_vm2, %v1045_v36  ;;  %v1025_v32 = vadd.f32 %v16393_v21, %v1024_v42  ;;  %v2863_v49 = vmax.f32 %v2855_v33, %v16736_v43 }
 0x14e   : > { %13088 = vmatmul.mubr.msk.f32.vlgmr.msra.gmra.mrb[88].mxu0 %vm1575_vm1, %v16468_v54  ;;  %v2864_v50 = vmax.f32 %v2856_v34, %v16739_v45  ;;  %v1048_v51 = vmax.f32 %v1030_v12, 0.0 }
 0x14f   : > { %14722 = vmatpush3.bf16.msra.mxu0 %v16687_v7  ;;  %13109 = vmatprep.mubr.msk.f32.mxu0 %vm1575_vm1, %v16519_v18  ;;  %v1047_v48 = vmax.f32 %v1025_v32, 0.0  ;;  %v12897_v52 = vpop.f32.mrb[48].mxu0  ;;  %v2867_v53 = vmax.f32 %v16648_v41, %v2863_v49  ;;  %v2869_v41 = vmax.f32 %v2853_v38, %v2865_v46 }
 0x150   : > { %14725 = vmatprep.subr.msk.bf16.mxu0 %vm16442_vm6, %v16705_v17  ;;  %14698 = vmatpush3.bf16.msk.msra.mxu1 %vm16442_vm6, %v16653_v47  ;;  %1064 = vst.msk [vmem:[#allocation2 + $0x172] sm:$0x1f] %vm581_vm3, %v1048_v51  ;;  %v1201_v55 = vadd.f32 %v12897_v52, %v16393_v21  ;;  %v1195_v57 = vpop.f32.mrb[49].mxu0  ;;  %v2868_v56 = vmax.f32 %v16679_v3, %v2864_v50  ;;  %v3109_v62 = vld [vmem:[#allocation2 + $0x145] sm:$0xff]  ;;  %v3110_v61 = vld [vmem:[#allocation2 + $0x14d] sm:$0xff] }
 0x151   : > { %14710 = vmatprep.subr.bf16.mxu1 %v16687_v7  ;;  %1063 = vst.msk [vmem:[#allocation2 + $0x16a] sm:$0xff] %vm565_vm2, %v1047_v48  ;;  %v16764_v58 = vpack.c.bf16 %v2867_v53, %v2866_v44  ;;  %v1196_v59 = vadd.f32 %v16393_v21, %v1195_v57 }
 0x152   : > { %v1275_v47 = vmax.f32 %v1201_v55, 0.0  ;;  %v16786_v6 = vpack.c.bf16 %v2869_v41, %v2868_v56 }
 0x153   : > { %14728 = vmatpush3.bf16.msk.msra.mxu0 %vm16442_vm6, %v16705_v17  ;;  %13077 = vmatmul.mubr.msk.f32.vlgmr.msra.gmra.mrb[14].mxu1 %vm1575_vm1, %v16545_v37  ;;  %v1274_v63 = vmax.f32 %v1196_v59, 0.0  ;;  %v12900_v0 = vpop.f32.mrb[50].mxu0 }
 0x154   : > { %14740 = vmatprep.subr.bf16.mxu0 %v16764_v58  ;;  %14712 = vmatpush3.bf16.msra.mxu1 %v16687_v7  ;;  %1291 = vst.msk [vmem:[#allocation2 + $0x17f] sm:$0xff] %vm565_vm2, %v1275_v47  ;;  %v1211_v1 = vadd.f32 %v12900_v0, %v16393_v21  ;;  %v1205_v2 = vpop.f32.mrb[51].mxu0  ;;  %v16779_v3 = vld [vmem:[#allocation2 + $0x15e] sm:$0xff]  ;;  %v3112_v60 = vld [vmem:[#allocation2 + $0x15d] sm:$0x1]  ;;  %v3111_v10 = vld [vmem:[#allocation2 + $0x155] sm:$0xff] }
 0x155   : > { %13098 = vmatprep.mubr.msk.f32.mxu1 %vm1575_vm1, %v16386_v20  ;;  %14715 = vmatprep.subr.msk.bf16.mxu1 %vm16442_vm6, %v16705_v17  ;;  %1290 = vst.msk [vmem:[#allocation2 + $0x177] sm:$0xff] %vm565_vm2, %v1274_v63  ;;  %v1206_v4 = vadd.f32 %v16393_v21, %v1205_v2  ;;  %v3117_v7 = vmax.f32 %v3109_v62, %v16779_v3 }
 0x156   : > { %13110 = vmatmul.mubr.msk.f32.vlgmr.msra.gmra.mrb[90].mxu0 %vm1575_vm1, %v16545_v37  ;;  %v1277_v8 = vmax.f32 %v1211_v1, 0.0 }
 0x157   : > { %14742 = vmatpush3.bf16.msra.mxu0 %v16764_v58  ;;  %13131 = vmatprep.mubr.msk.f32.mxu0 %vm1575_vm1, %v16386_v20  ;;  %v1276_v11 = vmax.f32 %v1206_v4, 0.0  ;;  %v12903_v13 = vpop.f32.mrb[52].mxu0  ;;  %v3116_v16 = vld [vmem:[#allocation2 + $0x176] sm:$0x1] }
 0x158   : > { %14745 = vmatprep.subr.msk.bf16.mxu0 %vm16442_vm6, %v16786_v6  ;;  %14718 = vmatpush3.bf16.msk.msra.mxu1 %vm16442_vm6, %v16705_v17  ;;  %1293 = vst.msk [vmem:[#allocation2 + $0x18f] sm:$0xff] %vm565_vm2, %v1277_v8  ;;  %v1221_v19 = vadd.f32 %v12903_v13, %v16393_v21  ;;  %v1215_v22 = vpop.f32.mrb[53].mxu0  ;;  %v16802_v20 = vld [vmem:[#allocation2 + $0x166] sm:$0xff]  ;;  %v16804_v23 = vld [vmem:[#allocation2 + $0x16e] sm:$0xff]  ;;  %v3120_v24 = vmax.f32 %v3112_v60, %v3116_v16 }
 0x159   : > { %14730 = vmatprep.subr.bf16.mxu1 %v16764_v58  ;;  %1292 = vst.msk [vmem:[#allocation2 + $0x187] sm:$0xff] %vm565_vm2, %v1276_v11  ;;  %v1216_v25 = vadd.f32 %v16393_v21, %v1215_v22  ;;  %v3118_v28 = vmax.f32 %v3110_v61, %v16802_v20  ;;  %v3121_v17 = vmax.f32 %v16719_v26, %v3117_v7  ;;  %v16907_v16 = vld [vmem:[%s18635_s7 + $0x10] sm:$0xff] }
 0x15a   : > { %v3119_v9 = vmax.f32 %v3111_v10, %v16804_v23  ;;  %v1279_v27 = vmax.f32 %v1221_v19, 0.0  ;;  %v3124_v29 = vmax.f32 %v3108_v15, %v3120_v24 }
 0x15b   : > { %14748 = vmatpush3.bf16.msk.msra.mxu0 %vm16442_vm6, %v16786_v6  ;;  %13099 = vmatmul.mubr.msk.f32.vlgmr.msra.gmra.mrb[16].mxu1 %vm1575_vm1, %v16507_v14  ;;  %v1278_v30 = vmax.f32 %v1216_v25, 0.0  ;;  %v12906_v31 = vpop.f32.mrb[54].mxu0  ;;  %v3122_v33 = vmax.f32 %v16736_v43, %v3118_v28  ;;  %v3365_v50 = vld [vmem:[#allocation2 + $0x17f] sm:$0xff] }
 0x15c   : > { %v3123_v34 = vmax.f32 %v16739_v45, %v3119_v9  ;;  %14732 = vmatpush3.bf16.msra.mxu1 %v16764_v58  ;;  %1295 = vst.msk [vmem:[#allocation2 + $0x19f] sm:$0xff] %vm565_vm2, %v1279_v27  ;;  %v1231_v26 = vadd.f32 %v12906_v31, %v16393_v21  ;;  %13120 = vmatprep.mubr.msk.f32.mxu1 %vm1575_vm1, %v16350_v5  ;;  %v1225_v36 = vpop.f32.mrb[55].mxu0  ;;  %v3364_v49 = vld [vmem:[#allocation2 + $0x177] sm:$0xff] }
 0x15d   : > { %14735 = vmatprep.subr.msk.bf16.mxu1 %vm16442_vm6, %v16786_v6  ;;  %1294 = vst.msk [vmem:[#allocation2 + $0x197] sm:$0xff] %vm565_vm2, %v1278_v30  ;;  %v1226_v39 = vadd.f32 %v16393_v21, %v1225_v36  ;;  %v16829_v40 = vpack.c.bf16 %v3122_v33, %v3121_v17 }
 0x15e   : > { %13132 = vmatmul.mubr.msk.f32.vlgmr.msra.gmra.mrb[92].mxu0 %vm1575_vm1, %v16507_v14  ;;  %v16833_v12 = vpack.c.bf16 %v3124_v29, %v3123_v34  ;;  %v1281_v42 = vmax.f32 %v1231_v26, 0.0 }
 0x15f   : > { %13153 = vmatprep.mubr.msk.f32.mxu0 %vm1575_vm1, %v16350_v5  ;;  %v1280_v43 = vmax.f32 %v1226_v39, 0.0  ;;  %14760 = vmatprep.subr.bf16.mxu0 %v16829_v40  ;;  %v12909_v44 = vpop.f32.mrb[56].mxu0  ;;  %v3367_v1 = vld [vmem:[#allocation2 + $0x18f] sm:$0x1] }
 0x160   : > { %14738 = vmatpush3.bf16.msk.msra.mxu1 %vm16442_vm6, %v16786_v6  ;;  %1297 = vst.msk [vmem:[#allocation2 + $0x1af] sm:$0xff] %vm565_vm2, %v1281_v42  ;;  %14762 = vmatpush3.bf16.msra.mxu0 %v16829_v40  ;;  %v1241_v45 = vadd.f32 %v12909_v44, %v16393_v21  ;;  %v1235_v46 = vpop.f32.mrb[57].mxu0  ;;  %v3366_v41 = vld [vmem:[#allocation2 + $0x187] sm:$0xff] }
 0x161   : > { %14750 = vmatprep.subr.bf16.mxu1 %v16764_v58  ;;  %1296 = vst.msk [vmem:[#allocation2 + $0x1a7] sm:$0xff] %vm565_vm2, %v1280_v43  ;;  %v1236_v5 = vadd.f32 %v16393_v21, %v1235_v46  ;;  %14765 = vmatprep.subr.msk.bf16.mxu0 %vm16442_vm6, %v16833_v12 }
 0x162   : > { %v1283_v32 = vmax.f32 %v1241_v45, 0.0 }
 0x163   : > { %13121 = vmatmul.mubr.msk.f32.vlgmr.msra.gmra.mrb[18].mxu1 %vm1575_vm1, %v16468_v54  ;;  %v1282_v51 = vmax.f32 %v1236_v5, 0.0  ;;  %v12912_v38 = vpop.f32.mrb[58].mxu0 }
 0x164   : > { %14752 = vmatpush3.bf16.msra.mxu1 %v16764_v58  ;;  %1299 = vst.msk [vmem:[#allocation2 + $0x1bf] sm:$0xff] %vm565_vm2, %v1283_v32  ;;  %v1251_v48 = vadd.f32 %v12912_v38, %v16393_v21  ;;  %13142 = vmatprep.mubr.msk.f32.mxu1 %vm1575_vm1, %v16519_v18  ;;  %v1245_v52 = vpop.f32.mrb[59].mxu0  ;;  %v16857_v53 = vld [vmem:[#allocation2 + $0x190] sm:$0xff]  ;;  %v16859_v55 = vld [vmem:[#allocation2 + $0x198] sm:$0xff]  ;;  %v16956_v32 = vld [vmem:[%s18635_s7] sm:$0xff] }
 0x165   : > { %14755 = vmatprep.subr.msk.bf16.mxu1 %vm16442_vm6, %v16786_v6  ;;  %1298 = vst.msk [vmem:[#allocation2 + $0x1b7] sm:$0xff] %vm565_vm2, %v1282_v51  ;;  %v1246_v57 = vadd.f32 %v16393_v21, %v1245_v52  ;;  %14768 = vmatpush3.bf16.msk.msra.mxu0 %vm16442_vm6, %v16833_v12  ;;  %v3372_v58 = vmax.f32 %v3364_v49, %v16857_v53 }
 0x166   : > { %v3373_v59 = vmax.f32 %v3365_v50, %v16859_v55  ;;  %v1285_v56 = vmax.f32 %v1251_v48, 0.0  ;;  %14780 = vmatprep.subr.bf16.mxu0 %v16829_v40 }
 0x167   : > { %v1284_v47 = vmax.f32 %v1246_v57, 0.0  ;;  %v12915_v62 = vpop.f32.mrb[60].mxu0  ;;  %v3376_v63 = vmax.f32 %v16779_v3, %v3372_v58  ;;  %v16888_v3 = vld [vmem:[%s18630_s2] ss:$0 sm:$0xff] }
 0x168   : > { %v3377_v0 = vmax.f32 %v16802_v20, %v3373_v59  ;;  %14758 = vmatpush3.bf16.msk.msra.mxu1 %vm16442_vm6, %v16786_v6  ;;  %1301 = vst.msk [vmem:[#allocation2 + $0x1cf] sm:$0xff] %vm565_vm2, %v1285_v56  ;;  %v1261_v2 = vadd.f32 %v12915_v62, %v16393_v21  ;;  %v1255_v4 = vpop.f32.mrb[61].mxu0  ;;  %13154 = vmatmul.mubr.msk.f32.vlgmr.msra.gmra.mrb[94].mxu0 %vm1575_vm1, %v16468_v54  ;;  %v16881_v7 = vld [vmem:[#allocation2 + $0x1a0] sm:$0xff]  ;;  %v3371_v60 = vld [vmem:[#allocation2 + $0x1a8] sm:$0x1]  ;;  %v3619_v17 = vld [vmem:[#allocation2 + $0x1a9] sm:$0xff] }
 0x169   : > { %14770 = vmatprep.subr.bf16.mxu1 %v16829_v40  ;;  %1300 = vst.msk [vmem:[#allocation2 + $0x1c7] sm:$0xff] %vm565_vm2, %v1284_v47  ;;  %v1256_v6 = vadd.f32 %v16888_v3, %v1255_v4  ;;  %14782 = vmatpush3.bf16.msra.mxu0 %v16829_v40  ;;  %v3363_v21 = vld [vmem:[#allocation2 + $0x176] sm:$0x1]  ;;  %v3374_v8 = vmax.f32 %v3366_v41, %v16881_v7  ;;  %v3618_v52 = vld [vmem:[#allocation2 + $0x1a8] sm:$0x1] }
 0x16a   : > { %v1287_v61 = vmax.f32 %v1261_v2, 0.0  ;;  %14785 = vmatprep.subr.msk.bf16.mxu0 %vm16442_vm6, %v16833_v12  ;;  %13175 = vmatprep.mubr.msk.f32.mxu0 %vm1575_vm1, %v16519_v18  ;;  %v3375_v10 = vmax.f32 %v3367_v1, %v3371_v60  ;;  %v16900_v13 = vpack.c.bf16 %v3377_v0, %v3376_v63 }
 0x16b   : > { %13143 = vmatmul.mubr.msk.f32.vlgmr.msra.gmra.mrb[20].mxu1 %vm1575_vm1, %v16545_v37  ;;  %v1286_v11 = vmax.f32 %v1256_v6, 0.0  ;;  %v12918_v15 = vpop.f32.mrb[62].mxu0  ;;  %v3378_v20 = vmax.f32 %v16804_v23, %v3374_v8  ;;  %v3622_v46 = vld [vmem:[#allocation2 + $0x1c1] sm:$0x1] }
 0x16c   : > { %14772 = vmatpush3.bf16.msra.mxu1 %v16829_v40  ;;  %1303 = vst.msk [vmem:[#allocation2 + $0x1df] sm:$0xff] %vm565_vm2, %v1287_v61  ;;  %13164 = vmatprep.mubr.msk.f32.mxu1 %vm1575_vm1, %v16907_v16  ;;  %v1271_v19 = vadd.f32 %v16888_v3, %v12918_v15  ;;  %v1265_v22 = vpop.f32.mrb[63].mxu0  ;;  %v3379_v24 = vmax.f32 %v3363_v21, %v3375_v10  ;;  %v3620_v9 = vld [vmem:[#allocation2 + $0x1b1] sm:$0xff] }
 0x16d   : > { %14775 = vmatprep.subr.msk.bf16.mxu1 %vm16442_vm6, %v16833_v12  ;;  %1302 = vst.msk [vmem:[#allocation2 + $0x1d7] sm:$0xff] %vm565_vm2, %v1286_v11  ;;  %14788 = vmatpush3.bf16.msk.msra.mxu0 %vm16442_vm6, %v16833_v12  ;;  %v1266_v25 = vadd.f32 %v16888_v3, %v1265_v22 }
 0x16e   : > { %v1289_v28 = vmax.f32 %v1271_v19, 0.0  ;;  %14800 = vmatprep.subr.bf16.mxu0 %v16900_v13  ;;  %v16927_v30 = vpack.c.bf16 %v3379_v24, %v3378_v20 }
 0x16f   : > { %v1288_v27 = vmax.f32 %v1266_v25, 0.0  ;;  %v12925_v23 = vpop.f32.mrb[64].mxu0 }
 0x170   : > { %14778 = vmatpush3.bf16.msk.msra.mxu1 %vm16442_vm6, %v16833_v12  ;;  %1305 = vst.msk [vmem:[#allocation2 + $0x1ef] sm:$0x1f] %vm581_vm3, %v1289_v28  ;;  %v1442_v29 = vadd.f32 %v16888_v3, %v12925_v23  ;;  %v1436_v31 = vpop.f32.mrb[65].mxu0  ;;  %13176 = vmatmul.mubr.msk.f32.vlgmr.msra.gmra.mrb[96].mxu0 %vm1575_vm1, %v16545_v37  ;;  %v16931_v33 = vld [vmem:[#allocation2 + $0x1c2] sm:$0xff]  ;;  %v16933_v34 = vld [vmem:[#allocation2 + $0x1ca] sm:$0xff]  ;;  %v3621_v12 = vld [vmem:[#allocation2 + $0x1b9] sm:$0xff] }
 0x171   : > { %14790 = vmatprep.subr.bf16.mxu1 %v16900_v13  ;;  %1304 = vst.msk [vmem:[#allocation2 + $0x1e7] sm:$0xff] %vm565_vm2, %v1288_v27  ;;  %v1437_v26 = vadd.f32 %v16888_v3, %v1436_v31  ;;  %14802 = vmatpush3.bf16.msra.mxu0 %v16900_v13  ;;  %v3627_v36 = vmax.f32 %v3619_v17, %v16931_v33  ;;  %v17030_v23 = vld [vmem:[%s18635_s7 + $0x8] sm:$0xf] }
 0x172   : > { %v3628_v39 = vmax.f32 %v3620_v9, %v16933_v34  ;;  %v1516_v40 = vmax.f32 %v1442_v29, 0.0  ;;  %14805 = vmatprep.subr.msk.bf16.mxu0 %vm16442_vm6, %v16927_v30  ;;  %13197 = vmatprep.mubr.msk.f32.mxu0 %vm1575_vm1, %v16907_v16 }
 0x173   : > { %13165 = vmatmul.mubr.msk.f32.vlgmr.msra.gmra.mrb[22].mxu1 %vm1575_vm1, %v16507_v14  ;;  %v1515_v42 = vmax.f32 %v1437_v26, 0.0  ;;  %v12928_v43 = vpop.f32.mrb[66].mxu0  ;;  %v3631_v44 = vmax.f32 %v16857_v53, %v3627_v36 }
 0x174   : > { %v3632_v45 = vmax.f32 %v16859_v55, %v3628_v39  ;;  %14792 = vmatpush3.bf16.msra.mxu1 %v16900_v13  ;;  %1532 = vst.msk [vmem:[#allocation2 + $0x1fc] sm:$0xff] %vm565_vm2, %v1516_v40  ;;  %v1452_v5 = vadd.f32 %v16888_v3, %v12928_v43  ;;  %13186 = vmatprep.mubr.msk.f32.mxu1 %vm1575_vm1, %v16956_v32  ;;  %v1446_v49 = vpop.f32.mrb[67].mxu0  ;;  %v16960_v50 = vld [vmem:[#allocation2 + $0x1d2] sm:$0xff]  ;;  %v3626_v51 = vld [vmem:[#allocation2 + $0x1da] sm:$0x1] }
 0x175   : > { %14795 = vmatprep.subr.msk.bf16.mxu1 %vm16442_vm6, %v16927_v30  ;;  %1531 = vst.msk [vmem:[#allocation2 + $0x1f4] sm:$0xff] %vm565_vm2, %v1515_v42  ;;  %v1447_v38 = vadd.f32 %v16888_v3, %v1446_v49  ;;  %14808 = vmatpush3.bf16.msk.msra.mxu0 %vm16442_vm6, %v16927_v30  ;;  %v3629_v53 = vmax.f32 %v3621_v12, %v16960_v50 }
 0x176   : > { %v16970_v48 = vpack.c.bf16 %v3632_v45, %v3631_v44  ;;  %v1518_v55 = vmax.f32 %v1452_v5, 0.0  ;;  %v3630_v57 = vmax.f32 %v3622_v46, %v3626_v51 }
 0x177   : > { %v1517_v58 = vmax.f32 %v1447_v38, 0.0  ;;  %v12931_v59 = vpop.f32.mrb[68].mxu0  ;;  %v3633_v56 = vmax.f32 %v16881_v7, %v3629_v53  ;;  %v3877_v15 = vld [vmem:[#allocation2 + $0x1f3] sm:$0x1] }
 0x178   : > { %14820 = vmatprep.subr.bf16.mxu0 %v16970_v48  ;;  %14798 = vmatpush3.bf16.msk.msra.mxu1 %vm16442_vm6, %v16927_v30  ;;  %1534 = vst.msk [vmem:[#allocation2 + $0x20c] sm:$0xff] %vm565_vm2, %v1518_v55  ;;  %v1462_v41 = vadd.f32 %v16888_v3, %v12931_v59  ;;  %v3634_v47 = vmax.f32 %v3618_v52, %v3630_v57  ;;  %v1456_v62 = vpop.f32.mrb[69].mxu0  ;;  %v3875_v0 = vld [vmem:[#allocation2 + $0x1e3] sm:$0xff] }
 0x179   : > { %13198 = vmatmul.mubr.msk.f32.vlgmr.msra.gmra.mrb[98].mxu0 %vm1575_vm1, %v16507_v14  ;;  %14810 = vmatprep.subr.bf16.mxu1 %v16900_v13  ;;  %1533 = vst.msk [vmem:[#allocation2 + $0x204] sm:$0xff] %vm565_vm2, %v1517_v58  ;;  %v1457_v63 = vadd.f32 %v16888_v3, %v1456_v62  ;;  %v3874_v14 = vld [vmem:[#allocation2 + $0x1db] sm:$0xff] }
 0x17a   : > { %14822 = vmatpush3.bf16.msra.mxu0 %v16970_v48  ;;  %v1520_v1 = vmax.f32 %v1462_v41, 0.0  ;;  %v16986_v2 = vpack.c.bf16 %v3634_v47, %v3633_v56  ;;  %13219 = vmatprep.mubr.msk.f32.mxu0 %vm1575_vm1, %v16956_v32  ;;  %v17079_v58 = vld [vmem:[%s18635_s7 + $0x18] sm:$0xf] }
 0x17b   : > { %13187 = vmatmul.mubr.msk.f32.vlgmr.msra.gmra.mrb[24].mxu1 %vm1575_vm1, %v16468_v54  ;;  %v1519_v4 = vmax.f32 %v1457_v63, 0.0  ;;  %v12934_v7 = vpop.f32.mrb[70].mxu0  ;;  %v16992_v60 = vld [vmem:[#allocation2 + $0x1fc] sm:$0xff] }
 0x17c   : > { %14812 = vmatpush3.bf16.msra.mxu1 %v16900_v13  ;;  %1536 = vst.msk [vmem:[#allocation2 + $0x21c] sm:$0xff] %vm565_vm2, %v1520_v1  ;;  %13208 = vmatprep.mubr.msk.f32.mxu1 %vm1575_vm1, %v16519_v18  ;;  %v1472_v6 = vadd.f32 %v16888_v3, %v12934_v7  ;;  %v1466_v21 = vpop.f32.mrb[71].mxu0  ;;  %v16999_v8 = vld [vmem:[#allocation2 + $0x1f4] sm:$0xff]  ;;  %v3883_v61 = vmax.f32 %v3875_v0, %v16992_v60  ;;  %v3876_v13 = vld [vmem:[#allocation2 + $0x1eb] sm:$0xff] }
 0x17d   : > { %14815 = vmatprep.subr.msk.bf16.mxu1 %vm16442_vm6, %v16927_v30  ;;  %14825 = vmatprep.subr.msk.bf16.mxu0 %vm16442_vm6, %v16986_v2  ;;  %1535 = vst.msk [vmem:[#allocation2 + $0x214] sm:$0xff] %vm565_vm2, %v1519_v4  ;;  %v1467_v54 = vadd.f32 %v16888_v3, %v1466_v21  ;;  %v3882_v10 = vmax.f32 %v3874_v14, %v16999_v8 }
 0x17e   : > { %14828 = vmatpush3.bf16.msk.msra.mxu0 %vm16442_vm6, %v16986_v2  ;;  %v1522_v11 = vmax.f32 %v1472_v6, 0.0  ;;  %v3887_v17 = vmax.f32 %v16933_v34, %v3883_v61 }
 0x17f   : > { %v1521_v19 = vmax.f32 %v1467_v54, 0.0  ;;  %v12937_v22 = vpop.f32.mrb[72].mxu0  ;;  %14840 = vmatprep.subr.bf16.mxu0 %v16970_v48  ;;  %v3881_v20 = vld [vmem:[#allocation2 + $0x20c] sm:$0x1]  ;;  %v3886_v28 = vmax.f32 %v16931_v33, %v3882_v10  ;;  %v3873_v33 = vld [vmem:[#allocation2 + $0x1da] sm:$0x1] }
 0x180   : > { %14818 = vmatpush3.bf16.msk.msra.mxu1 %vm16442_vm6, %v16927_v30  ;;  %1538 = vst.msk [vmem:[#allocation2 + $0x22c] sm:$0xff] %vm565_vm2, %v1522_v11  ;;  %v1482_v24 = vadd.f32 %v16888_v3, %v12937_v22  ;;  %v1476_v25 = vpop.f32.mrb[73].mxu0  ;;  %v17022_v9 = vld [vmem:[#allocation2 + $0x204] sm:$0xff]  ;;  %v3885_v30 = vmax.f32 %v3877_v15, %v3881_v20  ;;  %v4128_v56 = vld [vmem:[#allocation2 + $0x20c] sm:$0x1] }
 0x181   : > { %14830 = vmatprep.subr.bf16.mxu1 %v16970_v48  ;;  %1537 = vst.msk [vmem:[#allocation2 + $0x224] sm:$0xff] %vm565_vm2, %v1521_v19  ;;  %v1477_v27 = vadd.f32 %v16888_v3, %v1476_v25  ;;  %13220 = vmatmul.mubr.msk.f32.vlgmr.msra.gmra.mrb[100].mxu0 %vm1575_vm1, %v17030_v23  ;;  %v3884_v29 = vmax.f32 %v3876_v13, %v17022_v9  ;;  %v16021_v13 = vld [vmem:[%s18635_s7 + $0x20] sm:$0xff] }
 0x182   : > { %v1524_v31 = vmax.f32 %v1482_v24, 0.0  ;;  %14842 = vmatpush3.bf16.msra.mxu0 %v16970_v48  ;;  %13241 = vmatprep.mubr.msk.f32.mxu0 %vm1575_vm1, %v16519_v18  ;;  %v17052_v18 = vpack.c.bf16 %v3887_v17, %v3886_v28  ;;  %v3889_v12 = vmax.f32 %v3873_v33, %v3885_v30 }
 0x183   : > { %13209 = vmatmul.mubr.msk.f32.vlgmr.msra.gmra.mrb[26].mxu1 %vm1575_vm1, %v16545_v37  ;;  %v1523_v34 = vmax.f32 %v1477_v27, 0.0  ;;  %14845 = vmatprep.subr.msk.bf16.mxu0 %vm16442_vm6, %v16986_v2  ;;  %v12940_v26 = vpop.f32.mrb[74].mxu0  ;;  %v3888_v40 = vmax.f32 %v16960_v50, %v3884_v29 }
 0x184   : > { %14832 = vmatpush3.bf16.msra.mxu1 %v16970_v48  ;;  %1540 = vst.msk [vmem:[#allocation2 + $0x23c] sm:$0xff] %vm565_vm2, %v1524_v31  ;;  %13230 = vmatprep.mubr.msk.f32.mxu1 %vm1575_vm1, %v16907_v16  ;;  %v1492_v36 = vadd.f32 %v16888_v3, %v12940_v26  ;;  %v1486_v39 = vpop.f32.mrb[75].mxu0  ;;  %v4129_v44 = vld [vmem:[#allocation2 + $0x20d] sm:$0xff]  ;;  %v4130_v55 = vld [vmem:[#allocation2 + $0x215] sm:$0xff]  ;;  %v16022_v31 = vld [vmem:[%s18635_s7 + $0x28] sm:$0xf] }
 0x185   : > { %14835 = vmatprep.subr.msk.bf16.mxu1 %vm16442_vm6, %v16986_v2  ;;  %1539 = vst.msk [vmem:[#allocation2 + $0x234] sm:$0xff] %vm565_vm2, %v1523_v34  ;;  %v1487_v42 = vadd.f32 %v16888_v3, %v1486_v39  ;;  %v14853_v51 = vpack.c.bf16 %v3889_v12, %v3888_v40  ;;  %v11625_v40 = vld [vmem:[%s18631_s3 + $0x48] sm:$0xff] }
 0x186   : > { %14848 = vmatpush3.bf16.msk.msra.mxu0 %vm16442_vm6, %v16986_v2  ;;  %v1526_v43 = vmax.f32 %v1492_v36, 0.0 }
 0x187   : > { %v1525_v45 = vmax.f32 %v1487_v42, 0.0  ;;  %v12943_v46 = vpop.f32.mrb[76].mxu0  ;;  %14860 = vmatprep.subr.bf16.mxu0 %v17052_v18  ;;  %v11626_v42 = vld [vmem:[%s18631_s3 + $0x50] sm:$0xff] }
 0x188   : > { %14838 = vmatpush3.bf16.msk.msra.mxu1 %vm16442_vm6, %v16986_v2  ;;  %1542 = vst.msk [vmem:[#allocation2 + $0x24c] sm:$0xff] %vm565_vm2, %v1526_v43  ;;  %v1502_v5 = vadd.f32 %v16888_v3, %v12943_v46  ;;  %v1496_v49 = vpop.f32.mrb[77].mxu0  ;;  %v17065_v50 = vld [vmem:[#allocation2 + $0x226] sm:$0xff]  ;;  %v4132_v52 = vld [vmem:[#allocation2 + $0x225] sm:$0x1]  ;;  %v4131_v57 = vld [vmem:[#allocation2 + $0x21d] sm:$0xff] }
 0x189   : > { %14850 = vmatprep.subr.bf16.mxu1 %v17052_v18  ;;  %1541 = vst.msk [vmem:[#allocation2 + $0x244] sm:$0xff] %vm565_vm2, %v1525_v45  ;;  %v1497_v38 = vadd.f32 %v16888_v3, %v1496_v49  ;;  %13242 = vmatmul.mubr.msk.f32.vlgmr.msra.gmra.mrb[102].mxu0 %vm1575_vm1, %v16545_v37  ;;  %v4137_v48 = vmax.f32 %v4129_v44, %v17065_v50  ;;  %v11628_v43 = vld [vmem:[%s18631_s3 + $0x60] sm:$0xff]  ;;  %v11629_v44 = vld [vmem:[%s18631_s3 + $0x68] sm:$0xff] }
 0x18a   : > { %v1528_v53 = vmax.f32 %v1502_v5, 0.0  ;;  %14862 = vmatpush3.bf16.msra.mxu0 %v17052_v18  ;;  %13263 = vmatprep.mubr.msk.f32.mxu0 %vm1575_vm1, %v16907_v16  ;;  %v11636_v45 = vld [vmem:[%s18631_s3 + $0x80] sm:$0xff]  ;;  %v17194_v46 = vpack.c.bf16 %v11629_v44, %v11628_v43  ;;  %v11630_v5 = vld [vmem:[%s18631_s3 + $0x70] sm:$0xff] }
 0x18b   : > { %13231 = vmatmul.mubr.msk.f32.vlgmr.msra.gmra.mrb[28].mxu1 %vm1575_vm1, %v17079_v58  ;;  %v1527_v37 = vmax.f32 %v1497_v38, 0.0  ;;  %v12946_v59 = vpop.f32.mrb[78].mxu0  ;;  %14865 = vmatprep.subr.msk.bf16.mxu0 %vm16442_vm6, %v14853_v51  ;;  %v4136_v41 = vld [vmem:[#allocation2 + $0x23e] sm:$0x1]  ;;  %v4141_v4 = vmax.f32 %v16999_v8, %v4137_v48  ;;  %v4643_v48 = vld [vmem:[%s18631_s3] sm:$0xff] }
 0x18c   : > { %14852 = vmatpush3.bf16.msra.mxu1 %v17052_v18  ;;  %1544 = vst.msk [vmem:[#allocation2 + $0x25c] sm:$0xff] %vm565_vm2, %v1528_v53  ;;  %v1512_v47 = vadd.f32 %v16888_v3, %v12946_v59  ;;  %13252 = vmatprep.mubr.msk.f32.mxu1 %vm1575_vm1, %v16956_v32  ;;  %v1506_v62 = vpop.f32.mrb[79].mxu0  ;;  %v4134_v63 = vld [vmem:[#allocation2 + $0x22e] sm:$0xff]  ;;  %v4135_v0 = vld [vmem:[#allocation2 + $0x236] sm:$0xff]  ;;  %v4140_v1 = vmax.f32 %v4132_v52, %v4136_v41  ;;  %v4383_v30 = vld [vmem:[#allocation2 + $0x23e] sm:$0x1] }
 0x18d   : > { %14855 = vmatprep.subr.msk.bf16.mxu1 %vm16442_vm6, %v14853_v51  ;;  %1543 = vst.msk [vmem:[#allocation2 + $0x254] sm:$0xff] %vm565_vm2, %v1527_v37  ;;  %v1507_v2 = vadd.f32 %v16888_v3, %v1506_v62  ;;  %v4138_v14 = vmax.f32 %v4130_v55, %v4134_v63  ;;  %v4139_v7 = vmax.f32 %v4131_v57, %v4135_v0  ;;  %v11639_v38 = vld [vmem:[%s18631_s3 + $0x98] sm:$0xff]  ;;  %v4644_v53 = vld [vmem:[%s18631_s3 + $0x8] sm:$0xff]  ;;  %v11640_v55 = vld [vmem:[%s18631_s3 + $0xa0] sm:$0xff] }
 0x18e   : > { %v1530_v6 = vmax.f32 %v1512_v47, 0.0  ;;  %14868 = vmatpush3.bf16.msk.msra.mxu0 %vm16442_vm6, %v14853_v51  ;;  %v4144_v21 = vmax.f32 %v4128_v56, %v4140_v1  ;;  %v11641_v57 = vld [vmem:[%s18631_s3 + $0xa8] sm:$0xff]  ;;  %v11642_v59 = vld [vmem:[%s18631_s3 + $0xb0] sm:$0xff]  ;;  %v11643_v56 = vld [vmem:[%s18631_s3 + $0xb8] sm:$0xff] }
 0x18f   : > { %v1529_v61 = vmax.f32 %v1507_v2, 0.0  ;;  %v4142_v54 = vmax.f32 %v16992_v60, %v4138_v14  ;;  %v4143_v10 = vmax.f32 %v17022_v9, %v4139_v7  ;;  %v17238_v37 = vpack.c.bf16 %v11641_v57, %v11640_v55  ;;  %v11646_v47 = vld [vmem:[%s18631_s3 + $0xc0] sm:$0xff]  ;;  %v11647_v62 = vld [vmem:[%s18631_s3 + $0xc8] sm:$0xff] }
 0x190   : > { %14858 = vmatpush3.bf16.msk.msra.mxu1 %vm16442_vm6, %v14853_v51  ;;  %1546 = vst.msk [vmem:[#allocation2 + $0x26c] sm:$0x1f] %vm581_vm3, %v1530_v6  ;;  %v4384_v60 = vld [vmem:[#allocation2 + $0x23f] sm:$0xff]  ;;  %v4385_v19 = vld [vmem:[#allocation2 + $0x247] sm:$0xff]  ;;  %v17250_v41 = vpack.c.bf16 %v11643_v56, %v11642_v59  ;;  %v11648_v59 = vld [vmem:[%s18631_s3 + $0xd0] sm:$0xff] }
 0x191   : > { %14870 = vmatprep.subr.bf16.mxu1 %v17052_v18  ;;  %1545 = vst.msk [vmem:[#allocation2 + $0x264] sm:$0xff] %vm565_vm2, %v1529_v61  ;;  %v14879_v3 = vpack.c.bf16 %v4142_v54, %v4141_v4  ;;  %13264 = vmatmul.mubr.msk.f32.vlgmr.msra.gmra.mrb[104].mxu0 %vm1575_vm1, %v17079_v58  ;;  %v14883_v8 = vpack.c.bf16 %v4144_v21, %v4143_v10  ;;  %v11649_v56 = vld [vmem:[%s18631_s3 + $0xd8] sm:$0xff] }
 0x192   : > { %13285 = vmatprep.mubr.msk.f32.mxu0 %vm1575_vm1, %v16956_v32 }
 0x193   : > { %13253 = vmatmul.mubr.msk.f32.vlgmr.msra.gmra.mrb[30].mxu1 %vm1575_vm1, %v17030_v23  ;;  %14880 = vmatprep.subr.bf16.mxu0 %v14879_v3 }
 0x194   : > { %14872 = vmatpush3.bf16.msra.mxu1 %v17052_v18  ;;  %14882 = vmatpush3.bf16.msra.mxu0 %v14879_v3  ;;  %v4388_v11 = vld [vmem:[#allocation2 + $0x258] sm:$0xff]  ;;  %v4386_v22 = vld [vmem:[#allocation2 + $0x24f] sm:$0xff]  ;;  %v4387_v20 = vld [vmem:[#allocation2 + $0x257] sm:$0x1] }
 0x195   : > { %14875 = vmatprep.subr.msk.bf16.mxu1 %vm16442_vm6, %v14853_v51  ;;  %13274 = vmatprep.mubr.msk.f32.mxu1 %vm1575_vm1, %v16021_v13  ;;  %v4392_v15 = vmax.f32 %v4384_v60, %v4388_v11  ;;  %v11624_v18 = vld [vmem:[%s18631_s3 + $0x40] sm:$0xff] }
 0x196   : > { %14885 = vmatprep.subr.msk.bf16.mxu0 %vm16442_vm6, %v14883_v8  ;;  %v17158_v12 = vpack.c.bf16 %v11625_v40, %v11624_v18 }
 0x197   : > { %v4391_v24 = vld [vmem:[#allocation2 + $0x270] sm:$0x1]  ;;  %v4396_v28 = vmax.f32 %v17065_v50, %v4392_v15  ;;  %v11631_v50 = vld [vmem:[%s18631_s3 + $0x78] sm:$0xff] }
 0x198   : > { %14878 = vmatpush3.bf16.msk.msra.mxu1 %vm16442_vm6, %v14853_v51  ;;  %14888 = vmatpush3.bf16.msk.msra.mxu0 %vm16442_vm6, %v14883_v8  ;;  %v4389_v25 = vld [vmem:[#allocation2 + $0x260] sm:$0xff]  ;;  %v4390_v17 = vld [vmem:[#allocation2 + $0x268] sm:$0xff]  ;;  %v4395_v29 = vmax.f32 %v4387_v20, %v4391_v24  ;;  %v11638_v51 = vld [vmem:[%s18631_s3 + $0x90] sm:$0xff]  ;;  %v17216_v35 = vpack.c.bf16 %v11631_v50, %v11630_v5 }
 0x199   : > { %14890 = vmatprep.subr.bf16.mxu1 %v14879_v3  ;;  %14900 = vmatprep.subr.bf16.mxu0 %v14879_v3  ;;  %v4393_v9 = vmax.f32 %v4385_v19, %v4389_v25  ;;  %v4394_v27 = vmax.f32 %v4386_v22, %v4390_v17  ;;  %v17221_v52 = vpack.c.bf16 %v11639_v38, %v11638_v51  ;;  %v4645_v15 = vld [vmem:[%s18631_s3 + $0x10] sm:$0xff]  ;;  %v4646_v19 = vld [vmem:[%s18631_s3 + $0x18] sm:$0xff]  ;;  %v4647_v25 = vld [vmem:[%s18631_s3 + $0x20] sm:$0xff] }
 0x19a   : > { %v4399_v36 = vmax.f32 %v4383_v30, %v4395_v29  ;;  %v17272_v20 = vpack.c.bf16 %v4646_v19, %v4645_v15 }
 0x19b   : > { %13275 = vmatmul.mubr.msk.f32.vlgmr.msra.gmra.mrb[32].mxu1 %vm1575_vm1, %v16022_v31  ;;  %13286 = vmatmul.mubr.msk.f32.vlgmr.msra.gmra.mrb[106].mxu0 %vm1575_vm1, %v17030_v23  ;;  %v4397_v33 = vmax.f32 %v4134_v63, %v4393_v9  ;;  %v4398_v26 = vmax.f32 %v4135_v0, %v4394_v27  ;;  %v17260_v63 = vpack.c.bf16 %v11647_v62, %v11646_v47 }
 0x19c   : > { %14892 = vmatpush3.bf16.msra.mxu1 %v14879_v3  ;;  %14902 = vmatpush3.bf16.msra.mxu0 %v14879_v3 }
 0x19d   : > { %14895 = vmatprep.subr.msk.bf16.mxu1 %vm16442_vm6, %v14883_v8  ;;  %13296 = vmatprep.mubr.msk.f32.mxu1 %vm1575_vm1, %v16907_v16  ;;  %v14909_v34 = vpack.c.bf16 %v4397_v33, %v4396_v28  ;;  %v14913_v39 = vpack.c.bf16 %v4399_v36, %v4398_v26  ;;  %v4648_v28 = vld [vmem:[%s18631_s3 + $0x28] sm:$0xff]  ;;  %v4649_v26 = vld [vmem:[%s18631_s3 + $0x30] sm:$0xff]  ;;  %v4650_v36 = vld [vmem:[%s18631_s3 + $0x38] sm:$0xff] }
 0x19e   : > { %14905 = vmatprep.subr.msk.bf16.mxu0 %vm16442_vm6, %v14883_v8  ;;  %13307 = vmatprep.mubr.msk.f32.mxu0 %vm1575_vm1, %v16021_v13  ;;  %v17285_v30 = vpack.c.bf16 %v4648_v28, %v4647_v25  ;;  %v17296_v40 = vpack.c.bf16 %v4650_v36, %v4649_v26 }
 0x1a0   : > { %14898 = vmatpush3.bf16.msk.msra.mxu1 %vm16442_vm6, %v14883_v8  ;;  %14908 = vmatpush3.bf16.msk.msra.mxu0 %vm16442_vm6, %v14883_v8 }
 0x1a1   : > { %14910 = vmatprep.subr.bf16.mxu1 %v14909_v34  ;;  %14920 = vmatprep.subr.bf16.mxu0 %v14909_v34 }
 0x1a3   : > { %13297 = vmatmul.mubr.msk.f32.vlgmr.msra.gmra.mrb[34].mxu1 %vm1575_vm1, %v17079_v58  ;;  %13308 = vmatmul.mubr.msk.f32.vlgmr.msra.gmra.mrb[108].mxu0 %vm1575_vm1, %v16022_v31 }
 0x1a4   : > { %14912 = vmatpush3.bf16.msra.mxu1 %v14909_v34  ;;  %13318 = vmatprep.mubr.msk.f32.mxu1 %vm1575_vm1, %v16956_v32  ;;  %v11627_v32 = vld [vmem:[%s18631_s3 + $0x58] sm:$0xff] }
 0x1a5   : > { %14915 = vmatprep.subr.msk.bf16.mxu1 %vm16442_vm6, %v14913_v39  ;;  %14922 = vmatpush3.bf16.msra.mxu0 %v14909_v34 }
 0x1a6   : > { %14925 = vmatprep.subr.msk.bf16.mxu0 %vm16442_vm6, %v14913_v39  ;;  %13329 = vmatprep.mubr.msk.f32.mxu0 %vm1575_vm1, %v16907_v16  ;;  %v17173_v16 = vpack.c.bf16 %v11627_v32, %v11626_v42 }
 0x1a8   : > { %14918 = vmatpush3.bf16.msk.msra.mxu1 %vm16442_vm6, %v14913_v39 }
 0x1a9   : > { %14930 = vmatprep.subr.bf16.mxu1 %v14909_v34  ;;  %14928 = vmatpush3.bf16.msk.msra.mxu0 %vm16442_vm6, %v14913_v39 }
 0x1aa   : > { %14940 = vmatprep.subr.bf16.mxu0 %v17158_v12 }
 0x1ab   : > { %13319 = vmatmul.mubr.msk.f32.vlgmr.msra.gmra.mrb[36].mxu1 %vm1575_vm1, %v17030_v23  ;;  %v11637_v23 = vld [vmem:[%s18631_s3 + $0x88] sm:$0xff] }
 0x1ac   : > { %14932 = vmatpush3.bf16.msra.mxu1 %v14909_v34  ;;  %13340 = vmatprep.mubr.msk.f32.mxu1 %vm1575_vm1, %v16021_v13  ;;  %v17199_v49 = vpack.c.bf16 %v11637_v23, %v11636_v45 }
 0x1ad   : > { %14935 = vmatprep.subr.msk.bf16.mxu1 %vm16442_vm6, %v14913_v39  ;;  %13330 = vmatmul.mubr.msk.f32.vlgmr.msra.gmra.mrb[110].mxu0 %vm1575_vm1, %v17079_v58  ;;  %v17236_v58 = vpack.c.bf16 %v4644_v53, %v4643_v48 }
 0x1ae   : > { %14942 = vmatpush3.bf16.msra.mxu0 %v17158_v12 }
 0x1af   : > { %14944 = vmatprep.subr.bf16.mxu0 %v17173_v16 }
 0x1b0   : > { %14938 = vmatpush3.bf16.msk.msra.mxu1 %vm16442_vm6, %v14913_v39 }
 0x1b1   : > { %15036 = vmatprep.subr.bf16.mxu1 %v17199_v49 }
 0x1b2   : > { %14946 = vmatpush3.bf16.msra.mxu0 %v17173_v16 }
 0x1b3   : > { %13341 = vmatmul.mubr.msk.f32.vlgmr.msra.gmra.mrb[38].mxu1 %vm1575_vm1, %v16022_v31  ;;  %14948 = vmatprep.subr.bf16.mxu0 %v17194_v46 }
 0x1b4   : > { %15038 = vmatpush3.bf16.msra.mxu1 %v17199_v49 }
 0x1b5   : > { %15040 = vmatprep.subr.bf16.mxu1 %v17221_v52 }
 0x1b6   : > { %14950 = vmatpush3.bf16.msra.mxu0 %v17194_v46 }
 0x1b7   : > { %14952 = vmatprep.subr.bf16.mxu0 %v17216_v35 }
 0x1b8   : > { %15042 = vmatpush3.bf16.msra.mxu1 %v17221_v52 }
 0x1b9   : > { %15044 = vmatprep.subr.bf16.mxu1 %v17238_v37 }
 0x1ba   : > { %14954 = vmatpush3.bf16.msra.mxu0 %v17216_v35 }
 0x1bb   : > { %14956 = vmatprep.subr.bf16.mxu0 %v17236_v58 }
 0x1bc   : > { %15046 = vmatpush3.bf16.msra.mxu1 %v17238_v37 }
 0x1bd   : > { %15048 = vmatprep.subr.bf16.mxu1 %v17250_v41 }
 0x1c0   : > { %15050 = vmatpush3.bf16.msra.mxu1 %v17250_v41 }
 0x1c1   : > { %15052 = vmatprep.subr.bf16.mxu1 %v17260_v63 }
 0x1ee   : > { %v12957_v0 = vpop.f32.mrb[0].mxu1 }
 0x1ef   : > { %v1652_v1 = vpop.f32.mrb[1].mxu1 }
 0x1f6   : > { %v12968_v2 = vpop.f32.mrb[2].mxu1 }
 0x1f7   : > { %v1733_v14 = vpop.f32.mrb[3].mxu1 }
 0x1fa   : > { %v13001_v4 = vpop.f32.mrb[80].mxu0 }
 0x1fb   : > { %v1994_v7 = vpop.f32.mrb[81].mxu0 }
 0x1fe   : > { %v12979_v6 = vpop.f32.mrb[4].mxu1 }
 0x1ff   : > { %v1824_v21 = vmax.f32 %v12968_v2, %v12979_v6  ;;  %v1814_v61 = vpop.f32.mrb[5].mxu1  ;;  %v11650_v2 = vld [vmem:[%s18631_s3 + $0xe0] sm:$0xff] }
 0x200   : > { %v1823_v54 = vmax.f32 %v1733_v14, %v1814_v61  ;;  %v11651_v14 = vld [vmem:[%s18631_s3 + $0xe8] sm:$0xff] }
 0x201   : > { %v1826_v10 = vmax.f32 %v12957_v0, %v1824_v21  ;;  %v17326_v0 = vpack.c.bf16 %v11649_v56, %v11648_v59 }
 0x202   : > { %v1825_v3 = vmax.f32 %v1652_v1, %v1823_v54  ;;  %v17344_v54 = vpack.c.bf16 %v11651_v14, %v11650_v2 }
 0x203   : > { %1829 = vst.msk [vmem:[#allocation3 + $0x8] sm:$0xf] %vm1828_vm7, %v1826_v10 }
 0x204   : > { %1827 = vst.msk [vmem:[#allocation3] sm:$0xff] %vm565_vm2, %v1825_v3 }
 0x206   : > { %v12990_v8 = vpop.f32.mrb[6].mxu1  ;;  %v13023_v60 = vpop.f32.mrb[82].mxu0 }
 0x207   : > { %v1919_v11 = vpop.f32.mrb[7].mxu1  ;;  %v2174_v13 = vpop.f32.mrb[83].mxu0 }
 0x20a   : > { %v4652_v24 = vld [vmem:[#allocation3 + $0x9] sm:$0x7] }
 0x20b   : > { %v4651_v22 = vld [vmem:[#allocation3 + $0x1] sm:$0xff] }
 0x20c   : > { %13359 = vmatprep.mubr.msk.f32.mxu0 %vm565_vm2, %v4651_v22  ;;  %v4641_v17 = vld [vmem:[#allocation3] sm:$0xff]  ;;  %v4642_v38 = vld [vmem:[#allocation3 + $0x8] sm:$0x7] }
 0x20d   : > { %13360 = vmatmul.mubr.msk.f32.vlgmr.msra.gmra.mrb[112].mxu0 %vm565_vm2, %v4652_v24 }
 0x20e   : > { %14958 = vmatpush3.bf16.msra.mxu0 %v17236_v58  ;;  %13378 = vmatprep.mubr.msk.f32.mxu0 %vm565_vm2, %v4641_v17  ;;  %v13012_v9 = vpop.f32.mrb[8].mxu1  ;;  %v13045_v27 = vpop.f32.mrb[84].mxu0 }
 0x20f   : > { %14960 = vmatprep.subr.bf16.mxu0 %v17272_v20  ;;  %v2079_v29 = vmax.f32 %v13001_v4, %v13012_v9  ;;  %v2069_v31 = vpop.f32.mrb[9].mxu1  ;;  %v2324_v33 = vpop.f32.mrb[85].mxu0 }
 0x210   : > { %v2078_v34 = vmax.f32 %v1994_v7, %v2069_v31 }
 0x211   : > { %v2081_v39 = vmax.f32 %v12990_v8, %v2079_v29 }
 0x212   : > { %14962 = vmatpush3.bf16.msra.mxu0 %v17272_v20  ;;  %v2080_v18 = vmax.f32 %v1919_v11, %v2078_v34  ;;  %v11653_v11 = vld [vmem:[%s18631_s3 + $0xf8] sm:$0xff] }
 0x213   : > { %2084 = vst.msk [vmem:[#allocation3 + $0x18] sm:$0xf] %vm1828_vm7, %v2081_v39  ;;  %14964 = vmatprep.subr.bf16.mxu0 %v17285_v30 }
 0x214   : > { %2083 = vst.msk [vmem:[#allocation3 + $0x10] sm:$0xff] %vm565_vm2, %v2080_v18 }
 0x216   : > { %14966 = vmatpush3.bf16.msra.mxu0 %v17285_v30  ;;  %v13034_v42 = vpop.f32.mrb[10].mxu1 }
 0x217   : > { %14968 = vmatprep.subr.bf16.mxu0 %v17296_v40  ;;  %v2334_v32 = vmax.f32 %v13034_v42, %v13045_v27  ;;  %v2249_v43 = vpop.f32.mrb[11].mxu1 }
 0x218   : > { %v2333_v44 = vmax.f32 %v2249_v43, %v2324_v33 }
 0x219   : > { %v13067_v45 = vpop.f32.mrb[86].mxu0  ;;  %v2336_v23 = vmax.f32 %v13023_v60, %v2334_v32  ;;  %v11652_v60 = vld [vmem:[%s18631_s3 + $0xf0] sm:$0xff] }
 0x21a   : > { %v2504_v5 = vpop.f32.mrb[87].mxu0  ;;  %14970 = vmatpush3.bf16.msra.mxu0 %v17296_v40  ;;  %v2335_v50 = vmax.f32 %v2174_v13, %v2333_v44  ;;  %v17357_v13 = vld [vmem:[#allocation3 + $0x18] sm:$0x7]  ;;  %v17364_v19 = vpack.c.bf16 %v11653_v11, %v11652_v60 }
 0x21b   : > { %14972 = vmatprep.subr.bf16.mxu0 %v17199_v49  ;;  %v17303_v51 = vld [vmem:[#allocation3 + $0x10] sm:$0xff]  ;;  %2339 = vst.msk [vmem:[#allocation3 + $0x28] sm:$0xf] %vm1828_vm7, %v2336_v23  ;;  %v4919_v36 = vld [vmem:[#allocation3 + $0x19] sm:$0x7] }
 0x21c   : > { %2338 = vst.msk [vmem:[#allocation3 + $0x20] sm:$0xff] %vm565_vm2, %v2335_v50  ;;  %v4918_v15 = vld [vmem:[#allocation3 + $0x11] sm:$0xff] }
 0x21d   : > { %13379 = vmatmul.mubr.msk.f32.vlgmr.msra.gmra.mrb[112].mxu0 %vm565_vm2, %v4642_v38 }
 0x21e   : > { %14974 = vmatpush3.bf16.msra.mxu0 %v17199_v49  ;;  %13397 = vmatprep.mubr.msk.f32.mxu0 %vm565_vm2, %v17303_v51  ;;  %v13056_v48 = vpop.f32.mrb[12].mxu1 }
 0x21f   : > { %14976 = vmatprep.subr.bf16.mxu0 %v17221_v52  ;;  %v2429_v53 = vpop.f32.mrb[13].mxu1 }
 0x221   : > { %v13089_v55 = vpop.f32.mrb[88].mxu0 }
 0x222   : > { %v2684_v57 = vpop.f32.mrb[89].mxu0  ;;  %14978 = vmatpush3.bf16.msra.mxu0 %v17221_v52  ;;  %v17319_v47 = vld [vmem:[#allocation3 + $0x28] sm:$0x7] }
 0x223   : > { %14980 = vmatprep.subr.bf16.mxu0 %v17238_v37  ;;  %v17322_v62 = vld [vmem:[#allocation3 + $0x20] sm:$0xff]  ;;  %v17372_v31 = vld [vmem:[#allocation3 + $0x29] sm:$0x7] }
 0x224   : > { %13473 = vmatprep.mubr.msk.f32.mxu1 %vm565_vm2, %v17322_v62  ;;  %v17330_v1 = vld [vmem:[#allocation3 + $0x21] sm:$0xff] }
 0x225   : > { %13474 = vmatmul.mubr.msk.f32.vlgmr.msra.gmra.mrb[40].mxu1 %vm565_vm2, %v17319_v47 }
 0x226   : > { %14982 = vmatpush3.bf16.msra.mxu0 %v17238_v37  ;;  %15054 = vmatpush3.bf16.msra.mxu1 %v17260_v63  ;;  %v13078_v4 = vpop.f32.mrb[14].mxu1 }
 0x227   : > { %14984 = vmatprep.subr.bf16.mxu0 %v17250_v41  ;;  %15056 = vmatprep.subr.bf16.mxu1 %v17326_v0  ;;  %v2589_v7 = vmax.f32 %v13067_v45, %v13078_v4  ;;  %v2579_v6 = vpop.f32.mrb[15].mxu1 }
 0x228   : > { %13492 = vmatprep.mubr.msk.f32.mxu1 %vm565_vm2, %v17330_v1  ;;  %v2588_v21 = vmax.f32 %v2504_v5, %v2579_v6 }
 0x229   : > { %v13111_v61 = vpop.f32.mrb[90].mxu0  ;;  %v2591_v10 = vmax.f32 %v13056_v48, %v2589_v7 }
 0x22a   : > { %v2834_v3 = vpop.f32.mrb[91].mxu0  ;;  %14986 = vmatpush3.bf16.msra.mxu0 %v17250_v41  ;;  %15058 = vmatpush3.bf16.msra.mxu1 %v17326_v0  ;;  %v2590_v8 = vmax.f32 %v2429_v53, %v2588_v21 }
 0x22b   : > { %14988 = vmatprep.subr.bf16.mxu0 %v17260_v63  ;;  %15060 = vmatprep.subr.bf16.mxu1 %v17344_v54  ;;  %2594 = vst.msk [vmem:[#allocation3 + $0x38] sm:$0xf] %vm1828_vm7, %v2591_v10 }
 0x22c   : > { %2593 = vst.msk [vmem:[#allocation3 + $0x30] sm:$0xff] %vm565_vm2, %v2590_v8 }
 0x22d   : > { %13398 = vmatmul.mubr.msk.f32.vlgmr.msra.gmra.mrb[112].mxu0 %vm565_vm2, %v17357_v13 }
 0x22e   : > { %14990 = vmatpush3.bf16.msra.mxu0 %v17260_v63  ;;  %13416 = vmatprep.mubr.msk.f32.mxu0 %vm565_vm2, %v4918_v15  ;;  %v13100_v22 = vpop.f32.mrb[16].mxu1 }
 0x22f   : > { %14992 = vmatprep.subr.bf16.mxu0 %v17326_v0  ;;  %15062 = vmatpush3.bf16.msra.mxu1 %v17344_v54  ;;  %v2844_v24 = vmax.f32 %v13100_v22, %v13111_v61  ;;  %v2759_v25 = vpop.f32.mrb[17].mxu1 }
 0x230   : > { %15064 = vmatprep.subr.bf16.mxu1 %v17364_v19  ;;  %v2843_v28 = vmax.f32 %v2759_v25, %v2834_v3 }
 0x231   : > { %v13133_v17 = vpop.f32.mrb[92].mxu0  ;;  %v2846_v9 = vmax.f32 %v13089_v55, %v2844_v24 }
 0x232   : > { %v3014_v27 = vpop.f32.mrb[93].mxu0  ;;  %14994 = vmatpush3.bf16.msra.mxu0 %v17326_v0  ;;  %v2845_v29 = vmax.f32 %v2684_v57, %v2843_v28 }
 0x233   : > { %14996 = vmatprep.subr.bf16.mxu0 %v17344_v54  ;;  %15066 = vmatpush3.bf16.msra.mxu1 %v17364_v19  ;;  %2849 = vst.msk [vmem:[#allocation3 + $0x48] sm:$0xf] %vm1828_vm7, %v2846_v9 }
 0x234   : > { %2848 = vst.msk [vmem:[#allocation3 + $0x40] sm:$0xff] %vm565_vm2, %v2845_v29 }
 0x236   : > { %14998 = vmatpush3.bf16.msra.mxu0 %v17344_v54  ;;  %13493 = vmatmul.mubr.msk.f32.vlgmr.msra.gmra.mrb[40].mxu1 %vm565_vm2, %v17372_v31  ;;  %v13122_v33 = vpop.f32.mrb[18].mxu1 }
 0x237   : > { %15000 = vmatprep.subr.bf16.mxu0 %v17364_v19  ;;  %v2939_v34 = vpop.f32.mrb[19].mxu1 }
 0x23a   : > { %15002 = vmatpush3.bf16.msra.mxu0 %v17364_v19 }
 0x23b   : > { %15004 = vmatprep.subr.bf16.mxu0 %v17158_v12  ;;  %v13155_v26 = vpop.f32.mrb[94].mxu0 }
 0x23c   : > { %v3194_v39 = vpop.f32.mrb[95].mxu0 }
 0x23d   : > { %13417 = vmatmul.mubr.msk.f32.vlgmr.msra.gmra.mrb[112].mxu0 %vm565_vm2, %v4919_v36 }
 0x23e   : > { %15006 = vmatpush3.bf16.msra.mxu0 %v17158_v12  ;;  %13435 = vmatprep.mubr.msk.f32.mxu0 %vm565_vm2, %v4918_v15  ;;  %v13144_v18 = vpop.f32.mrb[20].mxu1 }
 0x23f   : > { %15008 = vmatprep.subr.bf16.mxu0 %v17173_v16  ;;  %v3099_v42 = vmax.f32 %v13133_v17, %v13144_v18  ;;  %v3089_v32 = vpop.f32.mrb[21].mxu1 }
 0x240   : > { %v3098_v43 = vmax.f32 %v3014_v27, %v3089_v32 }
 0x241   : > { %v3101_v44 = vmax.f32 %v13122_v33, %v3099_v42 }
 0x242   : > { %15010 = vmatpush3.bf16.msra.mxu0 %v17173_v16  ;;  %v3100_v45 = vmax.f32 %v2939_v34, %v3098_v43 }
 0x243   : > { %15012 = vmatprep.subr.bf16.mxu0 %v17194_v46  ;;  %3104 = vst.msk [vmem:[#allocation3 + $0x58] sm:$0xf] %vm1828_vm7, %v3101_v44  ;;  %v13177_v23 = vpop.f32.mrb[96].mxu0 }
 0x244   : > { %3103 = vst.msk [vmem:[#allocation3 + $0x50] sm:$0xff] %vm565_vm2, %v3100_v45  ;;  %v3344_v5 = vpop.f32.mrb[97].mxu0 }
 0x246   : > { %15014 = vmatpush3.bf16.msra.mxu0 %v17194_v46  ;;  %v13166_v50 = vpop.f32.mrb[22].mxu1 }
 0x247   : > { %15016 = vmatprep.subr.bf16.mxu0 %v17216_v35  ;;  %v3354_v38 = vmax.f32 %v13166_v50, %v13177_v23  ;;  %v3269_v48 = vpop.f32.mrb[23].mxu1 }
 0x248   : > { %v3353_v53 = vmax.f32 %v3269_v48, %v3344_v5  ;;  %v17437_v5 = vld [vmem:[#allocation3 + $0x30] sm:$0xff] }
 0x249   : > { %v3356_v55 = vmax.f32 %v13155_v26, %v3354_v38 }
 0x24a   : > { %15018 = vmatpush3.bf16.msra.mxu0 %v17216_v35  ;;  %v3355_v57 = vmax.f32 %v3194_v39, %v3353_v53 }
 0x24b   : > { %15020 = vmatprep.subr.bf16.mxu0 %v17236_v58  ;;  %3359 = vst.msk [vmem:[#allocation3 + $0x68] sm:$0xf] %vm1828_vm7, %v3356_v55 }
 0x24c   : > { %v13199_v59 = vpop.f32.mrb[98].mxu0  ;;  %3358 = vst.msk [vmem:[#allocation3 + $0x60] sm:$0xff] %vm565_vm2, %v3355_v57 }
 0x24d   : > { %v3524_v56 = vpop.f32.mrb[99].mxu0  ;;  %13436 = vmatmul.mubr.msk.f32.vlgmr.msra.gmra.mrb[114].mxu0 %vm565_vm2, %v4919_v36 }
 0x24e   : > { %15022 = vmatpush3.bf16.msra.mxu0 %v17236_v58  ;;  %13454 = vmatprep.mubr.msk.f32.mxu0 %vm565_vm2, %v17303_v51  ;;  %v13188_v2 = vpop.f32.mrb[24].mxu1 }
 0x24f   : > { %15024 = vmatprep.subr.bf16.mxu0 %v17272_v20  ;;  %v3449_v14 = vpop.f32.mrb[25].mxu1 }
 0x252   : > { %15026 = vmatpush3.bf16.msra.mxu0 %v17272_v20 }
 0x253   : > { %15028 = vmatprep.subr.bf16.mxu0 %v17285_v30 }
 0x254   : > { %v13221_v4 = vpop.f32.mrb[100].mxu0 }
 0x255   : > { %v3704_v7 = vpop.f32.mrb[101].mxu0 }
 0x256   : > { %15030 = vmatpush3.bf16.msra.mxu0 %v17285_v30  ;;  %v13210_v6 = vpop.f32.mrb[26].mxu1 }
 0x257   : > { %15032 = vmatprep.subr.bf16.mxu0 %v17296_v40  ;;  %v3609_v21 = vmax.f32 %v13199_v59, %v13210_v6  ;;  %v3599_v61 = vpop.f32.mrb[27].mxu1  ;;  %v18640_v6 = vmov 0.0|0.0  }
 0x258   : > { %v3608_v10 = vmax.f32 %v3524_v56, %v3599_v61  ;;  %15135 = vmatprep.subr.bf16.mxu1 %v18640_v6 }
 0x259   : > { %v3611_v3 = vmax.f32 %v13188_v2, %v3609_v21  ;;  %v18638_v21 = vmov 0.0  }
 0x25a   : > { %15034 = vmatpush3.bf16.msra.mxu0 %v17296_v40  ;;  %v3610_v51 = vmax.f32 %v3449_v14, %v3608_v10  ;;  %v17454_v14 = vld [vmem:[#allocation3 + $0x38] sm:$0x7]  ;;  %13582 = vmatprep.mubr.msk.f32.mxu1 %vm16090_vm8, %v18638_v21 }
 0x25b   : > { %15068 = vmatprep.subr.bf16.mxu0 %v17158_v12  ;;  %3614 = vst.msk [vmem:[#allocation3 + $0x78] sm:$0xf] %vm1828_vm7, %v3611_v3 }
 0x25c   : > { %3613 = vst.msk [vmem:[#allocation3 + $0x70] sm:$0xff] %vm565_vm2, %v3610_v51  ;;  %v13243_v8 = vpop.f32.mrb[102].mxu0 }
 0x25d   : > { %13455 = vmatmul.mubr.msk.f32.vlgmr.msra.gmra.mrb[114].mxu0 %vm565_vm2, %v17357_v13  ;;  %v3854_v60 = vpop.f32.mrb[103].mxu0 }
 0x25e   : > { %15070 = vmatpush3.bf16.msra.mxu0 %v17158_v12  ;;  %13511 = vmatprep.mubr.msk.f32.mxu0 %vm565_vm2, %v17330_v1  ;;  %v13232_v11 = vpop.f32.mrb[28].mxu1 }
 0x25f   : > { %15072 = vmatprep.subr.bf16.mxu0 %v17173_v16  ;;  %v3864_v15 = vmax.f32 %v13232_v11, %v13243_v8  ;;  %v3779_v22 = vpop.f32.mrb[29].mxu1 }
 0x260   : > { %v3863_v24 = vmax.f32 %v3779_v22, %v3854_v60  ;;  %v17483_v22 = vld [vmem:[%s18632_s4] ss:$0 sm:$0xff] }
 0x261   : > { %v3866_v25 = vmax.f32 %v13221_v4, %v3864_v15  ;;  %v17459_v4 = vld [vmem:[#allocation3 + $0x31] sm:$0xff] }
 0x262   : > { %15074 = vmatpush3.bf16.msra.mxu0 %v17173_v16  ;;  %v3865_v28 = vmax.f32 %v3704_v7, %v3863_v24  ;;  %v17470_v7 = vld [vmem:[#allocation3 + $0x39] sm:$0x7] }
 0x263   : > { %15076 = vmatprep.subr.bf16.mxu0 %v17194_v46  ;;  %3869 = vst.msk [vmem:[#allocation3 + $0x88] sm:$0xf] %vm1828_vm7, %v3866_v25 }
 0x264   : > { %3868 = vst.msk [vmem:[#allocation3 + $0x80] sm:$0xff] %vm565_vm2, %v3865_v28  ;;  %v13265_v13 = vpop.f32.mrb[104].mxu0 }
 0x265   : > { %v4034_v17 = vpop.f32.mrb[105].mxu0 }
 0x266   : > { %15078 = vmatpush3.bf16.msra.mxu0 %v17194_v46  ;;  %v13254_v1 = vpop.f32.mrb[30].mxu1 }
 0x267   : > { %15080 = vmatprep.subr.bf16.mxu0 %v17216_v35  ;;  %v3959_v9 = vpop.f32.mrb[31].mxu1 }
 0x26a   : > { %15082 = vmatpush3.bf16.msra.mxu0 %v17216_v35 }
 0x26b   : > { %15084 = vmatprep.subr.bf16.mxu0 %v17236_v58 }
 0x26d   : > { %13512 = vmatmul.mubr.msk.f32.vlgmr.msra.gmra.mrb[116].mxu0 %vm565_vm2, %v17372_v31 }
 0x26e   : > { %15086 = vmatpush3.bf16.msra.mxu0 %v17236_v58  ;;  %13530 = vmatprep.mubr.msk.f32.mxu0 %vm565_vm2, %v17322_v62  ;;  %v13276_v27 = vpop.f32.mrb[32].mxu1  ;;  %v13287_v29 = vpop.f32.mrb[106].mxu0 }
 0x26f   : > { %15088 = vmatprep.subr.bf16.mxu0 %v17272_v20  ;;  %v4119_v33 = vmax.f32 %v13265_v13, %v13276_v27  ;;  %v4109_v34 = vpop.f32.mrb[33].mxu1  ;;  %v4214_v26 = vpop.f32.mrb[107].mxu0 }
 0x270   : > { %v4118_v36 = vmax.f32 %v4034_v17, %v4109_v34 }
 0x271   : > { %v4121_v39 = vmax.f32 %v13254_v1, %v4119_v33 }
 0x272   : > { %15090 = vmatpush3.bf16.msra.mxu0 %v17272_v20  ;;  %v4120_v18 = vmax.f32 %v3959_v9, %v4118_v36 }
 0x273   : > { %15092 = vmatprep.subr.bf16.mxu0 %v17285_v30  ;;  %4124 = vst.msk [vmem:[#allocation3 + $0x98] sm:$0xf] %vm1828_vm7, %v4121_v39 }
 0x274   : > { %4123 = vst.msk [vmem:[#allocation3 + $0x90] sm:$0xff] %vm565_vm2, %v4120_v18 }
 0x276   : > { %15094 = vmatpush3.bf16.msra.mxu0 %v17285_v30  ;;  %v13298_v62 = vpop.f32.mrb[34].mxu1  ;;  %v13309_v31 = vpop.f32.mrb[108].mxu0 }
 0x277   : > { %15096 = vmatprep.subr.bf16.mxu0 %v17296_v40  ;;  %v4374_v42 = vmax.f32 %v13298_v62, %v13309_v31  ;;  %v4289_v32 = vpop.f32.mrb[35].mxu1  ;;  %v4364_v43 = vpop.f32.mrb[109].mxu0 }
 0x278   : > { %v4373_v44 = vmax.f32 %v4289_v32, %v4364_v43 }
 0x279   : > { %v4376_v45 = vmax.f32 %v13287_v29, %v4374_v42 }
 0x27a   : > { %15098 = vmatpush3.bf16.msra.mxu0 %v17296_v40  ;;  %v4375_v23 = vmax.f32 %v4214_v26, %v4373_v44  ;;  %v17513_v44 = vld [vmem:[%s18636_s8] sm:$0x1f] }
 0x27b   : > { %15100 = vmatprep.subr.bf16.mxu0 %v17199_v49  ;;  %4379 = vst.msk [vmem:[#allocation3 + $0xa8] sm:$0xf] %vm1828_vm7, %v4376_v45  ;;  %v17518_v45 = vld [vmem:[%s18636_s8 + $0x8] sm:$0x1f] }
 0x27c   : > { %4378 = vst.msk [vmem:[#allocation3 + $0xa0] sm:$0xff] %vm565_vm2, %v4375_v23  ;;  %v17529_v23 = vld [vmem:[#allocation3 + $0x41] sm:$0xff] }
 0x27d   : > { %13531 = vmatmul.mubr.msk.f32.vlgmr.msra.gmra.mrb[116].mxu0 %vm565_vm2, %v17319_v47 }
 0x27e   : > { %15102 = vmatpush3.bf16.msra.mxu0 %v17199_v49  ;;  %13549 = vmatprep.mubr.msk.f32.mxu0 %vm565_vm2, %v17437_v5  ;;  %v13320_v50 = vpop.f32.mrb[36].mxu1 }
 0x27f   : > { %15104 = vmatprep.subr.bf16.mxu0 %v17221_v52  ;;  %v4469_v38 = vpop.f32.mrb[37].mxu1 }
 0x280   : > { %v13331_v48 = vpop.f32.mrb[110].mxu0 }
 0x281   : > { %v4544_v53 = vpop.f32.mrb[111].mxu0 }
 0x282   : > { %15106 = vmatpush3.bf16.msra.mxu0 %v17221_v52 }
 0x283   : > { %15108 = vmatprep.subr.bf16.mxu0 %v17238_v37 }
 0x286   : > { %15110 = vmatpush3.bf16.msra.mxu0 %v17238_v37  ;;  %v13342_v55 = vpop.f32.mrb[38].mxu1 }
 0x287   : > { %15112 = vmatprep.subr.bf16.mxu0 %v17250_v41  ;;  %v4629_v47 = vmax.f32 %v13331_v48, %v13342_v55  ;;  %v4619_v57 = vpop.f32.mrb[39].mxu1  ;;  %v6050_v48 = vld [vmem:[#allocation3 + $0x40] sm:$0xff]  ;;  %v17607_v55 = vld [vmem:[#allocation3 + $0x58] sm:$0x7] }
 0x288   : > { %v4628_v59 = vmax.f32 %v4544_v53, %v4619_v57  ;;  %v17585_v53 = vld [vmem:[#allocation3 + $0x50] sm:$0xff]  ;;  %v17634_v57 = vld [vmem:[#allocation3 + $0x59] sm:$0x7] }
 0x289   : > { %v4631_v56 = vmax.f32 %v13320_v50, %v4629_v47  ;;  %v17534_v50 = vld [vmem:[%s18636_s8 + $0x10] sm:$0x1f] }
 0x28a   : > { %15114 = vmatpush3.bf16.msra.mxu0 %v17250_v41  ;;  %v4630_v2 = vmax.f32 %v4469_v38, %v4628_v59  ;;  %v17558_v38 = vld [vmem:[#allocation3 + $0x49] sm:$0x7]  ;;  %v17612_v47 = vld [vmem:[#allocation3 + $0x51] sm:$0xff]  ;;  %v17639_v59 = vld [vmem:[#allocation3 + $0x61] sm:$0xff] }
 0x28b   : > { %15116 = vmatprep.subr.bf16.mxu0 %v17260_v63  ;;  %4634 = vst.msk [vmem:[#allocation3 + $0xb8] sm:$0xf] %vm1828_vm7, %v4631_v56  ;;  %v17656_v56 = vld [vmem:[#allocation3 + $0x69] sm:$0x7] }
 0x28c   : > { %4633 = vst.msk [vmem:[#allocation3 + $0xb0] sm:$0xff] %vm565_vm2, %v4630_v2  ;;  %v17660_v2 = vld [vmem:[#allocation3 + $0x60] sm:$0xff] }
 0x28d   : > { %13550 = vmatmul.mubr.msk.f32.vlgmr.msra.gmra.mrb[116].mxu0 %vm565_vm2, %v17454_v14 }
 0x28e   : > { %15118 = vmatpush3.bf16.msra.mxu0 %v17260_v63  ;;  %13568 = vmatprep.mubr.msk.f32.mxu0 %vm565_vm2, %v17459_v4 }
 0x28f   : > { %15120 = vmatprep.subr.bf16.mxu0 %v17326_v0 }
 0x292   : > { %15122 = vmatpush3.bf16.msra.mxu0 %v17326_v0 }
 0x293   : > { %15124 = vmatprep.subr.bf16.mxu0 %v17344_v54 }
 0x296   : > { %15126 = vmatpush3.bf16.msra.mxu0 %v17344_v54 }
 0x297   : > { %15128 = vmatprep.subr.bf16.mxu0 %v17364_v19 }
 0x29a   : > { %15130 = vmatpush3.bf16.msra.mxu0 %v17364_v19 }
 0x29b   : > { %15131 = vmatprep.subr.bf16.mxu0 %v18640_v6 }
 0x29d   : > { %13569 = vmatmul.mubr.msk.f32.vlgmr.msra.gmra.mrb[116].mxu0 %vm565_vm2, %v17470_v7 }
 0x29e   : > { %13575 = vmatprep.mubr.msk.f32.mxu0 %vm16090_vm8, %v18638_v21 }
 0x309   : > { %v13494_v61 = vpop.f32.mrb[40].mxu1 }
 0x30a   : > { %v5331_v10 = vpop.f32.mrb[41].mxu1 }
 0x310   : > { %v13418_v3 = vpop.f32.mrb[112].mxu0 }
 0x311   : > { %v5001_v51 = vpop.f32.mrb[113].mxu0  ;;  %v5019_v13 = vadd.f32 %v13418_v3, %v17483_v22  ;;  %v17708_v3 = vld [vmem:[#allocation3 + $0x81] sm:$0xff] }
 0x312   : > { %v5018_v9 = vadd.f32 %v17483_v22, %v5001_v51  ;;  %v17720_v51 = vld [vmem:[#allocation3 + $0x89] sm:$0x7] }
 0x313   : > { %v5021_v36 = vmax.f32 %v5019_v13, 0.0  ;;  %v17784_v13 = vld [vmem:[#allocation3 + $0xa9] sm:$0x7] }
 0x314   : > { %v5020_v18 = vmax.f32 %v5018_v9, 0.0 }
 0x330   : > { %v13456_v8 = vpop.f32.mrb[114].mxu0 }
 0x331   : > { %v15853_v60 = vadd.f32 %v13494_v61, %v13456_v8  ;;  %v5163_v11 = vpop.f32.mrb[115].mxu0  ;;  %v17692_v61 = vld [vmem:[#allocation3 + $0x71] sm:$0xff]  ;;  %v17724_v8 = vld [vmem:[#allocation3 + $0x80] sm:$0xff] }
 0x332   : > { %v15854_v15 = vadd.f32 %v5331_v10, %v5163_v11  ;;  %v17704_v10 = vld [vmem:[#allocation3 + $0x79] sm:$0x7]  ;;  %v17740_v11 = vld [vmem:[#allocation3 + $0x90] sm:$0xff] }
 0x333   : > { %v5343_v24 = vadd.f32 %v15853_v60, %v17483_v22  ;;  %v17736_v60 = vld [vmem:[#allocation3 + $0x88] sm:$0x7] }
 0x334   : > { %v5342_v25 = vadd.f32 %v15854_v15, %v17483_v22  ;;  %v17752_v15 = vld [vmem:[#allocation3 + $0x98] sm:$0x7] }
 0x335   : > { %v5345_v29 = vmax.f32 %v5343_v24, 0.0  ;;  %v17756_v24 = vld [vmem:[#allocation3 + $0x91] sm:$0xff] }
 0x336   : > { %v5344_v34 = vmax.f32 %v5342_v25, 0.0  ;;  %v17768_v25 = vld [vmem:[#allocation3 + $0x99] sm:$0x7] }
 0x370   : > { %v13570_v28 = vpop.f32.mrb[116].mxu0 }
 0x371   : > { %v17489_v17 = vadd.f32 %v13570_v28, %v17483_v22  ;;  %v5655_v1 = vpop.f32.mrb[117].mxu0  ;;  %v17772_v28 = vld [vmem:[#allocation3 + $0xa1] sm:$0xff] }
 0x372   : > { %v17493_v27 = vadd.f32 %v17483_v22, %v5655_v1  ;;  %v17788_v1 = vld [vmem:[#allocation3 + $0xa0] sm:$0xff] }
 0x373   : > { %v5669_v33 = vmax.f32 %v17489_v17, 0.0 }
 0x374   : > { %v5668_v26 = vmax.f32 %v17493_v27, 0.0 }
 0x375   : > { %v5671_v39 = vmax.f32 %v5345_v29, %v5669_v33 }
 0x376   : > { %v5670_v62 = vmax.f32 %v5344_v34, %v5668_v26 }
 0x377   : > { %v5673_v31 = vmax.f32 %v5021_v36, %v5671_v39 }
 0x378   : > { %v5672_v42 = vmax.f32 %v5020_v18, %v5670_v62 }
 0x37a   : > { %v15132_v43 = vpack.c.bf16 %v5673_v31, %v5672_v42  ;;  %v17802_v42 = vld [vmem:[#allocation3 + $0xa8] sm:$0x7] }
 0x37c   : > { %15134 = vmatpush3.bf16.msk.msra.mxu0 %vm17502_vm10, %v15132_v43  ;;  %15138 = vmatpush3.bf16.msk.msra.mxu1 %vm17502_vm10, %v15132_v43 }
 0x37d   : > { %15139 = vmatprep.subr.bf16.mxu1 %v18640_v6  ;;  %15208 = vmatprep.subr.bf16.mxu0 %v17158_v12 }
 0x37f   : > { %13576 = vmatmul.mubr.msk.f32.vlgmr.msra.gmra.mrb[118].mxu0 %vm5674_vm11, %v17513_v44  ;;  %13583 = vmatmul.mubr.msk.f32.vlgmr.msra.gmra.mrb[42].mxu1 %vm5674_vm11, %v17518_v45 }
 0x380   : > { %15142 = vmatpush3.bf16.msk.msra.mxu1 %vm17502_vm10, %v15132_v43  ;;  %15210 = vmatpush3.bf16.msra.mxu0 %v17158_v12  ;;  %v8975_v43 = vld [vmem:[#allocation3 + $0xb0] sm:$0xff] }
 0x381   : > { %13684 = vmatprep.mubr.msk.f32.mxu0 %vm565_vm2, %v17529_v23  ;;  %13589 = vmatprep.mubr.msk.f32.mxu1 %vm16090_vm8, %v18638_v21 }
 0x382   : > { %15144 = vmatprep.subr.bf16.mxu1 %v17158_v12  ;;  %15212 = vmatprep.subr.bf16.mxu0 %v17173_v16 }
 0x383   : > { %13590 = vmatmul.mubr.msk.f32.vlgmr.msra.gmra.mrb[44].mxu1 %vm5674_vm11, %v17534_v50 }
 0x384   : > { %15146 = vmatpush3.bf16.msra.mxu1 %v17158_v12  ;;  %13608 = vmatprep.mubr.msk.f32.mxu1 %vm565_vm2, %v17459_v4  ;;  %v17676_v4 = vld [vmem:[#allocation3 + $0x70] sm:$0xff] }
 0x385   : > { %15214 = vmatpush3.bf16.msra.mxu0 %v17173_v16  ;;  %15148 = vmatprep.subr.bf16.mxu1 %v17173_v16 }
 0x386   : > { %15216 = vmatprep.subr.bf16.mxu0 %v17194_v46 }
 0x388   : > { %15150 = vmatpush3.bf16.msra.mxu1 %v17173_v16 }
 0x389   : > { %15218 = vmatpush3.bf16.msra.mxu0 %v17194_v46  ;;  %15152 = vmatprep.subr.bf16.mxu1 %v17194_v46 }
 0x38a   : > { %15220 = vmatprep.subr.bf16.mxu0 %v17216_v35 }
 0x38c   : > { %15154 = vmatpush3.bf16.msra.mxu1 %v17194_v46 }
 0x38d   : > { %15222 = vmatpush3.bf16.msra.mxu0 %v17216_v35  ;;  %15156 = vmatprep.subr.bf16.mxu1 %v17216_v35 }
 0x38e   : > { %15224 = vmatprep.subr.bf16.mxu0 %v17236_v58 }
 0x390   : > { %13685 = vmatmul.mubr.msk.f32.vlgmr.msra.gmra.mrb[120].mxu0 %vm565_vm2, %v17558_v38  ;;  %15158 = vmatpush3.bf16.msra.mxu1 %v17216_v35 }
 0x391   : > { %15226 = vmatpush3.bf16.msra.mxu0 %v17236_v58  ;;  %13703 = vmatprep.mubr.msk.f32.mxu0 %vm565_vm2, %v6050_v48 }
 0x392   : > { %15160 = vmatprep.subr.bf16.mxu1 %v17236_v58  ;;  %15228 = vmatprep.subr.bf16.mxu0 %v17272_v20 }
 0x393   : > { %13609 = vmatmul.mubr.msk.f32.vlgmr.msra.gmra.mrb[46].mxu1 %vm565_vm2, %v17470_v7  ;;  %v17688_v7 = vld [vmem:[#allocation3 + $0x78] sm:$0x7] }
 0x394   : > { %15162 = vmatpush3.bf16.msra.mxu1 %v17236_v58  ;;  %13627 = vmatprep.mubr.msk.f32.mxu1 %vm565_vm2, %v17437_v5  ;;  %v6051_v5 = vld [vmem:[#allocation3 + $0x48] sm:$0x7] }
 0x395   : > { %15230 = vmatpush3.bf16.msra.mxu0 %v17272_v20  ;;  %15164 = vmatprep.subr.bf16.mxu1 %v17272_v20 }
 0x396   : > { %15232 = vmatprep.subr.bf16.mxu0 %v17285_v30 }
 0x398   : > { %15166 = vmatpush3.bf16.msra.mxu1 %v17272_v20 }
 0x399   : > { %15234 = vmatpush3.bf16.msra.mxu0 %v17285_v30  ;;  %15168 = vmatprep.subr.bf16.mxu1 %v17285_v30 }
 0x39a   : > { %15236 = vmatprep.subr.bf16.mxu0 %v17296_v40 }
 0x39c   : > { %15170 = vmatpush3.bf16.msra.mxu1 %v17285_v30 }
 0x39d   : > { %15238 = vmatpush3.bf16.msra.mxu0 %v17296_v40  ;;  %15172 = vmatprep.subr.bf16.mxu1 %v17296_v40 }
 0x39e   : > { %15240 = vmatprep.subr.bf16.mxu0 %v17199_v49 }
 0x3a0   : > { %13704 = vmatmul.mubr.msk.f32.vlgmr.msra.gmra.mrb[120].mxu0 %vm565_vm2, %v6051_v5  ;;  %15174 = vmatpush3.bf16.msra.mxu1 %v17296_v40 }
 0x3a1   : > { %15242 = vmatpush3.bf16.msra.mxu0 %v17199_v49  ;;  %13722 = vmatprep.mubr.msk.f32.mxu0 %vm565_vm2, %v17585_v53 }
 0x3a2   : > { %15176 = vmatprep.subr.bf16.mxu1 %v17199_v49  ;;  %15244 = vmatprep.subr.bf16.mxu0 %v17221_v52 }
 0x3a3   : > { %13628 = vmatmul.mubr.msk.f32.vlgmr.msra.gmra.mrb[46].mxu1 %vm565_vm2, %v17454_v14  ;;  %v17672_v14 = vld [vmem:[#allocation3 + $0x68] sm:$0x7] }
 0x3a4   : > { %15178 = vmatpush3.bf16.msra.mxu1 %v17199_v49  ;;  %13646 = vmatprep.mubr.msk.f32.mxu1 %vm565_vm2, %v6050_v48  ;;  %v9061_v48 = vld [vmem:[#allocation3 + $0xb9] sm:$0x7] }
 0x3a5   : > { %15246 = vmatpush3.bf16.msra.mxu0 %v17221_v52  ;;  %15180 = vmatprep.subr.bf16.mxu1 %v17221_v52 }
 0x3a6   : > { %15248 = vmatprep.subr.bf16.mxu0 %v17238_v37 }
 0x3a8   : > { %15182 = vmatpush3.bf16.msra.mxu1 %v17221_v52 }
 0x3a9   : > { %15250 = vmatpush3.bf16.msra.mxu0 %v17238_v37  ;;  %15184 = vmatprep.subr.bf16.mxu1 %v17238_v37 }
 0x3aa   : > { %15252 = vmatprep.subr.bf16.mxu0 %v17250_v41 }
 0x3ac   : > { %15186 = vmatpush3.bf16.msra.mxu1 %v17238_v37 }
 0x3ad   : > { %15254 = vmatpush3.bf16.msra.mxu0 %v17250_v41  ;;  %15188 = vmatprep.subr.bf16.mxu1 %v17250_v41 }
 0x3ae   : > { %15256 = vmatprep.subr.bf16.mxu0 %v17260_v63 }
 0x3b0   : > { %13723 = vmatmul.mubr.msk.f32.vlgmr.msra.gmra.mrb[120].mxu0 %vm565_vm2, %v17607_v55  ;;  %15190 = vmatpush3.bf16.msra.mxu1 %v17250_v41 }
 0x3b1   : > { %15258 = vmatpush3.bf16.msra.mxu0 %v17260_v63  ;;  %13741 = vmatprep.mubr.msk.f32.mxu0 %vm565_vm2, %v17612_v47 }
 0x3b2   : > { %15192 = vmatprep.subr.bf16.mxu1 %v17260_v63  ;;  %15260 = vmatprep.subr.bf16.mxu0 %v17326_v0 }
 0x3b3   : > { %13647 = vmatmul.mubr.msk.f32.vlgmr.msra.gmra.mrb[46].mxu1 %vm565_vm2, %v6051_v5 }
 0x3b4   : > { %15194 = vmatpush3.bf16.msra.mxu1 %v17260_v63  ;;  %13665 = vmatprep.mubr.msk.f32.mxu1 %vm565_vm2, %v17529_v23  ;;  %v8976_v23 = vld [vmem:[#allocation3 + $0xb8] sm:$0x7] }
 0x3b5   : > { %15262 = vmatpush3.bf16.msra.mxu0 %v17326_v0  ;;  %15196 = vmatprep.subr.bf16.mxu1 %v17326_v0 }
 0x3b6   : > { %15264 = vmatprep.subr.bf16.mxu0 %v17344_v54 }
 0x3b8   : > { %15198 = vmatpush3.bf16.msra.mxu1 %v17326_v0 }
 0x3b9   : > { %15266 = vmatpush3.bf16.msra.mxu0 %v17344_v54  ;;  %15200 = vmatprep.subr.bf16.mxu1 %v17344_v54 }
 0x3ba   : > { %15268 = vmatprep.subr.bf16.mxu0 %v17364_v19 }
 0x3bc   : > { %15202 = vmatpush3.bf16.msra.mxu1 %v17344_v54 }
 0x3bd   : > { %15270 = vmatpush3.bf16.msra.mxu0 %v17364_v19  ;;  %15204 = vmatprep.subr.bf16.mxu1 %v17364_v19 }
 0x3be   : > { %15348 = vmatprep.subr.bf16.mxu0 %v17158_v12 }
 0x3c0   : > { %13742 = vmatmul.mubr.msk.f32.vlgmr.msra.gmra.mrb[120].mxu0 %vm565_vm2, %v17634_v57  ;;  %15206 = vmatpush3.bf16.msra.mxu1 %v17364_v19 }
 0x3c1   : > { %15350 = vmatpush3.bf16.msra.mxu0 %v17158_v12  ;;  %13857 = vmatprep.mubr.msk.f32.mxu0 %vm565_vm2, %v17639_v59 }
 0x3c2   : > { %15352 = vmatprep.subr.bf16.mxu0 %v17173_v16  ;;  %15271 = vmatprep.subr.bf16.mxu1 %v18640_v6 }
 0x3c3   : > { %13666 = vmatmul.mubr.msk.f32.vlgmr.msra.gmra.mrb[46].mxu1 %vm565_vm2, %v17558_v38  ;;  %v9060_v38 = vld [vmem:[#allocation3 + $0xb1] sm:$0xff] }
 0x3c4   : > { %13748 = vmatprep.mubr.msk.f32.mxu1 %vm16090_vm8, %v18638_v21 }
 0x3c5   : > { %15354 = vmatpush3.bf16.msra.mxu0 %v17173_v16 }
 0x3c6   : > { %15356 = vmatprep.subr.bf16.mxu0 %v17194_v46 }
 0x3c9   : > { %15358 = vmatpush3.bf16.msra.mxu0 %v17194_v46 }
 0x3ca   : > { %15360 = vmatprep.subr.bf16.mxu0 %v17216_v35 }
 0x3cd   : > { %15362 = vmatpush3.bf16.msra.mxu0 %v17216_v35 }
 0x3ce   : > { %15364 = vmatprep.subr.bf16.mxu0 %v17236_v58 }
 0x3d0   : > { %13858 = vmatmul.mubr.msk.f32.vlgmr.msra.gmra.mrb[122].mxu0 %vm565_vm2, %v17656_v56 }
 0x3d1   : > { %15366 = vmatpush3.bf16.msra.mxu0 %v17236_v58  ;;  %13876 = vmatprep.mubr.msk.f32.mxu0 %vm565_vm2, %v17660_v2 }
 0x3d2   : > { %15368 = vmatprep.subr.bf16.mxu0 %v17272_v20 }
 0x3d5   : > { %15370 = vmatpush3.bf16.msra.mxu0 %v17272_v20 }
 0x3d6   : > { %15372 = vmatprep.subr.bf16.mxu0 %v17285_v30 }
 0x3d9   : > { %15374 = vmatpush3.bf16.msra.mxu0 %v17285_v30 }
 0x3da   : > { %15376 = vmatprep.subr.bf16.mxu0 %v17296_v40 }
 0x3dd   : > { %15378 = vmatpush3.bf16.msra.mxu0 %v17296_v40 }
 0x3de   : > { %15380 = vmatprep.subr.bf16.mxu0 %v17199_v49 }
 0x3e0   : > { %13877 = vmatmul.mubr.msk.f32.vlgmr.msra.gmra.mrb[122].mxu0 %vm565_vm2, %v17672_v14 }
 0x3e1   : > { %15382 = vmatpush3.bf16.msra.mxu0 %v17199_v49  ;;  %13895 = vmatprep.mubr.msk.f32.mxu0 %vm565_vm2, %v17676_v4 }
 0x3e2   : > { %15384 = vmatprep.subr.bf16.mxu0 %v17221_v52 }
 0x3e5   : > { %15386 = vmatpush3.bf16.msra.mxu0 %v17221_v52 }
 0x3e6   : > { %15388 = vmatprep.subr.bf16.mxu0 %v17238_v37 }
 0x3e9   : > { %15390 = vmatpush3.bf16.msra.mxu0 %v17238_v37 }
 0x3ea   : > { %15392 = vmatprep.subr.bf16.mxu0 %v17250_v41 }
 0x3ed   : > { %15394 = vmatpush3.bf16.msra.mxu0 %v17250_v41 }
 0x3ee   : > { %15396 = vmatprep.subr.bf16.mxu0 %v17260_v63 }
 0x3f0   : > { %13896 = vmatmul.mubr.msk.f32.vlgmr.msra.gmra.mrb[122].mxu0 %vm565_vm2, %v17688_v7 }
 0x3f1   : > { %15398 = vmatpush3.bf16.msra.mxu0 %v17260_v63  ;;  %13914 = vmatprep.mubr.msk.f32.mxu0 %vm565_vm2, %v17692_v61 }
 0x3f2   : > { %15400 = vmatprep.subr.bf16.mxu0 %v17326_v0 }
 0x3f5   : > { %15402 = vmatpush3.bf16.msra.mxu0 %v17326_v0 }
 0x3f6   : > { %15404 = vmatprep.subr.bf16.mxu0 %v17344_v54 }
 0x3f9   : > { %15406 = vmatpush3.bf16.msra.mxu0 %v17344_v54 }
 0x3fa   : > { %15408 = vmatprep.subr.bf16.mxu0 %v17364_v19 }
 0x3fd   : > { %15410 = vmatpush3.bf16.msra.mxu0 %v17364_v19 }
 0x3fe   : > { %15488 = vmatprep.subr.bf16.mxu0 %v17158_v12 }
 0x400   : > { %13915 = vmatmul.mubr.msk.f32.vlgmr.msra.gmra.mrb[122].mxu0 %vm565_vm2, %v17704_v10 }
 0x401   : > { %15490 = vmatpush3.bf16.msra.mxu0 %v17158_v12  ;;  %14030 = vmatprep.mubr.msk.f32.mxu0 %vm565_vm2, %v17708_v3 }
 0x402   : > { %15492 = vmatprep.subr.bf16.mxu0 %v17173_v16 }
 0x405   : > { %15494 = vmatpush3.bf16.msra.mxu0 %v17173_v16 }
 0x406   : > { %15496 = vmatprep.subr.bf16.mxu0 %v17194_v46 }
 0x409   : > { %15498 = vmatpush3.bf16.msra.mxu0 %v17194_v46 }
 0x40a   : > { %15500 = vmatprep.subr.bf16.mxu0 %v17216_v35 }
 0x40d   : > { %15502 = vmatpush3.bf16.msra.mxu0 %v17216_v35 }
 0x40e   : > { %15504 = vmatprep.subr.bf16.mxu0 %v17236_v58 }
 0x410   : > { %14031 = vmatmul.mubr.msk.f32.vlgmr.msra.gmra.mrb[124].mxu0 %vm565_vm2, %v17720_v51 }
 0x411   : > { %15506 = vmatpush3.bf16.msra.mxu0 %v17236_v58  ;;  %14049 = vmatprep.mubr.msk.f32.mxu0 %vm565_vm2, %v17724_v8 }
 0x412   : > { %15508 = vmatprep.subr.bf16.mxu0 %v17272_v20 }
 0x415   : > { %15510 = vmatpush3.bf16.msra.mxu0 %v17272_v20 }
 0x416   : > { %15512 = vmatprep.subr.bf16.mxu0 %v17285_v30 }
 0x419   : > { %15514 = vmatpush3.bf16.msra.mxu0 %v17285_v30 }
 0x41a   : > { %15516 = vmatprep.subr.bf16.mxu0 %v17296_v40 }
 0x41d   : > { %15518 = vmatpush3.bf16.msra.mxu0 %v17296_v40 }
 0x41e   : > { %15520 = vmatprep.subr.bf16.mxu0 %v17199_v49 }
 0x420   : > { %14050 = vmatmul.mubr.msk.f32.vlgmr.msra.gmra.mrb[124].mxu0 %vm565_vm2, %v17736_v60 }
 0x421   : > { %15522 = vmatpush3.bf16.msra.mxu0 %v17199_v49  ;;  %14068 = vmatprep.mubr.msk.f32.mxu0 %vm565_vm2, %v17740_v11 }
 0x422   : > { %15524 = vmatprep.subr.bf16.mxu0 %v17221_v52 }
 0x425   : > { %15526 = vmatpush3.bf16.msra.mxu0 %v17221_v52 }
 0x426   : > { %15528 = vmatprep.subr.bf16.mxu0 %v17238_v37 }
 0x429   : > { %15530 = vmatpush3.bf16.msra.mxu0 %v17238_v37 }
 0x42a   : > { %15532 = vmatprep.subr.bf16.mxu0 %v17250_v41 }
 0x42d   : > { %15534 = vmatpush3.bf16.msra.mxu0 %v17250_v41 }
 0x42e   : > { %15536 = vmatprep.subr.bf16.mxu0 %v17260_v63 }
 0x430   : > { %14069 = vmatmul.mubr.msk.f32.vlgmr.msra.gmra.mrb[124].mxu0 %vm565_vm2, %v17752_v15 }
 0x431   : > { %15538 = vmatpush3.bf16.msra.mxu0 %v17260_v63  ;;  %14087 = vmatprep.mubr.msk.f32.mxu0 %vm565_vm2, %v17756_v24 }
 0x432   : > { %15540 = vmatprep.subr.bf16.mxu0 %v17326_v0 }
 0x435   : > { %15542 = vmatpush3.bf16.msra.mxu0 %v17326_v0 }
 0x436   : > { %15544 = vmatprep.subr.bf16.mxu0 %v17344_v54 }
 0x439   : > { %15546 = vmatpush3.bf16.msra.mxu0 %v17344_v54 }
 0x43a   : > { %15548 = vmatprep.subr.bf16.mxu0 %v17364_v19 }
 0x43d   : > { %15550 = vmatpush3.bf16.msra.mxu0 %v17364_v19 }
 0x43e   : > { %15628 = vmatprep.subr.bf16.mxu0 %v17158_v12 }
 0x440   : > { %14088 = vmatmul.mubr.msk.f32.vlgmr.msra.gmra.mrb[124].mxu0 %vm565_vm2, %v17768_v25 }
 0x441   : > { %15630 = vmatpush3.bf16.msra.mxu0 %v17158_v12  ;;  %14203 = vmatprep.mubr.msk.f32.mxu0 %vm565_vm2, %v17772_v28 }
 0x442   : > { %15632 = vmatprep.subr.bf16.mxu0 %v17173_v16 }
 0x445   : > { %15634 = vmatpush3.bf16.msra.mxu0 %v17173_v16 }
 0x446   : > { %15636 = vmatprep.subr.bf16.mxu0 %v17194_v46 }
 0x449   : > { %15638 = vmatpush3.bf16.msra.mxu0 %v17194_v46 }
 0x44a   : > { %15640 = vmatprep.subr.bf16.mxu0 %v17216_v35 }
 0x44d   : > { %15642 = vmatpush3.bf16.msra.mxu0 %v17216_v35 }
 0x44e   : > { %15644 = vmatprep.subr.bf16.mxu0 %v17236_v58 }
 0x450   : > { %14204 = vmatmul.mubr.msk.f32.vlgmr.msra.gmra.mrb[126].mxu0 %vm565_vm2, %v17784_v13 }
 0x451   : > { %15646 = vmatpush3.bf16.msra.mxu0 %v17236_v58  ;;  %14222 = vmatprep.mubr.msk.f32.mxu0 %vm565_vm2, %v17788_v1 }
 0x452   : > { %v5821_v9 = vpop.f32.mrb[42].mxu1  ;;  %15648 = vmatprep.subr.bf16.mxu0 %v17272_v20  ;;  %v5748_v29 = vpop.f32.mrb[118].mxu0 }
 0x453   : > { %v13584_v34 = vpop.f32.mrb[43].mxu1  ;;  %v13577_v36 = vpop.f32.mrb[119].mxu0 }
 0x455   : > { %15650 = vmatpush3.bf16.msra.mxu0 %v17272_v20 }
 0x456   : > { %v5894_v39 = vpop.f32.mrb[44].mxu1  ;;  %15652 = vmatprep.subr.bf16.mxu0 %v17285_v30 }
 0x457   : > { %v5898_v18 = vmax.f32 %v5821_v9, %v5894_v39  ;;  %v13591_v62 = vpop.f32.mrb[45].mxu1 }
 0x459   : > { %v17796_v31 = vmax.f32 %v5748_v29, %v5898_v18  ;;  %15654 = vmatpush3.bf16.msra.mxu0 %v17285_v30 }
 0x45a   : > { %15656 = vmatprep.subr.bf16.mxu0 %v17296_v40 }
 0x45d   : > { %15658 = vmatpush3.bf16.msra.mxu0 %v17296_v40 }
 0x45e   : > { %15660 = vmatprep.subr.bf16.mxu0 %v17199_v49 }
 0x460   : > { %14223 = vmatmul.mubr.msk.f32.vlgmr.msra.gmra.mrb[126].mxu0 %vm565_vm2, %v17802_v42 }
 0x461   : > { %15662 = vmatpush3.bf16.msra.mxu0 %v17199_v49  ;;  %14241 = vmatprep.mubr.msk.f32.mxu0 %vm565_vm2, %v8975_v43 }
 0x462   : > { %15664 = vmatprep.subr.bf16.mxu0 %v17221_v52 }
 0x465   : > { %15666 = vmatpush3.bf16.msra.mxu0 %v17221_v52 }
 0x466   : > { %15668 = vmatprep.subr.bf16.mxu0 %v17238_v37 }
 0x469   : > { %15670 = vmatpush3.bf16.msra.mxu0 %v17238_v37 }
 0x46a   : > { %15672 = vmatprep.subr.bf16.mxu0 %v17250_v41 }
 0x46d   : > { %15674 = vmatpush3.bf16.msra.mxu0 %v17250_v41 }
 0x46e   : > { %15676 = vmatprep.subr.bf16.mxu0 %v17260_v63 }
 0x470   : > { %14242 = vmatmul.mubr.msk.f32.vlgmr.msra.gmra.mrb[126].mxu0 %vm565_vm2, %v8976_v23 }
 0x471   : > { %15678 = vmatpush3.bf16.msra.mxu0 %v17260_v63  ;;  %14260 = vmatprep.mubr.msk.f32.mxu0 %vm565_vm2, %v9060_v38 }
 0x472   : > { %15680 = vmatprep.subr.bf16.mxu0 %v17326_v0 }
 0x475   : > { %15682 = vmatpush3.bf16.msra.mxu0 %v17326_v0 }
 0x476   : > { %15684 = vmatprep.subr.bf16.mxu0 %v17344_v54 }
 0x479   : > { %15686 = vmatpush3.bf16.msra.mxu0 %v17344_v54 }
 0x47a   : > { %15688 = vmatprep.subr.bf16.mxu0 %v17364_v19 }
 0x47d   : > { %15690 = vmatpush3.bf16.msra.mxu0 %v17364_v19 }
 0x480   : > { %14261 = vmatmul.mubr.msk.f32.vlgmr.msra.gmra.mrb[126].mxu0 %vm565_vm2, %v9061_v48 }
 0x493   : > { %v13743_v5 = vpop.f32.mrb[120].mxu0 }
 0x494   : > { %v6533_v9 = vpop.f32.mrb[121].mxu0  ;;  %v17826_v29 = vadd.f32 %v13743_v5, %v17483_v22 }
 0x495   : > { %v17829_v34 = vadd.f32 %v17483_v22, %v6533_v9 }
 0x496   : > { %v13667_v36 = vpop.f32.mrb[46].mxu1  ;;  %v6547_v43 = vmax.f32 %v17826_v29, 0.0 }
 0x497   : > { %v6221_v39 = vadd.f32 %v13667_v36, %v17483_v22  ;;  %v6209_v18 = vpop.f32.mrb[47].mxu1  ;;  %v6546_v38 = vmax.f32 %v17829_v34, 0.0 }
 0x498   : > { %v6220_v62 = vadd.f32 %v17483_v22, %v6209_v18  ;;  %v18649_v18 = vmov 0.0  }
 0x499   : > { %v6223_v23 = vmax.f32 %v6221_v39, 0.0  ;;  %v18648_v39 = vmov 0.0|0.0  }
 0x49a   : > { %v6222_v48 = vmax.f32 %v6220_v62, 0.0 }
 0x49b   : > { %v6549_v21 = vmax.f32 %v6223_v23, %v6547_v43 }
 0x49c   : > { %v6548_v5 = vmax.f32 %v6222_v48, %v6546_v38 }
 0x49d   : > { %v6551_v9 = vmax.f32 %v5669_v33, %v6549_v21 }
 0x49e   : > { %v6550_v36 = vmax.f32 %v5668_v26, %v6548_v5 }
 0x4a0   : > { %v15272_v6 = vpack.c.bf16 %v6551_v9, %v6550_v36 }
 0x4a2   : > { %15274 = vmatpush3.bf16.msk.msra.mxu1 %vm17502_vm10, %v15272_v6 }
 0x4a3   : > { %15275 = vmatprep.subr.bf16.mxu1 %v18648_v39 }
 0x4a5   : > { %13749 = vmatmul.mubr.msk.f32.vlgmr.msra.gmra.mrb[48].mxu1 %vm5674_vm11, %v17513_v44 }
 0x4a6   : > { %15278 = vmatpush3.bf16.msk.msra.mxu1 %vm17502_vm10, %v15272_v6  ;;  %13755 = vmatprep.mubr.msk.f32.mxu1 %vm16090_vm8, %v18649_v18 }
 0x4a7   : > { %15279 = vmatprep.subr.bf16.mxu1 %v18648_v39 }
 0x4a9   : > { %13756 = vmatmul.mubr.msk.f32.vlgmr.msra.gmra.mrb[50].mxu1 %vm5674_vm11, %v17518_v45 }
 0x4aa   : > { %15282 = vmatpush3.bf16.msk.msra.mxu1 %vm17502_vm10, %v15272_v6  ;;  %13762 = vmatprep.mubr.msk.f32.mxu1 %vm16090_vm8, %v18649_v18 }
 0x4ab   : > { %15284 = vmatprep.subr.bf16.mxu1 %v17158_v12 }
 0x4ad   : > { %13763 = vmatmul.mubr.msk.f32.vlgmr.msra.gmra.mrb[52].mxu1 %vm5674_vm11, %v17534_v50 }
 0x4ae   : > { %15286 = vmatpush3.bf16.msra.mxu1 %v17158_v12  ;;  %13781 = vmatprep.mubr.msk.f32.mxu1 %vm565_vm2, %v17612_v47 }
 0x4af   : > { %15288 = vmatprep.subr.bf16.mxu1 %v17173_v16 }
 0x4b2   : > { %15290 = vmatpush3.bf16.msra.mxu1 %v17173_v16 }
 0x4b3   : > { %15292 = vmatprep.subr.bf16.mxu1 %v17194_v46 }
 0x4b6   : > { %15294 = vmatpush3.bf16.msra.mxu1 %v17194_v46 }
 0x4b7   : > { %15296 = vmatprep.subr.bf16.mxu1 %v17216_v35 }
 0x4ba   : > { %15298 = vmatpush3.bf16.msra.mxu1 %v17216_v35 }
 0x4bb   : > { %15300 = vmatprep.subr.bf16.mxu1 %v17236_v58 }
 0x4bd   : > { %13782 = vmatmul.mubr.msk.f32.vlgmr.msra.gmra.mrb[54].mxu1 %vm565_vm2, %v17634_v57 }
 0x4be   : > { %15302 = vmatpush3.bf16.msra.mxu1 %v17236_v58  ;;  %13800 = vmatprep.mubr.msk.f32.mxu1 %vm565_vm2, %v17585_v53 }
 0x4bf   : > { %15304 = vmatprep.subr.bf16.mxu1 %v17272_v20 }
 0x4c2   : > { %15306 = vmatpush3.bf16.msra.mxu1 %v17272_v20 }
 0x4c3   : > { %15308 = vmatprep.subr.bf16.mxu1 %v17285_v30 }
 0x4c6   : > { %15310 = vmatpush3.bf16.msra.mxu1 %v17285_v30 }
 0x4c7   : > { %15312 = vmatprep.subr.bf16.mxu1 %v17296_v40 }
 0x4ca   : > { %15314 = vmatpush3.bf16.msra.mxu1 %v17296_v40 }
 0x4cb   : > { %15316 = vmatprep.subr.bf16.mxu1 %v17199_v49 }
 0x4cd   : > { %13801 = vmatmul.mubr.msk.f32.vlgmr.msra.gmra.mrb[54].mxu1 %vm565_vm2, %v17607_v55 }
 0x4ce   : > { %15318 = vmatpush3.bf16.msra.mxu1 %v17199_v49  ;;  %13819 = vmatprep.mubr.msk.f32.mxu1 %vm565_vm2, %v17660_v2 }
 0x4cf   : > { %15320 = vmatprep.subr.bf16.mxu1 %v17221_v52 }
 0x4d2   : > { %15322 = vmatpush3.bf16.msra.mxu1 %v17221_v52 }
 0x4d3   : > { %v13916_v6 = vpop.f32.mrb[122].mxu0  ;;  %15324 = vmatprep.subr.bf16.mxu1 %v17238_v37 }
 0x4d4   : > { %v7400_v21 = vpop.f32.mrb[123].mxu0 }
 0x4d5   : > { %v17926_v23 = vadd.f32 %v17483_v22, %v7400_v21 }
 0x4d6   : > { %15326 = vmatpush3.bf16.msra.mxu1 %v17238_v37 }
 0x4d7   : > { %15328 = vmatprep.subr.bf16.mxu1 %v17250_v41 }
 0x4da   : > { %15330 = vmatpush3.bf16.msra.mxu1 %v17250_v41 }
 0x4db   : > { %15332 = vmatprep.subr.bf16.mxu1 %v17260_v63 }
 0x4dd   : > { %13820 = vmatmul.mubr.msk.f32.vlgmr.msra.gmra.mrb[54].mxu1 %vm565_vm2, %v17672_v14 }
 0x4de   : > { %15334 = vmatpush3.bf16.msra.mxu1 %v17260_v63  ;;  %13838 = vmatprep.mubr.msk.f32.mxu1 %vm565_vm2, %v17639_v59 }
 0x4df   : > { %15336 = vmatprep.subr.bf16.mxu1 %v17326_v0 }
 0x4e2   : > { %15338 = vmatpush3.bf16.msra.mxu1 %v17326_v0 }
 0x4e3   : > { %15340 = vmatprep.subr.bf16.mxu1 %v17344_v54 }
 0x4e6   : > { %15342 = vmatpush3.bf16.msra.mxu1 %v17344_v54 }
 0x4e7   : > { %15344 = vmatprep.subr.bf16.mxu1 %v17364_v19 }
 0x4ea   : > { %15346 = vmatpush3.bf16.msra.mxu1 %v17364_v19 }
 0x4eb   : > { %15411 = vmatprep.subr.bf16.mxu1 %v18648_v39 }
 0x4ed   : > { %13839 = vmatmul.mubr.msk.f32.vlgmr.msra.gmra.mrb[54].mxu1 %vm565_vm2, %v17656_v56  ;;  %v17923_v56 = vadd.f32 %v13916_v6, %v17483_v22 }
 0x4ee   : > { %13921 = vmatprep.mubr.msk.f32.mxu1 %vm16090_vm8, %v18649_v18 }
 0x513   : > { %v17912_v17 = vpop.f32.mrb[124].mxu0 }
 0x514   : > { %v17914_v27 = vpop.f32.mrb[125].mxu0  ;;  %v18013_v34 = vadd.f32 %v17912_v17, %v17483_v22 }
 0x553   : > { %v17916_v33 = vpop.f32.mrb[126].mxu0 }
 0x554   : > { %v17918_v26 = vpop.f32.mrb[127].mxu0 }
 0x578   : > { %v6621_v53 = vpop.f32.mrb[48].mxu1 }
 0x579   : > { %v13750_v55 = vpop.f32.mrb[49].mxu1 }
 0x57a   : > { %v7414_v55 = vmax.f32 %v17923_v56, 0.0  ;;  %v9372_v56 = vld [vmem:[%s18633_s5 + $0x18] sm:$0xff] }
 0x57c   : > { %v6691_v47 = vpop.f32.mrb[50].mxu1 }
 0x57d   : > { %v13757_v57 = vpop.f32.mrb[51].mxu1 }
 0x580   : > { %v6761_v59 = vpop.f32.mrb[52].mxu1 }
 0x581   : > { %v6765_v2 = vmax.f32 %v6691_v47, %v6761_v59  ;;  %v13764_v14 = vpop.f32.mrb[53].mxu1  ;;  %v7413_v47 = vmax.f32 %v17926_v23, 0.0  ;;  %v11769_v23 = vld [vmem:[%s18633_s5 + $0x28] sm:$0xff] }
 0x583   : > { %v17920_v62 = vmax.f32 %v6621_v53, %v6765_v2 }
 0x5c0   : > { %v13840_v48 = vpop.f32.mrb[54].mxu1 }
 0x5c1   : > { %v7088_v5 = vadd.f32 %v13840_v48, %v17483_v22  ;;  %v7076_v9 = vpop.f32.mrb[55].mxu1 }
 0x5c2   : > { %v7087_v36 = vadd.f32 %v17483_v22, %v7076_v9  ;;  %v8281_v9 = vmax.f32 %v18013_v34, 0.0  ;;  %v11779_v34 = vld [vmem:[%s18633_s5 + $0x68] sm:$0xff] }
 0x5c3   : > { %v7090_v57 = vmax.f32 %v7088_v5, 0.0 }
 0x5c4   : > { %v7089_v59 = vmax.f32 %v7087_v36, 0.0 }
 0x5c5   : > { %v7416_v53 = vmax.f32 %v7090_v57, %v7414_v55 }
 0x5c6   : > { %v7415_v6 = vmax.f32 %v7089_v59, %v7413_v47 }
 0x5c7   : > { %v7418_v21 = vmax.f32 %v6547_v43, %v7416_v53  ;;  %v18017_v43 = vadd.f32 %v17483_v22, %v17914_v27 }
 0x5c8   : > { %v7417_v2 = vmax.f32 %v6546_v38, %v7415_v6 }
 0x5c9   : > { %v8280_v57 = vmax.f32 %v18017_v43, 0.0 }
 0x5ca   : > { %v15412_v14 = vpack.c.bf16 %v7418_v21, %v7417_v2 }
 0x5cc   : > { %15414 = vmatpush3.bf16.msk.msra.mxu1 %vm17502_vm10, %v15412_v14 }
 0x5cd   : > { %15415 = vmatprep.subr.bf16.mxu1 %v18648_v39 }
 0x5cf   : > { %13922 = vmatmul.mubr.msk.f32.vlgmr.msra.gmra.mrb[56].mxu1 %vm5674_vm11, %v17513_v44 }
 0x5d0   : > { %15418 = vmatpush3.bf16.msk.msra.mxu1 %vm17502_vm10, %v15412_v14  ;;  %13928 = vmatprep.mubr.msk.f32.mxu1 %vm16090_vm8, %v18649_v18 }
 0x5d1   : > { %15419 = vmatprep.subr.bf16.mxu1 %v18648_v39 }
 0x5d3   : > { %13929 = vmatmul.mubr.msk.f32.vlgmr.msra.gmra.mrb[58].mxu1 %vm5674_vm11, %v17518_v45 }
 0x5d4   : > { %15422 = vmatpush3.bf16.msk.msra.mxu1 %vm17502_vm10, %v15412_v14  ;;  %13935 = vmatprep.mubr.msk.f32.mxu1 %vm16090_vm8, %v18649_v18  ;;  %v11773_v14 = vld [vmem:[%s18633_s5 + $0x40] sm:$0xff] }
 0x5d5   : > { %15424 = vmatprep.subr.bf16.mxu1 %v17158_v12 }
 0x5d7   : > { %13936 = vmatmul.mubr.msk.f32.vlgmr.msra.gmra.mrb[60].mxu1 %vm5674_vm11, %v17534_v50 }
 0x5d8   : > { %15426 = vmatpush3.bf16.msra.mxu1 %v17158_v12  ;;  %13954 = vmatprep.mubr.msk.f32.mxu1 %vm565_vm2, %v17692_v61 }
 0x5d9   : > { %15428 = vmatprep.subr.bf16.mxu1 %v17173_v16 }
 0x5dc   : > { %15430 = vmatpush3.bf16.msra.mxu1 %v17173_v16 }
 0x5dd   : > { %15432 = vmatprep.subr.bf16.mxu1 %v17194_v46 }
 0x5e0   : > { %15434 = vmatpush3.bf16.msra.mxu1 %v17194_v46 }
 0x5e1   : > { %15436 = vmatprep.subr.bf16.mxu1 %v17216_v35 }
 0x5e4   : > { %15438 = vmatpush3.bf16.msra.mxu1 %v17216_v35 }
 0x5e5   : > { %15440 = vmatprep.subr.bf16.mxu1 %v17236_v58 }
 0x5e7   : > { %13955 = vmatmul.mubr.msk.f32.vlgmr.msra.gmra.mrb[62].mxu1 %vm565_vm2, %v17704_v10 }
 0x5e8   : > { %15442 = vmatpush3.bf16.msra.mxu1 %v17236_v58  ;;  %13973 = vmatprep.mubr.msk.f32.mxu1 %vm565_vm2, %v17676_v4 }
 0x5e9   : > { %15444 = vmatprep.subr.bf16.mxu1 %v17272_v20 }
 0x5ec   : > { %15446 = vmatpush3.bf16.msra.mxu1 %v17272_v20 }
 0x5ed   : > { %15448 = vmatprep.subr.bf16.mxu1 %v17285_v30 }
 0x5f0   : > { %15450 = vmatpush3.bf16.msra.mxu1 %v17285_v30 }
 0x5f1   : > { %15452 = vmatprep.subr.bf16.mxu1 %v17296_v40 }
 0x5f4   : > { %15454 = vmatpush3.bf16.msra.mxu1 %v17296_v40 }
 0x5f5   : > { %15456 = vmatprep.subr.bf16.mxu1 %v17199_v49 }
 0x5f7   : > { %13974 = vmatmul.mubr.msk.f32.vlgmr.msra.gmra.mrb[62].mxu1 %vm565_vm2, %v17688_v7 }
 0x5f8   : > { %15458 = vmatpush3.bf16.msra.mxu1 %v17199_v49  ;;  %13992 = vmatprep.mubr.msk.f32.mxu1 %vm565_vm2, %v17724_v8 }
 0x5f9   : > { %15460 = vmatprep.subr.bf16.mxu1 %v17221_v52 }
 0x5fc   : > { %15462 = vmatpush3.bf16.msra.mxu1 %v17221_v52 }
 0x5fd   : > { %15464 = vmatprep.subr.bf16.mxu1 %v17238_v37 }
 0x600   : > { %15466 = vmatpush3.bf16.msra.mxu1 %v17238_v37 }
 0x601   : > { %15468 = vmatprep.subr.bf16.mxu1 %v17250_v41 }
 0x604   : > { %15470 = vmatpush3.bf16.msra.mxu1 %v17250_v41 }
 0x605   : > { %15472 = vmatprep.subr.bf16.mxu1 %v17260_v63 }
 0x607   : > { %13993 = vmatmul.mubr.msk.f32.vlgmr.msra.gmra.mrb[62].mxu1 %vm565_vm2, %v17736_v60 }
 0x608   : > { %15474 = vmatpush3.bf16.msra.mxu1 %v17260_v63  ;;  %14011 = vmatprep.mubr.msk.f32.mxu1 %vm565_vm2, %v17708_v3 }
 0x609   : > { %15476 = vmatprep.subr.bf16.mxu1 %v17326_v0 }
 0x60c   : > { %15478 = vmatpush3.bf16.msra.mxu1 %v17326_v0 }
 0x60d   : > { %15480 = vmatprep.subr.bf16.mxu1 %v17344_v54 }
 0x610   : > { %15482 = vmatpush3.bf16.msra.mxu1 %v17344_v54 }
 0x611   : > { %15484 = vmatprep.subr.bf16.mxu1 %v17364_v19 }
 0x614   : > { %15486 = vmatpush3.bf16.msra.mxu1 %v17364_v19 }
 0x615   : > { %15551 = vmatprep.subr.bf16.mxu1 %v18648_v39 }
 0x617   : > { %14012 = vmatmul.mubr.msk.f32.vlgmr.msra.gmra.mrb[62].mxu1 %vm565_vm2, %v17720_v51 }
 0x618   : > { %14094 = vmatprep.mubr.msk.f32.mxu1 %vm16090_vm8, %v18649_v18 }
 0x6a2   : > { %v7488_v4 = vpop.f32.mrb[56].mxu1 }
 0x6a3   : > { %v13923_v7 = vpop.f32.mrb[57].mxu1 }
 0x6a6   : > { %v7558_v61 = vpop.f32.mrb[58].mxu1 }
 0x6a7   : > { %v13930_v10 = vpop.f32.mrb[59].mxu1 }
 0x6a8   : > { %v11775_v10 = vld [vmem:[%s18633_s5 + $0x50] sm:$0xff] }
 0x6aa   : > { %v7628_v3 = vpop.f32.mrb[60].mxu1 }
 0x6ab   : > { %v7632_v8 = vmax.f32 %v7558_v61, %v7628_v3  ;;  %v13937_v60 = vpop.f32.mrb[61].mxu1  ;;  %v9453_v61 = vrot.slane %v17796_v31, 1  ;;  %v11776_v3 = vld [vmem:[%s18633_s5 + $0x58] sm:$0xff] }
 0x6ac   : > { %v11778_v60 = vld [vmem:[%s18633_s5 + $0x60] sm:$0xff] }
 0x6ad   : > { %v18009_v29 = vmax.f32 %v7488_v4, %v7632_v8  ;;  %v11774_v4 = vld [vmem:[%s18633_s5 + $0x48] sm:$0xff]  ;;  %v15719_v8 = vpack.c.bf16 %v11776_v3, %v11775_v10  ;;  %v15722_v43 = vpack.c.bf16 %v11779_v34, %v11778_v60  ;;  %v11820_v3 = vld [vmem:[%s18633_s5 + $0x170] sm:$0xff]  ;;  %v11823_v34 = vld [vmem:[%s18633_s5 + $0x180] sm:$0xff] }
 0x6ae   : > { %v15716_v7 = vpack.c.bf16 %v11774_v4, %v11773_v14  ;;  %v11815_v14 = vld [vmem:[%s18633_s5 + $0x150] sm:$0xff]  ;;  %v11816_v4 = vld [vmem:[%s18633_s5 + $0x158] sm:$0xff] }
 0x6ea   : > { %v14013_v51 = vpop.f32.mrb[62].mxu1 }
 0x6eb   : > { %v7955_v38 = vadd.f32 %v14013_v51, %v17483_v22  ;;  %v7943_v48 = vpop.f32.mrb[63].mxu1  ;;  %v9532_v51 = vrot.slane %v17796_v31, 2 }
 0x6ec   : > { %v7954_v5 = vadd.f32 %v17483_v22, %v7943_v48  ;;  %v11781_v48 = vld [vmem:[%s18633_s5 + $0x78] sm:$0xff] }
 0x6ed   : > { %v7957_v36 = vmax.f32 %v7955_v38, 0.0  ;;  %v11780_v38 = vld [vmem:[%s18633_s5 + $0x70] sm:$0xff] }
 0x6ee   : > { %v7956_v59 = vmax.f32 %v7954_v5, 0.0  ;;  %v15725_v5 = vpack.c.bf16 %v11781_v48, %v11780_v38  ;;  %v10243_v38 = vrot.slane %v18009_v29, 1  ;;  %v11825_v48 = vld [vmem:[%s18633_s5 + $0x190] sm:$0xff] }
 0x6ef   : > { %v8283_v17 = vmax.f32 %v7957_v36, %v8281_v9  ;;  %v11784_v36 = vld [vmem:[%s18633_s5 + $0x88] sm:$0xff] }
 0x6f0   : > { %v8282_v53 = vmax.f32 %v7956_v59, %v8280_v57  ;;  %v9611_v59 = vrot.slane %v17796_v31, 3 }
 0x6f1   : > { %v8285_v27 = vmax.f32 %v7414_v55, %v8283_v17  ;;  %v11785_v17 = vld [vmem:[%s18633_s5 + $0x90] sm:$0xff] }
 0x6f2   : > { %v8284_v6 = vmax.f32 %v7413_v47, %v8282_v53  ;;  %v11771_v47 = vld [vmem:[%s18633_s5 + $0x38] sm:$0xff] }
 0x6f3   : > { %v11786_v53 = vld [vmem:[%s18633_s5 + $0x98] sm:$0xff] }
 0x6f4   : > { %v15552_v21 = vpack.c.bf16 %v8285_v27, %v8284_v6  ;;  %v15731_v27 = vpack.c.bf16 %v11786_v53, %v11785_v17  ;;  %v11788_v6 = vld [vmem:[%s18633_s5 + $0xa0] sm:$0xff]  ;;  %v10322_v17 = vrot.slane %v18009_v29, 2  ;;  %v11830_v53 = vld [vmem:[%s18633_s5 + $0x1b0] sm:$0xff] }
 0x6f6   : > { %15554 = vmatpush3.bf16.msk.msra.mxu1 %vm17502_vm10, %v15552_v21 }
 0x6f7   : > { %15555 = vmatprep.subr.bf16.mxu1 %v18648_v39 }
 0x6f9   : > { %14095 = vmatmul.mubr.msk.f32.vlgmr.msra.gmra.mrb[64].mxu1 %vm5674_vm11, %v17513_v44 }
 0x6fa   : > { %15558 = vmatpush3.bf16.msk.msra.mxu1 %vm17502_vm10, %v15552_v21  ;;  %14101 = vmatprep.mubr.msk.f32.mxu1 %vm16090_vm8, %v18649_v18 }
 0x6fb   : > { %15559 = vmatprep.subr.bf16.mxu1 %v18648_v39 }
 0x6fd   : > { %14102 = vmatmul.mubr.msk.f32.vlgmr.msra.gmra.mrb[66].mxu1 %vm5674_vm11, %v17518_v45 }
 0x6fe   : > { %15562 = vmatpush3.bf16.msk.msra.mxu1 %vm17502_vm10, %v15552_v21  ;;  %14108 = vmatprep.mubr.msk.f32.mxu1 %vm16090_vm8, %v18649_v18  ;;  %v11789_v21 = vld [vmem:[%s18633_s5 + $0xa8] sm:$0xff] }
 0x6ff   : > { %15564 = vmatprep.subr.bf16.mxu1 %v17158_v12 }
 0x701   : > { %14109 = vmatmul.mubr.msk.f32.vlgmr.msra.gmra.mrb[68].mxu1 %vm5674_vm11, %v17534_v50 }
 0x702   : > { %15566 = vmatpush3.bf16.msra.mxu1 %v17158_v12  ;;  %14127 = vmatprep.mubr.msk.f32.mxu1 %vm565_vm2, %v17756_v24 }
 0x703   : > { %15568 = vmatprep.subr.bf16.mxu1 %v17173_v16 }
 0x706   : > { %15570 = vmatpush3.bf16.msra.mxu1 %v17173_v16 }
 0x707   : > { %15572 = vmatprep.subr.bf16.mxu1 %v17194_v46 }
 0x70a   : > { %15574 = vmatpush3.bf16.msra.mxu1 %v17194_v46 }
 0x70b   : > { %15576 = vmatprep.subr.bf16.mxu1 %v17216_v35 }
 0x70e   : > { %15578 = vmatpush3.bf16.msra.mxu1 %v17216_v35 }
 0x70f   : > { %15580 = vmatprep.subr.bf16.mxu1 %v17236_v58 }
 0x711   : > { %14128 = vmatmul.mubr.msk.f32.vlgmr.msra.gmra.mrb[70].mxu1 %vm565_vm2, %v17768_v25 }
 0x712   : > { %15582 = vmatpush3.bf16.msra.mxu1 %v17236_v58  ;;  %14146 = vmatprep.mubr.msk.f32.mxu1 %vm565_vm2, %v17740_v11 }
 0x713   : > { %15584 = vmatprep.subr.bf16.mxu1 %v17272_v20 }
 0x716   : > { %15586 = vmatpush3.bf16.msra.mxu1 %v17272_v20 }
 0x717   : > { %15588 = vmatprep.subr.bf16.mxu1 %v17285_v30 }
 0x71a   : > { %15590 = vmatpush3.bf16.msra.mxu1 %v17285_v30  ;;  %v16023_v30 = vld [vmem:[%s18632_s4] ss:$0 sm:$0xff] }
 0x71b   : > { %15592 = vmatprep.subr.bf16.mxu1 %v17296_v40 }
 0x71e   : > { %15594 = vmatpush3.bf16.msra.mxu1 %v17296_v40 }
 0x71f   : > { %15596 = vmatprep.subr.bf16.mxu1 %v17199_v49 }
 0x721   : > { %14147 = vmatmul.mubr.msk.f32.vlgmr.msra.gmra.mrb[70].mxu1 %vm565_vm2, %v17752_v15 }
 0x722   : > { %15598 = vmatpush3.bf16.msra.mxu1 %v17199_v49  ;;  %14165 = vmatprep.mubr.msk.f32.mxu1 %vm565_vm2, %v17788_v1 }
 0x723   : > { %15600 = vmatprep.subr.bf16.mxu1 %v17221_v52 }
 0x726   : > { %15602 = vmatpush3.bf16.msra.mxu1 %v17221_v52 }
 0x727   : > { %15604 = vmatprep.subr.bf16.mxu1 %v17238_v37 }
 0x72a   : > { %15606 = vmatpush3.bf16.msra.mxu1 %v17238_v37 }
 0x72b   : > { %15608 = vmatprep.subr.bf16.mxu1 %v17250_v41 }
 0x72e   : > { %15610 = vmatpush3.bf16.msra.mxu1 %v17250_v41  ;;  %v9146_v41 = vadd.f32 %v17916_v33, %v17483_v22  ;;  %v9370_v33 = vld [vmem:[%s18633_s5 + $0x8] sm:$0xff] }
 0x72f   : > { %15612 = vmatprep.subr.bf16.mxu1 %v17260_v63 }
 0x731   : > { %14166 = vmatmul.mubr.msk.f32.vlgmr.msra.gmra.mrb[70].mxu1 %vm565_vm2, %v17802_v42  ;;  %v9369_v42 = vld [vmem:[%s18633_s5] sm:$0xff] }
 0x732   : > { %15614 = vmatpush3.bf16.msra.mxu1 %v17260_v63  ;;  %14184 = vmatprep.mubr.msk.f32.mxu1 %vm565_vm2, %v17772_v28  ;;  %v9145_v63 = vadd.f32 %v17483_v22, %v17918_v26  ;;  %v9371_v26 = vld [vmem:[%s18633_s5 + $0x10] sm:$0xff] }
 0x733   : > { %15616 = vmatprep.subr.bf16.mxu1 %v17326_v0  ;;  %v15707_v32 = vpack.c.bf16 %v9372_v56, %v9371_v26  ;;  %v10006_v56 = vrot.slane %v17920_v62, 3 }
 0x734   : > { %v9147_v15 = vmax.f32 %v9145_v63, 0.0  ;;  %v11796_v63 = vld [vmem:[%s18633_s5 + $0xd8] sm:$0xff] }
 0x736   : > { %15618 = vmatpush3.bf16.msra.mxu1 %v17326_v0 }
 0x737   : > { %15620 = vmatprep.subr.bf16.mxu1 %v17344_v54 }
 0x73a   : > { %15622 = vmatpush3.bf16.msra.mxu1 %v17344_v54 }
 0x73b   : > { %15624 = vmatprep.subr.bf16.mxu1 %v17364_v19 }
 0x73e   : > { %15626 = vmatpush3.bf16.msra.mxu1 %v17364_v19  ;;  %v9148_v19 = vmax.f32 %v9146_v41, 0.0  ;;  %v11795_v41 = vld [vmem:[%s18633_s5 + $0xd0] sm:$0xff] }
 0x73f   : > { %15691 = vmatprep.subr.bf16.mxu1 %v18648_v39 }
 0x741   : > { %14185 = vmatmul.mubr.msk.f32.vlgmr.msra.gmra.mrb[70].mxu1 %vm565_vm2, %v17784_v13 }
 0x742   : > { %14267 = vmatprep.mubr.msk.f32.mxu1 %vm16090_vm8, %v18649_v18 }
 0x7cc   : > { %v8355_v12 = vpop.f32.mrb[64].mxu1 }
 0x7cd   : > { %v14096_v16 = vpop.f32.mrb[65].mxu1 }
 0x7ce   : > { %v9690_v16 = vrot.slane %v17796_v31, 4 }
 0x7d0   : > { %v8425_v46 = vpop.f32.mrb[66].mxu1 }
 0x7d1   : > { %v14103_v49 = vpop.f32.mrb[67].mxu1 }
 0x7d2   : > { %v11791_v49 = vld [vmem:[%s18633_s5 + $0xb8] sm:$0xff] }
 0x7d4   : > { %v8495_v35 = vpop.f32.mrb[68].mxu1 }
 0x7d5   : > { %v8499_v52 = vmax.f32 %v8425_v46, %v8495_v35  ;;  %v14110_v58 = vpop.f32.mrb[69].mxu1  ;;  %v11790_v46 = vld [vmem:[%s18633_s5 + $0xb0] sm:$0xff] }
 0x7d6   : > { %v15737_v35 = vpack.c.bf16 %v11791_v49, %v11790_v46  ;;  %v10401_v46 = vrot.slane %v18009_v29, 3  ;;  %v11835_v49 = vld [vmem:[%s18633_s5 + $0x1d0] sm:$0xff] }
 0x7d7   : > { %v18100_v37 = vmax.f32 %v8355_v12, %v8499_v52  ;;  %v15734_v12 = vpack.c.bf16 %v11789_v21, %v11788_v6  ;;  %v11794_v52 = vld [vmem:[%s18633_s5 + $0xc8] sm:$0xff]  ;;  %v11833_v21 = vld [vmem:[%s18633_s5 + $0x1c0] sm:$0xff] }
 0x814   : > { %v14186_v20 = vpop.f32.mrb[70].mxu1 }
 0x815   : > { %v8822_v40 = vadd.f32 %v16023_v30, %v14186_v20  ;;  %v8810_v0 = vpop.f32.mrb[71].mxu1  ;;  %v15743_v20 = vpack.c.bf16 %v11796_v63, %v11795_v41  ;;  %v10480_v63 = vrot.slane %v18009_v29, 4 }
 0x816   : > { %v8821_v54 = vadd.f32 %v16023_v30, %v8810_v0  ;;  %v11798_v30 = vld [vmem:[%s18633_s5 + $0xe0] sm:$0xff] }
 0x817   : > { %v8824_v11 = vmax.f32 %v8822_v40, 0.0  ;;  %v11799_v40 = vld [vmem:[%s18633_s5 + $0xe8] sm:$0xff] }
 0x818   : > { %v8823_v24 = vmax.f32 %v8821_v54, 0.0  ;;  %v15746_v0 = vpack.c.bf16 %v11799_v40, %v11798_v30  ;;  %v9848_v54 = vrot.slane %v17920_v62, 1  ;;  %v11841_v30 = vld [vmem:[%s18633_s5 + $0x1f8] sm:$0xff] }
 0x819   : > { %v9150_v25 = vmax.f32 %v8824_v11, %v9148_v19  ;;  %v11800_v19 = vld [vmem:[%s18633_s5 + $0xf0] sm:$0xff]  ;;  %v11801_v11 = vld [vmem:[%s18633_s5 + $0xf8] sm:$0xff] }
 0x81a   : > { %v9149_v28 = vmax.f32 %v8823_v24, %v9147_v15  ;;  %v15749_v15 = vpack.c.bf16 %v11801_v11, %v11800_v19  ;;  %v11803_v24 = vld [vmem:[%s18633_s5 + $0x100] sm:$0xff]  ;;  %v11845_v19 = vld [vmem:[%s18633_s5 + $0x210] sm:$0xff]  ;;  %v11846_v11 = vld [vmem:[%s18633_s5 + $0x218] sm:$0xff] }
 0x81b   : > { %v9152_v13 = vmax.f32 %v8281_v9, %v9150_v25  ;;  %v11783_v9 = vld [vmem:[%s18633_s5 + $0x80] sm:$0xff]  ;;  %v11804_v25 = vld [vmem:[%s18633_s5 + $0x108] sm:$0xff] }
 0x81c   : > { %v9151_v22 = vmax.f32 %v8280_v57, %v9149_v28  ;;  %v15728_v57 = vpack.c.bf16 %v11784_v36, %v11783_v9  ;;  %v15752_v28 = vpack.c.bf16 %v11804_v25, %v11803_v24  ;;  %v11828_v36 = vld [vmem:[%s18633_s5 + $0x1a0] sm:$0xff]  ;;  %v11849_v25 = vld [vmem:[%s18633_s5 + $0x228] sm:$0xff] }
 0x81d   : > { %v11848_v24 = vld [vmem:[%s18633_s5 + $0x220] sm:$0xff] }
 0x81e   : > { %v15692_v1 = vpack.c.bf16 %v9152_v13, %v9151_v22  ;;  %v9927_v13 = vrot.slane %v17920_v62, 2  ;;  %v11805_v22 = vld [vmem:[%s18633_s5 + $0x110] sm:$0xff] }
 0x820   : > { %15694 = vmatpush3.bf16.msk.msra.mxu1 %vm17502_vm10, %v15692_v1 }
 0x821   : > { %15695 = vmatprep.subr.bf16.mxu1 %v18648_v39 }
 0x823   : > { %14268 = vmatmul.mubr.msk.f32.vlgmr.msra.gmra.mrb[72].mxu1 %vm5674_vm11, %v17513_v44  ;;  %v15704_v44 = vpack.c.bf16 %v9370_v33, %v9369_v42  ;;  %v11808_v33 = vld [vmem:[%s18633_s5 + $0x120] sm:$0xff] }
 0x824   : > { %15698 = vmatpush3.bf16.msk.msra.mxu1 %vm17502_vm10, %v15692_v1  ;;  %14274 = vmatprep.mubr.msk.f32.mxu1 %vm16090_vm8, %v18649_v18 }
 0x825   : > { %15699 = vmatprep.subr.bf16.mxu1 %v18648_v39 }
 0x827   : > { %14275 = vmatmul.mubr.msk.f32.vlgmr.msra.gmra.mrb[74].mxu1 %vm5674_vm11, %v17518_v45  ;;  %v11768_v45 = vld [vmem:[%s18633_s5 + $0x20] sm:$0xff] }
 0x828   : > { %15702 = vmatpush3.bf16.msk.msra.mxu1 %vm17502_vm10, %v15692_v1  ;;  %14281 = vmatprep.mubr.msk.f32.mxu1 %vm16090_vm8, %v18649_v18  ;;  %v15710_v55 = vpack.c.bf16 %v11769_v23, %v11768_v45  ;;  %v11806_v1 = vld [vmem:[%s18633_s5 + $0x118] sm:$0xff] }
 0x829   : > { %15703 = vmatprep.subr.bf16.mxu1 %v18648_v39  ;;  %v15755_v42 = vpack.c.bf16 %v11806_v1, %v11805_v22  ;;  %v11811_v45 = vld [vmem:[%s18633_s5 + $0x138] sm:$0xff]  ;;  %v11850_v22 = vld [vmem:[%s18633_s5 + $0x230] sm:$0xff] }
 0x82a   : > { %v11851_v1 = vld [vmem:[%s18633_s5 + $0x238] sm:$0xff] }
 0x82b   : > { %14282 = vmatmul.mubr.msk.f32.vlgmr.msra.gmra.mrb[76].mxu1 %vm5674_vm11, %v17534_v50  ;;  %v11770_v50 = vld [vmem:[%s18633_s5 + $0x30] sm:$0xff] }
 0x82c   : > { %15705 = vmatpush3.bf16.msra.mxu1 %v15704_v44  ;;  %14292 = vmatprep.mubr.msk.f32.mxu1 %vm16090_vm8, %v18649_v18  ;;  %v15713_v2 = vpack.c.bf16 %v11771_v47, %v11770_v50  ;;  %v11809_v44 = vld [vmem:[%s18633_s5 + $0x128] sm:$0xff] }
 0x82d   : > { %15706 = vmatprep.subr.bf16.mxu1 %v18648_v39  ;;  %v15758_v26 = vpack.c.bf16 %v11809_v44, %v11808_v33  ;;  %v11814_v50 = vld [vmem:[%s18633_s5 + $0x148] sm:$0xff]  ;;  %v11853_v33 = vld [vmem:[%s18633_s5 + $0x240] sm:$0xff] }
 0x82e   : > { %v11854_v44 = vld [vmem:[%s18633_s5 + $0x248] sm:$0xff] }
 0x830   : > { %15708 = vmatpush3.bf16.msra.mxu1 %v15707_v32  ;;  %v11810_v32 = vld [vmem:[%s18633_s5 + $0x130] sm:$0xff] }
 0x831   : > { %15709 = vmatprep.subr.bf16.mxu1 %v18648_v39  ;;  %v15761_v23 = vpack.c.bf16 %v11811_v45, %v11810_v32  ;;  %v11855_v32 = vld [vmem:[%s18633_s5 + $0x250] sm:$0xff]  ;;  %v11856_v45 = vld [vmem:[%s18633_s5 + $0x258] sm:$0xff] }
 0x833   : > { %14293 = vmatmul.mubr.msk.f32.vlgmr.msra.gmra.mrb[78].mxu1 %vm9373_vm12, %v17796_v31  ;;  %v11793_v31 = vld [vmem:[%s18633_s5 + $0xc0] sm:$0xff] }
 0x834   : > { %15711 = vmatpush3.bf16.msra.mxu1 %v15710_v55  ;;  %14303 = vmatprep.mubr.msk.f32.mxu1 %vm16090_vm8, %v18649_v18  ;;  %v15740_v58 = vpack.c.bf16 %v11794_v52, %v11793_v31  ;;  %v11813_v55 = vld [vmem:[%s18633_s5 + $0x140] sm:$0xff] }
 0x835   : > { %15712 = vmatprep.subr.bf16.mxu1 %v18648_v39  ;;  %v15764_v47 = vpack.c.bf16 %v11814_v50, %v11813_v55  ;;  %v11838_v52 = vld [vmem:[%s18633_s5 + $0x1e0] sm:$0xff]  ;;  %v11859_v50 = vld [vmem:[%s18633_s5 + $0x268] sm:$0xff] }
 0x836   : > { %v11858_v55 = vld [vmem:[%s18633_s5 + $0x260] sm:$0xff] }
 0x838   : > { %15714 = vmatpush3.bf16.msra.mxu1 %v15713_v2  ;;  %v10085_v2 = vrot.slane %v17920_v62, 4 }
 0x839   : > { %15715 = vmatprep.subr.bf16.mxu1 %v18648_v39 }
 0x83b   : > { %14304 = vmatmul.mubr.msk.f32.vlgmr.msra.gmra.mrb[78].mxu1 %vm9373_vm12, %v9453_v61  ;;  %v11819_v61 = vld [vmem:[%s18633_s5 + $0x168] sm:$0xff] }
 0x83c   : > { %15717 = vmatpush3.bf16.msra.mxu1 %v15716_v7  ;;  %14314 = vmatprep.mubr.msk.f32.mxu1 %vm16090_vm8, %v18649_v18  ;;  %v15767_v7 = vpack.c.bf16 %v11816_v4, %v11815_v14  ;;  %v11860_v14 = vld [vmem:[%s18633_s5 + $0x270] sm:$0xff]  ;;  %v11861_v4 = vld [vmem:[%s18633_s5 + $0x278] sm:$0xff] }
 0x83d   : > { %15718 = vmatprep.subr.bf16.mxu1 %v18648_v39 }
 0x840   : > { %15720 = vmatpush3.bf16.msra.mxu1 %v15719_v8  ;;  %v11821_v8 = vld [vmem:[%s18633_s5 + $0x178] sm:$0xff] }
 0x841   : > { %15721 = vmatprep.subr.bf16.mxu1 %v18648_v39  ;;  %v15773_v60 = vpack.c.bf16 %v11821_v8, %v11820_v3  ;;  %v10875_v3 = vrot.slane %v18100_v37, 4  ;;  %v11865_v8 = vld [vmem:[%s18633_s5 + $0x290] sm:$0xff] }
 0x843   : > { %14315 = vmatmul.mubr.msk.f32.vlgmr.msra.gmra.mrb[78].mxu1 %vm9373_vm12, %v9532_v51 }
 0x844   : > { %15723 = vmatpush3.bf16.msra.mxu1 %v15722_v43  ;;  %14325 = vmatprep.mubr.msk.f32.mxu1 %vm16090_vm8, %v18649_v18  ;;  %v11824_v43 = vld [vmem:[%s18633_s5 + $0x188] sm:$0xff] }
 0x845   : > { %15724 = vmatprep.subr.bf16.mxu1 %v18648_v39  ;;  %v15776_v51 = vpack.c.bf16 %v11824_v43, %v11823_v34 }
 0x848   : > { %15726 = vmatpush3.bf16.msra.mxu1 %v15725_v5  ;;  %v11826_v5 = vld [vmem:[%s18633_s5 + $0x198] sm:$0xff] }
 0x849   : > { %15727 = vmatprep.subr.bf16.mxu1 %v18648_v39  ;;  %v15779_v9 = vpack.c.bf16 %v11826_v5, %v11825_v48  ;;  %v11868_v48 = vld [vmem:[%s18633_s5 + $0x2a0] sm:$0xff]  ;;  %v11869_v5 = vld [vmem:[%s18633_s5 + $0x2a8] sm:$0xff] }
 0x84b   : > { %14326 = vmatmul.mubr.msk.f32.vlgmr.msra.gmra.mrb[78].mxu1 %vm9373_vm12, %v9611_v59 }
 0x84c   : > { %15729 = vmatpush3.bf16.msra.mxu1 %v15728_v57  ;;  %14336 = vmatprep.mubr.msk.f32.mxu1 %vm16090_vm8, %v18649_v18  ;;  %v11829_v57 = vld [vmem:[%s18633_s5 + $0x1a8] sm:$0xff] }
 0x84d   : > { %15730 = vmatprep.subr.bf16.mxu1 %v18648_v39  ;;  %v15782_v59 = vpack.c.bf16 %v11829_v57, %v11828_v36 }
 0x850   : > { %15732 = vmatpush3.bf16.msra.mxu1 %v15731_v27  ;;  %v11831_v27 = vld [vmem:[%s18633_s5 + $0x1b8] sm:$0xff] }
 0x851   : > { %15733 = vmatprep.subr.bf16.mxu1 %v18648_v39  ;;  %v15785_v6 = vpack.c.bf16 %v11831_v27, %v11830_v53  ;;  %v11870_v53 = vld [vmem:[%s18633_s5 + $0x2b0] sm:$0xff]  ;;  %v11871_v27 = vld [vmem:[%s18633_s5 + $0x2b8] sm:$0xff] }
 0x853   : > { %14337 = vmatmul.mubr.msk.f32.vlgmr.msra.gmra.mrb[78].mxu1 %vm9373_vm12, %v9690_v16 }
 0x854   : > { %15735 = vmatpush3.bf16.msra.mxu1 %v15734_v12  ;;  %14347 = vmatprep.mubr.msk.f32.mxu1 %vm16090_vm8, %v18649_v18  ;;  %v11834_v12 = vld [vmem:[%s18633_s5 + $0x1c8] sm:$0xff] }
 0x855   : > { %15736 = vmatprep.subr.bf16.mxu1 %v18648_v39  ;;  %v15788_v16 = vpack.c.bf16 %v11834_v12, %v11833_v21  ;;  %v11873_v21 = vld [vmem:[%s18633_s5 + $0x2c0] sm:$0xff]  ;;  %v11874_v12 = vld [vmem:[%s18633_s5 + $0x2c8] sm:$0xff] }
 0x858   : > { %15738 = vmatpush3.bf16.msra.mxu1 %v15737_v35  ;;  %v11836_v35 = vld [vmem:[%s18633_s5 + $0x1d8] sm:$0xff] }
 0x859   : > { %15739 = vmatprep.subr.bf16.mxu1 %v18648_v39  ;;  %v15791_v31 = vpack.c.bf16 %v11836_v35, %v11835_v49  ;;  %v11875_v49 = vld [vmem:[%s18633_s5 + $0x2d0] sm:$0xff]  ;;  %v11876_v35 = vld [vmem:[%s18633_s5 + $0x2d8] sm:$0xff] }
 0x85b   : > { %14348 = vmatmul.mubr.msk.f32.vlgmr.msra.gmra.mrb[78].mxu1 %vm9373_vm12, %v17920_v62  ;;  %v11818_v62 = vld [vmem:[%s18633_s5 + $0x160] sm:$0xff] }
 0x85c   : > { %15741 = vmatpush3.bf16.msra.mxu1 %v15740_v58  ;;  %14358 = vmatprep.mubr.msk.f32.mxu1 %vm16090_vm8, %v18649_v18  ;;  %v15770_v10 = vpack.c.bf16 %v11819_v61, %v11818_v62  ;;  %v11839_v58 = vld [vmem:[%s18633_s5 + $0x1e8] sm:$0xff]  ;;  %v11863_v62 = vld [vmem:[%s18633_s5 + $0x280] sm:$0xff] }
 0x85d   : > { %15742 = vmatprep.subr.bf16.mxu1 %v18648_v39  ;;  %v15794_v41 = vpack.c.bf16 %v11839_v58, %v11838_v52  ;;  %v11864_v61 = vld [vmem:[%s18633_s5 + $0x288] sm:$0xff]  ;;  %v11878_v52 = vld [vmem:[%s18633_s5 + $0x2e0] sm:$0xff] }
 0x85e   : > { %v11879_v58 = vld [vmem:[%s18633_s5 + $0x2e8] sm:$0xff] }
 0x860   : > { %15744 = vmatpush3.bf16.msra.mxu1 %v15743_v20  ;;  %v11840_v20 = vld [vmem:[%s18633_s5 + $0x1f0] sm:$0xff] }
 0x861   : > { %15745 = vmatprep.subr.bf16.mxu1 %v18648_v39  ;;  %v15797_v40 = vpack.c.bf16 %v11841_v30, %v11840_v20  ;;  %v11880_v20 = vld [vmem:[%s18633_s5 + $0x2f0] sm:$0xff]  ;;  %v11881_v30 = vld [vmem:[%s18633_s5 + $0x2f8] sm:$0xff] }
 0x863   : > { %14359 = vmatmul.mubr.msk.f32.vlgmr.msra.gmra.mrb[78].mxu1 %vm9373_vm12, %v9848_v54 }
 0x864   : > { %15747 = vmatpush3.bf16.msra.mxu1 %v15746_v0  ;;  %14369 = vmatprep.mubr.msk.f32.mxu1 %vm16090_vm8, %v18649_v18  ;;  %v11844_v0 = vld [vmem:[%s18633_s5 + $0x208] sm:$0xff] }
 0x865   : > { %15748 = vmatprep.subr.bf16.mxu1 %v18648_v39 }
 0x868   : > { %15750 = vmatpush3.bf16.msra.mxu1 %v15749_v15  ;;  %v15803_v15 = vpack.c.bf16 %v11846_v11, %v11845_v19  ;;  %v11885_v11 = vld [vmem:[%s18633_s5 + $0x310] sm:$0xff] }
 0x869   : > { %15751 = vmatprep.subr.bf16.mxu1 %v18648_v39 }
 0x86b   : > { %14370 = vmatmul.mubr.msk.f32.vlgmr.msra.gmra.mrb[78].mxu1 %vm9373_vm12, %v9927_v13  ;;  %v10638_v13 = vrot.slane %v18100_v37, 1 }
 0x86c   : > { %15753 = vmatpush3.bf16.msra.mxu1 %v15752_v28  ;;  %14380 = vmatprep.mubr.msk.f32.mxu1 %vm16090_vm8, %v18649_v18  ;;  %v15806_v28 = vpack.c.bf16 %v11849_v25, %v11848_v24 }
 0x86d   : > { %15754 = vmatprep.subr.bf16.mxu1 %v18648_v39 }
 0x870   : > { %15756 = vmatpush3.bf16.msra.mxu1 %v15755_v42  ;;  %v15809_v42 = vpack.c.bf16 %v11851_v1, %v11850_v22 }
 0x871   : > { %15757 = vmatprep.subr.bf16.mxu1 %v18648_v39 }
 0x873   : > { %14381 = vmatmul.mubr.msk.f32.vlgmr.msra.gmra.mrb[78].mxu1 %vm9373_vm12, %v10006_v56  ;;  %v10717_v56 = vrot.slane %v18100_v37, 2 }
 0x874   : > { %15759 = vmatpush3.bf16.msra.mxu1 %v15758_v26  ;;  %14391 = vmatprep.mubr.msk.f32.mxu1 %vm16090_vm8, %v18649_v18  ;;  %v15812_v26 = vpack.c.bf16 %v11854_v44, %v11853_v33 }
 0x875   : > { %15760 = vmatprep.subr.bf16.mxu1 %v18648_v39 }
 0x878   : > { %15762 = vmatpush3.bf16.msra.mxu1 %v15761_v23  ;;  %v15815_v23 = vpack.c.bf16 %v11856_v45, %v11855_v32 }
 0x879   : > { %15763 = vmatprep.subr.bf16.mxu1 %v18648_v39 }
 0x87b   : > { %14392 = vmatmul.mubr.msk.f32.vlgmr.msra.gmra.mrb[78].mxu1 %vm9373_vm12, %v10085_v2  ;;  %v10796_v2 = vrot.slane %v18100_v37, 3 }
 0x87c   : > { %15765 = vmatpush3.bf16.msra.mxu1 %v15764_v47  ;;  %14402 = vmatprep.mubr.msk.f32.mxu1 %vm16090_vm8, %v18649_v18  ;;  %v15818_v47 = vpack.c.bf16 %v11859_v50, %v11858_v55 }
 0x87d   : > { %15766 = vmatprep.subr.bf16.mxu1 %v18648_v39 }
 0x880   : > { %15768 = vmatpush3.bf16.msra.mxu1 %v15767_v7  ;;  %v15821_v7 = vpack.c.bf16 %v11861_v4, %v11860_v14 }
 0x881   : > { %15769 = vmatprep.subr.bf16.mxu1 %v18648_v39 }
 0x883   : > { %14403 = vmatmul.mubr.msk.f32.vlgmr.msra.gmra.mrb[78].mxu1 %vm9373_vm12, %v18009_v29  ;;  %v11843_v29 = vld [vmem:[%s18633_s5 + $0x200] sm:$0xff] }
 0x884   : > { %15771 = vmatpush3.bf16.msra.mxu1 %v15770_v10  ;;  %14413 = vmatprep.mubr.msk.f32.mxu1 %vm16090_vm8, %v18649_v18  ;;  %v15800_v54 = vpack.c.bf16 %v11844_v0, %v11843_v29  ;;  %v15824_v10 = vpack.c.bf16 %v11864_v61, %v11863_v62  ;;  %v11883_v29 = vld [vmem:[%s18633_s5 + $0x300] sm:$0xff]  ;;  %v11884_v0 = vld [vmem:[%s18633_s5 + $0x308] sm:$0xff] }
 0x885   : > { %15772 = vmatprep.subr.bf16.mxu1 %v18648_v39 }
 0x888   : > { %15774 = vmatpush3.bf16.msra.mxu1 %v15773_v60  ;;  %v11866_v60 = vld [vmem:[%s18633_s5 + $0x298] sm:$0xff] }
 0x889   : > { %15775 = vmatprep.subr.bf16.mxu1 %v18648_v39  ;;  %v15827_v34 = vpack.c.bf16 %v11866_v60, %v11865_v8 }
 0x88b   : > { %14414 = vmatmul.mubr.msk.f32.vlgmr.msra.gmra.mrb[78].mxu1 %vm9373_vm12, %v10243_v38 }
 0x88c   : > { %15777 = vmatpush3.bf16.msra.mxu1 %v15776_v51  ;;  %14424 = vmatprep.mubr.msk.f32.mxu1 %vm16090_vm8, %v18649_v18 }
 0x88d   : > { %15778 = vmatprep.subr.bf16.mxu1 %v18648_v39 }
 0x890   : > { %15780 = vmatpush3.bf16.msra.mxu1 %v15779_v9 }
 0x891   : > { %15781 = vmatprep.subr.bf16.mxu1 %v18648_v39 }
 0x893   : > { %14425 = vmatmul.mubr.msk.f32.vlgmr.msra.gmra.mrb[78].mxu1 %vm9373_vm12, %v10322_v17 }
 0x894   : > { %15783 = vmatpush3.bf16.msra.mxu1 %v15782_v59  ;;  %14435 = vmatprep.mubr.msk.f32.mxu1 %vm16090_vm8, %v18649_v18  ;;  %v15830_v59 = vpack.c.bf16 %v11869_v5, %v11868_v48 }
 0x895   : > { %15784 = vmatprep.subr.bf16.mxu1 %v18648_v39 }
 0x898   : > { %15786 = vmatpush3.bf16.msra.mxu1 %v15785_v6  ;;  %v15833_v6 = vpack.c.bf16 %v11871_v27, %v11870_v53 }
 0x899   : > { %15787 = vmatprep.subr.bf16.mxu1 %v18648_v39 }
 0x89b   : > { %14436 = vmatmul.mubr.msk.f32.vlgmr.msra.gmra.mrb[78].mxu1 %vm9373_vm12, %v10401_v46 }
 0x89c   : > { %15789 = vmatpush3.bf16.msra.mxu1 %v15788_v16  ;;  %14446 = vmatprep.mubr.msk.f32.mxu1 %vm16090_vm8, %v18649_v18  ;;  %v15836_v16 = vpack.c.bf16 %v11874_v12, %v11873_v21 }
 0x89d   : > { %15790 = vmatprep.subr.bf16.mxu1 %v18648_v39 }
 0x8a0   : > { %15792 = vmatpush3.bf16.msra.mxu1 %v15791_v31  ;;  %v15839_v31 = vpack.c.bf16 %v11876_v35, %v11875_v49 }
 0x8a1   : > { %15793 = vmatprep.subr.bf16.mxu1 %v18648_v39 }
 0x8a3   : > { %14447 = vmatmul.mubr.msk.f32.vlgmr.msra.gmra.mrb[78].mxu1 %vm9373_vm12, %v10480_v63 }
 0x8a4   : > { %15795 = vmatpush3.bf16.msra.mxu1 %v15794_v41  ;;  %14457 = vmatprep.mubr.msk.f32.mxu1 %vm16090_vm8, %v18649_v18  ;;  %v15842_v41 = vpack.c.bf16 %v11879_v58, %v11878_v52 }
 0x8a5   : > { %15796 = vmatprep.subr.bf16.mxu1 %v18648_v39 }
 0x8a8   : > { %15798 = vmatpush3.bf16.msra.mxu1 %v15797_v40  ;;  %v15845_v40 = vpack.c.bf16 %v11881_v30, %v11880_v20 }
 0x8a9   : > { %15799 = vmatprep.subr.bf16.mxu1 %v18648_v39 }
 0x8ab   : > { %14458 = vmatmul.mubr.msk.f32.vlgmr.msra.gmra.mrb[78].mxu1 %vm9373_vm12, %v18100_v37 }
 0x8ac   : > { %15801 = vmatpush3.bf16.msra.mxu1 %v15800_v54  ;;  %14468 = vmatprep.mubr.msk.f32.mxu1 %vm16090_vm8, %v18649_v18  ;;  %v15848_v54 = vpack.c.bf16 %v11884_v0, %v11883_v29 }
 0x8ad   : > { %15802 = vmatprep.subr.bf16.mxu1 %v18648_v39 }
 0x8b0   : > { %15804 = vmatpush3.bf16.msra.mxu1 %v15803_v15  ;;  %v11886_v15 = vld [vmem:[%s18633_s5 + $0x318] sm:$0xff] }
 0x8b1   : > { %15805 = vmatprep.subr.bf16.mxu1 %v18648_v39  ;;  %v15851_v24 = vpack.c.bf16 %v11886_v15, %v11885_v11 }
 0x8b3   : > { %14469 = vmatmul.mubr.msk.f32.vlgmr.msra.gmra.mrb[78].mxu1 %vm9373_vm12, %v10638_v13 }
 0x8b4   : > { %15807 = vmatpush3.bf16.msra.mxu1 %v15806_v28  ;;  %14479 = vmatprep.mubr.msk.f32.mxu1 %vm16090_vm8, %v18649_v18  ;;  %v9368_v28 = vld [vmem:[%s18634_s6] sm:$0x1] }
 0x8b5   : > { %15808 = vmatprep.subr.bf16.mxu1 %v18648_v39 }
 0x8b8   : > { %15810 = vmatpush3.bf16.msra.mxu1 %v15809_v42 }
 0x8b9   : > { %15811 = vmatprep.subr.bf16.mxu1 %v18648_v39 }
 0x8bb   : > { %14480 = vmatmul.mubr.msk.f32.vlgmr.msra.gmra.mrb[78].mxu1 %vm9373_vm12, %v10717_v56 }
 0x8bc   : > { %15813 = vmatpush3.bf16.msra.mxu1 %v15812_v26  ;;  %14490 = vmatprep.mubr.msk.f32.mxu1 %vm16090_vm8, %v18649_v18 }
 0x8bd   : > { %15814 = vmatprep.subr.bf16.mxu1 %v18648_v39 }
 0x8c0   : > { %15816 = vmatpush3.bf16.msra.mxu1 %v15815_v23 }
 0x8c1   : > { %15817 = vmatprep.subr.bf16.mxu1 %v18648_v39 }
 0x8c3   : > { %14491 = vmatmul.mubr.msk.f32.vlgmr.msra.gmra.mrb[78].mxu1 %vm9373_vm12, %v10796_v2 }
 0x8c4   : > { %15819 = vmatpush3.bf16.msra.mxu1 %v15818_v47  ;;  %14501 = vmatprep.mubr.msk.f32.mxu1 %vm16090_vm8, %v18649_v18 }
 0x8c5   : > { %15820 = vmatprep.subr.bf16.mxu1 %v18648_v39 }
 0x8c8   : > { %15822 = vmatpush3.bf16.msra.mxu1 %v15821_v7 }
 0x8c9   : > { %15823 = vmatprep.subr.bf16.mxu1 %v18648_v39 }
 0x8cb   : > { %14502 = vmatmul.mubr.msk.f32.vlgmr.msra.gmra.mrb[78].mxu1 %vm9373_vm12, %v10875_v3 }
 0x8cc   : > { %15825 = vmatpush3.bf16.msra.mxu1 %v15824_v10  ;;  %14512 = vmatprep.mubr.msk.f32.mxu1 %vm16090_vm8, %v18649_v18 }
 0x8cd   : > { %15826 = vmatprep.subr.bf16.mxu1 %v18648_v39 }
 0x8d0   : > { %15828 = vmatpush3.bf16.msra.mxu1 %v15827_v34 }
 0x8d1   : > { %15829 = vmatprep.subr.bf16.mxu1 %v18648_v39 }
 0x8f6   : > { %v9222_v37 = vpop.f32.mrb[72].mxu1 }
 0x8f7   : > { %v14269_v43 = vpop.f32.mrb[73].mxu1 }
 0x8fa   : > { %v9292_v51 = vpop.f32.mrb[74].mxu1 }
 0x8fb   : > { %v14276_v38 = vpop.f32.mrb[75].mxu1 }
 0x8fe   : > { %v9362_v9 = vpop.f32.mrb[76].mxu1 }
 0x8ff   : > { %v9366_v36 = vmax.f32 %v9292_v51, %v9362_v9  ;;  %v14283_v57 = vpop.f32.mrb[77].mxu1 }
 0x901   : > { %v9367_v17 = vmax.f32 %v9222_v37, %v9366_v36 }
 0x903   : > { %14513 = vmatmul.mubr.msk.f32.vlgmr.msra.gmra.mrb[78].mxu1 %vm9373_vm12, %v9367_v17  ;;  %v11033_v46 = vrot.slane %v9367_v17, 1  ;;  %v11112_v63 = vrot.slane %v9367_v17, 2  ;;  %v11191_v19 = vrot.slane %v9367_v17, 3  ;;  %v11270_v25 = vrot.slane %v9367_v17, 4 }
 0x904   : > { %15831 = vmatpush3.bf16.msra.mxu1 %v15830_v59  ;;  %14523 = vmatprep.mubr.msk.f32.mxu1 %vm16090_vm8, %v18649_v18 }
 0x905   : > { %15832 = vmatprep.subr.bf16.mxu1 %v18648_v39 }
 0x908   : > { %15834 = vmatpush3.bf16.msra.mxu1 %v15833_v6 }
 0x909   : > { %15835 = vmatprep.subr.bf16.mxu1 %v18648_v39 }
 0x90b   : > { %14524 = vmatmul.mubr.msk.f32.vlgmr.msra.gmra.mrb[78].mxu1 %vm9373_vm12, %v11033_v46 }
 0x90c   : > { %15837 = vmatpush3.bf16.msra.mxu1 %v15836_v16  ;;  %14534 = vmatprep.mubr.msk.f32.mxu1 %vm16090_vm8, %v18649_v18 }
 0x90d   : > { %15838 = vmatprep.subr.bf16.mxu1 %v18648_v39 }
 0x910   : > { %15840 = vmatpush3.bf16.msra.mxu1 %v15839_v31 }
 0x911   : > { %15841 = vmatprep.subr.bf16.mxu1 %v18648_v39 }
 0x913   : > { %14535 = vmatmul.mubr.msk.f32.vlgmr.msra.gmra.mrb[78].mxu1 %vm9373_vm12, %v11112_v63 }
 0x914   : > { %15843 = vmatpush3.bf16.msra.mxu1 %v15842_v41  ;;  %14545 = vmatprep.mubr.msk.f32.mxu1 %vm16090_vm8, %v18649_v18 }
 0x915   : > { %15844 = vmatprep.subr.bf16.mxu1 %v18648_v39 }
 0x918   : > { %15846 = vmatpush3.bf16.msra.mxu1 %v15845_v40 }
 0x919   : > { %15847 = vmatprep.subr.bf16.mxu1 %v18648_v39 }
 0x91b   : > { %14546 = vmatmul.mubr.msk.f32.vlgmr.msra.gmra.mrb[78].mxu1 %vm9373_vm12, %v11191_v19 }
 0x91c   : > { %15849 = vmatpush3.bf16.msra.mxu1 %v15848_v54  ;;  %14556 = vmatprep.mubr.msk.f32.mxu1 %vm16090_vm8, %v18649_v18 }
 0x91d   : > { %15850 = vmatprep.subr.bf16.mxu1 %v18648_v39 }
 0x920   : > { %15852 = vmatpush3.bf16.msra.mxu1 %v15851_v24 }
 0x923   : > { %14557 = vmatmul.mubr.msk.f32.vlgmr.msra.gmra.mrb[78].mxu1 %vm9373_vm12, %v11270_v25 }
 0x9f6   : > { %v11339_v13 = vpop.f32.mrb[78].mxu1 }
 0x9f7   : > { %v15855_v22 = vadd.f32 %v11339_v13, %v9368_v28  ;;  %v14558_v1 = vpop.f32.mrb[79].mxu1 }
 0x9f9   : > { %v11344_v42 = vsel %vm1582_vm4, %v15855_v22, -inf }
 0x9fa   : > { %11345 = vmax.xlane.f32.xlu0 %v11344_v42 }
 0xa87   : > { %v11346_v33 = vpop.xlane.xlu0 %11345 }
 0xa88   : > { %v11347_v18 = vsub.f32 %v15855_v22, %v11346_v33 }
 0xa8a   : > { %v11348_v44 = vmul.f32 1.442695, %v11347_v18 }
 0xa8c   : > { %16012 = vpow2.f32 %v11348_v44 }
 0xa96   : > { %v16013_v39 = vpop.eup %16012 }
 0xa97   : > { %v11350_v26 = vsel %vm1582_vm4, %v16013_v39, 0.0 }
 0xa98   : > { %11351 = vadd.xlane.f32.xlu0 %v11350_v26 }
 0xb25   : > { %v11352_v56 = vpop.xlane.xlu0 %11351 }
 0xb26   : > { %16014 = vrcp.f32 %v11352_v56 }
 0xb30   : > { %v16015_v32 = vpop.eup %16014 }
 0xb31   : > { %v11354_v45 = vmul.f32 %v16015_v32, %v16013_v39 }
 0xb33   : > { %11355 = vst [vmem:[%s324_s24] sm:$0x1] %v11354_v45 }
 0xb34   : > { %16037 = shalt.err (!%p16034_p3)
}
 0xb35   : > { %s16038_s21 = scalar_lea.hbm %s18586_s28, 16  ;;  %s16042_s24 = scalar_lea.hbm %s18637_s9, 32 }
 0xb36   : > { %p16039_p4 = scmp.ne.s32.totalorder %s18586_s28, %s16038_s21  ;;  %p16043_p9 = scmp.lt.u32.totalorder %s18586_s28, %s18637_s9 }
 0xb37   : > { %p16044_p10 = scmp.lt.u32.totalorder %s16042_s24, %s16038_s21  ;;  %p16046_p12 = scmp.lt.u32.totalorder %s16038_s21, %s18586_s28 }
 0xb38   : > { %p16040_p7 = pnand %p16039_p4, %p16181_p5 }
 0xb39   : > { %p16045_p11 = por %p16044_p10, %p16043_p9 }
 0xb3a   : > { %p16041_p8 = pneg %p16040_p7 }
 0xb3b   : > { %p16047_p13 = por %p16046_p12, %p16045_p11 }
 0xb3d   : > { %p16048_p0 = pnand %p16047_p13, %p16041_p8 }
 0xb3f   : > { %16051 = shalt.err (!%p16048_p0)
}
 0xb40   : > { %15969 = dma.vmem_to_hbm [thread:$0]  (%p16181_p5), %s18588_s25, 16, %s18586_s28, %s11357_s29  }
 0xb41 PF: > { %p15975_p1 = scmp.ge.s32.totalorder %s16086_s12, 2  ;;  %s11381_s14 = sand.u32 1, %s16074_s30  }
 0xb42   : > { %s11382_s13 = scalar_lea.sflag [#allocation5], %s11381_s14 }
 0xb43   : > { %p15972_p2 = pnand %p15975_p1, %p16185_p6 }
 0xb45   : > { %16069 = dma.done.wait (!%p15972_p2), %s11382_s13, 16  }
 0xb46   : > { %16071 = vsyncadd (!%p15972_p2), %s11382_s13, 4294967280  ;;  %p19_p3 = scmp.ge.s32.totalorder %s16168_s15, 4   ;;  %s18650_s30 = smov %s16078_s10 }
 0xb47   : > { %s18651_s10 = smov %s16082_s11  ;;  %s18652_s11 = smov %s16179_s18 }
 0xb48   : > { %s18653_s12 = smov %s16168_s15  ;;  %21 = sbr.rel (!%p19_p3) target bundleno = 3 (0x3), region = 133 }
 0xb4f   :  { %11386 = vsyncpa [#allocation5], 1 }
 0xb50   :  { %11388 = vsyncpa [#allocation5 + $0x1], 1 }

</bundles_post_ra>
